<compile_context>
chip_gen: v5e
topology: v5e:2x2
jax: 0.10.0
libtpu: 0.0.40
codegen_flags: <defaults>
</compile_context>

<pallas_src>
import functools

import jax
import jax.numpy as jnp
from jax.experimental import pallas as pl
from jax.experimental.pallas import tpu as pltpu


def _se_kernel(x_ref, w1_ref, w2_ref, o_ref, *, inv_hw):
    """Fused SE forward for a batch tile.

    x_ref : (Bt, C, HWp)  input (spatial folded onto the lane axis, maybe 0-padded)
    w1_ref: (Cr, C)       fc1.weight (native layout)
    w2_ref: (C, Cr)       fc2.weight (native layout)
    o_ref : (Bt, C, HWp)
    """
    x = x_ref[...]
    xf = x.astype(jnp.float32)

    # Squeeze: global average pool over spatial (lane reduce), f32 accumulation.
    pooled = jnp.sum(xf, axis=-1) * inv_hw                          # (Bt, C)

    # Excite fc1: h[b, r] = sum_c pooled[b, c] * w1[r, c]
    #   -> VPU broadcast-mul + XLU lane reduce, weight in native (Cr, C) layout.
    w1 = w1_ref[...].astype(jnp.float32)                            # (Cr, C)
    h = jnp.sum(pooled[:, None, :] * w1[None, :, :], axis=-1)       # (Bt, Cr)
    h = jnp.maximum(h, 0.0)                                         # ReLU

    # Excite fc2: s[b, c] = sum_r h[b, r] * w2[c, r]
    w2 = w2_ref[...].astype(jnp.float32)                            # (C, Cr)
    s = jnp.sum(h[:, None, :] * w2[None, :, :], axis=-1)            # (Bt, C)
    s = jax.nn.sigmoid(s)                                           # EUP

    # Re-scale: per-channel scale broadcast across the dense lane (spatial) axis.
    o_ref[...] = (xf * s[:, :, None]).astype(o_ref.dtype)


def _vmem_capacity_bytes():
    try:
        cap = pltpu.get_tpu_info().vmem_capacity_bytes
        if cap and cap > 0:
            return int(cap)
    except Exception:
        pass
    return 64 << 20  # conservative fallback (v7x-sized)


def se_forward(x_nchw, fc1_weight, fc2_weight):
    """SEModule.forward.

    x_nchw     : (B, C, H, W)   NCHW input (f32 or bf16)
    fc1_weight : (Cr, C)        nn.Linear(C, Cr, bias=False).weight
    fc2_weight : (C, Cr)        nn.Linear(Cr, C, bias=False).weight
    returns    : (B, C, H, W) == x * sigmoid(fc2(relu(fc1(avgpool(x)))))
    """
    B, C, H, W = x_nchw.shape
    Cr = fc1_weight.shape[0]
    assert fc1_weight.shape == (Cr, C)
    assert fc2_weight.shape == (C, Cr)

    HW = H * W
    # Lane-density guard: keep the last (lane) axis a multiple of 128.
    HWp = max(128, ((HW + 127) // 128) * 128)
    x2 = x_nchw.reshape(B, C, HW)            # logical reshape of contiguous NCHW
    if HWp != HW:
        x2 = jnp.pad(x2, ((0, 0), (0, 0), (0, HWp - HW)))  # zeros don't affect the pooled sum

    itemsize = x2.dtype.itemsize
    bytes_per_batch = C * HWp * itemsize     # one batch element's in (== out) slab

    # Generation-aware VMEM budgeting.
    vmem_cap = _vmem_capacity_bytes()
    vmem_limit = max(8 << 20, int(0.75 * vmem_cap))
    slab_budget = int(0.8 * vmem_limit)      # headroom for weights / compiler scratch
    # Double-buffered input + output slabs => ~4x per-step footprint.
    bt_cap = max(1, slab_budget // (4 * bytes_per_batch))
    # Amortize the ~0.35 us/step fixed overhead: aim for >= ~2 MiB input per step.
    bt_want = max(1, -(-(2 << 20) // bytes_per_batch))
    bt = int(min(B, bt_cap, bt_want))
    # Largest divisor of B that is <= bt (exact grid, no remainder masking).
    while B % bt:
        bt -= 1

    kernel = functools.partial(_se_kernel, inv_hw=1.0 / HW)

    out = pl.pallas_call(
        kernel,
        grid=(B // bt,),
        in_specs=[
            pl.BlockSpec((bt, C, HWp), lambda b: (b, 0, 0)),
            pl.BlockSpec((Cr, C), lambda b: (0, 0)),
            pl.BlockSpec((C, Cr), lambda b: (0, 0)),
        ],
        out_specs=pl.BlockSpec((bt, C, HWp), lambda b: (b, 0, 0)),
        out_shape=jax.ShapeDtypeStruct((B, C, HWp), x2.dtype),
        compiler_params=pltpu.CompilerParams(
            # batch axis independent -> both TensorCores on v7x; harmless no-op on v5e/v6e
            dimension_semantics=("parallel",),
            vmem_limit_bytes=vmem_limit,
        ),
    )(x2, fc1_weight, fc2_weight)

    if HWp != HW:
        out = out[:, :, :HW]
    return out.reshape(B, C, H, W)


def se_reference(x, fc1_weight, fc2_weight):
    """Pure-JAX reference matching the PyTorch SEModule forward."""
    y = jnp.mean(x.astype(jnp.float32), axis=(2, 3))       # (B, C) global avg pool
    y = jnp.maximum(y @ fc1_weight.T.astype(jnp.float32), 0.0)
    y = jax.nn.sigmoid(y @ fc2_weight.T.astype(jnp.float32))
    return x.astype(jnp.float32) * y[:, :, None, None]


if __name__ == "__main__":
    key = jax.random.PRNGKey(0)
    kx, k1, k2 = jax.random.split(key, 3)

    B, C, H, W = 2, 64, 16, 16           # in_channel == out_channel == 64
    reduction = 4
    Cr = C // reduction                  # 16

    x = jax.random.normal(kx, (B, C, H, W), jnp.float32)
    fc1_w = 0.1 * jax.random.normal(k1, (Cr, C), jnp.float32)  # Linear(C, Cr, bias=False).weight
    fc2_w = 0.1 * jax.random.normal(k2, (C, Cr), jnp.float32)  # Linear(Cr, C, bias=False).weight

    fwd = jax.jit(se_forward)

    # f32 path
    out = fwd(x, fc1_w, fc2_w)
    jax.block_until_ready(out)
    ref = se_reference(x, fc1_w, fc2_w)
    assert out.shape == (B, C, H, W)
    assert jnp.allclose(out, ref, atol=1e-4, rtol=1e-4), float(jnp.max(jnp.abs(out - ref)))

    # bf16 I/O path (halves HBM traffic; math still accumulates in f32 in-kernel)
    x_bf16 = x.astype(jnp.bfloat16)
    out_bf16 = fwd(x_bf16, fc1_w, fc2_w)
    jax.block_until_ready(out_bf16)
    ref_bf16 = se_reference(x_bf16, fc1_w, fc2_w)
    assert out_bf16.dtype == jnp.bfloat16
    assert jnp.allclose(out_bf16.astype(jnp.float32), ref_bf16, atol=5e-2, rtol=5e-2)

    print("KERNEL_OK")
</pallas_src>

<mosaic_0001>
module attributes {stable_mosaic.version = 11 : i64} {
  func.func @_se_kernel(%arg0: i32, %arg1: memref<2x64x256xf32, #tpu.memory_space<vmem>>, %arg2: memref<16x64xf32, #tpu.memory_space<vmem>>, %arg3: memref<64x16xf32, #tpu.memory_space<vmem>>, %arg4: memref<2x64x256xf32, #tpu.memory_space<vmem>>) attributes {dimension_semantics = [#tpu.dimension_semantics<parallel>], iteration_bounds = array<i64: 1>, scalar_prefetch = 0 : i64, scratch_operands = 0 : i64, tpu.core_type = #tpu.core_type<tc>, window_params = [{transform_indices = @transform_0, window_bounds = array<i64: 2, 64, 256>}, {pipeline_mode = #tpu.pipeline_mode<synchronous>, transform_indices = @transform_1, window_bounds = array<i64: 16, 64>}, {pipeline_mode = #tpu.pipeline_mode<synchronous>, transform_indices = @transform_2, window_bounds = array<i64: 64, 16>}, {transform_indices = @transform_3, window_bounds = array<i64: 2, 64, 256>}]} {
    %c0 = arith.constant 0 : index
    %c0_0 = arith.constant 0 : index
    %c0_1 = arith.constant 0 : index
    %0 = vector.load %arg1[%c0, %c0_0, %c0_1] : memref<2x64x256xf32, #tpu.memory_space<vmem>>, vector<2x64x256xf32>
    %cst = arith.constant dense<0.000000e+00> : vector<2x64xf32>
    %1 = vector.multi_reduction <add>, %0, %cst [2] : vector<2x64x256xf32> to vector<2x64xf32>
    %cst_2 = arith.constant 3.906250e-03 : f32
    %2 = vector.broadcast %cst_2 : f32 to vector<2x64xf32>
    %3 = arith.mulf %1, %2 : vector<2x64xf32>
    %c0_3 = arith.constant 0 : index
    %c0_4 = arith.constant 0 : index
    %4 = vector.load %arg2[%c0_3, %c0_4] : memref<16x64xf32, #tpu.memory_space<vmem>>, vector<16x64xf32>
    %5 = vector.shape_cast %3 : vector<2x64xf32> to vector<2x1x64xf32>
    %6 = vector.shape_cast %4 : vector<16x64xf32> to vector<1x16x64xf32>
    %7 = vector.broadcast %5 : vector<2x1x64xf32> to vector<2x16x64xf32>
    %8 = vector.broadcast %6 : vector<1x16x64xf32> to vector<2x16x64xf32>
    %9 = arith.mulf %7, %8 : vector<2x16x64xf32>
    %cst_5 = arith.constant dense<0.000000e+00> : vector<2x16xf32>
    %10 = vector.multi_reduction <add>, %9, %cst_5 [2] : vector<2x16x64xf32> to vector<2x16xf32>
    %cst_6 = arith.constant 0.000000e+00 : f32
    %11 = vector.broadcast %cst_6 : f32 to vector<2x16xf32>
    %12 = arith.maximumf %10, %11 : vector<2x16xf32>
    %c0_7 = arith.constant 0 : index
    %c0_8 = arith.constant 0 : index
    %13 = vector.load %arg3[%c0_7, %c0_8] : memref<64x16xf32, #tpu.memory_space<vmem>>, vector<64x16xf32>
    %14 = vector.shape_cast %12 : vector<2x16xf32> to vector<2x1x16xf32>
    %15 = vector.shape_cast %13 : vector<64x16xf32> to vector<1x64x16xf32>
    %16 = vector.broadcast %14 : vector<2x1x16xf32> to vector<2x64x16xf32>
    %17 = vector.broadcast %15 : vector<1x64x16xf32> to vector<2x64x16xf32>
    %18 = arith.mulf %16, %17 : vector<2x64x16xf32>
    %cst_9 = arith.constant dense<0.000000e+00> : vector<2x64xf32>
    %19 = vector.multi_reduction <add>, %18, %cst_9 [2] : vector<2x64x16xf32> to vector<2x64xf32>
    %20 = arith.negf %19 : vector<2x64xf32>
    %21 = math.exp %20 : vector<2x64xf32>
    %cst_10 = arith.constant 1.000000e+00 : f32
    %22 = vector.broadcast %cst_10 : f32 to vector<2x64xf32>
    %23 = arith.addf %22, %21 : vector<2x64xf32>
    %24 = arith.divf %22, %23 : vector<2x64xf32>
    %25 = vector.shape_cast %24 : vector<2x64xf32> to vector<2x64x1xf32>
    %26 = vector.broadcast %25 : vector<2x64x1xf32> to vector<2x64x256xf32>
    %27 = arith.mulf %0, %26 : vector<2x64x256xf32>
    %c0_11 = arith.constant 0 : index
    %c0_12 = arith.constant 0 : index
    %c0_13 = arith.constant 0 : index
    %28 = vector.load %arg4[%c0_11, %c0_12, %c0_13] : memref<2x64x256xf32, #tpu.memory_space<vmem>>, vector<2x64x256xf32>
    tpu.vector_store %arg4[%c0_11, %c0_12, %c0_13], %27 {strides = array<i32>} : memref<2x64x256xf32, #tpu.memory_space<vmem>>, vector<2x64x256xf32>,
    return
  }
  func.func @transform_0(%arg0: i32) -> (i32, i32, i32) {
    %c0_i32 = arith.constant 0 : i32
    %c0_i32_0 = arith.constant 0 : i32
    %c0_i32_1 = arith.constant 0 : i32
    return %arg0, %c0_i32, %c0_i32_0 : i32, i32, i32
  }
  func.func @transform_1(%arg0: i32) -> (i32, i32) {
    %c0_i32 = arith.constant 0 : i32
    %c0_i32_0 = arith.constant 0 : i32
    %c0_i32_1 = arith.constant 0 : i32
    return %c0_i32, %c0_i32_0 : i32, i32
  }
  func.func @transform_2(%arg0: i32) -> (i32, i32) {
    %c0_i32 = arith.constant 0 : i32
    %c0_i32_0 = arith.constant 0 : i32
    %c0_i32_1 = arith.constant 0 : i32
    return %c0_i32, %c0_i32_0 : i32, i32
  }
  func.func @transform_3(%arg0: i32) -> (i32, i32, i32) {
    %c0_i32 = arith.constant 0 : i32
    %c0_i32_0 = arith.constant 0 : i32
    %c0_i32_1 = arith.constant 0 : i32
    return %arg0, %c0_i32, %c0_i32_0 : i32, i32, i32
  }
}

</mosaic_0001>

<bundles_post_ra>
// kernel: se_forward.1
= control target key start
LH: loop header
LB: loop body
LE: loop exit
PB: predicated region body
PF: predicated region fallthrough
CT: control target
= control target key end

     0   :  { %v11537_v21 = vlaneseq  ;;  %vm2311_vm0 = vcmask 130112   ;;  %vm2315_vm1 = vcmask 195712   ;;  %vm2319_vm2 = vcmask 261312   ;;  %s11533_s0 = inlined_call_operand.vmem [shape: f32[2,64,256], index: 0, kind: input, shape index: {}]   ;;  %s11534_s1 = inlined_call_operand.vmem [shape: f32[16,64], index: 1, kind: input, shape index: {}]   ;;  %s11535_s2 = inlined_call_operand.vmem [shape: f32[64,16], index: 2, kind: input, shape index: {}]   ;;  %s11536_s3 = inlined_call_operand.vmem [shape: f32[2,64,256], index: 3, kind: output, shape index: {}]  }
   0x1   :  { %v22_v0 = vld [vmem:[%s11533_s0 + $0x40] sm:$0xff]  ;;  %v23_v1 = vld [vmem:[%s11533_s0 + $0x48] sm:$0xff]  ;;  %v24_v9 = vld [vmem:[%s11533_s0 + $0x50] sm:$0xff]  ;;  %vm2323_vm3 = vcmask 326912   ;;  %vm2327_vm4 = vcmask 392512   ;;  %vm2331_vm5 = vcmask 458112  }
   0x2   :  { %v18_v2 = vld [vmem:[%s11533_s0 + $0x20] sm:$0xff]  ;;  %v58_v3 = vadd.f32 %v23_v1, %v22_v0  ;;  %v19_v4 = vld [vmem:[%s11533_s0 + $0x28] sm:$0xff]  ;;  %v25_v10 = vld [vmem:[%s11533_s0 + $0x58] sm:$0xff]  ;;  %v6412_v25 = vshrl.u32 %v11537_v21, 7  ;;  %vm2335_vm6 = vcmask 523712   ;;  %vm2802_vm7 = vcmask 1041409  }
   0x3   :  { %v14_v5 = vld [vmem:[%s11533_s0] sm:$0xff]  ;;  %v15_v6 = vld [vmem:[%s11533_s0 + $0x8] sm:$0xff]  ;;  %v52_v7 = vadd.f32 %v19_v4, %v18_v2  ;;  %v20_v11 = vld [vmem:[%s11533_s0 + $0x30] sm:$0xff]  ;;  %v61_v15 = vadd.f32 %v25_v10, %v24_v9  ;;  %vm2804_vm8 = vcmask 1042434   ;;  %vm2806_vm9 = vcmask 1043459  }
   0x4   :  { %v46_v8 = vadd.f32 %v15_v6, %v14_v5  ;;  %59 = vadd.xlane.f32.xlu2 %v58_v3  ;;  %v21_v12 = vld [vmem:[%s11533_s0 + $0x38] sm:$0xff]  ;;  %v16_v13 = vld [vmem:[%s11533_s0 + $0x10] sm:$0xff]  ;;  %v30_v18 = vld [vmem:[%s11533_s0 + $0x80] sm:$0xff]  ;;  %11814 = vst [vmem:[#allocation2_spill] sm:$0xff] %v6412_v25  ;;  %v6415_v29 = vadd.s32 8, %v6412_v25  ;;  %6064 = vset.pattern.permute.xlu1 %v6412_v25  ;;  %v6474_v54 = vadd.s32 24, %v6412_v25 }
   0x5   :  { %53 = vadd.xlane.f32.xlu1 %v52_v7  ;;  %v17_v14 = vld [vmem:[%s11533_s0 + $0x18] sm:$0xff]  ;;  %v55_v16 = vadd.f32 %v21_v12, %v20_v11  ;;  %v31_v19 = vld [vmem:[%s11533_s0 + $0x88] sm:$0xff]  ;;  %v28_v20 = vld [vmem:[%s11533_s0 + $0x70] sm:$0xff]  ;;  %v6477_v55 = vadd.s32 32, %v6412_v25  ;;  %v6496_v59 = vadd.s32 40, %v6412_v25  ;;  %v6500_v60 = vadd.s32 48, %v6412_v25 }
   0x6   :  { %47 = vadd.xlane.f32.xlu0 %v46_v8  ;;  %v49_v17 = vadd.f32 %v17_v14, %v16_v13  ;;  %v29_v22 = vld [vmem:[%s11533_s0 + $0x78] sm:$0xff]  ;;  %v26_v23 = vld [vmem:[%s11533_s0 + $0x60] sm:$0xff]  ;;  %v27_v24 = vld [vmem:[%s11533_s0 + $0x68] sm:$0xff]  ;;  %v70_v26 = vadd.f32 %v31_v19, %v30_v18  ;;  %11815 = vst [vmem:[#allocation3_spill] sm:$0xff] %v6415_v29  ;;  %6065 = vset.pattern.permute.xlu2 %v6415_v29  ;;  %v6508_v61 = vadd.s32 56, %v6412_v25  ;;  %v6515_v62 = vadd.s32 16, %v6412_v25 }
   0x7   :  { %v67_v27 = vadd.f32 %v29_v22, %v28_v20  ;;  %v64_v28 = vadd.f32 %v27_v24, %v26_v23  ;;  %6072 = vset.pattern.permute.xlu0 %v6415_v29  ;;  %v36_v30 = vld [vmem:[%s11533_s0 + $0xb0] sm:$0xff]  ;;  %v37_v31 = vld [vmem:[%s11533_s0 + $0xb8] sm:$0xff]  ;;  %v34_v32 = vld [vmem:[%s11533_s0 + $0xa0] sm:$0xff]  ;;  %vm2808_vm10 = vcmask 1044484   ;;  %vm2810_vm11 = vcmask 1045509  }
   0x8   :  { %v35_v33 = vld [vmem:[%s11533_s0 + $0xa8] sm:$0xff]  ;;  %v32_v34 = vld [vmem:[%s11533_s0 + $0x90] sm:$0xff]  ;;  %v33_v35 = vld [vmem:[%s11533_s0 + $0x98] sm:$0xff]  ;;  %v79_v36 = vadd.f32 %v37_v31, %v36_v30  ;;  %vm2812_vm12 = vcmask 1046534   ;;  %vm2814_vm13 = vcmask 1047559   ;;  %vm2841_vm14 = vcmask 523264  }
   0x9   :  { %v76_v37 = vadd.f32 %v35_v33, %v34_v32  ;;  %v73_v38 = vadd.f32 %v33_v35, %v32_v34  ;;  %v42_v39 = vld [vmem:[%s11533_s0 + $0xe0] sm:$0xff]  ;;  %v43_v40 = vld [vmem:[%s11533_s0 + $0xe8] sm:$0xff]  ;;  %v40_v41 = vld [vmem:[%s11533_s0 + $0xd0] sm:$0xff]  ;;  %vm5626_vm15 = vcmask 130048  }
   0xa   :  { %v41_v42 = vld [vmem:[%s11533_s0 + $0xd8] sm:$0xff]  ;;  %v38_v43 = vld [vmem:[%s11533_s0 + $0xc0] sm:$0xff]  ;;  %v39_v44 = vld [vmem:[%s11533_s0 + $0xc8] sm:$0xff]  ;;  %v88_v45 = vadd.f32 %v43_v40, %v42_v39 }
   0xb   :  { %v85_v46 = vadd.f32 %v41_v42, %v40_v41  ;;  %v82_v47 = vadd.f32 %v39_v44, %v38_v43  ;;  %v44_v48 = vld [vmem:[%s11533_s0 + $0xf0] sm:$0xff]  ;;  %v45_v49 = vld [vmem:[%s11533_s0 + $0xf8] sm:$0xff]  ;;  %v6465_v51 = vld [vmem:[%s11534_s1] sm:$0xff] }
   0xc   :  { %62 = vadd.xlane.f32.xlu2 %v61_v15  ;;  %v91_v50 = vadd.f32 %v45_v49, %v44_v48  ;;  %v6468_v52 = vperm.slane %v6465_v51, 0  ;;  %v163_v53 = vperm.slane %v6465_v51, 1  ;;  %v6481_v56 = vperm.slane %v6465_v51, 6  ;;  %v6488_v57 = vld [vmem:[%s11534_s1 + $0x8] sm:$0xff] }
   0xd   :  { %56 = vadd.xlane.f32.xlu1 %v55_v16  ;;  %v6492_v58 = vperm.slane %v6488_v57, 3  ;;  %v212_v63 = vperm.slane %v6465_v51, 2  ;;  %v6524_v0 = vperm.slane %v6465_v51, 7  ;;  %v6529_v1 = vperm.slane %v6488_v57, 4 }
   0xe   :  { %50 = vadd.xlane.f32.xlu0 %v49_v17  ;;  %v261_v2 = vperm.slane %v6465_v51, 3  ;;  %v6538_v3 = vperm.slane %v6488_v57, 0  ;;  %v6545_v5 = vperm.slane %v6488_v57, 5  ;;  %v310_v11 = vperm.slane %v6465_v51, 4 }
   0xf   :  { %v6577_v14 = vperm.slane %v6488_v57, 1  ;;  %v6588_v18 = vperm.slane %v6488_v57, 6  ;;  %v6643_v41 = vperm.slane %v6488_v57, 2  ;;  %v6652_v44 = vperm.slane %v6488_v57, 7 }
  0x14   :  { %71 = vadd.xlane.f32.xlu2 %v70_v26 }
  0x15   :  { %68 = vadd.xlane.f32.xlu1 %v67_v27 }
  0x16   :  { %65 = vadd.xlane.f32.xlu0 %v64_v28 }
  0x1c   :  { %80 = vadd.xlane.f32.xlu2 %v79_v36 }
  0x1d   :  { %77 = vadd.xlane.f32.xlu1 %v76_v37  ;;  %v6632_v37 = vperm.slane %v6465_v51, 5  ;;  %v11538_v51 = vmov 0  }
  0x1e   :  { %74 = vadd.xlane.f32.xlu0 %v73_v38 }
  0x24   :  { %89 = vadd.xlane.f32.xlu2 %v88_v45 }
  0x25   :  { %86 = vadd.xlane.f32.xlu1 %v85_v46 }
  0x26   :  { %83 = vadd.xlane.f32.xlu0 %v82_v47 }
  0x2e   :  { %92 = vadd.xlane.f32.xlu0 %v91_v50 }
  0x3c   :  { %125 = vperm.xlu2 %6065, %v6468_v52  }
  0x3e   :  { %119 = vperm.xlu1 %6064, %v6468_v52  }
  0x42   :  { %174 = vperm.xlu0 %6072, %v163_v53  }
  0x44   :  { %6066 = vset.pattern.permute.xlu2 %v6474_v54 }
  0x46   :  { %6067 = vset.pattern.permute.xlu1 %v6477_v55 }
  0x4a   :  { %419 = vperm.xlu0 %6072, %v6481_v56  }
  0x4c   :  { %137 = vperm.xlu2 %6066, %v6468_v52  }
  0x4e   :  { %143 = vperm.xlu1 %6067, %v6468_v52  }
  0x52   :  { %664 = vperm.xlu0 %6072, %v6492_v58  }
  0x54   :  { %6068 = vset.pattern.permute.xlu2 %v6496_v59 }
  0x56   :  { %6069 = vset.pattern.permute.xlu1 %v6500_v60 }
  0x5a   :  { %6137 = vset.pattern.permute.xlu0 %v6500_v60 }
  0x5c   :  { %149 = vperm.xlu2 %6068, %v6468_v52  }
  0x5e   :  { %155 = vperm.xlu1 %6069, %v6468_v52  }
  0x62   :  { %204 = vperm.xlu0 %6137, %v163_v53  }
  0x64   :  { %6070 = vset.pattern.permute.xlu2 %v6508_v61 }
  0x66   :  { %6071 = vset.pattern.permute.xlu1 %v6412_v25 }
  0x6a   :  { %449 = vperm.xlu0 %6137, %v6481_v56  }
  0x6c   :  { %161 = vperm.xlu2 %6070, %v6468_v52  }
  0x6e   :  { %168 = vperm.xlu1 %6071, %v163_v53  }
  0x72   :  { %694 = vperm.xlu0 %6137, %v6492_v58  }
  0x74   :  { %6073 = vset.pattern.permute.xlu2 %v6515_v62 }
  0x76   :  { %6074 = vset.pattern.permute.xlu1 %v6474_v54 }
  0x77   :  { %v6571_v12 = vpop.xlane.xlu2 %59 }
  0x78   :  { %v6585_v17 = vpop.xlane.xlu1 %53 }
  0x79   :  { %v6542_v4 = vpop.xlane.xlu0 %47 }
  0x7a   :  { %6142 = vset.pattern.permute.xlu0 %v6474_v54 }
  0x7c   :  { %180 = vperm.xlu2 %6073, %v163_v53  }
  0x7e   :  { %186 = vperm.xlu1 %6074, %v163_v53  }
  0x7f   :  { %v6579_v15 = vpop.xlane.xlu2 %62 }
  0x80   :  { %v6596_v22 = vpop.xlane.xlu1 %56 }
  0x81   :  { %v6550_v6 = vpop.xlane.xlu0 %50 }
  0x82   :  { %235 = vperm.xlu0 %6142, %v212_v63   ;;  %v6661_v47 = vmul.f32 0.00390625, %v6550_v6 }
  0x84   :  { %6075 = vset.pattern.permute.xlu2 %v6477_v55 }
  0x86   :  { %6076 = vset.pattern.permute.xlu1 %v6496_v59 }
  0x87   :  { %v6592_v19 = vpop.xlane.xlu2 %71 }
  0x88   :  { %11820 = vst [vmem:[#allocation8_spill] sm:$0xff] %v6592_v19  ;;  %v6605_v26 = vpop.xlane.xlu1 %68 }
  0x89   :  { %v6553_v7 = vpop.xlane.xlu0 %65 }
  0x8a   :  { %480 = vperm.xlu0 %6142, %v6524_v0  }
  0x8c   :  { %192 = vperm.xlu2 %6075, %v163_v53  }
  0x8e   :  { %198 = vperm.xlu1 %6076, %v163_v53  }
  0x8f   :  { %v6599_v23 = vpop.xlane.xlu2 %80 }
  0x90   :  { %11822 = vst [vmem:[#allocation10_spill] sm:$0xff] %v6599_v23  ;;  %v6612_v30 = vpop.xlane.xlu1 %77 }
  0x91   :  { %v6558_v8 = vpop.xlane.xlu0 %74  ;;  %11826 = vst [vmem:[#allocation14_spill] sm:$0xff] %v6612_v30 }
  0x92   :  { %725 = vperm.xlu0 %6142, %v6529_v1  }
  0x94   :  { %6077 = vset.pattern.permute.xlu2 %v6508_v61 }
  0x96   :  { %6078 = vset.pattern.permute.xlu1 %v6412_v25 }
  0x97   :  { %v6607_v27 = vpop.xlane.xlu2 %89 }
  0x98   :  { %11824 = vst [vmem:[#allocation12_spill] sm:$0xff] %v6607_v27  ;;  %v6621_v33 = vpop.xlane.xlu1 %86 }
  0x99   :  { %v6562_v9 = vpop.xlane.xlu0 %83  ;;  %11828 = vst [vmem:[#allocation16_spill] sm:$0xff] %v6621_v33 }
  0x9a   :  { %6147 = vset.pattern.permute.xlu0 %v6412_v25  ;;  %11816 = vst [vmem:[#allocation4_spill] sm:$0xff] %v6562_v9 }
  0x9c   :  { %210 = vperm.xlu2 %6077, %v163_v53   ;;  %v6675_v53 = vmul.f32 0.00390625, %v6553_v7 }
  0x9e   :  { %217 = vperm.xlu1 %6078, %v212_v63  }
  0x9f   :  { %v6616_v31 = vpop.permute.xlu2 %125 }
  0xa0   :  { %v1027_v50 = vmul.f32 %v6616_v31, %v6661_v47 }
  0xa1   :  { %v6566_v10 = vpop.xlane.xlu0 %92 }
  0xa2   :  { %266 = vperm.xlu0 %6147, %v261_v2   ;;  %11817 = vst [vmem:[#allocation5_spill] sm:$0xff] %v6566_v10 }
  0xa4   :  { %6079 = vset.pattern.permute.xlu2 %v6415_v29 }
  0xa6   :  { %6080 = vset.pattern.permute.xlu1 %v6515_v62 }
  0xa7   :  { %v6624_v34 = vpop.permute.xlu2 %137 }
  0xaa   :  { %511 = vperm.xlu0 %6147, %v6538_v3  }
  0xac   :  { %223 = vperm.xlu2 %6079, %v212_v63  }
  0xae   :  { %229 = vperm.xlu1 %6080, %v212_v63  }
  0xb0   :  { %v6629_v36 = vpop.permute.xlu1 %119 }
  0xb2   :  { %756 = vperm.xlu0 %6147, %v6545_v5  }
  0xb4   :  { %6081 = vset.pattern.permute.xlu2 %v6477_v55  ;;  %v6574_v13 = vpop.permute.xlu0 %174 }
  0xb5   :  { %11818 = vst [vmem:[#allocation6_spill] sm:$0xff] %v6574_v13  ;;  %v1035_v7 = vmul.f32 %v6574_v13, %v6661_v47 }
  0xb6   :  { %6082 = vset.pattern.permute.xlu1 %v6496_v59  ;;  %v6636_v38 = vpop.permute.xlu2 %149 }
  0xb7   :  { %11829 = vst [vmem:[#allocation17_spill] sm:$0xff] %v6636_v38 }
  0xba   :  { %6152 = vset.pattern.permute.xlu0 %v6496_v59 }
  0xbc   :  { %241 = vperm.xlu2 %6081, %v212_v63   ;;  %v6582_v16 = vpop.permute.xlu0 %419 }
  0xbd   :  { %11819 = vst [vmem:[#allocation7_spill] sm:$0xff] %v6582_v16 }
  0xbe   :  { %247 = vperm.xlu1 %6082, %v212_v63  }
  0xc0   :  { %v6638_v39 = vpop.permute.xlu1 %143 }
  0xc2   :  { %296 = vperm.xlu0 %6152, %v261_v2  }
  0xc4   :  { %6083 = vset.pattern.permute.xlu2 %v6500_v60  ;;  %v6594_v20 = vpop.permute.xlu0 %664 }
  0xc5   :  { %11821 = vst [vmem:[#allocation9_spill] sm:$0xff] %v6594_v20 }
  0xc6   :  { %6084 = vset.pattern.permute.xlu1 %v6508_v61  ;;  %v6646_v42 = vpop.permute.xlu2 %161 }
  0xca   :  { %541 = vperm.xlu0 %6152, %v6538_v3  }
  0xcc   :  { %253 = vperm.xlu2 %6083, %v212_v63  }
  0xce   :  { %259 = vperm.xlu1 %6084, %v212_v63  }
  0xd0   :  { %v6649_v43 = vpop.permute.xlu1 %155 }
  0xd1   :  { %11831 = vst [vmem:[#allocation19_spill] sm:$0xff] %v6649_v43  ;;  %v1032_v63 = vmul.f32 %v6649_v43, %v6675_v53 }
  0xd2   :  { %786 = vperm.xlu0 %6152, %v6545_v5  }
  0xd4   :  { %6085 = vset.pattern.permute.xlu2 %v6415_v29  ;;  %v6603_v24 = vpop.permute.xlu0 %204 }
  0xd5   :  { %11823 = vst [vmem:[#allocation11_spill] sm:$0xff] %v6603_v24 }
  0xd6   :  { %6086 = vset.pattern.permute.xlu1 %v6515_v62  ;;  %v6658_v46 = vpop.permute.xlu2 %180 }
  0xda   :  { %6157 = vset.pattern.permute.xlu0 %v6515_v62 }
  0xdc   :  { %272 = vperm.xlu2 %6085, %v261_v2   ;;  %v6609_v28 = vpop.permute.xlu0 %449 }
  0xdd   :  { %11825 = vst [vmem:[#allocation13_spill] sm:$0xff] %v6609_v28 }
  0xde   :  { %278 = vperm.xlu1 %6086, %v261_v2  }
  0xe0   :  { %v6664_v48 = vpop.permute.xlu1 %168 }
  0xe1   :  { %11833 = vst [vmem:[#allocation21_spill] sm:$0xff] %v6664_v48 }
  0xe2   :  { %131 = vperm.xlu0 %6157, %v6468_v52  }
  0xe4   :  { %6087 = vset.pattern.permute.xlu2 %v6474_v54  ;;  %v6619_v32 = vpop.permute.xlu0 %694 }
  0xe5   :  { %11827 = vst [vmem:[#allocation15_spill] sm:$0xff] %v6619_v32 }
  0xe6   :  { %6088 = vset.pattern.permute.xlu1 %v6477_v55  ;;  %v6672_v52 = vpop.permute.xlu2 %192 }
  0xe7   :  { %11835 = vst [vmem:[#allocation23_spill] sm:$0xff] %v6672_v52 }
  0xea   :  { %327 = vperm.xlu0 %6157, %v310_v11  }
  0xec   :  { %284 = vperm.xlu2 %6087, %v261_v2  }
  0xee   :  { %290 = vperm.xlu1 %6088, %v261_v2  }
  0xf0   :  { %v6678_v57 = vpop.permute.xlu1 %186 }
  0xf1   :  { %11836 = vst [vmem:[#allocation24_spill] sm:$0xff] %v6678_v57 }
  0xf2   :  { %572 = vperm.xlu0 %6157, %v6577_v14  }
  0xf4   :  { %6089 = vset.pattern.permute.xlu2 %v6500_v60  ;;  %v6626_v35 = vpop.permute.xlu0 %235 }
  0xf6   :  { %6090 = vset.pattern.permute.xlu1 %v6508_v61  ;;  %v6685_v6 = vpop.permute.xlu2 %210 }
  0xf7   :  { %11838 = vst [vmem:[#allocation26_spill] sm:$0xff] %v6685_v6 }
  0xfa   :  { %817 = vperm.xlu0 %6157, %v6588_v18  }
  0xfc   :  { %302 = vperm.xlu2 %6089, %v261_v2   ;;  %v6640_v40 = vpop.permute.xlu0 %480 }
  0xfd   :  { %11830 = vst [vmem:[#allocation18_spill] sm:$0xff] %v6640_v40 }
  0xfe   :  { %308 = vperm.xlu1 %6090, %v261_v2  }
 0x102   :  { %6162 = vset.pattern.permute.xlu0 %v6508_v61 }
 0x104   :  { %6091 = vset.pattern.permute.xlu2 %v6412_v25  ;;  %v6655_v45 = vpop.permute.xlu0 %725 }
 0x105   :  { %11832 = vst [vmem:[#allocation20_spill] sm:$0xff] %v6655_v45 }
 0x106   :  { %6092 = vset.pattern.permute.xlu1 %v6415_v29 }
 0x10a   :  { %357 = vperm.xlu0 %6162, %v310_v11  }
 0x10c   :  { %315 = vperm.xlu2 %6091, %v310_v11  }
 0x10e   :  { %321 = vperm.xlu1 %6092, %v310_v11  }
 0x112   :  { %602 = vperm.xlu0 %6162, %v6577_v14  }
 0x114   :  { %6093 = vset.pattern.permute.xlu2 %v6474_v54  ;;  %v6667_v49 = vpop.permute.xlu0 %266 }
 0x115   :  { %11834 = vst [vmem:[#allocation22_spill] sm:$0xff] %v6667_v49 }
 0x116   :  { %6094 = vset.pattern.permute.xlu1 %v6477_v55 }
 0x11a   :  { %847 = vperm.xlu0 %6162, %v6588_v18  }
 0x11c   :  { %333 = vperm.xlu2 %6093, %v310_v11   ;;  %v6683_v2 = vpop.permute.xlu0 %511 }
 0x11d   :  { %11837 = vst [vmem:[#allocation25_spill] sm:$0xff] %v6683_v2  ;;  %v6727_v2 = vmul.f32 0.00390625, %v6585_v17 }
 0x11e   :  { %339 = vperm.xlu1 %6094, %v310_v11  }
 0x122   :  { %6167 = vset.pattern.permute.xlu0 %v6477_v55 }
 0x124   :  { %6095 = vset.pattern.permute.xlu2 %v6496_v59  ;;  %v6695_v21 = vpop.permute.xlu0 %756 }
 0x125   :  { %11840 = vst [vmem:[#allocation28_spill] sm:$0xff] %v6695_v21  ;;  %v6714_v21 = vmul.f32 0.00390625, %v6605_v26 }
 0x126   :  { %6096 = vset.pattern.permute.xlu1 %v6500_v60 }
 0x12a   :  { %388 = vperm.xlu0 %6167, %v6632_v37  }
 0x12c   :  { %345 = vperm.xlu2 %6095, %v310_v11  }
 0x12e   :  { %351 = vperm.xlu1 %6096, %v310_v11   ;;  %v6688_v11 = vpop.permute.xlu1 %198 }
 0x132   :  { %633 = vperm.xlu0 %6167, %v6643_v41  }
 0x134   :  { %6097 = vset.pattern.permute.xlu2 %v6412_v25  ;;  %v6706_v13 = vpop.permute.xlu0 %296 }
 0x135   :  { %11841 = vst [vmem:[#allocation29_spill] sm:$0xff] %v6706_v13 }
 0x136   :  { %6098 = vset.pattern.permute.xlu1 %v6415_v29 }
 0x13a   :  { %878 = vperm.xlu0 %6167, %v6652_v44  }
 0x13c   :  { %364 = vperm.xlu2 %6097, %v6632_v37  }
 0x13e   :  { %370 = vperm.xlu1 %6098, %v6632_v37  }
 0x142   :  { %6176 = vset.pattern.permute.xlu0 %v11538_v51  ;;  %v6698_v51 = vpop.permute.xlu1 %217 }
 0x143   :  { %1542 = vperm.xlu0 %6176, %v1027_v50   ;;  %v6693_v50 = vpop.permute.xlu2 %223 }
 0x144   :  { %6099 = vset.pattern.permute.xlu2 %v6515_v62  ;;  %11839 = vst [vmem:[#allocation27_spill] sm:$0xff] %v6693_v50 }
 0x146   :  { %6100 = vset.pattern.permute.xlu1 %v6474_v54 }
 0x14b   :  { %1557 = vperm.xlu0 %6176, %v1032_v63   ;;  %v6701_v63 = vmul.f32 0.00390625, %v6571_v12  ;;  %v6708_v32 = vpop.permute.xlu2 %241  ;;  %v1041_v12 = vmul.f32 %v6685_v6, %v6714_v21  ;;  %v6738_v6 = vmul.f32 0.00390625, %v6579_v15 }
 0x14c   :  { %376 = vperm.xlu2 %6099, %v6632_v37   ;;  %11842 = vst [vmem:[#allocation30_spill] sm:$0xff] %v6708_v32 }
 0x14d   :  { %v1038_v43 = vmul.f32 %v6672_v52, %v6701_v63  ;;  %v6724_v52 = vpop.permute.xlu0 %541 }
 0x14e   :  { %382 = vperm.xlu1 %6100, %v6632_v37   ;;  %11845 = vst [vmem:[#allocation33_spill] sm:$0xff] %v6724_v52 }
 0x153   :  { %1566 = vperm.xlu0 %6176, %v1035_v7   ;;  %v6711_v7 = vpop.permute.xlu1 %229  ;;  %v6719_v20 = vpop.permute.xlu2 %253 }
 0x154   :  { %6101 = vset.pattern.permute.xlu2 %v6496_v59  ;;  %11843 = vst [vmem:[#allocation31_spill] sm:$0xff] %v6711_v7  ;;  %v1044_v26 = vmul.f32 %v6711_v7, %v6727_v2  ;;  %v6746_v7 = vmul.f32 0.00390625, %v6542_v4  ;;  %v6762_v4 = vmul.f32 0.00390625, %v6596_v22 }
 0x155   :  { %v6741_v23 = vpop.permute.xlu0 %786 }
 0x156   :  { %6102 = vset.pattern.permute.xlu1 %v6500_v60  ;;  %11847 = vst [vmem:[#allocation35_spill] sm:$0xff] %v6741_v23 }
 0x15b   :  { %1575 = vperm.xlu0 %6176, %v1038_v43   ;;  %v6722_v43 = vpop.permute.xlu1 %247  ;;  %v6732_v27 = vpop.permute.xlu2 %272 }
 0x15c   :  { %394 = vperm.xlu2 %6101, %v6632_v37   ;;  %11844 = vst [vmem:[#allocation32_spill] sm:$0xff] %v6722_v43  ;;  %v1047_v17 = vmul.f32 %v6722_v43, %v6738_v6 }
 0x15d   :  { %v6756_v40 = vpop.permute.xlu0 %131 }
 0x15e   :  { %400 = vperm.xlu1 %6102, %v6632_v37  }
 0x163   :  { %1584 = vperm.xlu0 %6176, %v1041_v12   ;;  %v6735_v12 = vpop.permute.xlu1 %259  ;;  %v6753_v15 = vpop.permute.xlu2 %284 }
 0x164   :  { %6103 = vset.pattern.permute.xlu2 %v6508_v61  ;;  %11846 = vst [vmem:[#allocation34_spill] sm:$0xff] %v6735_v12 }
 0x165   :  { %11849 = vst [vmem:[#allocation37_spill] sm:$0xff] %v6753_v15  ;;  %v6769_v23 = vpop.permute.xlu0 %327 }
 0x166   :  { %6104 = vset.pattern.permute.xlu1 %v6412_v25 }
 0x16b   :  { %1593 = vperm.xlu0 %6176, %v1044_v26   ;;  %v6749_v26 = vpop.permute.xlu1 %278  ;;  %v6764_v43 = vpop.permute.xlu2 %302 }
 0x16c   :  { %406 = vperm.xlu2 %6103, %v6632_v37   ;;  %11848 = vst [vmem:[#allocation36_spill] sm:$0xff] %v6749_v26  ;;  %v1050_v37 = vmul.f32 %v6667_v49, %v6746_v7  ;;  %v1053_v49 = vmul.f32 %v6753_v15, %v6762_v4  ;;  %v1056_v22 = vmul.f32 %v6764_v43, %v6675_v53 }
 0x16d   :  { %11850 = vst [vmem:[#allocation38_spill] sm:$0xff] %v6764_v43  ;;  %v6779_v33 = vpop.permute.xlu0 %572 }
 0x16e   :  { %413 = vperm.xlu1 %6104, %v6481_v56   ;;  %11852 = vst [vmem:[#allocation40_spill] sm:$0xff] %v6779_v33 }
 0x173   :  { %1602 = vperm.xlu0 %6176, %v1047_v17   ;;  %v6759_v17 = vpop.permute.xlu1 %290  ;;  %v6774_v19 = vpop.permute.xlu2 %315 }
 0x174   :  { %6105 = vset.pattern.permute.xlu2 %v6515_v62  ;;  %11851 = vst [vmem:[#allocation39_spill] sm:$0xff] %v6774_v19 }
 0x175   :  { %v6790_v30 = vpop.permute.xlu0 %817 }
 0x176   :  { %6106 = vset.pattern.permute.xlu1 %v6474_v54  ;;  %11855 = vst [vmem:[#allocation43_spill] sm:$0xff] %v6790_v30 }
 0x17b   :  { %1611 = vperm.xlu0 %6176, %v1050_v37   ;;  %v6772_v37 = vpop.permute.xlu1 %308  ;;  %v6784_v16 = vpop.permute.xlu2 %333 }
 0x17c   :  { %425 = vperm.xlu2 %6105, %v6481_v56   ;;  %11854 = vst [vmem:[#allocation42_spill] sm:$0xff] %v6784_v16 }
 0x17d   :  { %v6800_v10 = vpop.permute.xlu0 %357 }
 0x17e   :  { %431 = vperm.xlu1 %6106, %v6481_v56   ;;  %11857 = vst [vmem:[#allocation45_spill] sm:$0xff] %v6800_v10 }
 0x183   :  { %1620 = vperm.xlu0 %6176, %v1053_v49   ;;  %v6782_v15 = vpop.permute.xlu1 %321 }
 0x184   :  { %6107 = vset.pattern.permute.xlu2 %v6477_v55  ;;  %11853 = vst [vmem:[#allocation41_spill] sm:$0xff] %v6782_v15  ;;  %v1059_v49 = vmul.f32 %v6782_v15, %v6661_v47 }
 0x186   :  { %6108 = vset.pattern.permute.xlu1 %v6496_v59 }
 0x18b   :  { %1629 = vperm.xlu0 %6176, %v1056_v22   ;;  %v6794_v22 = vpop.permute.xlu2 %345 }
 0x18c   :  { %437 = vperm.xlu2 %6107, %v6481_v56  }
 0x18e   :  { %443 = vperm.xlu1 %6108, %v6481_v56  }
 0x190   :  { %v6792_v43 = vpop.permute.xlu1 %339 }
 0x191   :  { %11856 = vst [vmem:[#allocation44_spill] sm:$0xff] %v6792_v43  ;;  %v1062_v33 = vmul.f32 %v6792_v43, %v6701_v63 }
 0x193   :  { %1638 = vperm.xlu0 %6176, %v1059_v49   ;;  %v1065_v49 = vmul.f32 %v6800_v10, %v6714_v21 }
 0x194   :  { %6109 = vset.pattern.permute.xlu2 %v6508_v61 }
 0x196   :  { %6110 = vset.pattern.permute.xlu1 %v6412_v25  ;;  %v6802_v15 = vpop.permute.xlu2 %364 }
 0x197   :  { %11858 = vst [vmem:[#allocation46_spill] sm:$0xff] %v6802_v15 }
 0x19b   :  { %1647 = vperm.xlu0 %6176, %v1062_v33  }
 0x19c   :  { %455 = vperm.xlu2 %6109, %v6481_v56  }
 0x19e   :  { %462 = vperm.xlu1 %6110, %v6524_v0  }
 0x1a3   :  { %1656 = vperm.xlu0 %6176, %v1065_v49  }
 0x1a4   :  { %6111 = vset.pattern.permute.xlu2 %v6415_v29 }
 0x1a6   :  { %6112 = vset.pattern.permute.xlu1 %v6515_v62  ;;  %v6809_v9 = vpop.permute.xlu2 %376 }
 0x1a7   :  { %11859 = vst [vmem:[#allocation47_spill] sm:$0xff] %v6809_v9  ;;  %v1068_v33 = vmul.f32 %v6809_v9, %v6727_v2  ;;  %v6823_v9 = vpop.permute.xlu1 %351 }
 0x1a8   :  { %11861 = vst [vmem:[#allocation49_spill] sm:$0xff] %v6823_v9 }
 0x1ab   :  { %1665 = vperm.xlu0 %6176, %v1068_v33  }
 0x1ac   :  { %468 = vperm.xlu2 %6111, %v6524_v0  }
 0x1ae   :  { %474 = vperm.xlu1 %6112, %v6524_v0  }
 0x1b0   :  { %v6827_v33 = vpop.permute.xlu1 %370 }
 0x1b1   :  { %11862 = vst [vmem:[#allocation50_spill] sm:$0xff] %v6827_v33 }
 0x1b4   :  { %6113 = vset.pattern.permute.xlu2 %v6477_v55 }
 0x1b6   :  { %6114 = vset.pattern.permute.xlu1 %v6496_v59  ;;  %v6817_v56 = vpop.permute.xlu2 %394 }
 0x1b7   :  { %11860 = vst [vmem:[#allocation48_spill] sm:$0xff] %v6817_v56  ;;  %v1071_v49 = vmul.f32 %v6817_v56, %v6738_v6 }
 0x1b9   :  { %1674 = vperm.xlu0 %6176, %v1071_v49  }
 0x1bc   :  { %486 = vperm.xlu2 %6113, %v6524_v0  }
 0x1be   :  { %492 = vperm.xlu1 %6114, %v6524_v0  }
 0x1c0   :  { %v6831_v10 = vpop.permute.xlu1 %382 }
 0x1c1   :  { %11863 = vst [vmem:[#allocation51_spill] sm:$0xff] %v6831_v10 }
 0x1c4   :  { %6115 = vset.pattern.permute.xlu2 %v6500_v60 }
 0x1c6   :  { %6116 = vset.pattern.permute.xlu1 %v6508_v61 }
 0x1cc   :  { %498 = vperm.xlu2 %6115, %v6524_v0  }
 0x1ce   :  { %504 = vperm.xlu1 %6116, %v6524_v0   ;;  %v6844_v0 = vpop.permute.xlu2 %406 }
 0x1cf   :  { %11866 = vst [vmem:[#allocation54_spill] sm:$0xff] %v6844_v0 }
 0x1d0   :  { %v6835_v49 = vpop.permute.xlu1 %400 }
 0x1d1   :  { %11864 = vst [vmem:[#allocation52_spill] sm:$0xff] %v6835_v49 }
 0x1d4   :  { %6117 = vset.pattern.permute.xlu2 %v6415_v29 }
 0x1d6   :  { %6118 = vset.pattern.permute.xlu1 %v6515_v62  ;;  %v6848_v10 = vpop.permute.xlu2 %425 }
 0x1d7   :  { %11867 = vst [vmem:[#allocation55_spill] sm:$0xff] %v6848_v10 }
 0x1dc   :  { %517 = vperm.xlu2 %6117, %v6538_v3  }
 0x1de   :  { %523 = vperm.xlu1 %6118, %v6538_v3  }
 0x1e0   :  { %v6839_v56 = vpop.permute.xlu1 %413 }
 0x1e1   :  { %11865 = vst [vmem:[#allocation53_spill] sm:$0xff] %v6839_v56  ;;  %v1074_v43 = vmul.f32 %v6839_v56, %v6746_v7  ;;  %v1080_v56 = vmul.f32 %v6609_v28, %v6675_v53 }
 0x1e3   :  { %1683 = vperm.xlu0 %6176, %v1074_v43  }
 0x1e4   :  { %6119 = vset.pattern.permute.xlu2 %v6474_v54 }
 0x1e6   :  { %6120 = vset.pattern.permute.xlu1 %v6477_v55  ;;  %v6856_v43 = vpop.permute.xlu2 %437 }
 0x1ec   :  { %529 = vperm.xlu2 %6119, %v6538_v3  }
 0x1ee   :  { %535 = vperm.xlu1 %6120, %v6538_v3  }
 0x1f0   :  { %v6851_v49 = vpop.permute.xlu1 %431 }
 0x1f1   :  { %11868 = vst [vmem:[#allocation56_spill] sm:$0xff] %v6851_v49  ;;  %v1077_v15 = vmul.f32 %v6851_v49, %v6762_v4 }
 0x1f3   :  { %1692 = vperm.xlu0 %6176, %v1077_v15  }
 0x1f4   :  { %6121 = vset.pattern.permute.xlu2 %v6500_v60 }
 0x1f6   :  { %6122 = vset.pattern.permute.xlu1 %v6508_v61  ;;  %v6862_v10 = vpop.permute.xlu2 %455 }
 0x1f7   :  { %11869 = vst [vmem:[#allocation57_spill] sm:$0xff] %v6862_v10 }
 0x1fb   :  { %1701 = vperm.xlu0 %6176, %v1080_v56  }
 0x1fc   :  { %547 = vperm.xlu2 %6121, %v6538_v3  }
 0x1fe   :  { %553 = vperm.xlu1 %6122, %v6538_v3  }
 0x204   :  { %6123 = vset.pattern.permute.xlu2 %v6412_v25 }
 0x206   :  { %6124 = vset.pattern.permute.xlu1 %v6415_v29  ;;  %v6867_v15 = vpop.permute.xlu2 %468 }
 0x207   :  { %11870 = vst [vmem:[#allocation58_spill] sm:$0xff] %v6867_v15  ;;  %v1083_v49 = vmul.f32 %v6867_v15, %v6661_v47  ;;  %v6881_v15 = vpop.permute.xlu1 %443 }
 0x208   :  { %11872 = vst [vmem:[#allocation60_spill] sm:$0xff] %v6881_v15 }
 0x209   :  { %1710 = vperm.xlu0 %6176, %v1083_v49  }
 0x20c   :  { %560 = vperm.xlu2 %6123, %v6577_v14  }
 0x20e   :  { %566 = vperm.xlu1 %6124, %v6577_v14  }
 0x210   :  { %v6885_v49 = vpop.permute.xlu1 %462 }
 0x211   :  { %11873 = vst [vmem:[#allocation61_spill] sm:$0xff] %v6885_v49 }
 0x214   :  { %6125 = vset.pattern.permute.xlu2 %v6474_v54 }
 0x216   :  { %6126 = vset.pattern.permute.xlu1 %v6477_v55  ;;  %v6875_v56 = vpop.permute.xlu2 %486 }
 0x217   :  { %11871 = vst [vmem:[#allocation59_spill] sm:$0xff] %v6875_v56  ;;  %v1086_v3 = vmul.f32 %v6875_v56, %v6701_v63 }
 0x219   :  { %1719 = vperm.xlu0 %6176, %v1086_v3  }
 0x21c   :  { %578 = vperm.xlu2 %6125, %v6577_v14  }
 0x21e   :  { %584 = vperm.xlu1 %6126, %v6577_v14  }
 0x220   :  { %v6889_v28 = vpop.permute.xlu1 %474 }
 0x221   :  { %11874 = vst [vmem:[#allocation62_spill] sm:$0xff] %v6889_v28 }
 0x224   :  { %6127 = vset.pattern.permute.xlu2 %v6496_v59 }
 0x226   :  { %6128 = vset.pattern.permute.xlu1 %v6500_v60  ;;  %v6901_v49 = vpop.permute.xlu2 %498 }
 0x227   :  { %11877 = vst [vmem:[#allocation65_spill] sm:$0xff] %v6901_v49 }
 0x22c   :  { %590 = vperm.xlu2 %6127, %v6577_v14  }
 0x22e   :  { %596 = vperm.xlu1 %6128, %v6577_v14  }
 0x230   :  { %v6893_v3 = vpop.permute.xlu1 %492 }
 0x231   :  { %11875 = vst [vmem:[#allocation63_spill] sm:$0xff] %v6893_v3 }
 0x234   :  { %6129 = vset.pattern.permute.xlu2 %v6412_v25 }
 0x236   :  { %6130 = vset.pattern.permute.xlu1 %v6415_v29  ;;  %v6905_v14 = vpop.permute.xlu2 %517 }
 0x237   :  { %11878 = vst [vmem:[#allocation66_spill] sm:$0xff] %v6905_v14 }
 0x23c   :  { %609 = vperm.xlu2 %6129, %v6643_v41  }
 0x23e   :  { %615 = vperm.xlu1 %6130, %v6643_v41  }
 0x240   :  { %v6897_v56 = vpop.permute.xlu1 %504 }
 0x241   :  { %11876 = vst [vmem:[#allocation64_spill] sm:$0xff] %v6897_v56  ;;  %v1089_v10 = vmul.f32 %v6897_v56, %v6714_v21  ;;  %v1095_v56 = vmul.f32 %v6724_v52, %v6738_v6 }
 0x243   :  { %1728 = vperm.xlu0 %6176, %v1089_v10  }
 0x244   :  { %6131 = vset.pattern.permute.xlu2 %v6515_v62 }
 0x246   :  { %6132 = vset.pattern.permute.xlu1 %v6474_v54  ;;  %v6914_v10 = vpop.permute.xlu2 %529 }
 0x247   :  { %11880 = vst [vmem:[#allocation68_spill] sm:$0xff] %v6914_v10 }
 0x24c   :  { %621 = vperm.xlu2 %6131, %v6643_v41  }
 0x24e   :  { %627 = vperm.xlu1 %6132, %v6643_v41  }
 0x250   :  { %v6909_v3 = vpop.permute.xlu1 %523 }
 0x251   :  { %11879 = vst [vmem:[#allocation67_spill] sm:$0xff] %v6909_v3  ;;  %v1092_v28 = vmul.f32 %v6909_v3, %v6727_v2 }
 0x253   :  { %1737 = vperm.xlu0 %6176, %v1092_v28  }
 0x254   :  { %6133 = vset.pattern.permute.xlu2 %v6496_v59 }
 0x256   :  { %6134 = vset.pattern.permute.xlu1 %v6500_v60  ;;  %v6920_v14 = vpop.permute.xlu2 %547 }
 0x257   :  { %11881 = vst [vmem:[#allocation69_spill] sm:$0xff] %v6920_v14 }
 0x25b   :  { %1746 = vperm.xlu0 %6176, %v1095_v56  }
 0x25c   :  { %639 = vperm.xlu2 %6133, %v6643_v41  }
 0x25e   :  { %645 = vperm.xlu1 %6134, %v6643_v41  }
 0x264   :  { %6135 = vset.pattern.permute.xlu2 %v6508_v61 }
 0x266   :  { %6136 = vset.pattern.permute.xlu1 %v6412_v25  ;;  %v6925_v28 = vpop.permute.xlu2 %560 }
 0x267   :  { %11882 = vst [vmem:[#allocation70_spill] sm:$0xff] %v6925_v28  ;;  %v1098_v3 = vmul.f32 %v6925_v28, %v6746_v7  ;;  %v6939_v28 = vpop.permute.xlu1 %535 }
 0x268   :  { %11884 = vst [vmem:[#allocation72_spill] sm:$0xff] %v6939_v28 }
 0x269   :  { %1755 = vperm.xlu0 %6176, %v1098_v3  }
 0x26c   :  { %651 = vperm.xlu2 %6135, %v6643_v41  }
 0x26e   :  { %658 = vperm.xlu1 %6136, %v6492_v58  }
 0x270   :  { %v6943_v41 = vpop.permute.xlu1 %553 }
 0x271   :  { %11885 = vst [vmem:[#allocation73_spill] sm:$0xff] %v6943_v41 }
 0x274   :  { %6138 = vset.pattern.permute.xlu2 %v6515_v62 }
 0x276   :  { %6139 = vset.pattern.permute.xlu1 %v6474_v54  ;;  %v6933_v56 = vpop.permute.xlu2 %578 }
 0x277   :  { %11883 = vst [vmem:[#allocation71_spill] sm:$0xff] %v6933_v56  ;;  %v1101_v52 = vmul.f32 %v6933_v56, %v6762_v4  ;;  %v6953_v56 = vpop.permute.xlu0 %602 }
 0x278   :  { %11888 = vst [vmem:[#allocation76_spill] sm:$0xff] %v6953_v56 }
 0x279   :  { %1764 = vperm.xlu0 %6176, %v1101_v52  }
 0x27c   :  { %670 = vperm.xlu2 %6138, %v6492_v58  }
 0x27e   :  { %676 = vperm.xlu1 %6139, %v6492_v58  }
 0x27f   :  { %v6961_v10 = vpop.permute.xlu0 %847 }
 0x280   :  { %v6947_v3 = vpop.permute.xlu1 %566  ;;  %11890 = vst [vmem:[#allocation78_spill] sm:$0xff] %v6961_v10 }
 0x281   :  { %11886 = vst [vmem:[#allocation74_spill] sm:$0xff] %v6947_v3 }
 0x284   :  { %6140 = vset.pattern.permute.xlu2 %v6477_v55 }
 0x286   :  { %6141 = vset.pattern.permute.xlu1 %v6496_v59  ;;  %v6964_v3 = vpop.permute.xlu2 %590 }
 0x287   :  { %11891 = vst [vmem:[#allocation79_spill] sm:$0xff] %v6964_v3 }
 0x28c   :  { %682 = vperm.xlu2 %6140, %v6492_v58  }
 0x28e   :  { %688 = vperm.xlu1 %6141, %v6492_v58  }
 0x290   :  { %v6951_v52 = vpop.permute.xlu1 %584 }
 0x291   :  { %11887 = vst [vmem:[#allocation75_spill] sm:$0xff] %v6951_v52  ;;  %v6967_v52 = vpop.permute.xlu0 %388 }
 0x292   :  { %11892 = vst [vmem:[#allocation80_spill] sm:$0xff] %v6967_v52 }
 0x294   :  { %6143 = vset.pattern.permute.xlu2 %v6508_v61 }
 0x296   :  { %6144 = vset.pattern.permute.xlu1 %v6412_v25 }
 0x29c   :  { %700 = vperm.xlu2 %6143, %v6492_v58   ;;  %v6970_v58 = vpop.permute.xlu2 %609 }
 0x29d   :  { %11893 = vst [vmem:[#allocation81_spill] sm:$0xff] %v6970_v58 }
 0x29e   :  { %707 = vperm.xlu1 %6144, %v6529_v1  }
 0x2a0   :  { %v6957_v14 = vpop.permute.xlu1 %596 }
 0x2a1   :  { %11889 = vst [vmem:[#allocation77_spill] sm:$0xff] %v6957_v14  ;;  %v1104_v41 = vmul.f32 %v6957_v14, %v6675_v53  ;;  %v6978_v14 = vpop.permute.xlu0 %633 }
 0x2a2   :  { %11895 = vst [vmem:[#allocation83_spill] sm:$0xff] %v6978_v14  ;;  %v1110_v3 = vmul.f32 %v6978_v14, %v6701_v63 }
 0x2a3   :  { %1773 = vperm.xlu0 %6176, %v1104_v41  }
 0x2a4   :  { %6145 = vset.pattern.permute.xlu2 %v6415_v29 }
 0x2a6   :  { %6146 = vset.pattern.permute.xlu1 %v6515_v62  ;;  %v6980_v10 = vpop.permute.xlu2 %621 }
 0x2ac   :  { %713 = vperm.xlu2 %6145, %v6529_v1  }
 0x2ae   :  { %719 = vperm.xlu1 %6146, %v6529_v1  }
 0x2b0   :  { %v6973_v56 = vpop.permute.xlu1 %615 }
 0x2b1   :  { %11894 = vst [vmem:[#allocation82_spill] sm:$0xff] %v6973_v56  ;;  %v1107_v41 = vmul.f32 %v6973_v56, %v6661_v47 }
 0x2b3   :  { %1782 = vperm.xlu0 %6176, %v1107_v41  }
 0x2b4   :  { %6148 = vset.pattern.permute.xlu2 %v6477_v55 }
 0x2b6   :  { %6149 = vset.pattern.permute.xlu1 %v6496_v59  ;;  %v6986_v58 = vpop.permute.xlu2 %639 }
 0x2b7   :  { %11896 = vst [vmem:[#allocation84_spill] sm:$0xff] %v6986_v58 }
 0x2bb   :  { %1791 = vperm.xlu0 %6176, %v1110_v3  }
 0x2bc   :  { %731 = vperm.xlu2 %6148, %v6529_v1  }
 0x2be   :  { %737 = vperm.xlu1 %6149, %v6529_v1  }
 0x2c4   :  { %6150 = vset.pattern.permute.xlu2 %v6500_v60 }
 0x2c6   :  { %6151 = vset.pattern.permute.xlu1 %v6508_v61  ;;  %v6991_v41 = vpop.permute.xlu2 %651 }
 0x2c7   :  { %11897 = vst [vmem:[#allocation85_spill] sm:$0xff] %v6991_v41  ;;  %v1113_v56 = vmul.f32 %v6991_v41, %v6714_v21  ;;  %v7005_v41 = vpop.permute.xlu1 %627 }
 0x2c8   :  { %11899 = vst [vmem:[#allocation87_spill] sm:$0xff] %v7005_v41 }
 0x2c9   :  { %1800 = vperm.xlu0 %6176, %v1113_v56  }
 0x2cc   :  { %743 = vperm.xlu2 %6150, %v6529_v1  }
 0x2ce   :  { %749 = vperm.xlu1 %6151, %v6529_v1  }
 0x2d0   :  { %v7009_v1 = vpop.permute.xlu1 %645 }
 0x2d1   :  { %11900 = vst [vmem:[#allocation88_spill] sm:$0xff] %v7009_v1 }
 0x2d4   :  { %6153 = vset.pattern.permute.xlu2 %v6415_v29 }
 0x2d6   :  { %6154 = vset.pattern.permute.xlu1 %v6515_v62  ;;  %v6999_v3 = vpop.permute.xlu2 %670 }
 0x2d7   :  { %11898 = vst [vmem:[#allocation86_spill] sm:$0xff] %v6999_v3  ;;  %v1116_v14 = vmul.f32 %v6999_v3, %v6727_v2 }
 0x2d9   :  { %1809 = vperm.xlu0 %6176, %v1116_v14  }
 0x2dc   :  { %762 = vperm.xlu2 %6153, %v6545_v5  }
 0x2de   :  { %768 = vperm.xlu1 %6154, %v6545_v5  }
 0x2e0   :  { %v7013_v56 = vpop.permute.xlu1 %658 }
 0x2e1   :  { %11901 = vst [vmem:[#allocation89_spill] sm:$0xff] %v7013_v56 }
 0x2e4   :  { %6155 = vset.pattern.permute.xlu2 %v6474_v54 }
 0x2e6   :  { %6156 = vset.pattern.permute.xlu1 %v6477_v55  ;;  %v7026_v1 = vpop.permute.xlu2 %682 }
 0x2ec   :  { %774 = vperm.xlu2 %6155, %v6545_v5  }
 0x2ee   :  { %780 = vperm.xlu1 %6156, %v6545_v5  }
 0x2f0   :  { %v7017_v14 = vpop.permute.xlu1 %676 }
 0x2f1   :  { %11902 = vst [vmem:[#allocation90_spill] sm:$0xff] %v7017_v14 }
 0x2f4   :  { %6158 = vset.pattern.permute.xlu2 %v6500_v60 }
 0x2f6   :  { %6159 = vset.pattern.permute.xlu1 %v6508_v61  ;;  %v7030_v56 = vpop.permute.xlu2 %700 }
 0x2f7   :  { %11904 = vst [vmem:[#allocation92_spill] sm:$0xff] %v7030_v56 }
 0x2fc   :  { %792 = vperm.xlu2 %6158, %v6545_v5  }
 0x2fe   :  { %798 = vperm.xlu1 %6159, %v6545_v5  }
 0x300   :  { %v7021_v3 = vpop.permute.xlu1 %688 }
 0x301   :  { %11903 = vst [vmem:[#allocation91_spill] sm:$0xff] %v7021_v3  ;;  %v1119_v58 = vmul.f32 %v7021_v3, %v6738_v6  ;;  %v1125_v3 = vmul.f32 %v6655_v45, %v6762_v4 }
 0x303   :  { %1818 = vperm.xlu0 %6176, %v1119_v58  }
 0x304   :  { %6160 = vset.pattern.permute.xlu2 %v6412_v25 }
 0x306   :  { %6161 = vset.pattern.permute.xlu1 %v6415_v29  ;;  %v7038_v58 = vpop.permute.xlu2 %713 }
 0x30c   :  { %805 = vperm.xlu2 %6160, %v6588_v18  }
 0x30e   :  { %811 = vperm.xlu1 %6161, %v6588_v18  }
 0x310   :  { %v7033_v14 = vpop.permute.xlu1 %707 }
 0x311   :  { %11905 = vst [vmem:[#allocation93_spill] sm:$0xff] %v7033_v14  ;;  %v1122_v5 = vmul.f32 %v7033_v14, %v6746_v7 }
 0x313   :  { %1827 = vperm.xlu0 %6176, %v1122_v5  }
 0x314   :  { %6163 = vset.pattern.permute.xlu2 %v6474_v54 }
 0x316   :  { %6164 = vset.pattern.permute.xlu1 %v6477_v55  ;;  %v7044_v56 = vpop.permute.xlu2 %731 }
 0x31b   :  { %1836 = vperm.xlu0 %6176, %v1125_v3  }
 0x31c   :  { %823 = vperm.xlu2 %6163, %v6588_v18  }
 0x31e   :  { %829 = vperm.xlu1 %6164, %v6588_v18  }
 0x324   :  { %6165 = vset.pattern.permute.xlu2 %v6496_v59 }
 0x326   :  { %6166 = vset.pattern.permute.xlu1 %v6500_v60  ;;  %v7049_v5 = vpop.permute.xlu2 %743 }
 0x327   :  { %11906 = vst [vmem:[#allocation94_spill] sm:$0xff] %v7049_v5  ;;  %v1128_v14 = vmul.f32 %v7049_v5, %v6675_v53  ;;  %v7063_v5 = vpop.permute.xlu1 %719 }
 0x329   :  { %1845 = vperm.xlu0 %6176, %v1128_v14   ;;  %v7069_v14 = vpop.permute.xlu0 %878 }
 0x32a   :  { %11908 = vst [vmem:[#allocation96_spill] sm:$0xff] %v7069_v14 }
 0x32c   :  { %835 = vperm.xlu2 %6165, %v6588_v18  }
 0x32e   :  { %841 = vperm.xlu1 %6166, %v6588_v18  }
 0x330   :  { %v7067_v18 = vpop.permute.xlu1 %737 }
 0x334   :  { %6168 = vset.pattern.permute.xlu2 %v6412_v25 }
 0x336   :  { %6169 = vset.pattern.permute.xlu1 %v6415_v29  ;;  %v7057_v55 = vpop.permute.xlu2 %762 }
 0x337   :  { %11907 = vst [vmem:[#allocation95_spill] sm:$0xff] %v7057_v55  ;;  %v1131_v3 = vmul.f32 %v7057_v55, %v6661_v47 }
 0x339   :  { %1854 = vperm.xlu0 %6176, %v1131_v3   ;;  %v7076_v3 = vpop.permute.xlu0 %1542 }
 0x33a   :  { %11909 = vst [vmem:[#allocation97_spill] sm:$0xff] %v7076_v3  ;;  %v11913_v3 = vmov 0  }
 0x33c   :  { %854 = vperm.xlu2 %6168, %v6652_v44  }
 0x33e   :  { %860 = vperm.xlu1 %6169, %v6652_v44  }
 0x340   :  { %v7073_v25 = vpop.permute.xlu1 %749 }
 0x344   :  { %6170 = vset.pattern.permute.xlu2 %v6515_v62 }
 0x346   :  { %6171 = vset.pattern.permute.xlu1 %v6474_v54  ;;  %v7083_v54 = vpop.permute.xlu0 %1557 }
 0x347   :  { %11910 = vst [vmem:[#allocation98_spill] sm:$0xff] %v7083_v54  ;;  %v1029_v54 = vmul.f32 %v6624_v34, %v6762_v4 }
 0x34c   :  { %866 = vperm.xlu2 %6170, %v6652_v44  }
 0x34e   :  { %872 = vperm.xlu1 %6171, %v6652_v44   ;;  %v7095_v29 = vpop.permute.xlu0 %1566 }
 0x34f   :  { %11914 = vst [vmem:[#allocation101_spill] sm:$0xff] %v7095_v29 }
 0x350   :  { %v7079_v55 = vpop.permute.xlu1 %768 }
 0x354   :  { %6172 = vset.pattern.permute.xlu2 %v6496_v59  ;;  %v1026_v59 = vmul.f32 %v6629_v36, %v6746_v7 }
 0x356   :  { %6173 = vset.pattern.permute.xlu1 %v6500_v60  ;;  %v7092_v60 = vpop.permute.xlu2 %774 }
 0x357   :  { %11912 = vst [vmem:[#allocation100_spill] sm:$0xff] %v7092_v60 }
 0x35c   :  { %884 = vperm.xlu2 %6172, %v6652_v44  }
 0x35e   :  { %890 = vperm.xlu1 %6173, %v6652_v44   ;;  %v7100_v14 = vpop.permute.xlu2 %792 }
 0x35f   :  { %11915 = vst [vmem:[#allocation102_spill] sm:$0xff] %v7100_v14 }
 0x360   :  { %v7085_v62 = vpop.permute.xlu1 %780 }
 0x361   :  { %11911 = vst [vmem:[#allocation99_spill] sm:$0xff] %v7085_v62  ;;  %v1134_v45 = vmul.f32 %v7085_v62, %v6701_v63  ;;  %v1028_v62 = vmul.f32 %v6756_v40, %v6727_v2 }
 0x363   :  { %1863 = vperm.xlu0 %6176, %v1134_v45  }
 0x364   :  { %6174 = vset.pattern.permute.xlu2 %v6508_v61 }
 0x366   :  { %6175 = vset.pattern.permute.xlu1 %v11913_v3  ;;  %v7113_v29 = vpop.permute.xlu2 %805 }
 0x367   :  { %1539 = vperm.xlu1 %6175, %v1026_v59   ;;  %v7108_v59 = vpop.permute.xlu0 %1575 }
 0x368   :  { %11917 = vst [vmem:[#allocation104_spill] sm:$0xff] %v7108_v59 }
 0x36c   :  { %896 = vperm.xlu2 %6174, %v6652_v44   ;;  %v1031_v44 = vmul.f32 %v6636_v38, %v6738_v6 }
 0x36f   :  { %1548 = vperm.xlu1 %6175, %v1029_v54   ;;  %v1140_v54 = vmul.f32 %v6790_v30, %v6727_v2  ;;  %v7121_v59 = vpop.permute.xlu0 %1584 }
 0x370   :  { %v7102_v45 = vpop.permute.xlu1 %798  ;;  %11918 = vst [vmem:[#allocation105_spill] sm:$0xff] %v7121_v59 }
 0x371   :  { %11916 = vst [vmem:[#allocation103_spill] sm:$0xff] %v7102_v45  ;;  %v1137_v61 = vmul.f32 %v7102_v45, %v6714_v21  ;;  %v1030_v45 = vmul.f32 %v6638_v39, %v6701_v63 }
 0x373   :  { %1872 = vperm.xlu0 %6176, %v1137_v61   ;;  %v1034_v61 = vmul.f32 %v6664_v48, %v6746_v7 }
 0x374   :  { %6177 = vset.pattern.permute.xlu2 %v11913_v3 }
 0x375   :  { %1545 = vperm.xlu2 %6177, %v1028_v62   ;;  %v1033_v62 = vmul.f32 %v6646_v42, %v6714_v21 }
 0x376   :  { %v7123_v3 = vpop.permute.xlu2 %823 }
 0x377   :  { %1554 = vperm.xlu1 %6175, %v1031_v44   ;;  %v1037_v44 = vmul.f32 %v6678_v57, %v6762_v4  ;;  %v7133_v48 = vpop.permute.xlu0 %1593 }
 0x378   :  { %11920 = vst [vmem:[#allocation107_spill] sm:$0xff] %v7133_v48 }
 0x37b   :  { %1881 = vperm.xlu0 %6176, %v1140_v54  }
 0x37d   :  { %1551 = vperm.xlu2 %6177, %v1030_v45   ;;  %v1036_v45 = vmul.f32 %v6658_v46, %v6727_v2 }
 0x37f   :  { %1563 = vperm.xlu1 %6175, %v1034_v61   ;;  %v1040_v61 = vmul.f32 %v6603_v24, %v6675_v53  ;;  %v7139_v59 = vpop.permute.xlu0 %1602 }
 0x380   :  { %11921 = vst [vmem:[#allocation108_spill] sm:$0xff] %v7139_v59  ;;  %v1046_v59 = vmul.f32 %v6708_v32, %v6701_v63  ;;  %v7155_v48 = vpop.permute.xlu1 %811 }
 0x381   :  { %11924 = vst [vmem:[#allocation111_spill] sm:$0xff] %v7155_v48 }
 0x385   :  { %1560 = vperm.xlu2 %6177, %v1033_v62   ;;  %v1039_v62 = vmul.f32 %v6688_v11, %v6738_v6 }
 0x386   :  { %v7129_v30 = vpop.permute.xlu2 %835 }
 0x387   :  { %11919 = vst [vmem:[#allocation106_spill] sm:$0xff] %v7129_v30  ;;  %v1143_v54 = vmul.f32 %v7129_v30, %v6738_v6  ;;  %1572 = vperm.xlu1 %6175, %v1037_v44   ;;  %v1043_v30 = vmul.f32 %v6693_v50, %v6661_v47 }
 0x389   :  { %1890 = vperm.xlu0 %6176, %v1143_v54  }
 0x38d   :  { %1569 = vperm.xlu2 %6177, %v1036_v45   ;;  %v1042_v45 = vmul.f32 %v6698_v51, %v6746_v7 }
 0x38f   :  { %1581 = vperm.xlu1 %6175, %v1040_v61   ;;  %v7151_v61 = vpop.permute.xlu0 %1611 }
 0x390   :  { %11923 = vst [vmem:[#allocation110_spill] sm:$0xff] %v7151_v61  ;;  %v1048_v61 = vmul.f32 %v6719_v20, %v6675_v53 }
 0x395   :  { %1578 = vperm.xlu2 %6177, %v1039_v62   ;;  %v1045_v62 = vmul.f32 %v6626_v35, %v6762_v4 }
 0x396   :  { %v7145_v44 = vpop.permute.xlu2 %854 }
 0x397   :  { %11922 = vst [vmem:[#allocation109_spill] sm:$0xff] %v7145_v44  ;;  %v1146_v54 = vmul.f32 %v7145_v44, %v6746_v7  ;;  %1590 = vperm.xlu1 %6175, %v1043_v30   ;;  %v1049_v44 = vmul.f32 %v6735_v12, %v6714_v21  ;;  %v7161_v30 = vpop.permute.xlu0 %1620 }
 0x398   :  { %11925 = vst [vmem:[#allocation112_spill] sm:$0xff] %v7161_v30 }
 0x399   :  { %1899 = vperm.xlu0 %6176, %v1146_v54   ;;  %v7163_v54 = vpop.permute.xlu1 %829 }
 0x39a   :  { %11926 = vst [vmem:[#allocation113_spill] sm:$0xff] %v7163_v54 }
 0x39d   :  { %1587 = vperm.xlu2 %6177, %v1042_v45  }
 0x39f   :  { %1599 = vperm.xlu1 %6175, %v1046_v59   ;;  %v1052_v59 = vmul.f32 %v6749_v26, %v6727_v2  ;;  %v7169_v45 = vpop.permute.xlu0 %1629 }
 0x3a0   :  { %11927 = vst [vmem:[#allocation114_spill] sm:$0xff] %v7169_v45 }
 0x3a1   :  { %v7171_v32 = vpop.permute.xlu1 %841 }
 0x3a5   :  { %1596 = vperm.xlu2 %6177, %v1045_v62   ;;  %v1051_v62 = vmul.f32 %v6732_v27, %v6661_v47 }
 0x3a6   :  { %v7177_v30 = vpop.permute.xlu2 %866 }
 0x3a7   :  { %1608 = vperm.xlu1 %6175, %v1049_v44   ;;  %v1055_v44 = vmul.f32 %v6706_v13, %v6738_v6  ;;  %11928 = vst [vmem:[#allocation115_spill] sm:$0xff] %v7177_v30  ;;  %v7181_v50 = vpop.permute.xlu0 %1638  ;;  %v1061_v13 = vmul.f32 %v6784_v16, %v6762_v4  ;;  %v7216_v16 = vmul.f32 0.00390625, %v6558_v8  ;;  %v11941_v8 = vld [vmem:[#allocation4_spill] sm:$0xff] }
 0x3a8   :  { %11929 = vst [vmem:[#allocation116_spill] sm:$0xff] %v7181_v50  ;;  %v7231_v24 = vmul.f32 0.00390625, %v11941_v8  ;;  %v11946_v8 = vld [vmem:[#allocation5_spill] sm:$0xff] }
 0x3a9   :  { %11936 = vst [vmem:[#allocation123_spill] sm:$0xff] %v7216_v16 }
 0x3ad   :  { %1605 = vperm.xlu2 %6177, %v1048_v61   ;;  %v1054_v61 = vmul.f32 %v6759_v17, %v6701_v63 }
 0x3af   :  { %1617 = vperm.xlu1 %6175, %v1052_v59   ;;  %v1058_v59 = vmul.f32 %v6774_v19, %v6746_v7  ;;  %v7195_v50 = vpop.permute.xlu0 %1647 }
 0x3b0   :  { %v7179_v12 = vpop.permute.xlu1 %860  ;;  %11932 = vst [vmem:[#allocation119_spill] sm:$0xff] %v7195_v50 }
 0x3b5   :  { %1614 = vperm.xlu2 %6177, %v1051_v62  }
 0x3b6   :  { %v7187_v45 = vpop.permute.xlu2 %884 }
 0x3b7   :  { %1626 = vperm.xlu1 %6175, %v1055_v44   ;;  %11930 = vst [vmem:[#allocation117_spill] sm:$0xff] %v7187_v45  ;;  %v1057_v44 = vmul.f32 %v6772_v37, %v6714_v21 }
 0x3bd   :  { %1623 = vperm.xlu2 %6177, %v1054_v61   ;;  %v1060_v61 = vmul.f32 %v6769_v23, %v6727_v2 }
 0x3bf   :  { %1635 = vperm.xlu1 %6175, %v1058_v59   ;;  %v1064_v59 = vmul.f32 %v6823_v9, %v6675_v53  ;;  %v11940_v9 = vld [vmem:[#allocation46_spill] sm:$0xff] }
 0x3c0   :  { %v7189_v26 = vpop.permute.xlu1 %872 }
 0x3c1   :  { %11931 = vst [vmem:[#allocation118_spill] sm:$0xff] %v7189_v26  ;;  %v1149_v62 = vmul.f32 %v7189_v26, %v6762_v4  ;;  %v7205_v26 = vpop.permute.xlu0 %1656 }
 0x3c2   :  { %11933 = vst [vmem:[#allocation120_spill] sm:$0xff] %v7205_v26 }
 0x3c3   :  { %1908 = vperm.xlu0 %6176, %v1149_v62  }
 0x3c5   :  { %1632 = vperm.xlu2 %6177, %v1057_v44  }
 0x3c6   :  { %v7199_v19 = vpop.permute.xlu2 %896 }
 0x3c7   :  { %1644 = vperm.xlu1 %6175, %v1061_v13   ;;  %v1063_v13 = vmul.f32 %v6794_v22, %v6738_v6 }
 0x3cd   :  { %1641 = vperm.xlu2 %6177, %v1060_v61   ;;  %v1067_v61 = vmul.f32 %v6827_v33, %v6661_v47  ;;  %v7246_v33 = vmul.f32 0.00390625, %v11946_v8  ;;  %v11951_v8 = vld [vmem:[#allocation55_spill] sm:$0xff] }
 0x3cf   :  { %1653 = vperm.xlu1 %6175, %v1064_v59   ;;  %v7207_v62 = vpop.permute.xlu2 %1545 }
 0x3d0   :  { %11934 = vst [vmem:[#allocation121_spill] sm:$0xff] %v7207_v62  ;;  %v7209_v50 = vpop.permute.xlu1 %890  ;;  %v7222_v62 = vpop.permute.xlu0 %1665 }
 0x3d1   :  { %11935 = vst [vmem:[#allocation122_spill] sm:$0xff] %v7209_v50  ;;  %v1152_v44 = vmul.f32 %v7209_v50, %v6675_v53  ;;  %v1155_v50 = vmul.f32 %v6616_v31, %v7216_v16 }
 0x3d2   :  { %11938 = vst [vmem:[#allocation125_spill] sm:$0xff] %v7222_v62  ;;  %v1158_v62 = vmul.f32 %v6638_v39, %v7231_v24  ;;  %v1161_v39 = vmul.f32 %v6646_v42, %v7246_v33 }
 0x3d3   :  { %1917 = vperm.xlu0 %6176, %v1152_v44   ;;  %v1066_v44 = vmul.f32 %v11940_v9, %v6746_v7 }
 0x3d5   :  { %1650 = vperm.xlu2 %6177, %v1063_v13   ;;  %v1070_v13 = vmul.f32 %v6967_v52, %v6701_v63  ;;  %v1076_v52 = vmul.f32 %v11951_v8, %v6727_v2 }
 0x3d7   :  { %1662 = vperm.xlu1 %6175, %v1067_v61   ;;  %v7220_v59 = vpop.permute.xlu2 %1551 }
 0x3d8   :  { %11937 = vst [vmem:[#allocation124_spill] sm:$0xff] %v7220_v59  ;;  %v7237_v59 = vpop.permute.xlu0 %1674 }
 0x3d9   :  { %v7224_v26 = vpop.permute.xlu1 %1539  ;;  %11943 = vst [vmem:[#allocation4_spill] sm:$0xff] %v7237_v59  ;;  %v11950_v59 = vld [vmem:[#allocation52_spill] sm:$0xff] }
 0x3da   :  { %11939 = vst [vmem:[#allocation126_spill] sm:$0xff] %v7224_v26  ;;  %v11945_v26 = vld [vmem:[#allocation51_spill] sm:$0xff] }
 0x3db   :  { %1926 = vperm.xlu0 %6176, %v1155_v50   ;;  %v1069_v50 = vmul.f32 %v11945_v26, %v6762_v4 }
 0x3dd   :  { %1659 = vperm.xlu2 %6177, %v1066_v44   ;;  %v1073_v44 = vmul.f32 %v6844_v0, %v6714_v21  ;;  %v11952_v0 = vld [vmem:[#allocation14_spill] sm:$0xff] }
 0x3df   :  { %1671 = vperm.xlu1 %6175, %v1070_v13   ;;  %v7235_v61 = vpop.permute.xlu2 %1560 }
 0x3e0   :  { %11942 = vst [vmem:[#allocation46_spill] sm:$0xff] %v7235_v61  ;;  %v7252_v61 = vpop.permute.xlu0 %1683 }
 0x3e1   :  { %v7241_v31 = vpop.permute.xlu1 %1548  ;;  %11948 = vst [vmem:[#allocation5_spill] sm:$0xff] %v7252_v61  ;;  %v11956_v61 = vld [vmem:[#allocation7_spill] sm:$0xff] }
 0x3e2   :  { %11944 = vst [vmem:[#allocation127_spill] sm:$0xff] %v7241_v31 }
 0x3e3   :  { %1935 = vperm.xlu0 %6176, %v1158_v62   ;;  %v1072_v62 = vmul.f32 %v11950_v59, %v6675_v53 }
 0x3e5   :  { %1668 = vperm.xlu2 %6177, %v1069_v50   ;;  %v7263_v50 = vmul.f32 0.00390625, %v11952_v0  ;;  %v11957_v0 = vld [vmem:[#allocation16_spill] sm:$0xff] }
 0x3e6   :  { %v7278_v8 = vmul.f32 0.00390625, %v11957_v0  ;;  %v11963_v0 = vld [vmem:[#allocation8_spill] sm:$0xff] }
 0x3e7   :  { %1680 = vperm.xlu1 %6175, %v1073_v44   ;;  %v7250_v13 = vpop.permute.xlu2 %1569  ;;  %v1164_v42 = vmul.f32 %v6658_v46, %v7263_v50 }
 0x3e8   :  { %11947 = vst [vmem:[#allocation51_spill] sm:$0xff] %v7250_v13  ;;  %v7267_v13 = vpop.permute.xlu0 %1692  ;;  %v1167_v46 = vmul.f32 %v6688_v11, %v7278_v8 }
 0x3e9   :  { %v7256_v31 = vpop.permute.xlu1 %1554  ;;  %11954 = vst [vmem:[#allocation14_spill] sm:$0xff] %v7267_v13 }
 0x3ea   :  { %11949 = vst [vmem:[#allocation128_spill] sm:$0xff] %v7256_v31 }
 0x3eb   :  { %1944 = vperm.xlu0 %6176, %v1161_v39   ;;  %v1075_v39 = vmul.f32 %v11956_v61, %v6661_v47  ;;  %11958 = vst [vmem:[#allocation7_spill] sm:$0xff] %v7278_v8 }
 0x3ed   :  { %1677 = vperm.xlu2 %6177, %v1072_v62   ;;  %v1079_v62 = vmul.f32 %v6881_v15, %v6738_v6  ;;  %v7293_v15 = vmul.f32 0.00390625, %v11963_v0  ;;  %v11969_v0 = vld [vmem:[#allocation10_spill] sm:$0xff] }
 0x3ee   :  { %v7308_v57 = vmul.f32 0.00390625, %v11969_v0  ;;  %v11975_v0 = vld [vmem:[#allocation12_spill] sm:$0xff] }
 0x3ef   :  { %1689 = vperm.xlu1 %6175, %v1076_v52   ;;  %v7265_v44 = vpop.permute.xlu2 %1578 }
 0x3f0   :  { %11953 = vst [vmem:[#allocation52_spill] sm:$0xff] %v7265_v44  ;;  %v7282_v44 = vpop.permute.xlu0 %1701 }
 0x3f1   :  { %v7271_v31 = vpop.permute.xlu1 %1563  ;;  %11960 = vst [vmem:[#allocation130_spill] sm:$0xff] %v7282_v44  ;;  %v11967_v44 = vld [vmem:[#allocation57_spill] sm:$0xff] }
 0x3f2   :  { %11955 = vst [vmem:[#allocation129_spill] sm:$0xff] %v7271_v31  ;;  %v11962_v31 = vld [vmem:[#allocation61_spill] sm:$0xff] }
 0x3f3   :  { %1953 = vperm.xlu0 %6176, %v1164_v42   ;;  %v1078_v42 = vmul.f32 %v6856_v43, %v6701_v63  ;;  %11970 = vst [vmem:[#allocation57_spill] sm:$0xff] %v7308_v57 }
 0x3f5   :  { %1686 = vperm.xlu2 %6177, %v1075_v39   ;;  %v1082_v39 = vmul.f32 %v11962_v31, %v6746_v7  ;;  %v11968_v31 = vld [vmem:[#allocation18_spill] sm:$0xff] }
 0x3f7   :  { %1698 = vperm.xlu1 %6175, %v1079_v62   ;;  %v7280_v52 = vpop.permute.xlu2 %1587 }
 0x3f8   :  { %11959 = vst [vmem:[#allocation16_spill] sm:$0xff] %v7280_v52  ;;  %v1170_v52 = vmul.f32 %v6698_v51, %v7293_v15  ;;  %v1173_v51 = vmul.f32 %v6626_v35, %v7308_v57 }
 0x3f9   :  { %v7286_v13 = vpop.permute.xlu1 %1572 }
 0x3fa   :  { %11961 = vst [vmem:[#allocation131_spill] sm:$0xff] %v7286_v13  ;;  %v7301_v13 = vpop.permute.xlu0 %1710 }
 0x3fb   :  { %1962 = vperm.xlu0 %6176, %v1167_v46   ;;  %11966 = vst [vmem:[#allocation133_spill] sm:$0xff] %v7301_v13  ;;  %v1081_v46 = vmul.f32 %v11967_v44, %v6714_v21 }
 0x3fd   :  { %1695 = vperm.xlu2 %6177, %v1078_v42   ;;  %v1085_v42 = vmul.f32 %v11968_v31, %v6762_v4  ;;  %v7323_v31 = vmul.f32 0.00390625, %v11975_v0 }
 0x3ff   :  { %1707 = vperm.xlu1 %6175, %v1082_v39   ;;  %v7295_v62 = vpop.permute.xlu2 %1596  ;;  %v1176_v35 = vmul.f32 %v6719_v20, %v7323_v31  ;;  %v11983_v20 = vld [vmem:[#allocation25_spill] sm:$0xff] }
 0x400   :  { %11964 = vst [vmem:[#allocation8_spill] sm:$0xff] %v7295_v62 }
 0x401   :  { %v7299_v11 = vpop.permute.xlu1 %1581 }
 0x402   :  { %11965 = vst [vmem:[#allocation132_spill] sm:$0xff] %v7299_v11  ;;  %v11973_v11 = vld [vmem:[#allocation62_spill] sm:$0xff] }
 0x403   :  { %1971 = vperm.xlu0 %6176, %v1170_v52   ;;  %v1084_v13 = vmul.f32 %v11973_v11, %v6727_v2  ;;  %v7318_v52 = vpop.permute.xlu0 %1719 }
 0x404   :  { %11974 = vst [vmem:[#allocation62_spill] sm:$0xff] %v7318_v52 }
 0x405   :  { %1704 = vperm.xlu2 %6177, %v1081_v46   ;;  %v1088_v46 = vmul.f32 %v6901_v49, %v6675_v53  ;;  %v11980_v49 = vld [vmem:[#allocation66_spill] sm:$0xff] }
 0x407   :  { %1716 = vperm.xlu1 %6175, %v1085_v42   ;;  %v7310_v39 = vpop.permute.xlu2 %1605 }
 0x408   :  { %11971 = vst [vmem:[#allocation10_spill] sm:$0xff] %v7310_v39 }
 0x409   :  { %v7314_v62 = vpop.permute.xlu1 %1590 }
 0x40a   :  { %11972 = vst [vmem:[#allocation134_spill] sm:$0xff] %v7314_v62  ;;  %v11978_v62 = vld [vmem:[#allocation63_spill] sm:$0xff] }
 0x40b   :  { %1980 = vperm.xlu0 %6176, %v1173_v51   ;;  %v1087_v51 = vmul.f32 %v11978_v62, %v6738_v6  ;;  %v7333_v52 = vpop.permute.xlu0 %1728 }
 0x40c   :  { %11979 = vst [vmem:[#allocation63_spill] sm:$0xff] %v7333_v52 }
 0x40d   :  { %1713 = vperm.xlu2 %6177, %v1084_v13   ;;  %v1091_v13 = vmul.f32 %v11980_v49, %v6661_v47 }
 0x40f   :  { %1725 = vperm.xlu1 %6175, %v1088_v46   ;;  %v7325_v42 = vpop.permute.xlu2 %1614  ;;  %v1179_v46 = vmul.f32 %v6732_v27, %v7216_v16  ;;  %v11987_v27 = vld [vmem:[#allocation68_spill] sm:$0xff] }
 0x410   :  { %11976 = vst [vmem:[#allocation12_spill] sm:$0xff] %v7325_v42 }
 0x411   :  { %v7329_v39 = vpop.permute.xlu1 %1599 }
 0x412   :  { %11977 = vst [vmem:[#allocation135_spill] sm:$0xff] %v7329_v39  ;;  %v1090_v39 = vmul.f32 %v11983_v20, %v6746_v7 }
 0x413   :  { %1989 = vperm.xlu0 %6176, %v1176_v35   ;;  %v7345_v38 = vpop.permute.xlu0 %1737  ;;  %v1094_v35 = vmul.f32 %v6939_v28, %v6701_v63 }
 0x414   :  { %11984 = vst [vmem:[#allocation25_spill] sm:$0xff] %v7345_v38 }
 0x415   :  { %1722 = vperm.xlu2 %6177, %v1087_v51  }
 0x417   :  { %1734 = vperm.xlu1 %6175, %v1091_v13   ;;  %v7337_v0 = vpop.permute.xlu2 %1623  ;;  %v1182_v13 = vmul.f32 %v6759_v17, %v7231_v24  ;;  %v11992_v17 = vld [vmem:[#allocation69_spill] sm:$0xff] }
 0x418   :  { %11981 = vst [vmem:[#allocation66_spill] sm:$0xff] %v7337_v0 }
 0x419   :  { %v7341_v42 = vpop.permute.xlu1 %1608 }
 0x41a   :  { %11982 = vst [vmem:[#allocation136_spill] sm:$0xff] %v7341_v42  ;;  %v1093_v42 = vmul.f32 %v11987_v27, %v6762_v4 }
 0x41b   :  { %1998 = vperm.xlu0 %6176, %v1179_v46   ;;  %v11988_v46 = vld [vmem:[#allocation73_spill] sm:$0xff]  ;;  %v7359_v38 = vpop.permute.xlu0 %1746 }
 0x41c   :  { %v1097_v0 = vmul.f32 %v11988_v46, %v6714_v21  ;;  %11989 = vst [vmem:[#allocation68_spill] sm:$0xff] %v7359_v38 }
 0x41d   :  { %1731 = vperm.xlu2 %6177, %v1090_v39  }
 0x41f   :  { %1743 = vperm.xlu1 %6175, %v1094_v35   ;;  %v7349_v51 = vpop.permute.xlu2 %1632  ;;  %v1185_v35 = vmul.f32 %v6772_v37, %v7246_v33  ;;  %v11997_v37 = vld [vmem:[#allocation74_spill] sm:$0xff] }
 0x420   :  { %11985 = vst [vmem:[#allocation137_spill] sm:$0xff] %v7349_v51 }
 0x421   :  { %v7353_v52 = vpop.permute.xlu1 %1617 }
 0x422   :  { %11986 = vst [vmem:[#allocation138_spill] sm:$0xff] %v7353_v52  ;;  %v1096_v52 = vmul.f32 %v11992_v17, %v6675_v53 }
 0x423   :  { %2007 = vperm.xlu0 %6176, %v1182_v13   ;;  %v11993_v13 = vld [vmem:[#allocation40_spill] sm:$0xff]  ;;  %v7371_v46 = vpop.permute.xlu0 %1755 }
 0x424   :  { %v1100_v28 = vmul.f32 %v11993_v13, %v6727_v2  ;;  %11994 = vst [vmem:[#allocation69_spill] sm:$0xff] %v7371_v46 }
 0x425   :  { %1740 = vperm.xlu2 %6177, %v1093_v42  }
 0x427   :  { %1752 = vperm.xlu1 %6175, %v1097_v0   ;;  %v7361_v39 = vpop.permute.xlu2 %1641  ;;  %v1188_v0 = vmul.f32 %v6769_v23, %v7263_v50  ;;  %v12002_v23 = vld [vmem:[#allocation75_spill] sm:$0xff] }
 0x428   :  { %11990 = vst [vmem:[#allocation139_spill] sm:$0xff] %v7361_v39 }
 0x429   :  { %v7365_v51 = vpop.permute.xlu1 %1626 }
 0x42a   :  { %11991 = vst [vmem:[#allocation140_spill] sm:$0xff] %v7365_v51  ;;  %v1099_v51 = vmul.f32 %v11997_v37, %v6661_v47 }
 0x42b   :  { %2016 = vperm.xlu0 %6176, %v1185_v35   ;;  %v11998_v35 = vld [vmem:[#allocation79_spill] sm:$0xff]  ;;  %v7385_v46 = vpop.permute.xlu0 %1764 }
 0x42c   :  { %v1103_v38 = vmul.f32 %v11998_v35, %v6738_v6  ;;  %12000 = vst [vmem:[#allocation79_spill] sm:$0xff] %v7385_v46 }
 0x42d   :  { %1749 = vperm.xlu2 %6177, %v1096_v52  }
 0x42f   :  { %1761 = vperm.xlu1 %6175, %v1100_v28   ;;  %v7373_v42 = vpop.permute.xlu2 %1650  ;;  %v1191_v28 = vmul.f32 %v6794_v22, %v7278_v8  ;;  %v12007_v22 = vld [vmem:[#allocation76_spill] sm:$0xff] }
 0x430   :  { %11995 = vst [vmem:[#allocation141_spill] sm:$0xff] %v7373_v42 }
 0x431   :  { %v7377_v39 = vpop.permute.xlu1 %1635 }
 0x432   :  { %11996 = vst [vmem:[#allocation142_spill] sm:$0xff] %v7377_v39  ;;  %v1102_v39 = vmul.f32 %v12002_v23, %v6701_v63 }
 0x433   :  { %2025 = vperm.xlu0 %6176, %v1188_v0   ;;  %v12003_v0 = vld [vmem:[#allocation81_spill] sm:$0xff] }
 0x434   :  { %v1106_v13 = vmul.f32 %v12003_v0, %v6746_v7 }
 0x435   :  { %1758 = vperm.xlu2 %6177, %v1099_v51  }
 0x437   :  { %1770 = vperm.xlu1 %6175, %v1103_v38   ;;  %v7383_v52 = vpop.permute.xlu2 %1659  ;;  %v7397_v38 = vpop.permute.xlu0 %1773 }
 0x438   :  { %11999 = vst [vmem:[#allocation74_spill] sm:$0xff] %v7383_v52  ;;  %v1194_v52 = vmul.f32 %v11940_v9, %v7293_v15  ;;  %v1108_v9 = vmul.f32 %v6980_v10, %v6727_v2 }
 0x439   :  { %v7389_v42 = vpop.permute.xlu1 %1644  ;;  %12005 = vst [vmem:[#allocation81_spill] sm:$0xff] %v7397_v38 }
 0x43a   :  { %12001 = vst [vmem:[#allocation143_spill] sm:$0xff] %v7389_v42  ;;  %v1105_v42 = vmul.f32 %v12007_v22, %v6714_v21 }
 0x43b   :  { %2034 = vperm.xlu0 %6176, %v1191_v28   ;;  %v1109_v28 = vmul.f32 %v7005_v41, %v6762_v4 }
 0x43d   :  { %1767 = vperm.xlu2 %6177, %v1102_v39  }
 0x43f   :  { %1779 = vperm.xlu1 %6175, %v1106_v13   ;;  %v7395_v51 = vpop.permute.xlu2 %1668  ;;  %v7409_v13 = vpop.permute.xlu0 %1782 }
 0x440   :  { %12004 = vst [vmem:[#allocation75_spill] sm:$0xff] %v7395_v51  ;;  %v1197_v51 = vmul.f32 %v11945_v26, %v7308_v57  ;;  %v12015_v26 = vld [vmem:[#allocation84_spill] sm:$0xff] }
 0x441   :  { %v7401_v46 = vpop.permute.xlu1 %1653  ;;  %12009 = vst [vmem:[#allocation145_spill] sm:$0xff] %v7409_v13 }
 0x442   :  { %12006 = vst [vmem:[#allocation144_spill] sm:$0xff] %v7401_v46 }
 0x443   :  { %2043 = vperm.xlu0 %6176, %v1194_v52   ;;  %v12011_v52 = vld [vmem:[#allocation88_spill] sm:$0xff] }
 0x444   :  { %v1112_v46 = vmul.f32 %v12011_v52, %v6675_v53 }
 0x445   :  { %1776 = vperm.xlu2 %6177, %v1105_v42  }
 0x447   :  { %1788 = vperm.xlu1 %6175, %v1109_v28   ;;  %v7407_v39 = vpop.permute.xlu2 %1677  ;;  %v1200_v28 = vmul.f32 %v11950_v59, %v7323_v31  ;;  %v7425_v13 = vpop.permute.xlu0 %1791 }
 0x448   :  { %12008 = vst [vmem:[#allocation76_spill] sm:$0xff] %v7407_v39 }
 0x449   :  { %v7413_v38 = vpop.permute.xlu1 %1662  ;;  %12014 = vst [vmem:[#allocation148_spill] sm:$0xff] %v7425_v13 }
 0x44a   :  { %12010 = vst [vmem:[#allocation146_spill] sm:$0xff] %v7413_v38  ;;  %v1111_v38 = vmul.f32 %v12015_v26, %v6738_v6 }
 0x44b   :  { %2052 = vperm.xlu0 %6176, %v1197_v51   ;;  %v12016_v51 = vld [vmem:[#allocation9_spill] sm:$0xff] }
 0x44c   :  { %v1115_v41 = vmul.f32 %v12016_v51, %v6661_v47 }
 0x44d   :  { %1785 = vperm.xlu2 %6177, %v1108_v9  }
 0x44f   :  { %1797 = vperm.xlu1 %6175, %v1112_v46   ;;  %v7419_v42 = vpop.permute.xlu2 %1686  ;;  %v1203_v46 = vmul.f32 %v11956_v61, %v7216_v16  ;;  %v7437_v59 = vpop.permute.xlu0 %1800 }
 0x450   :  { %12012 = vst [vmem:[#allocation88_spill] sm:$0xff] %v7419_v42 }
 0x451   :  { %v7423_v39 = vpop.permute.xlu1 %1671  ;;  %12019 = vst [vmem:[#allocation150_spill] sm:$0xff] %v7437_v59 }
 0x452   :  { %12013 = vst [vmem:[#allocation147_spill] sm:$0xff] %v7423_v39  ;;  %v12020_v39 = vld [vmem:[#allocation89_spill] sm:$0xff] }
 0x453   :  { %2061 = vperm.xlu0 %6176, %v1200_v28   ;;  %v1114_v13 = vmul.f32 %v12020_v39, %v6746_v7  ;;  %v1118_v28 = vmul.f32 %v7026_v1, %v6701_v63 }
 0x455   :  { %1794 = vperm.xlu2 %6177, %v1111_v38  }
 0x457   :  { %1806 = vperm.xlu1 %6175, %v1115_v41   ;;  %v7431_v9 = vpop.permute.xlu2 %1695  ;;  %v1206_v41 = vmul.f32 %v6856_v43, %v7231_v24  ;;  %v7449_v61 = vpop.permute.xlu0 %1809 }
 0x458   :  { %12017 = vst [vmem:[#allocation84_spill] sm:$0xff] %v7431_v9 }
 0x459   :  { %v7435_v42 = vpop.permute.xlu1 %1680  ;;  %12023 = vst [vmem:[#allocation152_spill] sm:$0xff] %v7449_v61 }
 0x45a   :  { %12018 = vst [vmem:[#allocation149_spill] sm:$0xff] %v7435_v42  ;;  %v12024_v42 = vld [vmem:[#allocation90_spill] sm:$0xff] }
 0x45b   :  { %2070 = vperm.xlu0 %6176, %v1203_v46   ;;  %v1117_v59 = vmul.f32 %v12024_v42, %v6762_v4  ;;  %v12025_v46 = vld [vmem:[#allocation92_spill] sm:$0xff] }
 0x45c   :  { %v1121_v51 = vmul.f32 %v12025_v46, %v6714_v21 }
 0x45d   :  { %1803 = vperm.xlu2 %6177, %v1114_v13  }
 0x45f   :  { %1815 = vperm.xlu1 %6175, %v1118_v28   ;;  %v7443_v38 = vpop.permute.xlu2 %1704  ;;  %v1209_v28 = vmul.f32 %v11967_v44, %v7246_v33  ;;  %v7461_v43 = vpop.permute.xlu0 %1818 }
 0x460   :  { %12021 = vst [vmem:[#allocation89_spill] sm:$0xff] %v7443_v38 }
 0x461   :  { %v7447_v9 = vpop.permute.xlu1 %1689  ;;  %12028 = vst [vmem:[#allocation153_spill] sm:$0xff] %v7461_v43 }
 0x462   :  { %12022 = vst [vmem:[#allocation151_spill] sm:$0xff] %v7447_v9  ;;  %v12029_v9 = vld [vmem:[#allocation15_spill] sm:$0xff] }
 0x463   :  { %2079 = vperm.xlu0 %6176, %v1206_v41   ;;  %v1120_v61 = vmul.f32 %v12029_v9, %v6675_v53  ;;  %v1124_v41 = vmul.f32 %v7063_v5, %v6727_v2 }
 0x465   :  { %1812 = vperm.xlu2 %6177, %v1117_v59  }
 0x467   :  { %1824 = vperm.xlu1 %6175, %v1121_v51   ;;  %v7455_v13 = vpop.permute.xlu2 %1713  ;;  %v1212_v51 = vmul.f32 %v11973_v11, %v7263_v50  ;;  %v7473_v44 = vpop.permute.xlu0 %1827  ;;  %v1126_v11 = vmul.f32 %v7044_v56, %v6701_v63 }
 0x468   :  { %12026 = vst [vmem:[#allocation90_spill] sm:$0xff] %v7455_v13 }
 0x469   :  { %v7459_v38 = vpop.permute.xlu1 %1698  ;;  %12032 = vst [vmem:[#allocation155_spill] sm:$0xff] %v7473_v44 }
 0x46a   :  { %12027 = vst [vmem:[#allocation92_spill] sm:$0xff] %v7459_v38  ;;  %v1123_v38 = vmul.f32 %v7038_v58, %v6661_v47 }
 0x46b   :  { %2088 = vperm.xlu0 %6176, %v1209_v28   ;;  %v1127_v28 = vmul.f32 %v7067_v18, %v6738_v6 }
 0x46d   :  { %1821 = vperm.xlu2 %6177, %v1120_v61  }
 0x46f   :  { %1833 = vperm.xlu1 %6175, %v1124_v41   ;;  %v7467_v59 = vpop.permute.xlu2 %1722  ;;  %v1215_v41 = vmul.f32 %v11978_v62, %v7278_v8  ;;  %v1129_v62 = vmul.f32 %v7073_v25, %v6714_v21 }
 0x470   :  { %12030 = vst [vmem:[#allocation15_spill] sm:$0xff] %v7467_v59 }
 0x471   :  { %v7471_v13 = vpop.permute.xlu1 %1707 }
 0x472   :  { %12031 = vst [vmem:[#allocation154_spill] sm:$0xff] %v7471_v13  ;;  %v7487_v13 = vpop.permute.xlu0 %1836 }
 0x473   :  { %2097 = vperm.xlu0 %6176, %v1212_v51   ;;  %12035 = vst [vmem:[#allocation158_spill] sm:$0xff] %v7487_v13  ;;  %v12036_v51 = vld [vmem:[#allocation28_spill] sm:$0xff] }
 0x474   :  { %v1130_v44 = vmul.f32 %v12036_v51, %v6746_v7  ;;  %v12149_v51 = vld [vmem:[#allocation71_spill] sm:$0xff] }
 0x475   :  { %1830 = vperm.xlu2 %6177, %v1123_v38  }
 0x477   :  { %1842 = vperm.xlu1 %6175, %v1127_v28   ;;  %v7479_v61 = vpop.permute.xlu2 %1731  ;;  %v1218_v28 = vmul.f32 %v11983_v20, %v7293_v15  ;;  %v1132_v20 = vmul.f32 %v7079_v55, %v6727_v2 }
 0x478   :  { %12033 = vst [vmem:[#allocation156_spill] sm:$0xff] %v7479_v61 }
 0x479   :  { %v7483_v59 = vpop.permute.xlu1 %1716 }
 0x47a   :  { %12034 = vst [vmem:[#allocation157_spill] sm:$0xff] %v7483_v59  ;;  %v7499_v59 = vpop.permute.xlu0 %1845 }
 0x47b   :  { %2106 = vperm.xlu0 %6176, %v1215_v41   ;;  %12039 = vst [vmem:[#allocation161_spill] sm:$0xff] %v7499_v59  ;;  %v1133_v41 = vmul.f32 %v7092_v60, %v6762_v4 }
 0x47d   :  { %1839 = vperm.xlu2 %6177, %v1126_v11  }
 0x47f   :  { %1851 = vperm.xlu1 %6175, %v1130_v44   ;;  %v7491_v38 = vpop.permute.xlu2 %1740  ;;  %v1221_v44 = vmul.f32 %v11987_v27, %v7308_v57  ;;  %v12045_v27 = vld [vmem:[#allocation35_spill] sm:$0xff] }
 0x480   :  { %12037 = vst [vmem:[#allocation159_spill] sm:$0xff] %v7491_v38 }
 0x481   :  { %v7495_v61 = vpop.permute.xlu1 %1725 }
 0x482   :  { %12038 = vst [vmem:[#allocation160_spill] sm:$0xff] %v7495_v61  ;;  %v7511_v61 = vpop.permute.xlu0 %1854 }
 0x483   :  { %2115 = vperm.xlu0 %6176, %v1218_v28   ;;  %12042 = vst [vmem:[#allocation164_spill] sm:$0xff] %v7511_v61  ;;  %v1136_v28 = vmul.f32 %v7100_v14, %v6675_v53 }
 0x485   :  { %1848 = vperm.xlu2 %6177, %v1129_v62  }
 0x487   :  { %1860 = vperm.xlu1 %6175, %v1133_v41   ;;  %v7503_v11 = vpop.permute.xlu2 %1749  ;;  %v1224_v41 = vmul.f32 %v11992_v17, %v7323_v31  ;;  %v1138_v17 = vmul.f32 %v7113_v29, %v6746_v7  ;;  %v12052_v7 = vld [vmem:[#allocation78_spill] sm:$0xff] }
 0x488   :  { %12040 = vst [vmem:[#allocation162_spill] sm:$0xff] %v7503_v11 }
 0x489   :  { %v7507_v38 = vpop.permute.xlu1 %1734 }
 0x48a   :  { %12041 = vst [vmem:[#allocation163_spill] sm:$0xff] %v7507_v38  ;;  %v1135_v38 = vmul.f32 %v12045_v27, %v6738_v6  ;;  %v7523_v59 = vpop.permute.xlu0 %1863 }
 0x48b   :  { %2124 = vperm.xlu0 %6176, %v1221_v44   ;;  %12046 = vst [vmem:[#allocation35_spill] sm:$0xff] %v7523_v59  ;;  %v1139_v44 = vmul.f32 %v7155_v48, %v6661_v47  ;;  %v12144_v48 = vld [vmem:[#allocation70_spill] sm:$0xff] }
 0x48c   :  { %v1226_v14 = vmul.f32 %v12144_v48, %v7293_v15  ;;  %v12151_v48 = vld [vmem:[#allocation40_spill] sm:$0xff] }
 0x48d   :  { %1857 = vperm.xlu2 %6177, %v1132_v20  }
 0x48f   :  { %1869 = vperm.xlu1 %6175, %v1136_v28   ;;  %v7515_v62 = vpop.permute.xlu2 %1758  ;;  %v1227_v28 = vmul.f32 %v11997_v37, %v7216_v16  ;;  %v1141_v37 = vmul.f32 %v7123_v3, %v6762_v4  ;;  %v1148_v4 = vmul.f32 %v7177_v30, %v6727_v2 }
 0x490   :  { %12043 = vst [vmem:[#allocation165_spill] sm:$0xff] %v7515_v62 }
 0x491   :  { %v7519_v11 = vpop.permute.xlu1 %1743 }
 0x492   :  { %12044 = vst [vmem:[#allocation166_spill] sm:$0xff] %v7519_v11  ;;  %v7535_v11 = vpop.permute.xlu0 %1872 }
 0x493   :  { %2133 = vperm.xlu0 %6176, %v1224_v41   ;;  %12049 = vst [vmem:[#allocation169_spill] sm:$0xff] %v7535_v11  ;;  %v1142_v41 = vmul.f32 %v7163_v54, %v6701_v63 }
 0x495   :  { %1866 = vperm.xlu2 %6177, %v1135_v38  }
 0x497   :  { %1878 = vperm.xlu1 %6175, %v1139_v44   ;;  %v7527_v20 = vpop.permute.xlu2 %1767  ;;  %v1230_v44 = vmul.f32 %v12002_v23, %v7231_v24  ;;  %v1144_v23 = vmul.f32 %v7171_v32, %v6675_v53  ;;  %v1151_v53 = vmul.f32 %v7187_v45, %v6738_v6 }
 0x498   :  { %12047 = vst [vmem:[#allocation167_spill] sm:$0xff] %v7527_v20 }
 0x499   :  { %v7531_v62 = vpop.permute.xlu1 %1752 }
 0x49a   :  { %12048 = vst [vmem:[#allocation168_spill] sm:$0xff] %v7531_v62  ;;  %v7549_v62 = vpop.permute.xlu0 %1881 }
 0x49b   :  { %2142 = vperm.xlu0 %6176, %v1227_v28   ;;  %v1145_v28 = vmul.f32 %v12052_v7, %v6714_v21  ;;  %12053 = vst [vmem:[#allocation172_spill] sm:$0xff] %v7549_v62  ;;  %v12132_v62 = vld [vmem:[#allocation59_spill] sm:$0xff] }
 0x49c   :  { %v1214_v11 = vmul.f32 %v12132_v62, %v7231_v24 }
 0x49d   :  { %1875 = vperm.xlu2 %6177, %v1138_v17  }
 0x49f   :  { %1887 = vperm.xlu1 %6175, %v1142_v41   ;;  %v7539_v38 = vpop.permute.xlu2 %1776  ;;  %v1233_v41 = vmul.f32 %v12007_v22, %v7246_v33  ;;  %v1147_v22 = vmul.f32 %v7179_v12, %v6661_v47  ;;  %v1154_v47 = vmul.f32 %v6629_v36, %v7293_v15 }
 0x4a0   :  { %12050 = vst [vmem:[#allocation170_spill] sm:$0xff] %v7539_v38 }
 0x4a1   :  { %v7543_v20 = vpop.permute.xlu1 %1761 }
 0x4a2   :  { %12051 = vst [vmem:[#allocation171_spill] sm:$0xff] %v7543_v20  ;;  %v12128_v20 = vld [vmem:[#allocation58_spill] sm:$0xff] }
 0x4a3   :  { %2151 = vperm.xlu0 %6176, %v1230_v44   ;;  %v7561_v44 = vpop.permute.xlu0 %1890 }
 0x4a4   :  { %12056 = vst [vmem:[#allocation175_spill] sm:$0xff] %v7561_v44 }
 0x4a5   :  { %1884 = vperm.xlu2 %6177, %v1141_v37  }
 0x4a7   :  { %1896 = vperm.xlu1 %6175, %v1145_v28   ;;  %v7551_v17 = vpop.permute.xlu2 %1785  ;;  %v1236_v28 = vmul.f32 %v6980_v10, %v7263_v50  ;;  %v12062_v10 = vld [vmem:[#allocation96_spill] sm:$0xff] }
 0x4a8   :  { %12054 = vst [vmem:[#allocation173_spill] sm:$0xff] %v7551_v17 }
 0x4a9   :  { %v7555_v38 = vpop.permute.xlu1 %1770 }
 0x4aa   :  { %12055 = vst [vmem:[#allocation174_spill] sm:$0xff] %v7555_v38 }
 0x4ab   :  { %2160 = vperm.xlu0 %6176, %v1233_v41   ;;  %v7573_v2 = vpop.permute.xlu0 %1899 }
 0x4ac   :  { %12059 = vst [vmem:[#allocation178_spill] sm:$0xff] %v7573_v2  ;;  %v1211_v2 = vmul.f32 %v12128_v20, %v7216_v16  ;;  %v12134_v20 = vld [vmem:[#allocation18_spill] sm:$0xff] }
 0x4ad   :  { %1893 = vperm.xlu2 %6177, %v1144_v23   ;;  %v1239_v23 = vmul.f32 %v12015_v26, %v7278_v8  ;;  %v1153_v26 = vmul.f32 %v7199_v19, %v6714_v21  ;;  %v12069_v21 = vld [vmem:[#allocation19_spill] sm:$0xff] }
 0x4af   :  { %1905 = vperm.xlu1 %6175, %v1148_v4   ;;  %v7563_v37 = vpop.permute.xlu2 %1794 }
 0x4b0   :  { %12057 = vst [vmem:[#allocation176_spill] sm:$0xff] %v7563_v37  ;;  %v1150_v37 = vmul.f32 %v12062_v10, %v6701_v63  ;;  %v1157_v63 = vmul.f32 %v6624_v34, %v7308_v57 }
 0x4b1   :  { %v7567_v17 = vpop.permute.xlu1 %1779 }
 0x4b2   :  { %12058 = vst [vmem:[#allocation177_spill] sm:$0xff] %v7567_v17  ;;  %v12126_v17 = vld [vmem:[#allocation13_spill] sm:$0xff] }
 0x4b3   :  { %2169 = vperm.xlu0 %6176, %v1236_v28   ;;  %v7585_v6 = vpop.permute.xlu0 %1908  ;;  %v1208_v38 = vmul.f32 %v12126_v17, %v7323_v31 }
 0x4b4   :  { %12063 = vst [vmem:[#allocation96_spill] sm:$0xff] %v7585_v6 }
 0x4b5   :  { %1902 = vperm.xlu2 %6177, %v1147_v22   ;;  %v1242_v22 = vmul.f32 %v12020_v39, %v7293_v15  ;;  %v1156_v39 = vmul.f32 %v6756_v40, %v7263_v50  ;;  %v12073_v40 = vld [vmem:[#allocation6_spill] sm:$0xff] }
 0x4b7   :  { %1914 = vperm.xlu1 %6175, %v1151_v53   ;;  %v7575_v41 = vpop.permute.xlu2 %1803 }
 0x4b8   :  { %12060 = vst [vmem:[#allocation179_spill] sm:$0xff] %v7575_v41 }
 0x4b9   :  { %v7579_v4 = vpop.permute.xlu1 %1788 }
 0x4ba   :  { %12061 = vst [vmem:[#allocation180_spill] sm:$0xff] %v7579_v4 }
 0x4bb   :  { %2178 = vperm.xlu0 %6176, %v1239_v23   ;;  %v7597_v36 = vpop.permute.xlu0 %1917  ;;  %v1245_v23 = vmul.f32 %v12024_v42, %v7308_v57  ;;  %v12072_v42 = vld [vmem:[#allocation17_spill] sm:$0xff] }
 0x4bc   :  { %12066 = vst [vmem:[#allocation183_spill] sm:$0xff] %v7597_v36 }
 0x4bd   :  { %1911 = vperm.xlu2 %6177, %v1150_v37  }
 0x4bf   :  { %1923 = vperm.xlu1 %6175, %v1154_v47   ;;  %v7587_v28 = vpop.permute.xlu2 %1812 }
 0x4c0   :  { %12064 = vst [vmem:[#allocation181_spill] sm:$0xff] %v7587_v28 }
 0x4c1   :  { %v7591_v53 = vpop.permute.xlu1 %1797 }
 0x4c2   :  { %12065 = vst [vmem:[#allocation182_spill] sm:$0xff] %v7591_v53  ;;  %v1159_v53 = vmul.f32 %v12072_v42, %v7278_v8 }
 0x4c3   :  { %2187 = vperm.xlu0 %6176, %v1242_v22   ;;  %v1160_v22 = vmul.f32 %v12069_v21, %v7323_v31  ;;  %v1251_v21 = vmul.f32 %v7038_v58, %v7216_v16  ;;  %v12080_v58 = vld [vmem:[#allocation24_spill] sm:$0xff] }
 0x4c5   :  { %1920 = vperm.xlu2 %6177, %v1153_v26   ;;  %v7611_v26 = vpop.permute.xlu0 %1926 }
 0x4c7   :  { %1932 = vperm.xlu1 %6175, %v1157_v63   ;;  %v7599_v37 = vpop.permute.xlu2 %1821  ;;  %v1248_v63 = vmul.f32 %v12029_v9, %v7323_v31  ;;  %v12076_v9 = vld [vmem:[#allocation21_spill] sm:$0xff] }
 0x4c8   :  { %12067 = vst [vmem:[#allocation184_spill] sm:$0xff] %v7599_v37 }
 0x4c9   :  { %v7603_v47 = vpop.permute.xlu1 %1806 }
 0x4ca   :  { %12068 = vst [vmem:[#allocation185_spill] sm:$0xff] %v7603_v47 }
 0x4cb   :  { %2196 = vperm.xlu0 %6176, %v1245_v23   ;;  %v1163_v23 = vmul.f32 %v12073_v40, %v7216_v16  ;;  %v1254_v40 = vmul.f32 %v7044_v56, %v7231_v24  ;;  %v12084_v56 = vld [vmem:[#allocation11_spill] sm:$0xff] }
 0x4cd   :  { %1929 = vperm.xlu2 %6177, %v1156_v39   ;;  %v7627_v28 = vpop.permute.xlu0 %1935 }
 0x4cf   :  { %1941 = vperm.xlu1 %6175, %v1160_v22   ;;  %v7609_v34 = vpop.permute.xlu2 %1830 }
 0x4d0   :  { %12070 = vst [vmem:[#allocation19_spill] sm:$0xff] %v7609_v34  ;;  %v12121_v34 = vld [vmem:[#allocation53_spill] sm:$0xff] }
 0x4d1   :  { %v7615_v37 = vpop.permute.xlu1 %1815  ;;  %v1202_v4 = vmul.f32 %v12121_v34, %v7293_v15 }
 0x4d2   :  { %12071 = vst [vmem:[#allocation186_spill] sm:$0xff] %v7615_v37  ;;  %v1162_v37 = vmul.f32 %v12076_v9, %v7293_v15 }
 0x4d3   :  { %2205 = vperm.xlu0 %6176, %v1248_v63   ;;  %v12077_v63 = vld [vmem:[#allocation23_spill] sm:$0xff] }
 0x4d4   :  { %v1166_v42 = vmul.f32 %v12077_v63, %v7231_v24  ;;  %v1257_v63 = vmul.f32 %v7073_v25, %v7246_v33  ;;  %v12088_v25 = vld [vmem:[#allocation27_spill] sm:$0xff] }
 0x4d5   :  { %1938 = vperm.xlu2 %6177, %v1159_v53  }
 0x4d7   :  { %1950 = vperm.xlu1 %6175, %v1163_v23   ;;  %v7621_v39 = vpop.permute.xlu2 %1839 }
 0x4d8   :  { %12074 = vst [vmem:[#allocation17_spill] sm:$0xff] %v7621_v39  ;;  %v7641_v39 = vpop.permute.xlu0 %1944 }
 0x4d9   :  { %v7625_v22 = vpop.permute.xlu1 %1824 }
 0x4da   :  { %12075 = vst [vmem:[#allocation6_spill] sm:$0xff] %v7625_v22  ;;  %v1165_v22 = vmul.f32 %v12080_v58, %v7308_v57 }
 0x4db   :  { %2214 = vperm.xlu0 %6176, %v1251_v21   ;;  %v12081_v21 = vld [vmem:[#allocation26_spill] sm:$0xff] }
 0x4dc   :  { %v1169_v9 = vmul.f32 %v12081_v21, %v7246_v33  ;;  %v1260_v21 = vmul.f32 %v7079_v55, %v7263_v50  ;;  %v12092_v55 = vld [vmem:[#allocation30_spill] sm:$0xff] }
 0x4dd   :  { %1947 = vperm.xlu2 %6177, %v1162_v37  }
 0x4df   :  { %1959 = vperm.xlu1 %6175, %v1166_v42   ;;  %v7633_v53 = vpop.permute.xlu2 %1848 }
 0x4e0   :  { %12078 = vst [vmem:[#allocation21_spill] sm:$0xff] %v7633_v53  ;;  %v1168_v53 = vmul.f32 %v12084_v56, %v7323_v31 }
 0x4e1   :  { %v7637_v23 = vpop.permute.xlu1 %1833 }
 0x4e2   :  { %12079 = vst [vmem:[#allocation23_spill] sm:$0xff] %v7637_v23  ;;  %v7655_v23 = vpop.permute.xlu0 %1953 }
 0x4e3   :  { %2223 = vperm.xlu0 %6176, %v1254_v40   ;;  %v12085_v40 = vld [vmem:[#allocation31_spill] sm:$0xff] }
 0x4e4   :  { %v1172_v58 = vmul.f32 %v12085_v40, %v7263_v50 }
 0x4e5   :  { %1956 = vperm.xlu2 %6177, %v1165_v22  }
 0x4e7   :  { %1968 = vperm.xlu1 %6175, %v1169_v9   ;;  %v7645_v37 = vpop.permute.xlu2 %1857 }
 0x4e8   :  { %12082 = vst [vmem:[#allocation24_spill] sm:$0xff] %v7645_v37  ;;  %v1174_v37 = vmul.f32 %v12092_v55, %v7231_v24 }
 0x4e9   :  { %v7649_v42 = vpop.permute.xlu1 %1842 }
 0x4ea   :  { %12083 = vst [vmem:[#allocation26_spill] sm:$0xff] %v7649_v42  ;;  %v1171_v42 = vmul.f32 %v12088_v25, %v7216_v16  ;;  %v7669_v40 = vpop.permute.xlu0 %1962 }
 0x4eb   :  { %2232 = vperm.xlu0 %6176, %v1257_v63   ;;  %v12089_v63 = vld [vmem:[#allocation32_spill] sm:$0xff] }
 0x4ec   :  { %v1175_v56 = vmul.f32 %v12089_v63, %v7278_v8  ;;  %v1266_v63 = vmul.f32 %v7113_v29, %v7293_v15  ;;  %v12100_v29 = vld [vmem:[#allocation36_spill] sm:$0xff] }
 0x4ed   :  { %1965 = vperm.xlu2 %6177, %v1168_v53  }
 0x4ef   :  { %1977 = vperm.xlu1 %6175, %v1172_v58   ;;  %v7657_v22 = vpop.permute.xlu2 %1866  ;;  %v1263_v58 = vmul.f32 %v12045_v27, %v7278_v8  ;;  %v12096_v27 = vld [vmem:[#allocation34_spill] sm:$0xff] }
 0x4f0   :  { %12086 = vst [vmem:[#allocation11_spill] sm:$0xff] %v7657_v22 }
 0x4f1   :  { %v7661_v9 = vpop.permute.xlu1 %1851 }
 0x4f2   :  { %12087 = vst [vmem:[#allocation31_spill] sm:$0xff] %v7661_v9  ;;  %v12119_v9 = vld [vmem:[#allocation48_spill] sm:$0xff] }
 0x4f3   :  { %2241 = vperm.xlu0 %6176, %v1260_v21   ;;  %v12093_v21 = vld [vmem:[#allocation22_spill] sm:$0xff] }
 0x4f4   :  { %v1178_v25 = vmul.f32 %v12093_v21, %v7293_v15  ;;  %v1269_v21 = vmul.f32 %v7123_v3, %v7308_v57  ;;  %v12104_v3 = vld [vmem:[#allocation29_spill] sm:$0xff] }
 0x4f5   :  { %1974 = vperm.xlu2 %6177, %v1171_v42  }
 0x4f7   :  { %1986 = vperm.xlu1 %6175, %v1175_v56   ;;  %v7667_v53 = vpop.permute.xlu2 %1875 }
 0x4f8   :  { %12090 = vst [vmem:[#allocation27_spill] sm:$0xff] %v7667_v53  ;;  %v7685_v53 = vpop.permute.xlu0 %1971 }
 0x4f9   :  { %v7673_v22 = vpop.permute.xlu1 %1860 }
 0x4fa   :  { %12091 = vst [vmem:[#allocation32_spill] sm:$0xff] %v7673_v22  ;;  %v1177_v22 = vmul.f32 %v12096_v27, %v7246_v33 }
 0x4fb   :  { %2250 = vperm.xlu0 %6176, %v1263_v58   ;;  %v12097_v58 = vld [vmem:[#allocation37_spill] sm:$0xff] }
 0x4fc   :  { %v1181_v55 = vmul.f32 %v12097_v58, %v7308_v57  ;;  %v1272_v58 = vmul.f32 %v7171_v32, %v7323_v31  ;;  %v12108_v32 = vld [vmem:[#allocation39_spill] sm:$0xff] }
 0x4fd   :  { %1983 = vperm.xlu2 %6177, %v1174_v37  }
 0x4ff   :  { %1995 = vperm.xlu1 %6175, %v1178_v25   ;;  %v7679_v42 = vpop.permute.xlu2 %1884 }
 0x500   :  { %12094 = vst [vmem:[#allocation30_spill] sm:$0xff] %v7679_v42  ;;  %v7699_v42 = vpop.permute.xlu0 %1980 }
 0x501   :  { %v7683_v56 = vpop.permute.xlu1 %1869 }
 0x502   :  { %12095 = vst [vmem:[#allocation22_spill] sm:$0xff] %v7683_v56  ;;  %v1180_v56 = vmul.f32 %v12100_v29, %v7263_v50 }
 0x503   :  { %2259 = vperm.xlu0 %6176, %v1266_v63   ;;  %v12101_v63 = vld [vmem:[#allocation38_spill] sm:$0xff] }
 0x504   :  { %v1184_v27 = vmul.f32 %v12101_v63, %v7323_v31  ;;  %v1275_v63 = vmul.f32 %v7179_v12, %v7216_v16  ;;  %v12112_v12 = vld [vmem:[#allocation42_spill] sm:$0xff] }
 0x505   :  { %1992 = vperm.xlu2 %6177, %v1177_v22  }
 0x507   :  { %2004 = vperm.xlu1 %6175, %v1181_v55   ;;  %v7691_v37 = vpop.permute.xlu2 %1893 }
 0x508   :  { %12098 = vst [vmem:[#allocation34_spill] sm:$0xff] %v7691_v37  ;;  %v1183_v37 = vmul.f32 %v12104_v3, %v7278_v8 }
 0x509   :  { %v7695_v25 = vpop.permute.xlu1 %1878 }
 0x50a   :  { %12099 = vst [vmem:[#allocation37_spill] sm:$0xff] %v7695_v25  ;;  %v7713_v25 = vpop.permute.xlu0 %1989 }
 0x50b   :  { %2268 = vperm.xlu0 %6176, %v1269_v21   ;;  %v12105_v21 = vld [vmem:[#allocation41_spill] sm:$0xff] }
 0x50c   :  { %v1187_v29 = vmul.f32 %v12105_v21, %v7216_v16 }
 0x50d   :  { %2001 = vperm.xlu2 %6177, %v1180_v56  }
 0x50f   :  { %2013 = vperm.xlu1 %6175, %v1184_v27   ;;  %v7703_v22 = vpop.permute.xlu2 %1902 }
 0x510   :  { %12102 = vst [vmem:[#allocation36_spill] sm:$0xff] %v7703_v22  ;;  %v12118_v22 = vld [vmem:[#allocation3_spill] sm:$0xff] }
 0x511   :  { %v7707_v55 = vpop.permute.xlu1 %1887 }
 0x512   :  { %12103 = vst [vmem:[#allocation38_spill] sm:$0xff] %v7707_v55  ;;  %v1186_v55 = vmul.f32 %v12108_v32, %v7293_v15  ;;  %v7727_v21 = vpop.permute.xlu0 %1998 }
 0x513   :  { %2277 = vperm.xlu0 %6176, %v1272_v58   ;;  %v12109_v58 = vld [vmem:[#allocation44_spill] sm:$0xff] }
 0x514   :  { %v1190_v3 = vmul.f32 %v12109_v58, %v7231_v24  ;;  %v1281_v58 = vmul.f32 %v7199_v19, %v7246_v33 }
 0x515   :  { %2010 = vperm.xlu2 %6177, %v1183_v37  }
 0x517   :  { %2022 = vperm.xlu1 %6175, %v1187_v29   ;;  %v7715_v56 = vpop.permute.xlu2 %1911  ;;  %v1278_v29 = vmul.f32 %v12062_v10, %v7231_v24  ;;  %v12115_v10 = vld [vmem:[#allocation49_spill] sm:$0xff] }
 0x518   :  { %12106 = vst [vmem:[#allocation29_spill] sm:$0xff] %v7715_v56 }
 0x519   :  { %v7719_v27 = vpop.permute.xlu1 %1896 }
 0x51a   :  { %12107 = vst [vmem:[#allocation41_spill] sm:$0xff] %v7719_v27  ;;  %v1189_v27 = vmul.f32 %v12112_v12, %v7308_v57 }
 0x51b   :  { %2286 = vperm.xlu0 %6176, %v1275_v63   ;;  %v12113_v63 = vld [vmem:[#allocation45_spill] sm:$0xff] }
 0x51c   :  { %v1193_v32 = vmul.f32 %v12113_v63, %v7246_v33 }
 0x51d   :  { %2019 = vperm.xlu2 %6177, %v1186_v55  }
 0x51f   :  { %2031 = vperm.xlu1 %6175, %v1190_v3   ;;  %v7725_v37 = vpop.permute.xlu2 %1920 }
 0x520   :  { %12110 = vst [vmem:[#allocation39_spill] sm:$0xff] %v7725_v37  ;;  %v7743_v37 = vpop.permute.xlu0 %2007 }
 0x521   :  { %v7731_v56 = vpop.permute.xlu1 %1905 }
 0x522   :  { %12111 = vst [vmem:[#allocation44_spill] sm:$0xff] %v7731_v56  ;;  %v1192_v56 = vmul.f32 %v12115_v10, %v7323_v31  ;;  %v1199_v10 = vmul.f32 %v12119_v9, %v7278_v8  ;;  %v12122_v9 = vld [vmem:[#allocation54_spill] sm:$0xff] }
 0x523   :  { %2295 = vperm.xlu0 %6176, %v1278_v29   ;;  %v12116_v29 = vld [vmem:[#allocation47_spill] sm:$0xff] }
 0x524   :  { %v1196_v12 = vmul.f32 %v12116_v29, %v7263_v50  ;;  %v12120_v29 = vld [vmem:[#allocation80_spill] sm:$0xff] }
 0x525   :  { %2028 = vperm.xlu2 %6177, %v1189_v27  }
 0x527   :  { %2040 = vperm.xlu1 %6175, %v1193_v32   ;;  %v7737_v55 = vpop.permute.xlu2 %1929  ;;  %v12117_v32 = vld [vmem:[#allocation50_spill] sm:$0xff] }
 0x528   :  { %v1195_v19 = vmul.f32 %v12117_v32, %v7216_v16 }
 0x529   :  { %v7741_v3 = vpop.permute.xlu1 %1914 }
 0x52a   :  { %12114 = vst [vmem:[#allocation42_spill] sm:$0xff] %v7741_v3  ;;  %v7756_v3 = vpop.permute.xlu0 %2016 }
 0x52b   :  { %2304 = vperm.xlu0 %6176, %v1281_v58  }
 0x52d   :  { %2037 = vperm.xlu2 %6177, %v1192_v56  }
 0x52f   :  { %2049 = vperm.xlu1 %6175, %v1196_v12   ;;  %v7749_v27 = vpop.permute.xlu2 %1938  ;;  %v1198_v12 = vmul.f32 %v12120_v29, %v7231_v24 }
 0x531   :  { %v7751_v63 = vpop.permute.xlu1 %1923 }
 0x532   :  { %v7768_v32 = vpop.permute.xlu0 %2025 }
 0x533   :  { %6182 = vset.pattern.permute.xlu0 %v12118_v22 }
 0x535   :  { %2046 = vperm.xlu2 %6177, %v1195_v19   ;;  %v1201_v19 = vmul.f32 %v12122_v9, %v7246_v33 }
 0x537   :  { %2058 = vperm.xlu1 %6175, %v1199_v10   ;;  %v7760_v58 = vpop.permute.xlu2 %1947  ;;  %v12123_v10 = vld [vmem:[#allocation56_spill] sm:$0xff] }
 0x538   :  { %v1205_v36 = vmul.f32 %v12123_v10, %v7308_v57 }
 0x539   :  { %v7762_v56 = vpop.permute.xlu1 %1932 }
 0x53a   :  { %v7780_v47 = vpop.permute.xlu0 %2034 }
 0x53d   :  { %2055 = vperm.xlu2 %6177, %v1198_v12  }
 0x53f   :  { %2067 = vperm.xlu1 %6175, %v1202_v4   ;;  %v7770_v22 = vpop.permute.xlu2 %1956  ;;  %v12125_v4 = vld [vmem:[#allocation55_spill] sm:$0xff] }
 0x540   :  { %v1204_v12 = vmul.f32 %v12125_v4, %v7263_v50 }
 0x541   :  { %v7772_v41 = vpop.permute.xlu1 %1941 }
 0x545   :  { %2064 = vperm.xlu2 %6177, %v1201_v19   ;;  %v7792_v19 = vpop.permute.xlu0 %2043 }
 0x547   :  { %2076 = vperm.xlu1 %6175, %v1205_v36   ;;  %v7778_v29 = vpop.permute.xlu2 %1965  ;;  %v12127_v36 = vld [vmem:[#allocation60_spill] sm:$0xff] }
 0x548   :  { %12124 = vst [vmem:[#allocation45_spill] sm:$0xff] %v7778_v29  ;;  %v1207_v10 = vmul.f32 %v12127_v36, %v7278_v8 }
 0x549   :  { %v7782_v34 = vpop.permute.xlu1 %1950 }
 0x54d   :  { %2073 = vperm.xlu2 %6177, %v1204_v12   ;;  %v7804_v12 = vpop.permute.xlu0 %2052 }
 0x54f   :  { %2085 = vperm.xlu1 %6175, %v1208_v38   ;;  %v7788_v9 = vpop.permute.xlu2 %1974  ;;  %v12131_v38 = vld [vmem:[#allocation61_spill] sm:$0xff] }
 0x550   :  { %v1210_v17 = vmul.f32 %v12131_v38, %v7293_v15 }
 0x551   :  { %v7790_v6 = vpop.permute.xlu1 %1959 }
 0x555   :  { %2082 = vperm.xlu2 %6177, %v1207_v10   ;;  %v12135_v10 = vld [vmem:[#allocation64_spill] sm:$0xff]  ;;  %v7816_v61 = vpop.permute.xlu0 %2061 }
 0x556   :  { %v1217_v45 = vmul.f32 %v12135_v10, %v7246_v33  ;;  %v12141_v10 = vld [vmem:[#allocation33_spill] sm:$0xff] }
 0x557   :  { %2094 = vperm.xlu1 %6175, %v1211_v2   ;;  %v7798_v4 = vpop.permute.xlu2 %1983  ;;  %v1213_v2 = vmul.f32 %v12134_v20, %v7308_v57  ;;  %v1223_v54 = vmul.f32 %v12141_v10, %v7278_v8 }
 0x558   :  { %12129 = vst [vmem:[#allocation49_spill] sm:$0xff] %v7798_v4 }
 0x559   :  { %v7800_v44 = vpop.permute.xlu1 %1968 }
 0x55a   :  { %12130 = vst [vmem:[#allocation47_spill] sm:$0xff] %v7800_v44 }
 0x55d   :  { %2091 = vperm.xlu2 %6177, %v1210_v17   ;;  %v12139_v17 = vld [vmem:[#allocation67_spill] sm:$0xff]  ;;  %v7828_v43 = vpop.permute.xlu0 %2070 }
 0x55e   :  { %v1220_v13 = vmul.f32 %v12139_v17, %v7263_v50 }
 0x55f   :  { %2103 = vperm.xlu1 %6175, %v1214_v11   ;;  %v7808_v36 = vpop.permute.xlu2 %1992  ;;  %v12138_v11 = vld [vmem:[#allocation65_spill] sm:$0xff] }
 0x560   :  { %12133 = vst [vmem:[#allocation50_spill] sm:$0xff] %v7808_v36  ;;  %v1216_v62 = vmul.f32 %v12138_v11, %v7323_v31  ;;  %v1229_v36 = vmul.f32 %v12149_v51, %v7308_v57  ;;  %v1231_v51 = vmul.f32 %v11998_v35, %v7278_v8 }
 0x561   :  { %v7810_v59 = vpop.permute.xlu1 %1977 }
 0x565   :  { %2100 = vperm.xlu2 %6177, %v1213_v2  }
 0x567   :  { %2112 = vperm.xlu1 %6175, %v1217_v45   ;;  %v7818_v38 = vpop.permute.xlu2 %2001  ;;  %v1219_v45 = vmul.f32 %v11980_v49, %v7216_v16 }
 0x568   :  { %12136 = vst [vmem:[#allocation48_spill] sm:$0xff] %v7818_v38  ;;  %v1246_v38 = vmul.f32 %v7026_v1, %v7231_v24 }
 0x569   :  { %v7820_v30 = vpop.permute.xlu1 %1986 }
 0x56a   :  { %12137 = vst [vmem:[#allocation80_spill] sm:$0xff] %v7820_v30 }
 0x56d   :  { %2109 = vperm.xlu2 %6177, %v1216_v62   ;;  %v7840_v62 = vpop.permute.xlu0 %2079 }
 0x56f   :  { %2121 = vperm.xlu1 %6175, %v1220_v13   ;;  %v7826_v20 = vpop.permute.xlu2 %2010  ;;  %v12143_v13 = vld [vmem:[#allocation72_spill] sm:$0xff] }
 0x570   :  { %12140 = vst [vmem:[#allocation53_spill] sm:$0xff] %v7826_v20  ;;  %v1222_v17 = vmul.f32 %v12143_v13, %v7231_v24 }
 0x571   :  { %v7830_v2 = vpop.permute.xlu1 %1995 }
 0x575   :  { %2118 = vperm.xlu2 %6177, %v1219_v45   ;;  %v7852_v10 = vpop.permute.xlu0 %2088 }
 0x576   :  { %12148 = vst [vmem:[#allocation13_spill] sm:$0xff] %v7852_v10 }
 0x577   :  { %2130 = vperm.xlu1 %6175, %v1223_v54   ;;  %v7836_v11 = vpop.permute.xlu2 %2019  ;;  %v12147_v54 = vld [vmem:[#allocation73_spill] sm:$0xff] }
 0x578   :  { %v1225_v45 = vmul.f32 %v12147_v54, %v7246_v33 }
 0x579   :  { %v7838_v7 = vpop.permute.xlu1 %2004 }
 0x57a   :  { %12142 = vst [vmem:[#allocation54_spill] sm:$0xff] %v7838_v7 }
 0x57d   :  { %2127 = vperm.xlu2 %6177, %v1222_v17   ;;  %v12152_v17 = vld [vmem:[#allocation77_spill] sm:$0xff]  ;;  %v7864_v20 = vpop.permute.xlu0 %2097 }
 0x57f   :  { %2139 = vperm.xlu1 %6175, %v1226_v14   ;;  %v7846_v49 = vpop.permute.xlu2 %2028  ;;  %v1228_v14 = vmul.f32 %v12151_v48, %v7263_v50 }
 0x580   :  { %12145 = vst [vmem:[#allocation56_spill] sm:$0xff] %v7846_v49 }
 0x581   :  { %v7848_v60 = vpop.permute.xlu1 %2013 }
 0x582   :  { %12146 = vst [vmem:[#allocation55_spill] sm:$0xff] %v7848_v60  ;;  %v1232_v60 = vmul.f32 %v12152_v17, %v7323_v31  ;;  %v12157_v17 = vld [vmem:[#allocation83_spill] sm:$0xff] }
 0x583   :  { %v1238_v49 = vmul.f32 %v12157_v17, %v7231_v24  ;;  %v12165_v17 = vld [vmem:[#allocation86_spill] sm:$0xff] }
 0x585   :  { %2136 = vperm.xlu2 %6177, %v1225_v45  }
 0x587   :  { %2148 = vperm.xlu1 %6175, %v1229_v36   ;;  %v7856_v13 = vpop.permute.xlu2 %2037  ;;  %v12154_v36 = vld [vmem:[#allocation82_spill] sm:$0xff] }
 0x588   :  { %12150 = vst [vmem:[#allocation60_spill] sm:$0xff] %v7856_v13  ;;  %v1235_v45 = vmul.f32 %v12154_v36, %v7216_v16  ;;  %v7876_v13 = vpop.permute.xlu0 %2106  ;;  %v12160_v36 = vld [vmem:[#allocation87_spill] sm:$0xff] }
 0x589   :  { %v7858_v44 = vpop.permute.xlu1 %2022 }
 0x58d   :  { %2145 = vperm.xlu2 %6177, %v1228_v14  }
 0x58f   :  { %2157 = vperm.xlu1 %6175, %v1232_v60   ;;  %v7866_v54 = vpop.permute.xlu2 %2046  ;;  %v1234_v60 = vmul.f32 %v12003_v0, %v7293_v15 }
 0x591   :  { %v7868_v10 = vpop.permute.xlu1 %2031 }
 0x592   :  { %12153 = vst [vmem:[#allocation58_spill] sm:$0xff] %v7868_v10 }
 0x595   :  { %2154 = vperm.xlu2 %6177, %v1231_v51   ;;  %v7888_v51 = vpop.permute.xlu0 %2115 }
 0x596   :  { %12159 = vst [vmem:[#allocation64_spill] sm:$0xff] %v7888_v51  ;;  %v1244_v51 = vmul.f32 %v12165_v17, %v7263_v50 }
 0x597   :  { %2166 = vperm.xlu1 %6175, %v1235_v45   ;;  %v7874_v48 = vpop.permute.xlu2 %2055  ;;  %v1237_v45 = vmul.f32 %v12160_v36, %v7308_v57 }
 0x598   :  { %12155 = vst [vmem:[#allocation61_spill] sm:$0xff] %v7874_v48  ;;  %v12161_v48 = vld [vmem:[#allocation85_spill] sm:$0xff] }
 0x599   :  { %v7878_v14 = vpop.permute.xlu1 %2040 }
 0x59a   :  { %12156 = vst [vmem:[#allocation59_spill] sm:$0xff] %v7878_v14  ;;  %v1241_v14 = vmul.f32 %v12161_v48, %v7246_v33  ;;  %v12168_v48 = vlaneseq }
 0x59d   :  { %2163 = vperm.xlu2 %6177, %v1234_v60   ;;  %v7900_v60 = vpop.permute.xlu0 %2124 }
 0x59e   :  { %12164 = vst [vmem:[#allocation33_spill] sm:$0xff] %v7900_v60  ;;  %v12172_v60 = vld [vmem:[#allocation20_spill] sm:$0xff] }
 0x59f   :  { %2175 = vperm.xlu1 %6175, %v1238_v49   ;;  %v7884_v35 = vpop.permute.xlu2 %2064  ;;  %v1240_v49 = vmul.f32 %v12011_v52, %v7323_v31  ;;  %v7917_v4 = vmul.f32 %v12172_v60, %v7308_v57 }
 0x5a0   :  { %12158 = vst [vmem:[#allocation18_spill] sm:$0xff] %v7884_v35 }
 0x5a1   :  { %v7886_v10 = vpop.permute.xlu1 %2049  ;;  %12173 = vst [vmem:[#allocation71_spill] sm:$0xff] %v7917_v4  ;;  %v7956_v4 = vmul.f32 %v7063_v5, %v7263_v50 }
 0x5a5   :  { %2172 = vperm.xlu2 %6177, %v1237_v45   ;;  %v12170_v45 = vld [vmem:[#allocation9_spill] sm:$0xff] }
 0x5a7   :  { %2184 = vperm.xlu1 %6175, %v1241_v14   ;;  %v7894_v0 = vpop.permute.xlu2 %2073  ;;  %v7909_v14 = vand.u32 127, %v12168_v48 }
 0x5a8   :  { %12162 = vst [vmem:[#allocation65_spill] sm:$0xff] %v7894_v0  ;;  %v12171_v0 = vld [vmem:[#allocation91_spill] sm:$0xff] }
 0x5a9   :  { %v7896_v30 = vpop.permute.xlu1 %2058  ;;  %12169 = vst [vmem:[#allocation73_spill] sm:$0xff] %v7909_v14  ;;  %v1247_v52 = vmul.f32 %v12171_v0, %v7278_v8  ;;  %v7925_v17 = vadd.s32 4294967248, %v7909_v14  ;;  %v7928_v48 = vadd.s32 4294967264, %v7909_v14  ;;  %v7939_v60 = vadd.s32 4294967256, %v7909_v14 }
 0x5aa   :  { %12163 = vst [vmem:[#allocation67_spill] sm:$0xff] %v7896_v30  ;;  %v1243_v30 = vmul.f32 %v12170_v45, %v7216_v16  ;;  %v7931_v45 = vadd.s32 4294967240, %v7909_v14  ;;  %v2562_v57 = vperm.slane %v7751_v63, %v7909_v14  ;;  %v12178_v63 = vld [vmem:[#allocation94_spill] sm:$0xff] }
 0x5ab   :  { %v7962_v7 = vmul.f32 %v12178_v63, %v7323_v31 }
 0x5ad   :  { %2181 = vperm.xlu2 %6177, %v1240_v49   ;;  %v7922_v49 = vpop.permute.xlu0 %2133 }
 0x5ae   :  { %12175 = vst [vmem:[#allocation77_spill] sm:$0xff] %v7922_v49  ;;  %v7942_v49 = vadd.s32 4294967272, %v7909_v14 }
 0x5af   :  { %2193 = vperm.xlu1 %6175, %v1244_v51   ;;  %v7904_v36 = vpop.permute.xlu2 %2082  ;;  %v7920_v51 = vadd.s32 4294967288, %v7909_v14 }
 0x5b0   :  { %12166 = vst [vmem:[#allocation72_spill] sm:$0xff] %v7904_v36 }
 0x5b1   :  { %v7906_v35 = vpop.permute.xlu1 %2067  ;;  %12174 = vst [vmem:[#allocation40_spill] sm:$0xff] %v7920_v51  ;;  %v2578_v36 = vperm.slane %v7782_v34, %v7920_v51  ;;  %v7966_v34 = vmul.f32 %v7067_v18, %v7278_v8  ;;  %v2563_v1 = vperm.slane %v7611_v26, %v7920_v51  ;;  %v2567_v18 = vperm.slane %v7762_v56, %v7942_v49 }
 0x5b2   :  { %12167 = vst [vmem:[#allocation70_spill] sm:$0xff] %v7906_v35  ;;  %v2569_v26 = vperm.slane %v7627_v28, %v7928_v48  ;;  %v2592_v56 = vperm.slane %v7685_v53, %v7909_v14  ;;  %v2603_v28 = vperm.slane %v7713_v25, %v7925_v17  ;;  %v2614_v53 = vperm.slane %v7743_v37, %v7928_v48 }
 0x5b3   :  { %v2564_v63 = vsel %vm2311_vm0, %v2563_v1, %v2562_v57  ;;  %v2586_v57 = vperm.slane %v7669_v40, %v7939_v60  ;;  %v2584_v40 = vperm.slane %v7790_v6, %v7928_v48 }
 0x5b5   :  { %2190 = vperm.xlu2 %6177, %v1243_v30   ;;  %v7934_v30 = vadd.s32 4294967280, %v7909_v14 }
 0x5b7   :  { %2202 = vperm.xlu1 %6175, %v1247_v52   ;;  %v7936_v0 = vpop.permute.xlu2 %2091  ;;  %v1249_v52 = vmul.f32 %v12025_v46, %v7246_v33  ;;  %v2577_v46 = vperm.slane %v7760_v58, %v7909_v14  ;;  %v2625_v6 = vperm.slane %v7768_v32, %v7934_v30  ;;  %v2653_v32 = vperm.slane %v7828_v43, %v7920_v51 }
 0x5b8   :  { %12176 = vst [vmem:[#allocation82_spill] sm:$0xff] %v7936_v0  ;;  %v12177_v0 = vld [vmem:[#allocation93_spill] sm:$0xff]  ;;  %v2607_v58 = vperm.slane %v7830_v2, %v7909_v14  ;;  %v2670_v43 = vperm.slane %v7864_v20, %v7934_v30  ;;  %v2638_v2 = vperm.slane %v7866_v54, %v7920_v51 }
 0x5b9   :  { %v1250_v29 = vmul.f32 %v12177_v0, %v7293_v15  ;;  %v7958_v35 = vpop.permute.xlu1 %2076  ;;  %v12179_v0 = vld [vmem:[#allocation95_spill] sm:$0xff]  ;;  %v2579_v8 = vsel %vm2311_vm0, %v2578_v36, %v2577_v46  ;;  %v2597_v36 = vperm.slane %v7699_v42, %v7942_v49  ;;  %v8006_v42 = vpop.permute.xlu0 %2142  ;;  %v12182_v54 = vld [vmem:[#allocation70_spill] sm:$0xff] }
 0x5ba   :  { %v7974_v5 = vmul.f32 %v12179_v0, %v7216_v16  ;;  %v2580_v0 = vperm.slane %v7655_v23, %v7934_v30  ;;  %v2565_v16 = vperm.slane %v7737_v55, %v7934_v30  ;;  %v2608_v23 = vperm.slane %v7727_v21, %v7920_v51  ;;  %12180 = vst [vmem:[#allocation83_spill] sm:$0xff] %v8006_v42  ;;  %v12285_v42 = vld [vmem:[#allocation52_spill] sm:$0xff] }
 0x5bb   :  { %v2582_v21 = vperm.slane %v7770_v22, %v7942_v49  ;;  %v2637_v22 = vperm.slane %v7792_v19, %v7909_v14  ;;  %v2659_v19 = vperm.slane %v7840_v62, %v7928_v48 }
 0x5bc   :  { %v2566_v1 = vsel %vm2315_vm1, %v2565_v16, %v2564_v63  ;;  %v2581_v55 = vsel %vm2315_vm1, %v2580_v0, %v2579_v8  ;;  %v2593_v16 = vperm.slane %v7788_v9, %v7920_v51  ;;  %v2595_v63 = vperm.slane %v7810_v59, %v7934_v30 }
 0x5bd   :  { %2199 = vperm.xlu2 %6177, %v1246_v38   ;;  %v2568_v46 = vsel %vm2319_vm2, %v2567_v18, %v2566_v1  ;;  %v2642_v9 = vperm.slane %v7804_v12, %v7942_v49  ;;  %v2583_v1 = vsel %vm2319_vm2, %v2582_v21, %v2581_v55  ;;  %v2571_v12 = vperm.slane %v7749_v27, %v7939_v60 }
 0x5be   :  { %v2570_v8 = vsel %vm2323_vm3, %v2569_v26, %v2568_v46  ;;  %v2585_v59 = vsel %vm2323_vm3, %v2584_v40, %v2583_v1  ;;  %v2573_v18 = vperm.slane %v7772_v41, %v7925_v17  ;;  %v2594_v55 = vsel %vm2311_vm0, %v2593_v16, %v2592_v56 }
 0x5bf   :  { %2211 = vperm.xlu1 %6175, %v1250_v29   ;;  %v8002_v38 = vpop.permute.xlu2 %2100  ;;  %v2631_v29 = vperm.slane %v7780_v47, %v7939_v60  ;;  %v2596_v26 = vsel %vm2315_vm1, %v2595_v63, %v2594_v55  ;;  %v2623_v40 = vperm.slane %v7858_v44, %v7920_v51  ;;  %v2572_v46 = vsel %vm2327_vm4, %v2571_v12, %v2570_v8  ;;  %v12181_v44 = vld [vmem:[#allocation54_spill] sm:$0xff]  ;;  %v12183_v63 = vld [vmem:[#allocation71_spill] sm:$0xff]  ;;  %v12184_v8 = vld [vmem:[#allocation45_spill] sm:$0xff] }
 0x5c0   :  { %v2587_v41 = vsel %vm2327_vm4, %v2586_v57, %v2585_v59  ;;  %v2640_v56 = vperm.slane %v7886_v10, %v7934_v30  ;;  %v2609_v20 = vsel %vm2311_vm0, %v2608_v23, %v2607_v58  ;;  %v2622_v21 = vperm.slane %v7836_v11, %v7909_v14  ;;  %v12185_v23 = vld [vmem:[#allocation48_spill] sm:$0xff]  ;;  %v12186_v59 = vld [vmem:[#allocation49_spill] sm:$0xff] }
 0x5c1   :  { %v8021_v0 = vpop.permute.xlu1 %2085  ;;  %v2612_v16 = vperm.slane %v12181_v44, %v7942_v49  ;;  %v2574_v57 = vsel %vm2331_vm5, %v2573_v18, %v2572_v46  ;;  %v2588_v10 = vperm.slane %v12184_v8, %v7925_v17  ;;  %v2598_v58 = vsel %vm2319_vm2, %v2597_v36, %v2596_v26  ;;  %v12187_v55 = vld [vmem:[#allocation80_spill] sm:$0xff]  ;;  %v8078_v18 = vpop.permute.xlu0 %2151 }
 0x5c2   :  { %v2610_v11 = vperm.slane %v12185_v23, %v7934_v30  ;;  %v2599_v12 = vperm.slane %v12186_v59, %v7928_v48  ;;  %v2601_v44 = vperm.slane %v12187_v55, %v7939_v60  ;;  %12188 = vst [vmem:[#allocation87_spill] sm:$0xff] %v8078_v18  ;;  %v2663_v25 = vperm.slane %v8021_v0, %v7925_v17 }
 0x5c3   :  { %v2589_v46 = vsel %vm2331_vm5, %v2588_v10, %v2587_v41  ;;  %v12189_v41 = vld [vmem:[#allocation58_spill] sm:$0xff] }
 0x5c4   :  { %v2611_v36 = vsel %vm2315_vm1, %v2610_v11, %v2609_v20  ;;  %v2600_v23 = vsel %vm2323_vm3, %v2599_v12, %v2598_v58  ;;  %v12190_v20 = vld [vmem:[#allocation65_spill] sm:$0xff] }
 0x5c5   :  { %2208 = vperm.xlu2 %6177, %v1249_v52   ;;  %v2652_v52 = vperm.slane %v12182_v54, %v7909_v14  ;;  %v2624_v54 = vsel %vm2311_vm0, %v2623_v40, %v2622_v21  ;;  %v2613_v59 = vsel %vm2319_vm2, %v2612_v16, %v2611_v36  ;;  %v2629_v21 = vperm.slane %v12189_v41, %v7928_v48  ;;  %v12192_v16 = vld [vmem:[#allocation56_spill] sm:$0xff]  ;;  %v12194_v12 = vld [vmem:[#allocation61_spill] sm:$0xff]  ;;  %v12196_v36 = vld [vmem:[#allocation55_spill] sm:$0xff] }
 0x5c6   :  { %v2602_v58 = vsel %vm2327_vm4, %v2601_v44, %v2600_v23  ;;  %v2627_v11 = vperm.slane %v12192_v16, %v7942_v49  ;;  %v2644_v55 = vperm.slane %v12194_v12, %v7928_v48  ;;  %v12199_v16 = vld [vmem:[#allocation59_spill] sm:$0xff]  ;;  %v12204_v12 = vperm.slane %v7816_v61, %v7925_v17 }
 0x5c7   :  { %2220 = vperm.xlu1 %6175, %v12183_v63   ;;  %v8064_v1 = vpop.permute.xlu2 %2109  ;;  %v2639_v63 = vsel %vm2311_vm0, %v2638_v2, %v2637_v22  ;;  %v2654_v40 = vsel %vm2311_vm0, %v2653_v32, %v2652_v52  ;;  %v2657_v22 = vperm.slane %v7958_v35, %v7942_v49  ;;  %v2626_v2 = vsel %vm2315_vm1, %v2625_v6, %v2624_v54  ;;  %v12193_v35 = vld [vmem:[#allocation67_spill] sm:$0xff] }
 0x5c8   :  { %v2641_v26 = vsel %vm2315_vm1, %v2640_v56, %v2639_v63  ;;  %v2655_v56 = vperm.slane %v12190_v20, %v7934_v30  ;;  %v2646_v52 = vperm.slane %v12193_v35, %v7939_v60  ;;  %v2615_v6 = vsel %vm2323_vm3, %v2614_v53, %v2613_v59  ;;  %v12197_v53 = vld [vmem:[#allocation47_spill] sm:$0xff] }
 0x5c9   :  { %v2095_v27 = vpop.permute.xlu1 %2094  ;;  %v2643_v32 = vsel %vm2319_vm2, %v2642_v9, %v2641_v26  ;;  %v12195_v9 = vld [vmem:[#allocation53_spill] sm:$0xff]  ;;  %v2618_v26 = vperm.slane %v12196_v36, %v7925_v17  ;;  %v2590_v59 = vperm.slane %v12197_v53, %v7931_v45  ;;  %v2635_v62 = vperm.slane %v12199_v16, %v7931_v45 }
 0x5ca   :  { %v2668_v8 = vperm.slane %v2095_v27, %v7920_v51  ;;  %v12191_v27 = vld [vmem:[#allocation82_spill] sm:$0xff]  ;;  %v2656_v44 = vsel %vm2315_vm1, %v2655_v56, %v2654_v40  ;;  %v2616_v63 = vperm.slane %v12195_v9, %v7939_v60  ;;  %v2645_v20 = vsel %vm2323_vm3, %v2644_v55, %v2643_v32  ;;  %v8151_v32 = vpop.permute.xlu0 %2160  ;;  %v12207_v36 = vld [vmem:[#allocation13_spill] sm:$0xff] }
 0x5cb   :  { %v2667_v10 = vperm.slane %v12191_v27, %v7909_v14  ;;  %v2658_v23 = vsel %vm2319_vm2, %v2657_v22, %v2656_v44  ;;  %v12198_v40 = vld [vmem:[#allocation50_spill] sm:$0xff]  ;;  %12201 = vst [vmem:[#allocation85_spill] sm:$0xff] %v8151_v32  ;;  %v2591_v35 = vsel %vm2335_vm6, %v2590_v59, %v2589_v46  ;;  %v12209_v53 = vperm.slane %v7876_v13, %v7939_v60  ;;  %v12210_v13 = vld [vmem:[#allocation28_spill] sm:$0xff] }
 0x5cc   :  { %v2617_v22 = vsel %vm2327_vm4, %v2616_v63, %v2615_v6  ;;  %v12206_v9 = vld [vmem:[#allocation18_spill] sm:$0xff] }
 0x5cd   :  { %2217 = vperm.xlu2 %6177, %v7956_v4   ;;  %v2669_v54 = vsel %vm2311_vm0, %v2668_v8, %v2667_v10  ;;  %v2628_v4 = vsel %vm2319_vm2, %v2627_v11, %v2626_v2  ;;  %v2605_v8 = vperm.slane %v12198_v40, %v7931_v45  ;;  %v2604_v2 = vsel %vm2331_vm5, %v2603_v28, %v2602_v58 }
 0x5ce   :  { %v2630_v41 = vsel %vm2323_vm3, %v2629_v21, %v2628_v4  ;;  %v2671_v56 = vsel %vm2315_vm1, %v2670_v43, %v2669_v54  ;;  %v2660_v10 = vsel %vm2323_vm3, %v2659_v19, %v2658_v23  ;;  %v2672_v21 = vperm.slane %v8002_v38, %v7942_v49  ;;  %v12200_v19 = vld [vmem:[#allocation72_spill] sm:$0xff] }
 0x5cf   :  { %2229 = vperm.xlu1 %6175, %v7962_v7   ;;  %v8118_v37 = vpop.permute.xlu2 %2118  ;;  %v2647_v7 = vsel %vm2327_vm4, %v2646_v52, %v2645_v20  ;;  %v2619_v58 = vsel %vm2331_vm5, %v2618_v26, %v2617_v22  ;;  %v2632_v43 = vsel %vm2327_vm4, %v2631_v29, %v2630_v41  ;;  %v2661_v11 = vperm.slane %v12200_v19, %v7939_v60  ;;  %v12203_v52 = vld [vmem:[#allocation60_spill] sm:$0xff]  ;;  %v12215_v19 = vld [vmem:[#allocation57_spill] sm:$0xff] }
 0x5d0   :  { %v12202_v38 = vperm.slane %v7641_v39, %v7931_v45  ;;  %v2633_v47 = vperm.slane %v12203_v52, %v7925_v17  ;;  %v2673_v29 = vsel %vm2319_vm2, %v2672_v21, %v2671_v56  ;;  %v2606_v6 = vsel %vm2335_vm6, %v2605_v8, %v2604_v2  ;;  %v12211_v21 = vld [vmem:[#allocation99_spill] sm:$0xff] }
 0x5d1   :  { %v2104_v27 = vpop.permute.xlu1 %2103  ;;  %v2649_v55 = vsel %vm2331_vm5, %v12204_v12, %v2647_v7  ;;  %v2662_v44 = vsel %vm2327_vm4, %v2661_v11, %v2660_v10  ;;  %v2650_v63 = vperm.slane %v12206_v9, %v7931_v45  ;;  %v2665_v26 = vperm.slane %v12207_v36, %v7931_v45  ;;  %v12216_v11 = vld [vmem:[#allocation100_spill] sm:$0xff] }
 0x5d2   :  { %v2674_v28 = vperm.slane %v2104_v27, %v7928_v48  ;;  %v2576_v0 = vsel %vm2335_vm6, %v12202_v38, %v2574_v57  ;;  %v12205_v57 = vperm.slane %v7756_v3, %v7931_v45  ;;  %v2634_v54 = vsel %vm2331_vm5, %v2633_v47, %v2632_v43 }
 0x5d3   :  { %v2664_v61 = vsel %vm2331_vm5, %v2663_v25, %v2662_v44  ;;  %v2823_v4 = vsel %vm2802_vm7, %v2591_v35, %v2576_v0  ;;  %v2651_v40 = vsel %vm2335_vm6, %v2650_v63, %v2649_v55  ;;  %v2678_v41 = vperm.slane %v8064_v1, %v7925_v17  ;;  %v12217_v0 = vld [vmem:[#allocation103_spill] sm:$0xff]  ;;  %v8227_v55 = vld [vmem:[%s11535_s2] sm:$0xff] }
 0x5d4   :  { %v2675_v39 = vsel %vm2323_vm3, %v2674_v28, %v2673_v29  ;;  %v2621_v46 = vsel %vm2335_vm6, %v12205_v57, %v2619_v58  ;;  %v2824_v23 = vsel %vm2804_vm8, %v2606_v6, %v2823_v4  ;;  %v1258_v7 = vmul.f32 %v12210_v13, %v7293_v15  ;;  %v8205_v58 = vpop.permute.xlu0 %2169  ;;  %v12221_v6 = vld [vmem:[#allocation102_spill] sm:$0xff]  ;;  %v12222_v44 = vld [vmem:[#allocation43_spill] sm:$0xff] }
 0x5d5   :  { %2226 = vperm.xlu2 %6177, %v7966_v34   ;;  %v2636_v34 = vsel %vm2335_vm6, %v2635_v62, %v2634_v54  ;;  %v2677_v59 = vsel %vm2327_vm4, %v12209_v53, %v2675_v39  ;;  %v2825_v8 = vsel %vm2806_vm9, %v2621_v46, %v2824_v23  ;;  %v1262_v25 = vmul.f32 %v12211_v21, %v7231_v24  ;;  %v12226_v63 = vld [vmem:[#allocation123_spill] sm:$0xff]  ;;  %v12230_v53 = vld [vmem:[#allocation98_spill] sm:$0xff] }
 0x5d6   :  { %v2826_v2 = vsel %vm2808_vm10, %v2636_v34, %v2825_v8  ;;  %v2679_v56 = vsel %vm2331_vm5, %v2678_v41, %v2677_v59  ;;  %12212 = vst [vmem:[#allocation9_spill] sm:$0xff] %v8205_v58  ;;  %v1261_v38 = vmul.f32 %v12216_v11, %v12215_v19  ;;  %v1265_v35 = vmul.f32 %v12217_v0, %v7246_v33  ;;  %v12229_v34 = vld [vmem:[#allocation97_spill] sm:$0xff]  ;;  %v12236_v13 = vld [vmem:[#allocation106_spill] sm:$0xff] }
 0x5d7   :  { %2238 = vperm.xlu1 %6175, %v7974_v5   ;;  %v8182_v3 = vpop.permute.xlu2 %2127  ;;  %v2666_v5 = vsel %vm2335_vm6, %v2665_v26, %v2664_v61  ;;  %v2827_v27 = vsel %vm2810_vm11, %v2651_v40, %v2826_v2  ;;  %v1264_v12 = vmul.f32 %v12221_v6, %v7323_v31  ;;  %v1268_v39 = vmul.f32 %v12222_v44, %v7263_v50  ;;  %v12227_v61 = vld [vmem:[#allocation111_spill] sm:$0xff]  ;;  %v12228_v26 = vld [vmem:[#allocation78_spill] sm:$0xff]  ;;  %v12232_v8 = vld [vmem:[#allocation101_spill] sm:$0xff] }
 0x5d8   :  { %12208 = vst [vmem:[#allocation86_spill] sm:$0xff] %v8182_v3  ;;  %v2828_v1 = vsel %vm2812_vm12, %v2666_v5, %v2827_v27  ;;  %v11691_v46 = vperm.slane %v8227_v55, 4  ;;  %v1267_v36 = vmul.f32 %v12227_v61, %v12226_v63  ;;  %v8244_v4 = vmul.f32 %v12228_v26, %v7246_v33  ;;  %v8253_v40 = vld [vmem:[%s11535_s2 + $0x8] sm:$0xff]  ;;  %v12234_v33 = vld [vmem:[#allocation105_spill] sm:$0xff]  ;;  %v12239_v21 = vld [vmem:[#allocation110_spill] sm:$0xff] }
 0x5d9   :  { %v2113_v20 = vpop.permute.xlu1 %2112  ;;  %v2310_v23 = vperm.slane %v12229_v34, %v7920_v51  ;;  %12231 = vst [vmem:[#allocation45_spill] sm:$0xff] %v8253_v40  ;;  %v2338_v41 = vperm.slane %v12232_v8, %v7920_v51  ;;  %v12241_v11 = vld [vmem:[#allocation114_spill] sm:$0xff]  ;;  %v12243_v6 = vld [vmem:[#allocation129_spill] sm:$0xff]  ;;  %v12245_v63 = vld [vmem:[#allocation116_spill] sm:$0xff]  ;;  %v12260_v8 = vperm.slane %v8253_v40, 1 }
 0x5da   :  { %v2680_v22 = vperm.slane %v2113_v20, %v7931_v45  ;;  %v12233_v20 = vld [vmem:[#allocation104_spill] sm:$0xff]  ;;  %v12242_v0 = vld [vmem:[#allocation126_spill] sm:$0xff]  ;;  %v12254_v26 = vld [vmem:[#allocation133_spill] sm:$0xff] }
 0x5db   :  { %v12247_v34 = vld [vmem:[#allocation120_spill] sm:$0xff]  ;;  %v12252_v61 = vld [vmem:[#allocation130_spill] sm:$0xff]  ;;  %v12256_v27 = vld [vmem:[#allocation25_spill] sm:$0xff] }
 0x5dc   :  { %v2681_v10 = vsel %vm2335_vm6, %v2680_v22, %v2679_v56  ;;  %v8218_v47 = vpop.permute.xlu0 %2178  ;;  %v12235_v22 = vld [vmem:[#allocation7_spill] sm:$0xff]  ;;  %v12257_v5 = vld [vmem:[#allocation113_spill] sm:$0xff] }
 0x5dd   :  { %2235 = vperm.xlu2 %6177, %v1258_v7   ;;  %v2829_v28 = vsel %vm2814_vm13, %v2681_v10, %v2828_v1  ;;  %12219 = vst [vmem:[#allocation94_spill] sm:$0xff] %v8218_v47  ;;  %v1271_v7 = vmul.f32 %v12236_v13, %v12235_v22  ;;  %v12237_v56 = vld [vmem:[#allocation107_spill] sm:$0xff]  ;;  %v12238_v10 = vld [vmem:[#allocation108_spill] sm:$0xff]  ;;  %v12248_v13 = vld [vmem:[#allocation125_spill] sm:$0xff] }
 0x5de   :  { %v2848_v43 = vsel %vm2841_vm14, %v2829_v28, 0.0  ;;  %v12240_v28 = vld [vmem:[#allocation112_spill] sm:$0xff]  ;;  %v12251_v1 = vld [vmem:[#allocation14_spill] sm:$0xff] }
 0x5df   :  { %2247 = vperm.xlu1 %6175, %v1262_v25   ;;  %2849 = vadd.xlane.f32.xlu0 %v2848_v43  ;;  %v8208_v16 = vpop.permute.xlu2 %2136  ;;  %v12255_v25 = vld [vmem:[#allocation62_spill] sm:$0xff]  ;;  %v12258_v43 = vld [vmem:[#allocation127_spill] sm:$0xff] }
 0x5e0   :  { %12213 = vst [vmem:[#allocation91_spill] sm:$0xff] %v8208_v16  ;;  %v2318_v16 = vperm.slane %v12258_v43, %v7942_v49 }
 0x5e1   :  { %v8210_v62 = vpop.permute.xlu1 %2121 }
 0x5e2   :  { %12214 = vst [vmem:[#allocation20_spill] sm:$0xff] %v8210_v62 }
 0x5e4   :  { %v8236_v9 = vpop.permute.xlu0 %2187 }
 0x5e5   :  { %2244 = vperm.xlu2 %6177, %v1261_v38   ;;  %12225 = vst [vmem:[#allocation71_spill] sm:$0xff] %v8236_v9  ;;  %v1270_v38 = vmul.f32 %v12257_v5, %v7231_v24  ;;  %v12263_v24 = vld [vmem:[#allocation51_spill] sm:$0xff]  ;;  %v12264_v5 = vld [vmem:[#allocation134_spill] sm:$0xff] }
 0x5e6   :  { %v2353_v43 = vperm.slane %v12264_v5, %v7920_v51 }
 0x5e7   :  { %2256 = vperm.xlu1 %6175, %v1265_v35   ;;  %v8216_v52 = vpop.permute.xlu2 %2145  ;;  %v2308_v35 = vperm.slane %v12242_v0, %v7909_v14  ;;  %v12261_v0 = vld [vmem:[#allocation68_spill] sm:$0xff] }
 0x5e8   :  { %12218 = vst [vmem:[#allocation93_spill] sm:$0xff] %v8216_v52  ;;  %v12268_v52 = vld [vmem:[#allocation81_spill] sm:$0xff] }
 0x5e9   :  { %v8220_v29 = vpop.permute.xlu1 %2130 }
 0x5ea   :  { %12220 = vst [vmem:[#allocation95_spill] sm:$0xff] %v8220_v29 }
 0x5ed   :  { %2253 = vperm.xlu2 %6177, %v1264_v12   ;;  %v2337_v12 = vperm.slane %v12243_v6, %v7909_v14  ;;  %v12262_v6 = vld [vmem:[#allocation121_spill] sm:$0xff] }
 0x5ee   :  { %v2314_v29 = vperm.slane %v12262_v6, %v7934_v30 }
 0x5ef   :  { %2265 = vperm.xlu1 %6175, %v1268_v39   ;;  %v8231_v57 = vpop.permute.xlu2 %2154  ;;  %v2312_v39 = vsel %vm2311_vm0, %v2310_v23, %v2308_v35  ;;  %v2339_v2 = vsel %vm2311_vm0, %v2338_v41, %v2337_v12  ;;  %v2340_v23 = vperm.slane %v12263_v24, %v7934_v30  ;;  %v8322_v35 = vpop.permute.xlu0 %2196  ;;  %v12266_v41 = vld [vmem:[#allocation69_spill] sm:$0xff]  ;;  %v12267_v12 = vld [vmem:[#allocation79_spill] sm:$0xff] }
 0x5f0   :  { %12223 = vst [vmem:[#allocation54_spill] sm:$0xff] %v8231_v57  ;;  %v12259_v57 = vld [vmem:[#allocation131_spill] sm:$0xff]  ;;  %v12270_v24 = vld [vmem:[#allocation145_spill] sm:$0xff]  ;;  %v2316_v5 = vsel %vm2315_vm1, %v2314_v29, %v2312_v39  ;;  %v12275_v39 = vld [vmem:[#allocation150_spill] sm:$0xff] }
 0x5f1   :  { %v8234_v54 = vpop.permute.xlu1 %2139  ;;  %v2342_v3 = vperm.slane %v12259_v57, %v7942_v49  ;;  %12265 = vst [vmem:[#allocation80_spill] sm:$0xff] %v8322_v35  ;;  %v12271_v35 = vld [vmem:[#allocation16_spill] sm:$0xff]  ;;  %v2341_v57 = vsel %vm2315_vm1, %v2340_v23, %v2339_v2  ;;  %v2320_v58 = vsel %vm2319_vm2, %v2318_v16, %v2316_v5 }
 0x5f2   :  { %12224 = vst [vmem:[#allocation70_spill] sm:$0xff] %v8234_v54  ;;  %v2352_v47 = vperm.slane %v12271_v35, %v7909_v14  ;;  %v12276_v2 = vld [vmem:[#allocation124_spill] sm:$0xff] }
 0x5f3   :  { %2937 = vperm.xlu0 %6182, %v11691_v46   ;;  %v12249_v46 = vld [vmem:[#allocation4_spill] sm:$0xff]  ;;  %v2322_v23 = vperm.slane %v12276_v2, %v7928_v48  ;;  %v12282_v2 = vperm.slane %v12233_v20, %v7928_v48  ;;  %v12287_v20 = vld [vmem:[#allocation135_spill] sm:$0xff] }
 0x5f4   :  { %v2354_v16 = vsel %vm2311_vm0, %v2353_v43, %v2352_v47  ;;  %v12283_v43 = vld [vmem:[#allocation132_spill] sm:$0xff] }
 0x5f5   :  { %2262 = vperm.xlu2 %6177, %v1267_v36   ;;  %v12246_v36 = vld [vmem:[#allocation119_spill] sm:$0xff]  ;;  %v2324_v35 = vsel %vm2323_vm3, %v2322_v23, %v2320_v58  ;;  %v2348_v5 = vperm.slane %v12283_v43, %v7925_v17  ;;  %v2359_v23 = vperm.slane %v12287_v20, %v7928_v48  ;;  %v12292_v54 = vld [vmem:[#allocation8_spill] sm:$0xff] }
 0x5f7   :  { %2274 = vperm.xlu1 %6175, %v1271_v7   ;;  %v8277_v44 = vpop.permute.xlu2 %2163  ;;  %v12250_v7 = vld [vmem:[#allocation5_spill] sm:$0xff] }
 0x5f8   :  { %12244 = vst [vmem:[#allocation48_spill] sm:$0xff] %v8277_v44  ;;  %v2343_v44 = vsel %vm2319_vm2, %v2342_v3, %v2341_v57  ;;  %v12278_v3 = vld [vmem:[#allocation153_spill] sm:$0xff]  ;;  %v12284_v57 = vld [vmem:[#allocation138_spill] sm:$0xff] }
 0x5f9   :  { %v8296_v59 = vpop.permute.xlu1 %2148  ;;  %v2345_v47 = vsel %vm2323_vm3, %v12282_v2, %v2343_v44  ;;  %v2370_v18 = vperm.slane %v12284_v57, %v7934_v30  ;;  %v12288_v44 = vperm.slane %v8253_v40, 6  ;;  %v12289_v2 = vld [vmem:[#allocation158_spill] sm:$0xff]  ;;  %v12290_v57 = vld [vmem:[#allocation161_spill] sm:$0xff] }
 0x5fa   :  { %12253 = vst [vmem:[#allocation49_spill] sm:$0xff] %v8296_v59  ;;  %v12269_v59 = vld [vmem:[#allocation109_spill] sm:$0xff] }
 0x5fb   :  { %3002 = vperm.xlu0 %6182, %v12260_v8   ;;  %v1274_v6 = vmul.f32 %v12269_v59, %v7293_v15  ;;  %v12272_v8 = vld [vmem:[#allocation128_spill] sm:$0xff] }
 0x5fc   :  { %v2326_v32 = vperm.slane %v12272_v8, %v7939_v60  ;;  %v12277_v8 = vld [vmem:[#allocation152_spill] sm:$0xff] }
 0x5fd   :  { %2271 = vperm.xlu2 %6177, %v1270_v38   ;;  %v12274_v38 = vld [vmem:[#allocation148_spill] sm:$0xff] }
 0x5fe   :  { %v12280_v59 = vld [vmem:[#allocation12_spill] sm:$0xff]  ;;  %v2328_v9 = vsel %vm2327_vm4, %v2326_v32, %v2324_v35  ;;  %v12291_v35 = vld [vmem:[#allocation115_spill] sm:$0xff]  ;;  %v12296_v32 = vperm.slane %v12239_v21, %v7909_v14 }
 0x5ff   :  { %2283 = vperm.xlu1 %6175, %v1274_v6   ;;  %v8342_v15 = vpop.permute.xlu2 %2172  ;;  %v12279_v6 = vld [vmem:[#allocation155_spill] sm:$0xff]  ;;  %v2368_v29 = vperm.slane %v12280_v59, %v7920_v51  ;;  %v2346_v59 = vperm.slane %v12285_v42, %v7939_v60  ;;  %v1276_v42 = vmul.f32 %v12291_v35, %v7263_v50 }
 0x600   :  { %12273 = vst [vmem:[#allocation58_spill] sm:$0xff] %v8342_v15 }
 0x601   :  { %v8360_v15 = vpop.permute.xlu1 %2157  ;;  %v2347_v40 = vsel %vm2327_vm4, %v2346_v59, %v2345_v47  ;;  %v2369_v50 = vsel %vm2311_vm0, %v2368_v29, %v12296_v32  ;;  %v12299_v47 = vld [vmem:[#allocation46_spill] sm:$0xff]  ;;  %v12304_v32 = vld [vmem:[#allocation35_spill] sm:$0xff] }
 0x602   :  { %12281 = vst [vmem:[#allocation65_spill] sm:$0xff] %v8360_v15  ;;  %v12286_v15 = vperm.slane %v12237_v56, %v7934_v30  ;;  %v2357_v56 = vperm.slane %v12292_v54, %v7942_v49  ;;  %v12297_v54 = vperm.slane %v12230_v53, %v7925_v17  ;;  %v2349_v62 = vsel %vm2331_vm5, %v2348_v5, %v2347_v40  ;;  %v12302_v40 = vld [vmem:[#allocation117_spill] sm:$0xff] }
 0x603   :  { %3067 = vperm.xlu0 %6182, %v12288_v44   ;;  %v12295_v44 = vld [vmem:[#allocation118_spill] sm:$0xff]  ;;  %v2334_v21 = vperm.slane %v12299_v47, %v7931_v45  ;;  %v8424_v5 = vmul.f32 %v12302_v40, %v12235_v22  ;;  %v12307_v22 = vperm.slane %v12240_v28, %v7942_v49 }
 0x604   :  { %v2356_v58 = vsel %vm2315_vm1, %v12286_v15, %v2354_v16  ;;  %v8393_v15 = vld [vmem:[%s11535_s2 + $0x10] sm:$0xff]  ;;  %v1277_v43 = vmul.f32 %v12295_v44, %v12215_v19  ;;  %v2332_v35 = vsel %vm2331_vm5, %v12297_v54, %v2328_v9  ;;  %v2371_v19 = vsel %vm2315_vm1, %v2370_v18, %v2369_v50  ;;  %v8412_v44 = vpop.permute.xlu0 %2205  ;;  %v12303_v18 = vld [vmem:[#allocation122_spill] sm:$0xff] }
 0x605   :  { %12293 = vst [vmem:[#allocation82_spill] sm:$0xff] %v8393_v15  ;;  %v12294_v16 = vld [vmem:[#allocation164_spill] sm:$0xff]  ;;  %2280 = vperm.xlu2 %6177, %v8244_v4   ;;  %v2358_v20 = vsel %vm2319_vm2, %v2357_v56, %v2356_v58  ;;  %v12300_v4 = vld [vmem:[#allocation142_spill] sm:$0xff]  ;;  %v11698_v9 = vperm.slane %v8393_v15, 3  ;;  %v1280_v58 = vmul.f32 %v12303_v18, %v7323_v31  ;;  %v2336_v50 = vsel %vm2335_vm6, %v2334_v21, %v2332_v35 }
 0x606   :  { %12298 = vst [vmem:[#allocation56_spill] sm:$0xff] %v8412_v44  ;;  %v2360_v29 = vsel %vm2323_vm3, %v2359_v23, %v2358_v20  ;;  %v2382_v59 = vperm.slane %v12300_v4, %v7909_v14  ;;  %v12305_v23 = vld [vmem:[#allocation169_spill] sm:$0xff]  ;;  %v2373_v47 = vsel %vm2319_vm2, %v12307_v22, %v2371_v19  ;;  %v12308_v31 = vld [vmem:[#allocation140_spill] sm:$0xff]  ;;  %v12310_v18 = vperm.slane %v12238_v10, %v7939_v60  ;;  %v12311_v21 = vld [vmem:[#allocation66_spill] sm:$0xff] }
 0x607   :  { %2292 = vperm.xlu1 %6175, %v1277_v43   ;;  %v8419_v53 = vpop.permute.xlu2 %2181  ;;  %v12306_v43 = vperm.slane %v12234_v33, %v7931_v45  ;;  %v2376_v4 = vperm.slane %v12308_v31, %v7939_v60  ;;  %v2374_v33 = vperm.slane %v12311_v21, %v7928_v48  ;;  %v12313_v28 = vld [vmem:[#allocation146_spill] sm:$0xff]  ;;  %v12314_v19 = vld [vmem:[#allocation172_spill] sm:$0xff]  ;;  %v12316_v10 = vperm.slane %v12245_v63, %v7920_v51  ;;  %v8477_v63 = vld [vmem:[%s11535_s2 + $0x18] sm:$0xff] }
 0x608   :  { %12301 = vst [vmem:[#allocation67_spill] sm:$0xff] %v8419_v53  ;;  %v2362_v35 = vsel %vm2327_vm4, %v12310_v18, %v2360_v29  ;;  %v2398_v20 = vperm.slane %v12313_v28, %v7920_v51  ;;  %v12315_v31 = vld [vmem:[#allocation10_spill] sm:$0xff]  ;;  %v12317_v18 = vld [vmem:[#allocation143_spill] sm:$0xff]  ;;  %v12323_v28 = vld [vmem:[#allocation88_spill] sm:$0xff] }
 0x609   :  { %v2351_v54 = vsel %vm2335_vm6, %v12306_v43, %v2349_v62  ;;  %v8443_v40 = vpop.permute.xlu1 %2166  ;;  %v12312_v62 = vld [vmem:[#allocation136_spill] sm:$0xff]  ;;  %v2363_v56 = vperm.slane %v12315_v31, %v7925_v17  ;;  %v2384_v29 = vsel %vm2311_vm0, %v12316_v10, %v2382_v59  ;;  %v2387_v21 = vperm.slane %v12317_v18, %v7942_v49  ;;  %v12319_v53 = vld [vmem:[#allocation139_spill] sm:$0xff]  ;;  %v12320_v31 = vld [vmem:[#allocation74_spill] sm:$0xff]  ;;  %12321 = vst [vmem:[#allocation53_spill] sm:$0xff] %v8477_v63 }
 0x60a   :  { %12309 = vst [vmem:[#allocation61_spill] sm:$0xff] %v8443_v40  ;;  %v2365_v43 = vperm.slane %v12312_v62, %v7931_v45  ;;  %v12318_v62 = vld [vmem:[#allocation175_spill] sm:$0xff]  ;;  %v2385_v22 = vperm.slane %v12319_v53, %v7934_v30  ;;  %v2375_v44 = vsel %vm2323_vm3, %v2374_v33, %v2373_v47  ;;  %v2397_v40 = vperm.slane %v12320_v31, %v7909_v14  ;;  %v12322_v59 = vld [vmem:[#allocation178_spill] sm:$0xff] }
 0x60b   :  { %3132 = vperm.xlu0 %6182, %v11698_v9   ;;  %v2364_v18 = vsel %vm2331_vm5, %v2363_v56, %v2362_v35  ;;  %v8483_v9 = vsel %vm2802_vm7, %v2351_v54, %v2336_v50  ;;  %v2377_v53 = vsel %vm2327_vm4, %v2376_v4, %v2375_v44  ;;  %v2413_v15 = vperm.slane %v12323_v28, %v7920_v51  ;;  %v12324_v56 = vld [vmem:[#allocation151_spill] sm:$0xff]  ;;  %v12325_v50 = vld [vmem:[#allocation154_spill] sm:$0xff]  ;;  %v12327_v4 = vld [vmem:[#allocation137_spill] sm:$0xff] }
 0x60c   :  { %v8487_v47 = vsel %vm2335_vm6, %v2365_v43, %v2364_v18  ;;  %v2386_v33 = vsel %vm2315_vm1, %v2385_v22, %v2384_v29  ;;  %v2399_v31 = vsel %vm2311_vm0, %v2398_v20, %v2397_v40  ;;  %v2415_v35 = vperm.slane %v12324_v56, %v7934_v30  ;;  %v12329_v22 = vld [vmem:[#allocation163_spill] sm:$0xff]  ;;  %v12332_v18 = vld [vmem:[#allocation141_spill] sm:$0xff] }
 0x60d   :  { %2289 = vperm.xlu2 %6177, %v1276_v42   ;;  %v2388_v10 = vsel %vm2319_vm2, %v2387_v21, %v2386_v33  ;;  %v2427_v54 = vperm.slane %v12325_v50, %v7909_v14  ;;  %v12328_v20 = vperm.slane %v12241_v11, %v7925_v17  ;;  %v2443_v29 = vperm.slane %v12329_v22, %v7920_v51  ;;  %v12330_v21 = vld [vmem:[#allocation165_spill] sm:$0xff]  ;;  %v12334_v11 = vld [vmem:[#allocation147_spill] sm:$0xff] }
 0x60e   :  { %v2458_v28 = vperm.slane %v12330_v21, %v7920_v51  ;;  %v2391_v33 = vperm.slane %v12332_v18, %v7939_v60  ;;  %v12333_v56 = vperm.slane %v12248_v13, %v7934_v30  ;;  %v12337_v21 = vperm.slane %v12246_v36, %v7928_v48  ;;  %v12338_v18 = vld [vmem:[#allocation75_spill] sm:$0xff] }
 0x60f   :  { %2301 = vperm.xlu1 %6175, %v1280_v58   ;;  %v8498_v42 = vpop.permute.xlu2 %2190  ;;  %v8507_v40 = vsel %vm2331_vm5, %v12328_v20, %v2377_v53  ;;  %v8513_v58 = vpop.permute.xlu0 %2214  ;;  %v2404_v53 = vperm.slane %v12334_v11, %v7928_v48  ;;  %v12335_v20 = vld [vmem:[#allocation171_spill] sm:$0xff]  ;;  %v12339_v13 = vperm.slane %v12250_v7, %v7909_v14  ;;  %v12342_v36 = vperm.slane %v12254_v26, %v7920_v51 }
 0x610   :  { %12326 = vst [vmem:[#allocation55_spill] sm:$0xff] %v8498_v42  ;;  %v2401_v50 = vsel %vm2315_vm1, %v12333_v56, %v2399_v31  ;;  %v2460_v43 = vperm.slane %v12335_v20, %v7934_v30  ;;  %v2390_v44 = vsel %vm2323_vm3, %v12337_v21, %v2388_v10  ;;  %v2402_v42 = vperm.slane %v12338_v18, %v7942_v49  ;;  %v12340_v56 = vld [vmem:[#allocation156_spill] sm:$0xff]  ;;  %v12343_v21 = vld [vmem:[#allocation157_spill] sm:$0xff] }
 0x611   :  { %12331 = vst [vmem:[#allocation47_spill] sm:$0xff] %v8513_v58  ;;  %v8525_v22 = vpop.permute.xlu1 %2175  ;;  %v2414_v31 = vsel %vm2311_vm0, %v2413_v15, %v12339_v13  ;;  %v2442_v11 = vperm.slane %v12340_v56, %v7909_v14  ;;  %v12341_v20 = vld [vmem:[#allocation96_spill] sm:$0xff]  ;;  %v2429_v10 = vsel %vm2311_vm0, %v12342_v36, %v2427_v54  ;;  %v2432_v18 = vperm.slane %v12343_v21, %v7942_v49  ;;  %v12345_v13 = vld [vmem:[#allocation90_spill] sm:$0xff] }
 0x612   :  { %12336 = vst [vmem:[#allocation50_spill] sm:$0xff] %v8525_v22  ;;  %v2416_v22 = vsel %vm2315_vm1, %v2415_v35, %v2414_v31  ;;  %v12344_v7 = vperm.slane %v8477_v63, 0  ;;  %v2403_v15 = vsel %vm2319_vm2, %v2402_v42, %v2401_v50  ;;  %v2430_v56 = vperm.slane %v12345_v13, %v7934_v30  ;;  %v12347_v31 = vld [vmem:[#allocation144_spill] sm:$0xff] }
 0x613   :  { %v2444_v58 = vsel %vm2311_vm0, %v2443_v29, %v2442_v11  ;;  %v12346_v35 = vperm.slane %v12266_v41, %v7909_v14  ;;  %v2392_v54 = vsel %vm2327_vm4, %v2391_v33, %v2390_v44  ;;  %v2393_v36 = vperm.slane %v12347_v31, %v7925_v17  ;;  %v12348_v42 = vld [vmem:[#allocation84_spill] sm:$0xff] }
 0x614   :  { %3197 = vperm.xlu0 %6182, %v12344_v7   ;;  %v2405_v21 = vsel %vm2323_vm3, %v2404_v53, %v2403_v15  ;;  %v2419_v50 = vperm.slane %v12348_v42, %v7928_v48  ;;  %v12349_v29 = vperm.slane %v12251_v1, %v7942_v49  ;;  %v2431_v33 = vsel %vm2315_vm1, %v2430_v56, %v2429_v10  ;;  %v12352_v53 = vld [vmem:[#allocation166_spill] sm:$0xff]  ;;  %v12358_v56 = vld [vmem:[#allocation177_spill] sm:$0xff] }
 0x615   :  { %v2459_v26 = vsel %vm2311_vm0, %v2458_v28, %v12346_v35  ;;  %2298 = vperm.xlu2 %6177, %v8424_v5   ;;  %v12350_v28 = vld [vmem:[#allocation92_spill] sm:$0xff]  ;;  %v2433_v11 = vsel %vm2319_vm2, %v2432_v18, %v2431_v33  ;;  %v2449_v15 = vperm.slane %v12352_v53, %v7928_v48  ;;  %v11701_v1 = vperm.slane %v8477_v63, 5  ;;  %v12355_v35 = vld [vmem:[#allocation159_spill] sm:$0xff] }
 0x616   :  { %v2461_v7 = vsel %vm2315_vm1, %v2460_v43, %v2459_v26  ;;  %v2418_v41 = vsel %vm2319_vm2, %v12349_v29, %v2416_v22  ;;  %v2421_v44 = vperm.slane %v12350_v28, %v7939_v60  ;;  %v12351_v43 = vperm.slane %v12256_v27, %v7934_v30  ;;  %v12354_v22 = vld [vmem:[#allocation2_spill] sm:$0xff]  ;;  %v12359_v28 = vld [vmem:[#allocation167_spill] sm:$0xff] }
 0x617   :  { %v8580_v13 = vpop.permute.xlu2 %2199  ;;  %6178 = vset.pattern.permute.xlu1 %v12354_v22  ;;  %v2447_v26 = vperm.slane %v12355_v35, %v7942_v49  ;;  %v12356_v10 = vperm.slane %v12267_v12, %v7942_v49  ;;  %v12357_v27 = vld [vmem:[#allocation174_spill] sm:$0xff]  ;;  %v2472_v31 = vperm.slane %v12358_v56, %v7909_v14  ;;  %v8595_v42 = vsel %vm2331_vm5, %v2393_v36, %v2392_v54 }
 0x618   :  { %v2446_v5 = vsel %vm2315_vm1, %v12351_v43, %v2444_v58  ;;  %12353 = vst [vmem:[#allocation59_spill] sm:$0xff] %v8580_v13  ;;  %v2466_v58 = vperm.slane %v12357_v27, %v7939_v60  ;;  %v2420_v29 = vsel %vm2323_vm3, %v2419_v50, %v2418_v41  ;;  %v2464_v33 = vperm.slane %v12359_v28, %v7928_v48  ;;  %v12360_v43 = vld [vmem:[#allocation185_spill] sm:$0xff]  ;;  %v8616_v50 = vpop.permute.xlu0 %2223 }
 0x619   :  { %v2463_v18 = vsel %vm2319_vm2, %v12356_v10, %v2461_v7  ;;  %v2488_v53 = vperm.slane %v12360_v43, %v7920_v51  ;;  %v8602_v12 = vpop.permute.xlu1 %2184  ;;  %v12362_v7 = vld [vmem:[#allocation183_spill] sm:$0xff]  ;;  %v12363_v10 = vperm.slane %v12249_v46, %v7939_v60  ;;  %v8613_v54 = vsel %vm2327_vm4, %v2421_v44, %v2420_v29 }
 0x61a   :  { %12361 = vst [vmem:[#allocation72_spill] sm:$0xff] %v8602_v12  ;;  %v2448_v36 = vsel %vm2319_vm2, %v2447_v26, %v2446_v5  ;;  %v12364_v41 = vperm.slane %v12255_v25, %v7928_v48  ;;  %v2465_v46 = vsel %vm2323_vm3, %v2464_v33, %v2463_v18  ;;  %v12366_v5 = vperm.slane %v12270_v24, %v7920_v51  ;;  %v8642_v18 = vld [vmem:[%s11535_s2 + $0x20] sm:$0xff] }
 0x61b   :  { %v8610_v27 = vsel %vm2327_vm4, %v12363_v10, %v2405_v21  ;;  %v2450_v28 = vsel %vm2323_vm3, %v2449_v15, %v2448_v36  ;;  %v12365_v21 = vld [vmem:[#allocation179_spill] sm:$0xff]  ;;  %v2467_v44 = vsel %vm2327_vm4, %v2466_v58, %v2465_v46  ;;  %v12369_v33 = vld [vmem:[#allocation162_spill] sm:$0xff]  ;;  %v12370_v58 = vld [vmem:[#allocation173_spill] sm:$0xff] }
 0x61c   :  { %v8622_v56 = vsel %vm2323_vm3, %v12364_v41, %v2433_v11  ;;  %v2487_v43 = vperm.slane %v12365_v21, %v7909_v14  ;;  %3262 = vperm.xlu0 %6182, %v11701_v1   ;;  %v2474_v25 = vsel %vm2311_vm0, %v12366_v5, %v2472_v31  ;;  %v12367_v11 = vld [vmem:[#allocation180_spill] sm:$0xff]  ;;  %v12368_v15 = vld [vmem:[#allocation19_spill] sm:$0xff]  ;;  %v2475_v36 = vperm.slane %v12370_v58, %v7934_v30  ;;  %v12375_v1 = vld [vmem:[#allocation170_spill] sm:$0xff] }
 0x61d   :  { %v2477_v26 = vperm.slane %v12367_v11, %v7942_v49  ;;  %v2503_v29 = vperm.slane %v12368_v15, %v7920_v51  ;;  %v12371_v31 = vld [vmem:[#allocation23_spill] sm:$0xff]  ;;  %v12373_v21 = vperm.slane %v12261_v0, %v7939_v60  ;;  %v12374_v11 = vld [vmem:[#allocation168_spill] sm:$0xff]  ;;  %v2470_v35 = vperm.slane %v12375_v1, %v7931_v45  ;;  %v12378_v0 = vld [vmem:[#allocation37_spill] sm:$0xff] }
 0x61e   :  { %v2489_v24 = vsel %vm2311_vm0, %v2488_v53, %v2487_v43  ;;  %v2505_v41 = vperm.slane %v12371_v31, %v7934_v30  ;;  %v12372_v46 = vld [vmem:[#allocation3_spill] sm:$0xff]  ;;  %v12377_v53 = vperm.slane %v12268_v52, %v7925_v17  ;;  %v2476_v31 = vsel %vm2315_vm1, %v2475_v36, %v2474_v25  ;;  %v12382_v25 = vld [vmem:[#allocation36_spill] sm:$0xff]  ;;  %v12392_v12 = vld [vmem:[#allocation182_spill] sm:$0xff] }
 0x61f   :  { %6179 = vset.pattern.permute.xlu2 %v12372_v46  ;;  %v2452_v5 = vsel %vm2327_vm4, %v12373_v21, %v2450_v28  ;;  %v12376_v58 = vld [vmem:[#allocation31_spill] sm:$0xff]  ;;  %v2533_v63 = vperm.slane %v12378_v0, %v7920_v51  ;;  %v8669_v28 = vpop.permute.xlu2 %2208  ;;  %v2478_v15 = vsel %vm2319_vm2, %v2477_v26, %v2476_v31  ;;  %v12380_v1 = vperm.slane %v12277_v8, %v7934_v30  ;;  %v12385_v8 = vld [vmem:[#allocation44_spill] sm:$0xff] }
 0x620   :  { %v2517_v10 = vperm.slane %v12376_v58, %v7909_v14  ;;  %v2469_v43 = vsel %vm2331_vm5, %v12377_v53, %v2467_v44  ;;  %12379 = vst [vmem:[#allocation60_spill] sm:$0xff] %v8669_v28  ;;  %v12381_v52 = vperm.slane %v12279_v6, %v7909_v14  ;;  %v2548_v36 = vperm.slane %v12382_v25, %v7920_v51  ;;  %v12383_v53 = vld [vmem:[#allocation186_spill] sm:$0xff]  ;;  %v12384_v26 = vld [vmem:[#allocation27_spill] sm:$0xff]  ;;  %v12387_v6 = vld [vmem:[#allocation176_spill] sm:$0xff] }
 0x621   :  { %v2491_v58 = vsel %vm2315_vm1, %v12380_v1, %v2489_v24  ;;  %v2494_v0 = vperm.slane %v12383_v53, %v7928_v48  ;;  %v2532_v31 = vperm.slane %v12384_v26, %v7909_v14  ;;  %v2550_v28 = vperm.slane %v12385_v8, %v7934_v30  ;;  %v8690_v24 = vpop.permute.xlu1 %2193 }
 0x622   :  { %v2504_v44 = vsel %vm2311_vm0, %v2503_v29, %v12381_v52  ;;  %12386 = vst [vmem:[#allocation18_spill] sm:$0xff] %v8690_v24  ;;  %v2481_v1 = vperm.slane %v12387_v6, %v7939_v60  ;;  %v12388_v29 = vld [vmem:[#allocation181_spill] sm:$0xff]  ;;  %v12389_v25 = vperm.slane %v12294_v16, %v7920_v51  ;;  %v12391_v26 = vperm.slane %v12274_v38, %v7928_v48  ;;  %v12393_v6 = vld [vmem:[#allocation24_spill] sm:$0xff] }
 0x623   :  { %v2506_v21 = vsel %vm2315_vm1, %v2505_v41, %v2504_v44  ;;  %v2492_v52 = vperm.slane %v12388_v29, %v7942_v49  ;;  %v12390_v41 = vld [vmem:[#allocation32_spill] sm:$0xff]  ;;  %v2483_v13 = vperm.slane %v12392_v12, %v7925_v17  ;;  %v2520_v24 = vperm.slane %v12393_v6, %v7934_v30  ;;  %v8724_v6 = vpop.permute.xlu0 %2232 }
 0x624   :  { %v2519_v53 = vsel %vm2311_vm0, %v12389_v25, %v2517_v10  ;;  %v2522_v44 = vperm.slane %v12390_v41, %v7942_v49  ;;  %v2480_v8 = vsel %vm2323_vm3, %v12391_v26, %v2478_v15  ;;  %v2534_v29 = vsel %vm2311_vm0, %v2533_v63, %v2532_v31  ;;  %v12396_v15 = vld [vmem:[#allocation26_spill] sm:$0xff]  ;;  %v12398_v31 = vld [vmem:[#allocation17_spill] sm:$0xff] }
 0x625   :  { %v12394_v16 = vperm.slane %v8642_v18, 2  ;;  %v2493_v10 = vsel %vm2319_vm2, %v2492_v52, %v2491_v58  ;;  %v12395_v25 = vperm.slane %v12289_v2, %v7942_v49  ;;  %v2511_v41 = vperm.slane %v12396_v15, %v7939_v60 }
 0x626   :  { %v12397_v12 = vperm.slane %v12322_v59, %v7909_v14  ;;  %v2495_v63 = vsel %vm2323_vm3, %v2494_v0, %v2493_v10  ;;  %v2509_v58 = vperm.slane %v12398_v31, %v7928_v48  ;;  %v2521_v52 = vsel %vm2315_vm1, %v2520_v24, %v2519_v53  ;;  %v12401_v24 = vld [vmem:[#allocation30_spill] sm:$0xff] }
 0x627   :  { %3327 = vperm.xlu0 %6182, %v12394_v16   ;;  %v2508_v38 = vsel %vm2319_vm2, %v12395_v25, %v2506_v21  ;;  %v2482_v21 = vsel %vm2327_vm4, %v2481_v1, %v2480_v8  ;;  %v2523_v16 = vsel %vm2319_vm2, %v2522_v44, %v2521_v52  ;;  %v12399_v59 = vperm.slane %v12314_v19, %v7934_v30  ;;  %v12400_v25 = vld [vmem:[#allocation38_spill] sm:$0xff] }
 0x628   :  { %v2549_v26 = vsel %vm2311_vm0, %v2548_v36, %v12397_v12  ;;  %v2539_v15 = vperm.slane %v12400_v25, %v7928_v48  ;;  %v2484_v0 = vsel %vm2331_vm5, %v2483_v13, %v2482_v21  ;;  %v2510_v10 = vsel %vm2323_vm3, %v2509_v58, %v2508_v38  ;;  %v12404_v38 = vld [vmem:[#allocation42_spill] sm:$0xff] }
 0x629   :  { %v2551_v2 = vsel %vm2315_vm1, %v2550_v28, %v2549_v26  ;;  %v2536_v36 = vsel %vm2315_vm1, %v12399_v59, %v2534_v29  ;;  %v2537_v53 = vperm.slane %v12401_v24, %v7942_v49  ;;  %v8743_v28 = vpop.permute.xlu2 %2217  ;;  %v11708_v1 = vperm.slane %v8642_v18, 7  ;;  %v12406_v58 = vld [vmem:[#allocation22_spill] sm:$0xff]  ;;  %v8766_v21 = vpop.permute.xlu1 %2202 }
 0x62a   :  { %v12402_v44 = vperm.slane %v12278_v3, %v7939_v60  ;;  %v2512_v8 = vsel %vm2327_vm4, %v2511_v41, %v2510_v10  ;;  %v12403_v29 = vperm.slane %v12341_v20, %v7942_v49  ;;  %v2556_v12 = vperm.slane %v12404_v38, %v7939_v60  ;;  %v12407_v41 = vld [vmem:[#allocation29_spill] sm:$0xff]  ;;  %v12408_v20 = vld [vmem:[#allocation184_spill] sm:$0xff]  ;;  %v12409_v59 = vld [vmem:[#allocation6_spill] sm:$0xff] }
 0x62b   :  { %v12405_v26 = vperm.slane %v12304_v32, %v7928_v48  ;;  %v2528_v3 = vperm.slane %v12406_v58, %v7925_v17  ;;  %v2554_v52 = vperm.slane %v12407_v41, %v7928_v48  ;;  %v2500_v25 = vperm.slane %v12409_v59, %v7931_v45  ;;  %v12410_v32 = vld [vmem:[#allocation11_spill] sm:$0xff] }
 0x62c   :  { %v2497_v19 = vsel %vm2327_vm4, %v12402_v44, %v2495_v63  ;;  %v2553_v13 = vsel %vm2319_vm2, %v12403_v29, %v2551_v2  ;;  %v2538_v63 = vsel %vm2319_vm2, %v2537_v53, %v2536_v36  ;;  %v2498_v2 = vperm.slane %v12408_v20, %v7925_v17 }
 0x62d   :  { %v2525_v31 = vsel %vm2323_vm3, %v12405_v26, %v2523_v16  ;;  %v2526_v10 = vperm.slane %v12410_v32, %v7939_v60  ;;  %v2540_v16 = vsel %vm2323_vm3, %v2539_v15, %v2538_v63  ;;  %v12411_v24 = vperm.slane %v12369_v33, %v7925_v17 }
 0x62e   :  { %v2471_v53 = vsel %vm2335_vm6, %v2470_v35, %v2469_v43  ;;  %v12412_v44 = vperm.slane %v12275_v39, %v7931_v45  ;;  %v2555_v38 = vsel %vm2323_vm3, %v2554_v52, %v2553_v13  ;;  %v2499_v26 = vsel %vm2331_vm5, %v2498_v2, %v2497_v19  ;;  %v8797_v39 = vld [vmem:[%s11535_s2 + $0x28] sm:$0xff]  ;;  %v12415_v43 = vld [vmem:[#allocation21_spill] sm:$0xff]  ;;  %v8817_v2 = vpop.permute.xlu0 %2241 }
 0x62f   :  { %v2454_v36 = vsel %vm2331_vm5, %v12411_v24, %v2452_v5  ;;  %3392 = vperm.xlu0 %6182, %v11708_v1   ;;  %v12413_v15 = vperm.slane %v12290_v57, %v7925_v17  ;;  %v2527_v5 = vsel %vm2327_vm4, %v2526_v10, %v2525_v31  ;;  %v2557_v35 = vsel %vm2327_vm4, %v2556_v12, %v2555_v38  ;;  %v12418_v12 = vld [vmem:[#allocation160_spill] sm:$0xff]  ;;  %v12446_v1 = vld [vmem:[#allocation49_spill] sm:$0xff] }
 0x630   :  { %v2486_v29 = vsel %vm2335_vm6, %v12412_v44, %v2484_v0  ;;  %12414 = vst [vmem:[#allocation13_spill] sm:$0xff] %v8797_v39  ;;  %v2515_v0 = vperm.slane %v12415_v43, %v7931_v45  ;;  %v2529_v13 = vsel %vm2331_vm5, %v2528_v3, %v2527_v5  ;;  %v12416_v19 = vperm.slane %v12318_v62, %v7939_v60  ;;  %v12420_v3 = vld [vmem:[#allocation34_spill] sm:$0xff]  ;;  %v12423_v44 = vld [vmem:[#allocation39_spill] sm:$0xff] }
 0x631   :  { %v2514_v33 = vsel %vm2331_vm5, %v12413_v15, %v2512_v8  ;;  %v12417_v8 = vld [vmem:[#allocation41_spill] sm:$0xff]  ;;  %v2438_v58 = vperm.slane %v12418_v12, %v7925_v17  ;;  %v12419_v63 = vperm.slane %v12374_v11, %v7931_v45  ;;  %v2501_v52 = vsel %vm2335_vm6, %v2500_v25, %v2499_v26  ;;  %v8821_v32 = vpop.permute.xlu2 %2226 }
 0x632   :  { %v2542_v57 = vsel %vm2327_vm4, %v12416_v19, %v2540_v16  ;;  %v2545_v31 = vperm.slane %v12417_v8, %v7931_v45  ;;  %v2543_v20 = vperm.slane %v12420_v3, %v7925_v17  ;;  %v2516_v59 = vsel %vm2335_vm6, %v2515_v0, %v2514_v33  ;;  %v12424_v26 = vld [vmem:[#allocation149_spill] sm:$0xff]  ;;  %v12425_v33 = vld [vmem:[#allocation15_spill] sm:$0xff]  ;;  %v12427_v0 = vld [vmem:[#allocation76_spill] sm:$0xff] }
 0x633   :  { %v2456_v41 = vsel %vm2335_vm6, %v12419_v63, %v2454_v36  ;;  %v11707_v10 = vperm.slane %v8797_v39, 4  ;;  %v12421_v11 = vperm.slane %v12362_v7, %v7925_v17  ;;  %v12422_v24 = vperm.slane %v12305_v23, %v7931_v45 }
 0x634   :  { %v2816_v62 = vsel %vm2802_vm7, %v2471_v53, %v2456_v41  ;;  %v2544_v53 = vsel %vm2331_vm5, %v2543_v20, %v2542_v57  ;;  %v2560_v38 = vperm.slane %v12423_v44, %v7931_v45  ;;  %v2410_v15 = vperm.slane %v12424_v26, %v7931_v45 }
 0x635   :  { %v2559_v16 = vsel %vm2331_vm5, %v12421_v11, %v2557_v35  ;;  %v2817_v25 = vsel %vm2804_vm8, %v2486_v29, %v2816_v62  ;;  %v2531_v36 = vsel %vm2335_vm6, %v12422_v24, %v2529_v13  ;;  %v2436_v7 = vperm.slane %v12425_v33, %v7939_v60  ;;  %v8842_v35 = vpop.permute.xlu1 %2211 }
 0x636   :  { %v2818_v5 = vsel %vm2806_vm9, %v2501_v52, %v2817_v25  ;;  %v2546_v29 = vsel %vm2335_vm6, %v2545_v31, %v2544_v53  ;;  %v12426_v23 = vperm.slane %v12327_v4, %v7931_v45  ;;  %v2408_v13 = vperm.slane %v12427_v0, %v7925_v17  ;;  %v8891_v24 = vpop.permute.xlu0 %2250 }
 0x637   :  { %v2561_v19 = vsel %vm2335_vm6, %v2560_v38, %v2559_v16  ;;  %v2819_v57 = vsel %vm2808_vm10, %v2516_v59, %v2818_v5  ;;  %v12428_v8 = vperm.slane %v12247_v34, %v7931_v45  ;;  %v12429_v12 = vperm.slane %v12252_v61, %v7925_v17  ;;  %3457 = vperm.xlu0 %6182, %v11707_v10   ;;  %v12430_v34 = vld [vmem:[#allocation89_spill] sm:$0xff] }
 0x638   :  { %v2381_v43 = vsel %vm2335_vm6, %v12426_v23, %v8507_v40  ;;  %v2437_v40 = vsel %vm2327_vm4, %v2436_v7, %v8622_v56  ;;  %v2820_v63 = vsel %vm2810_vm11, %v2531_v36, %v2819_v57  ;;  %v2409_v41 = vsel %vm2331_vm5, %v2408_v13, %v8610_v27  ;;  %v12432_v56 = vld [vmem:[#allocation63_spill] sm:$0xff] }
 0x639   :  { %v2396_v31 = vsel %vm2335_vm6, %v12428_v8, %v8595_v42  ;;  %v2424_v4 = vsel %vm2331_vm5, %v12429_v12, %v8613_v54  ;;  %v2425_v42 = vperm.slane %v12430_v34, %v7931_v45  ;;  %v2439_v52 = vsel %vm2331_vm5, %v2438_v58, %v2437_v40  ;;  %v8877_v54 = vld [vmem:[%s11535_s2 + $0x30] sm:$0xff]  ;;  %v8893_v36 = vpop.permute.xlu2 %2235 }
 0x63a   :  { %v2821_v61 = vsel %vm2812_vm12, %v2546_v29, %v2820_v63  ;;  %12431 = vst [vmem:[#allocation28_spill] sm:$0xff] %v8877_v54  ;;  %v2440_v3 = vperm.slane %v12432_v56, %v7931_v45  ;;  %v2805_v20 = vsel %vm2804_vm8, %v8487_v47, %v8483_v9  ;;  %v2411_v27 = vsel %vm2335_vm6, %v2410_v15, %v2409_v41  ;;  %v8916_v29 = vld [vmem:[%s11535_s2 + $0x38] sm:$0xff]  ;;  %v12435_v56 = vld [vmem:[#allocation64_spill] sm:$0xff] }
 0x63b   :  { %v2822_v62 = vsel %vm2814_vm13, %v2561_v19, %v2821_v61  ;;  %v2426_v58 = vsel %vm2335_vm6, %v2425_v42, %v2424_v4  ;;  %v2807_v59 = vsel %vm2806_vm9, %v2381_v43, %v2805_v20  ;;  %v11706_v11 = vperm.slane %v8877_v54, 1  ;;  %12433 = vst [vmem:[#allocation99_spill] sm:$0xff] %v8916_v29  ;;  %v12436_v20 = vld [vmem:[#allocation70_spill] sm:$0xff] }
 0x63c   :  { %v2441_v16 = vsel %vm2335_vm6, %v2440_v3, %v2439_v52  ;;  %v2809_v25 = vsel %vm2808_vm10, %v2396_v31, %v2807_v59  ;;  %v2845_v9 = vsel %vm2841_vm14, %v2822_v62, 0.0  ;;  %v11705_v15 = vperm.slane %v8877_v54, 6  ;;  %v12434_v52 = vld [vmem:[#allocation20_spill] sm:$0xff]  ;;  %v12437_v62 = vld [vmem:[#allocation33_spill] sm:$0xff] }
 0x63d   :  { %v2811_v47 = vsel %vm2810_vm11, %v2411_v27, %v2809_v25  ;;  %v8897_v53 = vpop.permute.xlu1 %2220  ;;  %2846 = vadd.xlane.f32.xlu1 %v2845_v9  ;;  %v11704_v23 = vperm.slane %v8916_v29, 3  ;;  %v11709_v19 = vperm.slane %v8227_v55, 0  ;;  %v2887_v12 = vperm.slane %v8227_v55, 1  ;;  %v12440_v9 = vld [vmem:[#allocation87_spill] sm:$0xff] }
 0x63e   :  { %v2813_v44 = vsel %vm2812_vm12, %v2426_v58, %v2811_v47  ;;  %v8907_v7 = vpop.permute.xlu0 %2259  ;;  %v11710_v40 = vperm.slane %v8227_v55, 7  ;;  %v2683_v34 = vperm.slane %v8118_v37, %v7920_v51  ;;  %v2685_v61 = vperm.slane %v12434_v52, %v7934_v30  ;;  %v12438_v37 = vld [vmem:[#allocation77_spill] sm:$0xff]  ;;  %v12443_v52 = vld [vmem:[#allocation94_spill] sm:$0xff] }
 0x63f   :  { %v2815_v38 = vsel %vm2814_vm13, %v2441_v16, %v2813_v44  ;;  %3522 = vperm.xlu0 %6182, %v11706_v11   ;;  %v2682_v3 = vperm.slane %v12435_v56, %v7909_v14  ;;  %v2697_v27 = vperm.slane %v12436_v20, %v7909_v14  ;;  %v2687_v58 = vperm.slane %v12437_v62, %v7942_v49  ;;  %v12439_v16 = vld [vmem:[#allocation83_spill] sm:$0xff]  ;;  %v12441_v44 = vld [vmem:[#allocation85_spill] sm:$0xff] }
 0x640   :  { %v2842_v26 = vsel %vm2841_vm14, %v2815_v38, 0.0  ;;  %v2698_v25 = vperm.slane %v12439_v16, %v7920_v51  ;;  %v2704_v47 = vperm.slane %v12440_v9, %v7928_v48  ;;  %v12444_v62 = vld [vmem:[#allocation71_spill] sm:$0xff]  ;;  %v12448_v38 = vld [vmem:[#allocation45_spill] sm:$0xff] }
 0x641   :  { %2843 = vadd.xlane.f32.xlu2 %v2842_v26  ;;  %v8909_v5 = vpop.permute.xlu2 %2244  ;;  %v12442_v26 = vld [vmem:[#allocation9_spill] sm:$0xff]  ;;  %v2684_v20 = vsel %vm2311_vm0, %v2683_v34, %v2682_v3  ;;  %v12449_v3 = vld [vmem:[#allocation56_spill] sm:$0xff]  ;;  %v12450_v56 = vld [vmem:[#allocation47_spill] sm:$0xff] }
 0x642   :  { %v2686_v11 = vsel %vm2315_vm1, %v2685_v61, %v2684_v20  ;;  %v2699_v10 = vsel %vm2311_vm0, %v2698_v25, %v2697_v27  ;;  %v2743_v16 = vperm.slane %v12450_v56, %v7920_v51  ;;  %v12451_v20 = vld [vmem:[#allocation93_spill] sm:$0xff]  ;;  %v12453_v34 = vld [vmem:[#allocation48_spill] sm:$0xff]  ;;  %v2760_v56 = vperm.slane %v8817_v2, %v7934_v30  ;;  %v12456_v61 = vld [vmem:[#allocation55_spill] sm:$0xff] }
 0x643   :  { %v2700_v27 = vperm.slane %v12451_v20, %v7934_v30  ;;  %v2688_v25 = vsel %vm2319_vm2, %v2687_v58, %v2686_v11  ;;  %v2728_v39 = vperm.slane %v12456_v61, %v7920_v51  ;;  %v12459_v61 = vld [vmem:[#allocation65_spill] sm:$0xff] }
 0x645   :  { %v8905_v33 = vpop.permute.xlu1 %2229  ;;  %v2701_v11 = vsel %vm2315_vm1, %v2700_v27, %v2699_v10 }
 0x646   :  { %v8923_v0 = vpop.permute.xlu0 %2268 }
 0x647   :  { %3587 = vperm.xlu0 %6182, %v11705_v15   ;;  %v12445_v15 = vld [vmem:[#allocation80_spill] sm:$0xff]  ;;  %v2777_v10 = vperm.slane %v8923_v0, %v7942_v49 }
 0x649   :  { %v8925_v13 = vpop.permute.xlu2 %2253 }
 0x64d   :  { %v8919_v43 = vpop.permute.xlu1 %2238 }
 0x64e   :  { %v8933_v8 = vpop.permute.xlu0 %2277 }
 0x64f   :  { %3652 = vperm.xlu0 %6182, %v11704_v23   ;;  %v2727_v23 = vperm.slane %v12444_v62, %v7909_v14  ;;  %v2712_v62 = vperm.slane %v12453_v34, %v7909_v14  ;;  %v2772_v34 = vperm.slane %v8907_v7, %v7909_v14  ;;  %v12458_v7 = vld [vmem:[#allocation18_spill] sm:$0xff] }
 0x651   :  { %v8935_v31 = vpop.permute.xlu2 %2262 }
 0x655   :  { %v8928_v57 = vpop.permute.xlu1 %2247 }
 0x656   :  { %2879 = vperm.xlu1 %6178, %v11709_v19   ;;  %v8942_v63 = vpop.permute.xlu0 %2286  ;;  %v12447_v19 = vld [vmem:[#allocation61_spill] sm:$0xff] }
 0x657   :  { %6227 = vset.pattern.permute.xlu0 %v12354_v22 }
 0x659   :  { %v8944_v41 = vpop.permute.xlu2 %2271 }
 0x65d   :  { %v8938_v4 = vpop.permute.xlu1 %2256 }
 0x65e   :  { %6180 = vset.pattern.permute.xlu1 %v12372_v46  ;;  %v9006_v20 = vpop.permute.xlu0 %2295  ;;  %v12457_v46 = vperm.slane %v12448_v38, 4 }
 0x65f   :  { %2892 = vperm.xlu0 %6227, %v2887_v12  }
 0x661   :  { %v9011_v58 = vpop.permute.xlu2 %2280 }
 0x665   :  { %v8948_v42 = vpop.permute.xlu1 %2265 }
 0x666   :  { %2898 = vperm.xlu1 %6180, %v2887_v12   ;;  %v2715_v12 = vperm.slane %v12442_v26, %v7934_v30  ;;  %v2702_v26 = vperm.slane %v12446_v1, %v7942_v49  ;;  %v12454_v1 = vld [vmem:[#allocation86_spill] sm:$0xff] }
 0x667   :  { %2970 = vperm.xlu0 %6227, %v11710_v40   ;;  %v2713_v40 = vperm.slane %v12447_v19, %v7920_v51  ;;  %v12452_v19 = vld [vmem:[#allocation95_spill] sm:$0xff]  ;;  %v2689_v29 = vperm.slane %v12454_v1, %v7928_v48 }
 0x668   :  { %v2691_v59 = vperm.slane %v12452_v19, %v7939_v60  ;;  %v12455_v19 = vperm.slane %v8227_v55, 2  ;;  %v2703_v2 = vsel %vm2319_vm2, %v2702_v26, %v2701_v11  ;;  %v2708_v11 = vperm.slane %v12459_v61, %v7925_v17  ;;  %v12464_v26 = vld [vmem:[#allocation91_spill] sm:$0xff] }
 0x669   :  { %v2714_v54 = vsel %vm2311_vm0, %v2713_v40, %v2712_v62  ;;  %v2690_v1 = vsel %vm2323_vm3, %v2689_v29, %v2688_v25  ;;  %v2788_v40 = vperm.slane %v8942_v63, %v7920_v51  ;;  %v2705_v0 = vsel %vm2323_vm3, %v2704_v47, %v2703_v2  ;;  %v12460_v63 = vld [vmem:[#allocation50_spill] sm:$0xff] }
 0x66a   :  { %v2692_v62 = vsel %vm2327_vm4, %v2691_v59, %v2690_v1  ;;  %v2716_v29 = vsel %vm2315_vm1, %v2715_v12, %v2714_v54  ;;  %v2913_v25 = vperm.slane %v8227_v55, 3  ;;  %v2719_v27 = vperm.slane %v12460_v63, %v7928_v48  ;;  %v12461_v1 = vld [vmem:[#allocation82_spill] sm:$0xff] }
 0x66b   :  { %v2758_v59 = vperm.slane %v8919_v43, %v7920_v51  ;;  %v12463_v2 = vld [vmem:[#allocation58_spill] sm:$0xff]  ;;  %v2773_v12 = vperm.slane %v8935_v31, %v7920_v51  ;;  %v2747_v43 = vperm.slane %v8897_v53, %v7942_v49  ;;  %v2775_v63 = vperm.slane %v8948_v42, %v7934_v30 }
 0x66c   :  { %v2717_v61 = vperm.slane %v12463_v2, %v7942_v49  ;;  %v2695_v2 = vperm.slane %v12464_v26, %v7931_v45  ;;  %v2745_v31 = vperm.slane %v8743_v28, %v7934_v30  ;;  %v12467_v28 = vperm.slane %v12445_v15, %v7942_v49  ;;  %v12469_v15 = vld [vmem:[#allocation67_spill] sm:$0xff] }
 0x66d   :  { %v9000_v9 = vpop.permute.xlu1 %2274 }
 0x66e   :  { %2911 = vperm.xlu1 %6180, %v12455_v19   ;;  %v2730_v19 = vperm.slane %v12458_v7, %v7934_v30  ;;  %v2729_v7 = vsel %vm2311_vm0, %v2728_v39, %v2727_v23  ;;  %v2757_v23 = vperm.slane %v8893_v36, %v7909_v14  ;;  %v12465_v36 = vperm.slane %v12438_v37, %v7925_v17 }
 0x66f   :  { %3035 = vperm.xlu0 %6227, %v12457_v46   ;;  %v2742_v46 = vperm.slane %v8842_v35, %v7909_v14  ;;  %v12462_v35 = vld [vmem:[#allocation54_spill] sm:$0xff] }
 0x670   :  { %v2706_v47 = vperm.slane %v12462_v35, %v7939_v60  ;;  %v2731_v54 = vsel %vm2315_vm1, %v2730_v19, %v2729_v7  ;;  %v2718_v7 = vsel %vm2319_vm2, %v2717_v61, %v2716_v29  ;;  %v2694_v53 = vsel %vm2331_vm5, %v12465_v36, %v2692_v62 }
 0x671   :  { %v2744_v39 = vsel %vm2311_vm0, %v2743_v16, %v2742_v46  ;;  %v2720_v16 = vsel %vm2323_vm3, %v2719_v27, %v2718_v7  ;;  %v2759_v26 = vsel %vm2311_vm0, %v2758_v59, %v2757_v23  ;;  %v12466_v46 = vperm.slane %v12461_v1, 1  ;;  %v12468_v27 = vld [vmem:[#allocation59_spill] sm:$0xff] }
 0x672   :  { %v2707_v19 = vsel %vm2327_vm4, %v2706_v47, %v2705_v0  ;;  %v2733_v0 = vsel %vm2319_vm2, %v12467_v28, %v2731_v54  ;;  %v2736_v29 = vperm.slane %v8766_v21, %v7939_v60  ;;  %v2746_v37 = vsel %vm2315_vm1, %v2745_v31, %v2744_v39 }
 0x673   :  { %v2709_v42 = vsel %vm2331_vm5, %v2708_v11, %v2707_v19  ;;  %v2774_v62 = vsel %vm2311_vm0, %v2773_v12, %v2772_v34  ;;  %v2290_v11 = vpop.permute.xlu2 %2289  ;;  %v2734_v47 = vperm.slane %v12468_v27, %v7928_v48  ;;  %v2748_v59 = vsel %vm2319_vm2, %v2747_v43, %v2746_v37  ;;  %v12471_v19 = vld [vmem:[#allocation72_spill] sm:$0xff] }
 0x674   :  { %v2776_v61 = vsel %vm2315_vm1, %v2775_v63, %v2774_v62  ;;  %v2723_v54 = vperm.slane %v12469_v15, %v7925_v17  ;;  %v12470_v21 = vperm.slane %v12443_v52, %v7939_v60  ;;  %v2761_v34 = vsel %vm2315_vm1, %v2760_v56, %v2759_v26 }
 0x675   :  { %v2284_v35 = vpop.permute.xlu1 %2283  ;;  %v2764_v12 = vperm.slane %v8928_v57, %v7928_v48  ;;  %v2725_v43 = vperm.slane %v12471_v19, %v7931_v45  ;;  %v2735_v63 = vsel %vm2323_vm3, %v2734_v47, %v2733_v0  ;;  %v3160_v7 = vperm.slane %v12461_v1, 6 }
 0x676   :  { %2924 = vperm.xlu1 %6180, %v2913_v25   ;;  %v2787_v23 = vperm.slane %v2284_v35, %v7909_v14  ;;  %v2722_v39 = vsel %vm2327_vm4, %v12470_v21, %v2720_v16  ;;  %v2762_v35 = vperm.slane %v8909_v5, %v7942_v49  ;;  %v2737_v31 = vsel %vm2327_vm4, %v2736_v29, %v2735_v63 }
 0x677   :  { %3100 = vperm.xlu0 %6227, %v12466_v46   ;;  %v12472_v52 = vperm.slane %v8616_v50, %v7928_v48  ;;  %v2778_v36 = vsel %vm2319_vm2, %v2777_v10, %v2776_v61  ;;  %v2781_v57 = vperm.slane %v9000_v9, %v7939_v60  ;;  %v2753_v16 = vperm.slane %v8905_v33, %v7925_v17 }
 0x678   :  { %v2763_v26 = vsel %vm2319_vm2, %v2762_v35, %v2761_v34  ;;  %v2779_v5 = vperm.slane %v8944_v41, %v7928_v48  ;;  %v2789_v46 = vsel %vm2311_vm0, %v2788_v40, %v2787_v23  ;;  %v2751_v50 = vperm.slane %v8821_v32, %v7939_v60  ;;  %v12474_v40 = vld [vmem:[#allocation60_spill] sm:$0xff] }
 0x679   :  { %v2750_v56 = vsel %vm2323_vm3, %v12472_v52, %v2748_v59  ;;  %v2765_v0 = vsel %vm2323_vm3, %v2764_v12, %v2763_v26  ;;  %v2790_v10 = vperm.slane %v2290_v11, %v7934_v30  ;;  %v12473_v33 = vperm.slane %v12441_v44, %v7931_v45  ;;  %v12478_v12 = vld [vmem:[#allocation53_spill] sm:$0xff] }
 0x67a   :  { %v2724_v41 = vsel %vm2331_vm5, %v2723_v54, %v2722_v39  ;;  %v2740_v37 = vperm.slane %v12474_v40, %v7931_v45  ;;  %v2780_v32 = vsel %vm2323_vm3, %v2779_v5, %v2778_v36  ;;  %v2752_v62 = vsel %vm2327_vm4, %v2751_v50, %v2750_v56  ;;  %v9212_v40 = vld [vmem:[%s11535_s2 + $0x8] sm:$0xff] }
 0x67b   :  { %v2711_v29 = vsel %vm2335_vm6, %v12473_v33, %v2709_v42  ;;  %v2782_v44 = vsel %vm2327_vm4, %v2781_v57, %v2780_v32  ;;  %v2791_v42 = vsel %vm2315_vm1, %v2790_v10, %v2789_v46  ;;  %v2754_v11 = vsel %vm2331_vm5, %v2753_v16, %v2752_v62  ;;  %v2299_v54 = vpop.permute.xlu2 %2298  ;;  %v12482_v33 = vld [vmem:[#allocation13_spill] sm:$0xff] }
 0x67c   :  { %v12476_v27 = vperm.slane %v8891_v24, %v7939_v60  ;;  %v2770_v59 = vperm.slane %v8938_v4, %v7931_v45  ;;  %v2696_v61 = vsel %vm2335_vm6, %v2695_v2, %v2694_v53  ;;  %v2726_v23 = vsel %vm2335_vm6, %v2725_v43, %v2724_v41  ;;  %v2305_v2 = vpop.permute.xlu0 %2304 }
 0x67d   :  { %v2293_v28 = vpop.permute.xlu1 %2292  ;;  %v2768_v15 = vperm.slane %v8925_v13, %v7925_v17  ;;  %v2939_v21 = vperm.slane %v8227_v55, 5  ;;  %v2830_v39 = vsel %vm2802_vm7, %v2711_v29, %v2696_v61  ;;  %v12477_v34 = vperm.slane %v8933_v8, %v7925_v17 }
 0x67e   :  { %v2792_v9 = vperm.slane %v2293_v28, %v7942_v49  ;;  %6183 = vset.pattern.permute.xlu1 %v12354_v22  ;;  %v12475_v49 = vperm.slane %v12449_v3, %v7925_v17  ;;  %v2767_v47 = vsel %vm2327_vm4, %v12476_v27, %v2765_v0  ;;  %v3225_v19 = vperm.slane %v12478_v12, 3 }
 0x67f   :  { %3165 = vperm.xlu0 %6227, %v3160_v7   ;;  %v2784_v4 = vsel %vm2331_vm5, %v12477_v34, %v2782_v44  ;;  %v12479_v53 = vperm.slane %v8724_v6, %v7931_v45  ;;  %v2769_v43 = vsel %vm2331_vm5, %v2768_v15, %v2767_v47  ;;  %v2785_v63 = vperm.slane %v9011_v58, %v7931_v45 }
 0x680   :  { %v2739_v30 = vsel %vm2331_vm5, %v12475_v49, %v2737_v31  ;;  %v2793_v3 = vsel %vm2319_vm2, %v2792_v9, %v2791_v42  ;;  %v12480_v35 = vperm.slane %v9006_v20, %v7928_v48  ;;  %v2831_v31 = vsel %vm2804_vm8, %v2726_v23, %v2830_v39  ;;  %v12481_v9 = vld [vmem:[#allocation3_spill] sm:$0xff] }
 0x681   :  { %v2741_v24 = vsel %vm2335_vm6, %v2740_v37, %v2739_v30  ;;  %v2756_v13 = vsel %vm2335_vm6, %v12479_v53, %v2754_v11  ;;  %v2771_v52 = vsel %vm2335_vm6, %v2770_v59, %v2769_v43  ;;  %v2796_v56 = vperm.slane %v2299_v54, %v7939_v60  ;;  %v12485_v30 = vld [vmem:[#allocation28_spill] sm:$0xff]  ;;  %v12486_v42 = vld [vmem:[#allocation99_spill] sm:$0xff] }
 0x682   :  { %v2795_v8 = vsel %vm2323_vm3, %v12480_v35, %v2793_v3  ;;  %v2786_v57 = vsel %vm2335_vm6, %v2785_v63, %v2784_v4  ;;  %v2832_v58 = vsel %vm2806_vm9, %v2741_v24, %v2831_v31  ;;  %v2800_v48 = vperm.slane %v2305_v2, %v7931_v45  ;;  %v6299_v45 = vld [vmem:[%s11535_s2] sm:$0xff] }
 0x683   :  { %v2797_v20 = vsel %vm2327_vm4, %v2796_v56, %v2795_v8  ;;  %v2833_v16 = vsel %vm2808_vm10, %v2756_v13, %v2832_v58  ;;  %v2952_v28 = vperm.slane %v6299_v45, 6  ;;  %v3290_v0 = vperm.slane %v8642_v18, 0 }
 0x684   :  { %v11723_v10 = vperm.slane %v8642_v18, 5  ;;  %v11722_v29 = vperm.slane %v12482_v33, 2  ;;  %v12483_v41 = vperm.slane %v8227_v55, 7  ;;  %v2978_v37 = vperm.slane %v9212_v40, 0  ;;  %v9244_v15 = vpop.xlane.xlu0 %2849 }
 0x685   :  { %v2302_v36 = vpop.permute.xlu1 %2301  ;;  %v11721_v32 = vperm.slane %v12482_v33, 7  ;;  %v12484_v49 = vperm.slane %v8227_v55, 0  ;;  %v11720_v62 = vperm.slane %v12485_v30, 4  ;;  %v3004_v44 = vperm.slane %v9212_v40, 2 }
 0x686   :  { %v2798_v6 = vperm.slane %v2302_v36, %v7925_v17  ;;  %2944 = vperm.xlu1 %6183, %v2939_v21   ;;  %v2834_v17 = vsel %vm2810_vm11, %v2771_v52, %v2833_v16  ;;  %v11719_v11 = vperm.slane %v12486_v42, 1  ;;  %v12487_v27 = vperm.slane %v8227_v55, 2 }
 0x687   :  { %3230 = vperm.xlu0 %6227, %v3225_v19   ;;  %v2835_v5 = vsel %vm2812_vm12, %v2786_v57, %v2834_v17  ;;  %v3017_v47 = vperm.slane %v9212_v40, 3  ;;  %v11718_v59 = vperm.slane %v12486_v42, 6  ;;  %v12488_v3 = vperm.slane %v8227_v55, 4 }
 0x688   :  { %v2799_v60 = vsel %vm2331_vm5, %v2798_v6, %v2797_v20  ;;  %v12489_v61 = vmov 0   ;;  %v12490_v23 = vperm.slane %v12448_v38, 4  ;;  %v3069_v39 = vperm.slane %v9212_v40, 7 }
 0x689   :  { %v2801_v26 = vsel %vm2335_vm6, %v2800_v48, %v2799_v60  ;;  %v3082_v34 = vperm.slane %v12461_v1, 0  ;;  %v12495_v43 = vperm.slane %v12461_v1, 1  ;;  %v3108_v31 = vperm.slane %v12461_v1, 2 }
 0x68a   :  { %v2836_v46 = vsel %vm2814_vm13, %v2801_v26, %v2835_v5  ;;  %v3134_v48 = vperm.slane %v12461_v1, 4  ;;  %v3147_v5 = vperm.slane %v12461_v1, 5 }
 0x68b   :  { %v2851_v50 = vsel %vm2841_vm14, %v2836_v46, 0.0 }
 0x68c   :  { %2852 = vadd.xlane.f32.xlu2 %v2851_v50  ;;  %v9249_v54 = vpop.permute.xlu0 %2937  ;;  %v12501_v50 = vperm.slane %v12448_v38, 6 }
 0x68d   :  { %12491 = vst [vmem:[#allocation57_spill] sm:$0xff] %v9249_v54 }
 0x68e   :  { %2957 = vperm.xlu1 %6183, %v2952_v28  }
 0x68f   :  { %3295 = vperm.xlu0 %6227, %v3290_v0  }
 0x694   :  { %v9253_v24 = vpop.permute.xlu0 %3002 }
 0x696   :  { %6185 = vset.pattern.permute.xlu1 %v12481_v9 }
 0x697   :  { %3360 = vperm.xlu0 %6227, %v11723_v10  }
 0x69c   :  { %v9257_v4 = vpop.permute.xlu0 %3067 }
 0x69e   :  { %2976 = vperm.xlu1 %6185, %v12483_v41  }
 0x69f   :  { %3425 = vperm.xlu0 %6227, %v11722_v29  }
 0x6a4   :  { %2885 = vperm.xlu2 %6179, %v12484_v49   ;;  %v9264_v13 = vpop.permute.xlu0 %3132 }
 0x6a5   :  { %12494 = vst [vmem:[#allocation103_spill] sm:$0xff] %v9264_v13 }
 0x6a6   :  { %2989 = vperm.xlu1 %6185, %v2978_v37  }
 0x6a7   :  { %3490 = vperm.xlu0 %6227, %v11721_v32  }
 0x6ac   :  { %6181 = vset.pattern.permute.xlu2 %v12354_v22  ;;  %v9273_v8 = vpop.permute.xlu0 %3197 }
 0x6ae   :  { %6187 = vset.pattern.permute.xlu1 %v12354_v22 }
 0x6af   :  { %3555 = vperm.xlu0 %6227, %v11720_v62  }
 0x6b0   :  { %v2847_v55 = vpop.xlane.xlu1 %2846 }
 0x6b1   :  { %v9276_v52 = vmax.f32 %v2847_v55, 0.0 }
 0x6b4   :  { %2905 = vperm.xlu2 %6181, %v12487_v27   ;;  %v2844_v2 = vpop.xlane.xlu2 %2843  ;;  %v9284_v57 = vpop.permute.xlu0 %3262  ;;  %v6301_v27 = vld [vmem:[%s11535_s2 + $0x10] sm:$0xff] }
 0x6b5   :  { %12497 = vst [vmem:[#allocation43_spill] sm:$0xff] %v9284_v57  ;;  %v9295_v60 = vmax.f32 %v2844_v2, 0.0 }
 0x6b6   :  { %3009 = vperm.xlu1 %6187, %v3004_v44  }
 0x6b7   :  { %3620 = vperm.xlu0 %6227, %v11719_v11  }
 0x6bc   :  { %2918 = vperm.xlu2 %6181, %v2913_v25   ;;  %v3043_v25 = vperm.slane %v9212_v40, 5  ;;  %v9293_v16 = vpop.permute.xlu0 %3327 }
 0x6bd   :  { %12498 = vst [vmem:[#allocation123_spill] sm:$0xff] %v9293_v16 }
 0x6be   :  { %3022 = vperm.xlu1 %6187, %v3017_v47  }
 0x6bf   :  { %3685 = vperm.xlu0 %6227, %v11718_v59  }
 0x6c4   :  { %2931 = vperm.xlu2 %6181, %v12488_v3   ;;  %v9306_v45 = vpop.permute.xlu0 %3392 }
 0x6c5   :  { %12500 = vst [vmem:[#allocation78_spill] sm:$0xff] %v9306_v45 }
 0x6c6   :  { %6189 = vset.pattern.permute.xlu1 %v12481_v9 }
 0x6c7   :  { %6233 = vset.pattern.permute.xlu0 %v12489_v61 }
 0x6c8   :  { %v9262_v53 = vpop.permute.xlu1 %2879 }
 0x6c9   :  { %12493 = vst [vmem:[#allocation100_spill] sm:$0xff] %v9262_v53 }
 0x6cc   :  { %6184 = vset.pattern.permute.xlu2 %v12481_v9 }
 0x6ce   :  { %3041 = vperm.xlu1 %6189, %v12490_v23  }
 0x6d4   :  { %2950 = vperm.xlu2 %6184, %v2939_v21   ;;  %v12492_v21 = vperm.slane %v12448_v38, 1 }
 0x6d6   :  { %3054 = vperm.xlu1 %6189, %v3043_v25  }
 0x6d8   :  { %v9269_v63 = vpop.permute.xlu1 %2898 }
 0x6d9   :  { %12496 = vst [vmem:[#allocation102_spill] sm:$0xff] %v9269_v63 }
 0x6dc   :  { %2963 = vperm.xlu2 %6184, %v2952_v28   ;;  %v3843_v28 = vmul.f32 %v9249_v54, %v9276_v52 }
 0x6de   :  { %6191 = vset.pattern.permute.xlu1 %v12354_v22 }
 0x6e0   :  { %v9282_v6 = vpop.permute.xlu1 %2911 }
 0x6e4   :  { %6186 = vset.pattern.permute.xlu2 %v12354_v22 }
 0x6e6   :  { %3074 = vperm.xlu1 %6191, %v3069_v39  }
 0x6e8   :  { %v9290_v20 = vpop.permute.xlu1 %2924 }
 0x6ec   :  { %2983 = vperm.xlu2 %6186, %v2978_v37   ;;  %v9317_v37 = vpop.permute.xlu0 %3457 }
 0x6ed   :  { %12503 = vst [vmem:[#allocation98_spill] sm:$0xff] %v9317_v37 }
 0x6ee   :  { %3087 = vperm.xlu1 %6191, %v3082_v34  }
 0x6f4   :  { %2996 = vperm.xlu2 %6186, %v12492_v21   ;;  %v9331_v3 = vpop.permute.xlu0 %3522 }
 0x6f5   :  { %12505 = vst [vmem:[#allocation104_spill] sm:$0xff] %v9331_v3 }
 0x6f6   :  { %6193 = vset.pattern.permute.xlu1 %v12481_v9 }
 0x6f8   :  { %v9304_v46 = vpop.permute.xlu1 %2944 }
 0x6fc   :  { %6188 = vset.pattern.permute.xlu2 %v12481_v9 }
 0x6fe   :  { %3106 = vperm.xlu1 %6193, %v12495_v43  }
 0x6ff   :  { %v9271_v35 = vpop.xlane.xlu2 %2852 }
 0x700   :  { %v9312_v41 = vpop.permute.xlu1 %2957 }
 0x701   :  { %12502 = vst [vmem:[#allocation97_spill] sm:$0xff] %v9312_v41  ;;  %v3846_v40 = vmul.f32 %v9312_v41, %v9295_v60  ;;  %v12528_v41 = vperm.slane %v8642_v18, 2 }
 0x704   :  { %3015 = vperm.xlu2 %6188, %v3004_v44  }
 0x706   :  { %3119 = vperm.xlu1 %6193, %v3108_v31  }
 0x707   :  { %v9278_v56 = vpop.permute.xlu2 %2885 }
 0x708   :  { %v3835_v36 = vmul.f32 %v9278_v56, %v9276_v52 }
 0x70a   :  { %4350 = vperm.xlu0 %6233, %v3835_v36  }
 0x70c   :  { %3028 = vperm.xlu2 %6188, %v3017_v47   ;;  %v3173_v47 = vperm.slane %v6301_v27, 7 }
 0x70e   :  { %6195 = vset.pattern.permute.xlu1 %v12354_v22 }
 0x70f   :  { %v9287_v58 = vpop.permute.xlu2 %2905 }
 0x710   :  { %v9322_v44 = vpop.permute.xlu1 %2976 }
 0x711   :  { %12504 = vst [vmem:[#allocation101_spill] sm:$0xff] %v9322_v44  ;;  %v3849_v38 = vmul.f32 %v9322_v44, %v9276_v52  ;;  %v12521_v44 = vperm.slane %v12478_v12, 5 }
 0x714   :  { %6190 = vset.pattern.permute.xlu2 %v12354_v22 }
 0x716   :  { %3139 = vperm.xlu1 %6195, %v3134_v48  }
 0x717   :  { %v9299_v17 = vpop.permute.xlu2 %2918 }
 0x718   :  { %12499 = vst [vmem:[#allocation111_spill] sm:$0xff] %v9299_v17  ;;  %v3840_v26 = vmul.f32 %v9299_v17, %v9295_v60  ;;  %v9346_v43 = vpop.permute.xlu1 %2989 }
 0x71a   :  { %4365 = vperm.xlu0 %6233, %v3840_v26  }
 0x71c   :  { %3048 = vperm.xlu2 %6190, %v3043_v25   ;;  %v9335_v25 = vpop.permute.xlu0 %3587 }
 0x71d   :  { %12506 = vst [vmem:[#allocation105_spill] sm:$0xff] %v9335_v25 }
 0x71e   :  { %3152 = vperm.xlu1 %6195, %v3147_v5  }
 0x71f   :  { %v9319_v49 = vpop.permute.xlu2 %2931 }
 0x722   :  { %4374 = vperm.xlu0 %6233, %v3843_v28  }
 0x724   :  { %3061 = vperm.xlu2 %6190, %v12501_v50   ;;  %v9344_v2 = vpop.permute.xlu0 %3652  ;;  %v12511_v50 = vperm.slane %v12461_v1, 3 }
 0x725   :  { %12507 = vst [vmem:[#allocation7_spill] sm:$0xff] %v9344_v2 }
 0x726   :  { %6197 = vset.pattern.permute.xlu1 %v12481_v9 }
 0x728   :  { %v9355_v28 = vpop.permute.xlu1 %3009 }
 0x729   :  { %12510 = vst [vmem:[#allocation108_spill] sm:$0xff] %v9355_v28 }
 0x72a   :  { %4383 = vperm.xlu0 %6233, %v3846_v40  }
 0x72c   :  { %6192 = vset.pattern.permute.xlu2 %v12481_v9  ;;  %v9353_v26 = vpop.permute.xlu0 %2892 }
 0x72d   :  { %12509 = vst [vmem:[#allocation107_spill] sm:$0xff] %v9353_v26 }
 0x72e   :  { %3171 = vperm.xlu1 %6197, %v3160_v7   ;;  %v9333_v23 = vpop.permute.xlu2 %2950  ;;  %v3199_v7 = vperm.slane %v12478_v12, 1 }
 0x732   :  { %4392 = vperm.xlu0 %6233, %v3849_v38   ;;  %v9362_v38 = vpop.permute.xlu1 %3022 }
 0x734   :  { %3080 = vperm.xlu2 %6192, %v3069_v39   ;;  %v3212_v39 = vperm.slane %v12478_v12, 2  ;;  %v9360_v40 = vpop.permute.xlu0 %2970 }
 0x736   :  { %3184 = vperm.xlu1 %6197, %v3173_v47   ;;  %v9337_v55 = vpop.permute.xlu2 %2963 }
 0x73c   :  { %3093 = vperm.xlu2 %6192, %v3082_v34   ;;  %v9379_v11 = vpop.permute.xlu0 %3035 }
 0x73d   :  { %12513 = vst [vmem:[#allocation112_spill] sm:$0xff] %v9379_v11 }
 0x73e   :  { %6199 = vset.pattern.permute.xlu1 %v12354_v22 }
 0x744   :  { %6194 = vset.pattern.permute.xlu2 %v12354_v22 }
 0x746   :  { %3204 = vperm.xlu1 %6199, %v3199_v7   ;;  %v9342_v21 = vpop.permute.xlu2 %2983 }
 0x74c   :  { %3113 = vperm.xlu2 %6194, %v3108_v31  }
 0x74e   :  { %3217 = vperm.xlu1 %6199, %v3212_v39   ;;  %v9349_v34 = vpop.permute.xlu2 %2996 }
 0x74f   :  { %12508 = vst [vmem:[#allocation106_spill] sm:$0xff] %v9349_v34  ;;  %v3852_v36 = vmul.f32 %v9349_v34, %v9295_v60 }
 0x751   :  { %4401 = vperm.xlu0 %6233, %v3852_v36   ;;  %v9371_v36 = vpop.permute.xlu1 %3041 }
 0x754   :  { %3126 = vperm.xlu2 %6194, %v12511_v50   ;;  %v9376_v50 = vld [vmem:[%s11535_s2 + $0x18] sm:$0xff] }
 0x755   :  { %v3238_v59 = vperm.slane %v9376_v50, 4  ;;  %v3264_v32 = vperm.slane %v9376_v50, 6 }
 0x756   :  { %6201 = vset.pattern.permute.xlu1 %v12481_v9 }
 0x75c   :  { %6196 = vset.pattern.permute.xlu2 %v12481_v9 }
 0x75e   :  { %3236 = vperm.xlu1 %6201, %v3225_v19   ;;  %v9367_v31 = vpop.permute.xlu2 %3015  ;;  %v3858_v19 = vmul.f32 %v9379_v11, %v9295_v60  ;;  %v3329_v11 = vperm.slane %v8642_v18, 3 }
 0x75f   :  { %12512 = vst [vmem:[#allocation110_spill] sm:$0xff] %v9367_v31  ;;  %v3855_v27 = vmul.f32 %v9367_v31, %v9276_v52 }
 0x761   :  { %4410 = vperm.xlu0 %6233, %v3855_v27   ;;  %v9385_v27 = vpop.permute.xlu1 %3054 }
 0x762   :  { %12514 = vst [vmem:[#allocation114_spill] sm:$0xff] %v9385_v27  ;;  %v3861_v62 = vmul.f32 %v9385_v27, %v9276_v52 }
 0x764   :  { %3145 = vperm.xlu2 %6196, %v3134_v48  }
 0x766   :  { %3249 = vperm.xlu1 %6201, %v3238_v59   ;;  %v9393_v1 = vpop.permute.xlu2 %3028 }
 0x767   :  { %12516 = vst [vmem:[#allocation129_spill] sm:$0xff] %v9393_v1 }
 0x769   :  { %4419 = vperm.xlu0 %6233, %v3858_v19   ;;  %v9391_v29 = vpop.permute.xlu1 %3074 }
 0x76a   :  { %12515 = vst [vmem:[#allocation126_spill] sm:$0xff] %v9391_v29  ;;  %v3864_v48 = vmul.f32 %v9391_v29, %v9295_v60 }
 0x76c   :  { %3158 = vperm.xlu2 %6196, %v3147_v5   ;;  %v3277_v5 = vperm.slane %v9376_v50, 7  ;;  %v3303_v50 = vperm.slane %v8642_v18, 1 }
 0x76e   :  { %6203 = vset.pattern.permute.xlu1 %v12354_v22 }
 0x771   :  { %4428 = vperm.xlu0 %6233, %v3861_v62   ;;  %v12517_v62 = vperm.slane %v12478_v12, 0  ;;  %v3368_v12 = vperm.slane %v8642_v18, 6 }
 0x774   :  { %6198 = vset.pattern.permute.xlu2 %v12354_v22 }
 0x776   :  { %3269 = vperm.xlu1 %6203, %v3264_v32   ;;  %v9399_v19 = vpop.permute.xlu2 %3048 }
 0x779   :  { %4437 = vperm.xlu0 %6233, %v3864_v48   ;;  %v9411_v48 = vpop.permute.xlu1 %3087 }
 0x77c   :  { %3178 = vperm.xlu2 %6198, %v3173_v47  }
 0x77e   :  { %3282 = vperm.xlu1 %6203, %v3277_v5   ;;  %v9403_v10 = vpop.permute.xlu2 %3061 }
 0x781   :  { %v9418_v27 = vpop.permute.xlu1 %3106 }
 0x784   :  { %3191 = vperm.xlu2 %6198, %v12517_v62  }
 0x786   :  { %6205 = vset.pattern.permute.xlu1 %v12481_v9 }
 0x78c   :  { %6200 = vset.pattern.permute.xlu2 %v12481_v9 }
 0x78e   :  { %3301 = vperm.xlu1 %6205, %v3290_v0   ;;  %v9409_v29 = vpop.permute.xlu2 %3080  ;;  %v9421_v0 = vpop.permute.xlu1 %3119 }
 0x794   :  { %3210 = vperm.xlu2 %6200, %v3199_v7  }
 0x796   :  { %3314 = vperm.xlu1 %6205, %v3303_v50   ;;  %v9414_v47 = vpop.permute.xlu2 %3093 }
 0x797   :  { %12518 = vst [vmem:[#allocation116_spill] sm:$0xff] %v9414_v47  ;;  %v3867_v62 = vmul.f32 %v9414_v47, %v9276_v52  ;;  %v9429_v47 = vpop.permute.xlu1 %3139 }
 0x799   :  { %4446 = vperm.xlu0 %6233, %v3867_v62   ;;  %v3342_v62 = vperm.slane %v8642_v18, 4 }
 0x79c   :  { %3223 = vperm.xlu2 %6200, %v3212_v39   ;;  %v3873_v39 = vmul.f32 %v9264_v13, %v9276_v52  ;;  %v9467_v13 = vpop.permute.xlu0 %3100 }
 0x79e   :  { %6207 = vset.pattern.permute.xlu1 %v12354_v22 }
 0x79f   :  { %v9434_v34 = vpop.permute.xlu1 %3152 }
 0x7a0   :  { %12520 = vst [vmem:[#allocation120_spill] sm:$0xff] %v9434_v34 }
 0x7a4   :  { %6202 = vset.pattern.permute.xlu2 %v12354_v22  ;;  %v9474_v54 = vpop.permute.xlu0 %3165 }
 0x7a5   :  { %12529 = vst [vmem:[#allocation133_spill] sm:$0xff] %v9474_v54 }
 0x7a6   :  { %3334 = vperm.xlu1 %6207, %v3329_v11   ;;  %v9425_v7 = vpop.permute.xlu2 %3113 }
 0x7a7   :  { %12519 = vst [vmem:[#allocation119_spill] sm:$0xff] %v9425_v7  ;;  %v3870_v31 = vmul.f32 %v9425_v7, %v9295_v60  ;;  %v9441_v7 = vpop.permute.xlu1 %3171 }
 0x7a8   :  { %12522 = vst [vmem:[#allocation125_spill] sm:$0xff] %v9441_v7 }
 0x7a9   :  { %4455 = vperm.xlu0 %6233, %v3870_v31   ;;  %v3876_v31 = vmul.f32 %v9434_v34, %v9295_v60  ;;  %v3394_v34 = vperm.slane %v12482_v33, 0 }
 0x7ac   :  { %3243 = vperm.xlu2 %6202, %v3238_v59   ;;  %v12523_v59 = vperm.slane %v8642_v18, 5  ;;  %v9488_v37 = vpop.permute.xlu0 %3230 }
 0x7ad   :  { %12532 = vst [vmem:[#allocation25_spill] sm:$0xff] %v9488_v37  ;;  %v3888_v25 = vmul.f32 %v9488_v37, %v9295_v60 }
 0x7ae   :  { %3347 = vperm.xlu1 %6207, %v3342_v62   ;;  %v9443_v51 = vpop.permute.xlu2 %3126 }
 0x7b1   :  { %4464 = vperm.xlu0 %6233, %v3873_v39   ;;  %v3879_v39 = vmul.f32 %v9441_v7, %v9276_v52  ;;  %v9460_v7 = vpop.permute.xlu1 %3184 }
 0x7b2   :  { %12525 = vst [vmem:[#allocation5_spill] sm:$0xff] %v9460_v7  ;;  %v3524_v7 = vperm.slane %v12485_v30, 2 }
 0x7b4   :  { %3256 = vperm.xlu2 %6202, %v12521_v44  }
 0x7b6   :  { %6209 = vset.pattern.permute.xlu1 %v12481_v9 }
 0x7b9   :  { %4473 = vperm.xlu0 %6233, %v3876_v31   ;;  %v9469_v14 = vpop.permute.xlu1 %3204 }
 0x7ba   :  { %12527 = vst [vmem:[#allocation130_spill] sm:$0xff] %v9469_v14 }
 0x7bc   :  { %6204 = vset.pattern.permute.xlu2 %v12481_v9 }
 0x7be   :  { %3366 = vperm.xlu1 %6209, %v12523_v59   ;;  %v9451_v44 = vpop.permute.xlu2 %3145 }
 0x7bf   :  { %12524 = vst [vmem:[#allocation4_spill] sm:$0xff] %v9451_v44 }
 0x7c1   :  { %4482 = vperm.xlu0 %6233, %v3879_v39   ;;  %v3407_v39 = vperm.slane %v12482_v33, 1  ;;  %v9476_v17 = vpop.permute.xlu1 %3217 }
 0x7c4   :  { %3275 = vperm.xlu2 %6204, %v3264_v32  }
 0x7c6   :  { %3379 = vperm.xlu1 %6209, %v3368_v12   ;;  %v9453_v31 = vpop.permute.xlu2 %3158 }
 0x7cc   :  { %3288 = vperm.xlu2 %6204, %v3277_v5  }
 0x7ce   :  { %6211 = vset.pattern.permute.xlu1 %v12354_v22 }
 0x7d4   :  { %6206 = vset.pattern.permute.xlu2 %v12354_v22 }
 0x7d6   :  { %3399 = vperm.xlu1 %6211, %v3394_v34   ;;  %v9458_v59 = vpop.permute.xlu2 %3178 }
 0x7dc   :  { %3308 = vperm.xlu2 %6206, %v3303_v50   ;;  %v12530_v50 = vperm.slane %v12482_v33, 2 }
 0x7de   :  { %3412 = vperm.xlu1 %6211, %v3407_v39   ;;  %v9463_v32 = vpop.permute.xlu2 %3191 }
 0x7df   :  { %12526 = vst [vmem:[#allocation14_spill] sm:$0xff] %v9463_v32  ;;  %v3882_v5 = vmul.f32 %v9463_v32, %v9295_v60 }
 0x7e1   :  { %4491 = vperm.xlu0 %6233, %v3882_v5   ;;  %v9485_v5 = vpop.permute.xlu1 %3236 }
 0x7e4   :  { %3321 = vperm.xlu2 %6206, %v12528_v41   ;;  %v3433_v41 = vperm.slane %v12482_v33, 3 }
 0x7e6   :  { %6213 = vset.pattern.permute.xlu1 %v12481_v9 }
 0x7e9   :  { %v9492_v57 = vpop.permute.xlu1 %3249 }
 0x7ea   :  { %12533 = vst [vmem:[#allocation113_spill] sm:$0xff] %v9492_v57 }
 0x7ec   :  { %6208 = vset.pattern.permute.xlu2 %v12481_v9 }
 0x7ee   :  { %3431 = vperm.xlu1 %6213, %v12530_v50   ;;  %v9481_v32 = vpop.permute.xlu2 %3210  ;;  %v3459_v50 = vperm.slane %v12482_v33, 5 }
 0x7ef   :  { %12531 = vst [vmem:[#allocation62_spill] sm:$0xff] %v9481_v32  ;;  %v3885_v2 = vmul.f32 %v9481_v32, %v9276_v52 }
 0x7f1   :  { %4500 = vperm.xlu0 %6233, %v3885_v2   ;;  %v3891_v2 = vmul.f32 %v9492_v57, %v9276_v52  ;;  %v9498_v32 = vpop.permute.xlu1 %3269  ;;  %v12537_v57 = vperm.slane %v8642_v18, 7 }
 0x7f2   :  { %12534 = vst [vmem:[#allocation127_spill] sm:$0xff] %v9498_v32 }
 0x7f4   :  { %3340 = vperm.xlu2 %6208, %v3329_v11   ;;  %v3894_v11 = vmul.f32 %v9498_v32, %v9295_v60 }
 0x7f6   :  { %3444 = vperm.xlu1 %6213, %v3433_v41   ;;  %v9500_v45 = vpop.permute.xlu2 %3223 }
 0x7f7   :  { %12535 = vst [vmem:[#allocation131_spill] sm:$0xff] %v9500_v45 }
 0x7f9   :  { %4509 = vperm.xlu0 %6233, %v3888_v25   ;;  %v3472_v25 = vperm.slane %v12482_v33, 6 }
 0x7fc   :  { %3353 = vperm.xlu2 %6208, %v3342_v62  }
 0x7fe   :  { %6215 = vset.pattern.permute.xlu1 %v12354_v22 }
 0x801   :  { %4518 = vperm.xlu0 %6233, %v3891_v2   ;;  %v9508_v2 = vpop.permute.xlu0 %3295 }
 0x804   :  { %6210 = vset.pattern.permute.xlu2 %v12354_v22 }
 0x806   :  { %3464 = vperm.xlu1 %6215, %v3459_v50   ;;  %v9506_v62 = vpop.permute.xlu2 %3243 }
 0x807   :  { %12536 = vst [vmem:[#allocation68_spill] sm:$0xff] %v9506_v62  ;;  %v3498_v62 = vperm.slane %v12485_v30, 0 }
 0x809   :  { %4527 = vperm.xlu0 %6233, %v3894_v11   ;;  %v9515_v45 = vpop.permute.xlu0 %3360  ;;  %v12539_v11 = vperm.slane %v12482_v33, 7 }
 0x80a   :  { %12538 = vst [vmem:[#allocation121_spill] sm:$0xff] %v9515_v45 }
 0x80c   :  { %3373 = vperm.xlu2 %6210, %v3368_v12   ;;  %v9522_v12 = vpop.permute.xlu1 %3282 }
 0x80d   :  { %12540 = vst [vmem:[#allocation51_spill] sm:$0xff] %v9522_v12 }
 0x80e   :  { %3477 = vperm.xlu1 %6215, %v3472_v25   ;;  %v9512_v37 = vpop.permute.xlu2 %3256 }
 0x811   :  { %v9525_v14 = vpop.permute.xlu0 %3425 }
 0x812   :  { %12541 = vst [vmem:[#allocation134_spill] sm:$0xff] %v9525_v14 }
 0x814   :  { %3386 = vperm.xlu2 %6210, %v12537_v57   ;;  %v9531_v45 = vpop.permute.xlu1 %3301 }
 0x815   :  { %12543 = vst [vmem:[#allocation79_spill] sm:$0xff] %v9531_v45 }
 0x816   :  { %6217 = vset.pattern.permute.xlu1 %v12481_v9 }
 0x81c   :  { %6212 = vset.pattern.permute.xlu2 %v12481_v9  ;;  %v9536_v12 = vpop.permute.xlu1 %3314 }
 0x81e   :  { %3496 = vperm.xlu1 %6217, %v12539_v11   ;;  %v9520_v32 = vpop.permute.xlu2 %3275  ;;  %v9533_v11 = vpop.permute.xlu0 %3490 }
 0x81f   :  { %12544 = vst [vmem:[#allocation81_spill] sm:$0xff] %v9533_v11  ;;  %v3903_v11 = vmul.f32 %v9293_v16, %v9276_v52 }
 0x824   :  { %3405 = vperm.xlu2 %6212, %v3394_v34  }
 0x826   :  { %3509 = vperm.xlu1 %6217, %v3498_v62   ;;  %v9527_v18 = vpop.permute.xlu2 %3288  ;;  %v9542_v54 = vpop.permute.xlu0 %3555 }
 0x827   :  { %12542 = vst [vmem:[#allocation69_spill] sm:$0xff] %v9527_v18  ;;  %v3897_v57 = vmul.f32 %v9527_v18, %v9276_v52 }
 0x828   :  { %12546 = vst [vmem:[#allocation145_spill] sm:$0xff] %v9542_v54  ;;  %v12550_v54 = vperm.slane %v12482_v33, 4 }
 0x829   :  { %4536 = vperm.xlu0 %6233, %v3897_v57   ;;  %v3537_v57 = vperm.slane %v12485_v30, 3 }
 0x82c   :  { %3418 = vperm.xlu2 %6212, %v3407_v39   ;;  %v9546_v39 = vpop.permute.xlu1 %3334 }
 0x82d   :  { %12547 = vst [vmem:[#allocation16_spill] sm:$0xff] %v9546_v39 }
 0x82e   :  { %6219 = vset.pattern.permute.xlu1 %v12354_v22  ;;  %v9551_v45 = vpop.permute.xlu0 %3620 }
 0x82f   :  { %12548 = vst [vmem:[#allocation128_spill] sm:$0xff] %v9551_v45 }
 0x834   :  { %6214 = vset.pattern.permute.xlu2 %v12354_v22  ;;  %v9553_v44 = vpop.permute.xlu1 %3347 }
 0x835   :  { %12549 = vst [vmem:[#allocation148_spill] sm:$0xff] %v9553_v44 }
 0x836   :  { %3529 = vperm.xlu1 %6219, %v3524_v7   ;;  %v9540_v34 = vpop.permute.xlu2 %3308 }
 0x837   :  { %12545 = vst [vmem:[#allocation109_spill] sm:$0xff] %v9540_v34  ;;  %v3900_v18 = vmul.f32 %v9540_v34, %v9295_v60  ;;  %v9560_v34 = vpop.permute.xlu0 %3685 }
 0x838   :  { %12551 = vst [vmem:[#allocation150_spill] sm:$0xff] %v9560_v34 }
 0x839   :  { %4545 = vperm.xlu0 %6233, %v3900_v18   ;;  %v3906_v18 = vmul.f32 %v9553_v44, %v9295_v60 }
 0x83c   :  { %3438 = vperm.xlu2 %6214, %v3433_v41   ;;  %v9562_v41 = vpop.permute.xlu1 %3366 }
 0x83d   :  { %12552 = vst [vmem:[#allocation124_spill] sm:$0xff] %v9562_v41  ;;  %v3909_v33 = vmul.f32 %v9562_v41, %v9276_v52 }
 0x83e   :  { %3542 = vperm.xlu1 %6219, %v3537_v57   ;;  %v9564_v39 = vpop.permute.xlu2 %3321 }
 0x83f   :  { %12553 = vst [vmem:[#allocation152_spill] sm:$0xff] %v9564_v39  ;;  %v9572_v16 = vpop.permute.xlu0 %4350 }
 0x840   :  { %12555 = vst [vmem:[#allocation153_spill] sm:$0xff] %v9572_v16 }
 0x841   :  { %4554 = vperm.xlu0 %6233, %v3903_v11   ;;  %v12554_v11 = vperm.slane %v12485_v30, 4 }
 0x844   :  { %3451 = vperm.xlu2 %6214, %v12550_v54   ;;  %v3563_v54 = vperm.slane %v12485_v30, 5  ;;  %v9587_v16 = vpop.permute.xlu1 %3379 }
 0x845   :  { %12560 = vst [vmem:[#allocation52_spill] sm:$0xff] %v9587_v16 }
 0x846   :  { %6221 = vset.pattern.permute.xlu1 %v12481_v9 }
 0x847   :  { %v9576_v44 = vpop.permute.xlu0 %4365 }
 0x848   :  { %12557 = vst [vmem:[#allocation12_spill] sm:$0xff] %v9576_v44 }
 0x849   :  { %4563 = vperm.xlu0 %6233, %v3906_v18  }
 0x84c   :  { %6216 = vset.pattern.permute.xlu2 %v12481_v9  ;;  %v9596_v39 = vpop.permute.xlu1 %3399 }
 0x84d   :  { %12563 = vst [vmem:[#allocation161_spill] sm:$0xff] %v9596_v39  ;;  %v3628_v39 = vperm.slane %v12486_v42, 2 }
 0x84e   :  { %3561 = vperm.xlu1 %6221, %v12554_v11   ;;  %v9574_v18 = vpop.permute.xlu2 %3340  ;;  %v3589_v11 = vperm.slane %v12485_v30, 7 }
 0x84f   :  { %12556 = vst [vmem:[#allocation155_spill] sm:$0xff] %v9574_v18 }
 0x851   :  { %4572 = vperm.xlu0 %6233, %v3909_v33   ;;  %v9583_v33 = vpop.permute.xlu0 %4374 }
 0x852   :  { %12558 = vst [vmem:[#allocation132_spill] sm:$0xff] %v9583_v33  ;;  %v12564_v33 = vperm.slane %v12485_v30, 1 }
 0x854   :  { %3470 = vperm.xlu2 %6216, %v3459_v50   ;;  %v3602_v50 = vperm.slane %v12486_v42, 0 }
 0x856   :  { %3574 = vperm.xlu1 %6221, %v3563_v54   ;;  %v9578_v34 = vpop.permute.xlu2 %3353 }
 0x859   :  { %v9592_v44 = vpop.permute.xlu0 %4383 }
 0x85a   :  { %12562 = vst [vmem:[#allocation158_spill] sm:$0xff] %v9592_v44 }
 0x85c   :  { %3483 = vperm.xlu2 %6216, %v3472_v25  }
 0x85e   :  { %6223 = vset.pattern.permute.xlu1 %v12354_v22 }
 0x861   :  { %v9601_v16 = vpop.permute.xlu0 %4392 }
 0x862   :  { %12565 = vst [vmem:[#allocation115_spill] sm:$0xff] %v9601_v16  ;;  %v3918_v16 = vmul.f32 %v9525_v14, %v9295_v60 }
 0x864   :  { %6218 = vset.pattern.permute.xlu2 %v12354_v22 }
 0x866   :  { %3594 = vperm.xlu1 %6223, %v3589_v11   ;;  %v9585_v41 = vpop.permute.xlu2 %3373 }
 0x867   :  { %12559 = vst [vmem:[#allocation138_spill] sm:$0xff] %v9585_v41  ;;  %v9603_v41 = vpop.permute.xlu1 %3412 }
 0x868   :  { %12566 = vst [vmem:[#allocation8_spill] sm:$0xff] %v9603_v41 }
 0x86c   :  { %3503 = vperm.xlu2 %6218, %v3498_v62   ;;  %v12567_v62 = vperm.slane %v12486_v42, 1 }
 0x86e   :  { %3607 = vperm.xlu1 %6223, %v3602_v50   ;;  %v9590_v25 = vpop.permute.xlu2 %3386 }
 0x86f   :  { %12561 = vst [vmem:[#allocation135_spill] sm:$0xff] %v9590_v25  ;;  %v3912_v18 = vmul.f32 %v9590_v25, %v9295_v60 }
 0x871   :  { %4581 = vperm.xlu0 %6233, %v3912_v18   ;;  %v9612_v18 = vpop.permute.xlu0 %4401 }
 0x872   :  { %12569 = vst [vmem:[#allocation118_spill] sm:$0xff] %v9612_v18 }
 0x874   :  { %3516 = vperm.xlu2 %6218, %v12564_v33   ;;  %v9614_v33 = vpop.permute.xlu1 %3431 }
 0x875   :  { %12570 = vst [vmem:[#allocation46_spill] sm:$0xff] %v9614_v33 }
 0x876   :  { %6225 = vset.pattern.permute.xlu1 %v12481_v9 }
 0x879   :  { %v9619_v41 = vpop.permute.xlu0 %4410 }
 0x87a   :  { %12571 = vst [vmem:[#allocation142_spill] sm:$0xff] %v9619_v41 }
 0x87c   :  { %6220 = vset.pattern.permute.xlu2 %v12481_v9 }
 0x87e   :  { %3626 = vperm.xlu1 %6225, %v12567_v62   ;;  %v9608_v44 = vpop.permute.xlu2 %3405  ;;  %v9621_v62 = vpop.permute.xlu1 %3444 }
 0x87f   :  { %12568 = vst [vmem:[#allocation164_spill] sm:$0xff] %v9608_v44  ;;  %v3915_v25 = vmul.f32 %v9608_v44, %v9276_v52 }
 0x880   :  { %12572 = vst [vmem:[#allocation117_spill] sm:$0xff] %v9621_v62 }
 0x881   :  { %4590 = vperm.xlu0 %6233, %v3915_v25   ;;  %v3921_v25 = vmul.f32 %v9621_v62, %v9276_v52  ;;  %v9632_v14 = vpop.permute.xlu0 %4419 }
 0x882   :  { %12573 = vst [vmem:[#allocation122_spill] sm:$0xff] %v9632_v14  ;;  %v12578_v14 = vperm.slane %v12485_v30, 6 }
 0x884   :  { %3535 = vperm.xlu2 %6220, %v3524_v7   ;;  %v9629_v7 = vld [vmem:[%s11535_s2 + $0x38] sm:$0xff] }
 0x885   :  { %v11785_v18 = vperm.slane %v9629_v7, 4  ;;  %v3693_v30 = vperm.slane %v9629_v7, 7 }
 0x886   :  { %3639 = vperm.xlu1 %6225, %v3628_v39   ;;  %v9634_v41 = vpop.permute.xlu1 %3464 }
 0x887   :  { %12574 = vst [vmem:[#allocation35_spill] sm:$0xff] %v9634_v41 }
 0x889   :  { %4599 = vperm.xlu0 %6233, %v3918_v16   ;;  %v9636_v16 = vpop.permute.xlu2 %3418  ;;  %v9646_v44 = vpop.permute.xlu0 %4428 }
 0x88a   :  { %12575 = vst [vmem:[#allocation169_spill] sm:$0xff] %v9636_v16 }
 0x88b   :  { %12577 = vst [vmem:[#allocation66_spill] sm:$0xff] %v9646_v44 }
 0x88c   :  { %3548 = vperm.xlu2 %6220, %v3537_v57   ;;  %v3924_v57 = vmul.f32 %v9634_v41, %v9295_v60 }
 0x88e   :  { %6228 = vset.pattern.permute.xlu1 %v12354_v22  ;;  %v9655_v33 = vpop.permute.xlu1 %3477 }
 0x88f   :  { %12580 = vst [vmem:[#allocation146_spill] sm:$0xff] %v9655_v33 }
 0x891   :  { %4608 = vperm.xlu0 %6233, %v3921_v25   ;;  %v3667_v25 = vperm.slane %v9629_v7, 5 }
 0x894   :  { %6222 = vset.pattern.permute.xlu2 %v12354_v22 }
 0x896   :  { %3659 = vperm.xlu1 %6228, %v11785_v18   ;;  %v9644_v62 = vpop.permute.xlu2 %3438  ;;  %v9653_v18 = vpop.permute.xlu0 %4437 }
 0x897   :  { %12576 = vst [vmem:[#allocation140_spill] sm:$0xff] %v9644_v62 }
 0x898   :  { %12579 = vst [vmem:[#allocation136_spill] sm:$0xff] %v9653_v18 }
 0x899   :  { %4617 = vperm.xlu0 %6233, %v3924_v57   ;;  %v12581_v57 = vperm.slane %v12486_v42, 6 }
 0x89c   :  { %3568 = vperm.xlu2 %6222, %v3563_v54  }
 0x89e   :  { %3672 = vperm.xlu1 %6228, %v3667_v25   ;;  %v9650_v16 = vpop.permute.xlu2 %3451  ;;  %v9662_v44 = vpop.permute.xlu0 %4446 }
 0x89f   :  { %12582 = vst [vmem:[#allocation172_spill] sm:$0xff] %v9662_v44 }
 0x8a4   :  { %3581 = vperm.xlu2 %6222, %v12578_v14   ;;  %v9665_v14 = vpop.permute.xlu1 %3496 }
 0x8a5   :  { %12583 = vst [vmem:[#allocation10_spill] sm:$0xff] %v9665_v14  ;;  %v12590_v14 = vperm.slane %v12486_v42, 3  ;;  %v3847_v42 = vmul.f32 %v9337_v55, %v9276_v52 }
 0x8a6   :  { %6230 = vset.pattern.permute.xlu1 %v12481_v9  ;;  %v9669_v18 = vpop.permute.xlu0 %4455 }
 0x8a7   :  { %12585 = vst [vmem:[#allocation175_spill] sm:$0xff] %v9669_v18 }
 0x8ac   :  { %6224 = vset.pattern.permute.xlu2 %v12481_v9  ;;  %v9675_v62 = vpop.permute.xlu1 %3509 }
 0x8ae   :  { %3691 = vperm.xlu1 %6230, %v12581_v57   ;;  %v9660_v54 = vpop.permute.xlu2 %3470  ;;  %v3836_v57 = vmul.f32 %v9353_v26, %v9295_v60  ;;  %v9678_v44 = vpop.permute.xlu0 %4464 }
 0x8af   :  { %12586 = vst [vmem:[#allocation139_spill] sm:$0xff] %v9678_v44  ;;  %v3933_v44 = vmul.f32 %v9331_v3, %v9276_v52 }
 0x8b4   :  { %3600 = vperm.xlu2 %6224, %v3589_v11   ;;  %v3838_v11 = vmul.f32 %v9287_v58, %v9295_v60  ;;  %v9683_v18 = vpop.permute.xlu1 %3529 }
 0x8b6   :  { %3704 = vperm.xlu1 %6230, %v3693_v30   ;;  %v9667_v41 = vpop.permute.xlu2 %3483 }
 0x8b7   :  { %12584 = vst [vmem:[#allocation143_spill] sm:$0xff] %v9667_v41  ;;  %v3927_v33 = vmul.f32 %v9667_v41, %v9276_v52 }
 0x8b9   :  { %4626 = vperm.xlu0 %6233, %v3927_v33   ;;  %v9689_v33 = vpop.permute.xlu0 %4473 }
 0x8ba   :  { %12588 = vst [vmem:[#allocation178_spill] sm:$0xff] %v9689_v33 }
 0x8bc   :  { %3613 = vperm.xlu2 %6224, %v3602_v50   ;;  %v9695_v26 = vpop.permute.xlu1 %3542 }
 0x8bd   :  { %12589 = vst [vmem:[#allocation88_spill] sm:$0xff] %v9695_v26 }
 0x8be   :  { %6234 = vset.pattern.permute.xlu1 %v12489_v61 }
 0x8bf   :  { %4353 = vperm.xlu1 %6234, %v3836_v57   ;;  %v3841_v57 = vmul.f32 %v9290_v20, %v9276_v52 }
 0x8c4   :  { %6226 = vset.pattern.permute.xlu2 %v12354_v22 }
 0x8c6   :  { %v9685_v41 = vpop.permute.xlu2 %3503 }
 0x8c7   :  { %12587 = vst [vmem:[#allocation74_spill] sm:$0xff] %v9685_v41  ;;  %v3930_v50 = vmul.f32 %v9685_v41, %v9295_v60  ;;  %4359 = vperm.xlu1 %6234, %v3838_v11   ;;  %v3844_v11 = vmul.f32 %v9304_v46, %v9295_v60  ;;  %v9705_v41 = vpop.permute.xlu1 %3561 }
 0x8c8   :  { %12592 = vst [vmem:[#allocation154_spill] sm:$0xff] %v9705_v41 }
 0x8c9   :  { %4635 = vperm.xlu0 %6233, %v3930_v50   ;;  %v9701_v50 = vpop.permute.xlu0 %4482 }
 0x8ca   :  { %12591 = vst [vmem:[#allocation151_spill] sm:$0xff] %v9701_v50 }
 0x8cc   :  { %3633 = vperm.xlu2 %6226, %v3628_v39   ;;  %v3936_v39 = vmul.f32 %v9695_v26, %v9295_v60 }
 0x8ce   :  { %v9707_v3 = vpop.permute.xlu2 %3516 }
 0x8cf   :  { %4368 = vperm.xlu1 %6234, %v3841_v57   ;;  %12593 = vst [vmem:[#allocation137_spill] sm:$0xff] %v9707_v3  ;;  %v9716_v57 = vpop.permute.xlu1 %3574 }
 0x8d1   :  { %4644 = vperm.xlu0 %6233, %v3933_v44   ;;  %v9712_v44 = vpop.permute.xlu0 %4491 }
 0x8d2   :  { %12594 = vst [vmem:[#allocation163_spill] sm:$0xff] %v9712_v44 }
 0x8d4   :  { %3646 = vperm.xlu2 %6226, %v12590_v14   ;;  %v3939_v14 = vmul.f32 %v9705_v41, %v9276_v52 }
 0x8d7   :  { %4377 = vperm.xlu1 %6234, %v3844_v11  }
 0x8d8   :  { %v9726_v50 = vpop.permute.xlu1 %3594 }
 0x8d9   :  { %4653 = vperm.xlu0 %6233, %v3936_v39   ;;  %v12596_v39 = vperm.slane %v9629_v7, 4  ;;  %v9724_v26 = vpop.permute.xlu0 %4500  ;;  %v3856_v7 = vmul.f32 %v9362_v38, %v9295_v60 }
 0x8da   :  { %12597 = vst [vmem:[#allocation141_spill] sm:$0xff] %v9724_v26  ;;  %v3859_v26 = vmul.f32 %v9371_v36, %v9276_v52 }
 0x8dc   :  { %6229 = vset.pattern.permute.xlu2 %v12481_v9  ;;  %v3850_v9 = vmul.f32 %v9342_v21, %v9295_v60 }
 0x8de   :  { %v9718_v11 = vpop.permute.xlu2 %3535 }
 0x8df   :  { %4386 = vperm.xlu1 %6234, %v3847_v42   ;;  %12595 = vst [vmem:[#allocation165_spill] sm:$0xff] %v9718_v11  ;;  %v3853_v42 = vmul.f32 %v9253_v24, %v9276_v52 }
 0x8e0   :  { %v9734_v41 = vpop.permute.xlu1 %3607 }
 0x8e1   :  { %4662 = vperm.xlu0 %6233, %v3939_v14   ;;  %v9732_v44 = vpop.permute.xlu0 %4509 }
 0x8e2   :  { %12598 = vst [vmem:[#allocation147_spill] sm:$0xff] %v9732_v44 }
 0x8e4   :  { %3665 = vperm.xlu2 %6229, %v12596_v39  }
 0x8e6   :  { %v9730_v14 = vpop.permute.xlu2 %3548 }
 0x8e7   :  { %4395 = vperm.xlu1 %6234, %v3850_v9  }
 0x8e9   :  { %v9741_v9 = vpop.permute.xlu0 %4518 }
 0x8ea   :  { %12599 = vst [vmem:[#allocation171_spill] sm:$0xff] %v9741_v9  ;;  %v3837_v9 = vmul.f32 %v9269_v63, %v9276_v52 }
 0x8ec   :  { %3678 = vperm.xlu2 %6229, %v3667_v25  }
 0x8ef   :  { %4404 = vperm.xlu1 %6234, %v3853_v42  }
 0x8f0   :  { %v9743_v25 = vpop.permute.xlu1 %3626 }
 0x8f1   :  { %v9753_v33 = vpop.permute.xlu0 %4527 }
 0x8f2   :  { %12601 = vst [vmem:[#allocation156_spill] sm:$0xff] %v9753_v33 }
 0x8f4   :  { %6231 = vset.pattern.permute.xlu2 %v12354_v22  ;;  %v3834_v22 = vmul.f32 %v9262_v53, %v9295_v60 }
 0x8f6   :  { %v9739_v39 = vpop.permute.xlu2 %3568 }
 0x8f7   :  { %4413 = vperm.xlu1 %6234, %v3856_v7  }
 0x8f8   :  { %v9758_v7 = vpop.permute.xlu1 %3639 }
 0x8f9   :  { %12602 = vst [vmem:[#allocation96_spill] sm:$0xff] %v9758_v7 }
 0x8fc   :  { %3698 = vperm.xlu2 %6231, %v3693_v30   ;;  %v3862_v30 = vmul.f32 %v9403_v10, %v9295_v60 }
 0x8fe   :  { %v9747_v44 = vpop.permute.xlu2 %3581 }
 0x8ff   :  { %12600 = vst [vmem:[#allocation75_spill] sm:$0xff] %v9747_v44  ;;  %v3942_v42 = vmul.f32 %v9747_v44, %v9295_v60  ;;  %4422 = vperm.xlu1 %6234, %v3859_v26   ;;  %v9762_v44 = vpop.permute.xlu0 %4536  ;;  %v3865_v26 = vmul.f32 %v9409_v29, %v9276_v52 }
 0x900   :  { %12603 = vst [vmem:[#allocation157_spill] sm:$0xff] %v9762_v44  ;;  %v3868_v44 = vmul.f32 %v9467_v13, %v9295_v60 }
 0x901   :  { %4671 = vperm.xlu0 %6233, %v3942_v42  }
 0x904   :  { %6232 = vset.pattern.permute.xlu2 %v12489_v61 }
 0x905   :  { %4347 = vperm.xlu2 %6232, %v3834_v22   ;;  %v3839_v22 = vmul.f32 %v9282_v6, %v9276_v52 }
 0x907   :  { %4431 = vperm.xlu1 %6234, %v3862_v30   ;;  %v9774_v30 = vpop.permute.xlu0 %4545 }
 0x908   :  { %v9766_v42 = vpop.permute.xlu1 %3659  ;;  %12606 = vst [vmem:[#allocation84_spill] sm:$0xff] %v9774_v30  ;;  %v3951_v30 = vmul.f32 %v9758_v7, %v9276_v52  ;;  %v3877_v7 = vmul.f32 %v9453_v31, %v9276_v52 }
 0x909   :  { %12604 = vst [vmem:[#allocation90_spill] sm:$0xff] %v9766_v42 }
 0x90d   :  { %4356 = vperm.xlu2 %6232, %v3837_v9   ;;  %v3948_v9 = vmul.f32 %v9551_v45, %v9295_v60  ;;  %v3874_v45 = vmul.f32 %v9429_v47, %v9295_v60 }
 0x90e   :  { %v9768_v33 = vpop.permute.xlu2 %3600 }
 0x90f   :  { %12605 = vst [vmem:[#allocation144_spill] sm:$0xff] %v9768_v33  ;;  %v3945_v61 = vmul.f32 %v9768_v33, %v9276_v52  ;;  %4440 = vperm.xlu1 %6234, %v3865_v26   ;;  %v3842_v26 = vmul.f32 %v9319_v49, %v9295_v60  ;;  %v9786_v33 = vpop.permute.xlu0 %4554 }
 0x910   :  { %v9780_v63 = vpop.permute.xlu1 %3672  ;;  %12608 = vst [vmem:[#allocation166_spill] sm:$0xff] %v9786_v33 }
 0x911   :  { %4680 = vperm.xlu0 %6233, %v3945_v61   ;;  %12607 = vst [vmem:[#allocation92_spill] sm:$0xff] %v9780_v63  ;;  %v3871_v61 = vmul.f32 %v9421_v0, %v9276_v52 }
 0x915   :  { %4362 = vperm.xlu2 %6232, %v3839_v22  }
 0x917   :  { %4449 = vperm.xlu1 %6234, %v3868_v44   ;;  %v3845_v44 = vmul.f32 %v9333_v23, %v9276_v52  ;;  %v9798_v53 = vpop.permute.xlu0 %4563 }
 0x918   :  { %12611 = vst [vmem:[#allocation174_spill] sm:$0xff] %v9798_v53 }
 0x919   :  { %4689 = vperm.xlu0 %6233, %v3948_v9   ;;  %v9794_v9 = vpop.permute.xlu2 %3613 }
 0x91a   :  { %12610 = vst [vmem:[#allocation159_spill] sm:$0xff] %v9794_v9 }
 0x91d   :  { %4371 = vperm.xlu2 %6232, %v3842_v26   ;;  %v3954_v26 = vmul.f32 %v9766_v42, %v9295_v60 }
 0x91f   :  { %4458 = vperm.xlu1 %6234, %v3871_v61  }
 0x920   :  { %v9790_v22 = vpop.permute.xlu1 %3691 }
 0x921   :  { %12609 = vst [vmem:[#allocation2_spill] sm:$0xff] %v9790_v22  ;;  %4698 = vperm.xlu0 %6233, %v3951_v30   ;;  %v3848_v30 = vmul.f32 %v9360_v40, %v9295_v60 }
 0x925   :  { %4380 = vperm.xlu2 %6232, %v3845_v44   ;;  %v9810_v44 = vpop.permute.xlu0 %4572 }
 0x926   :  { %v9806_v61 = vpop.permute.xlu2 %3633  ;;  %12613 = vst [vmem:[#allocation167_spill] sm:$0xff] %v9810_v44 }
 0x927   :  { %4467 = vperm.xlu1 %6234, %v3874_v45   ;;  %12612 = vst [vmem:[#allocation177_spill] sm:$0xff] %v9806_v61  ;;  %v3851_v45 = vmul.f32 %v9346_v43, %v9276_v52 }
 0x928   :  { %v9802_v33 = vpop.permute.xlu1 %3704 }
 0x929   :  { %4707 = vperm.xlu0 %6233, %v3954_v26   ;;  %v3880_v26 = vmul.f32 %v9458_v59, %v9295_v60 }
 0x92d   :  { %4389 = vperm.xlu2 %6232, %v3848_v30   ;;  %v9820_v22 = vpop.permute.xlu0 %4581  ;;  %v3883_v30 = vmul.f32 %v9273_v8, %v9276_v52 }
 0x92e   :  { %v9818_v42 = vpop.permute.xlu2 %3646  ;;  %12615 = vst [vmem:[#allocation183_spill] sm:$0xff] %v9820_v22  ;;  %v3886_v22 = vmul.f32 %v9476_v17, %v9295_v60 }
 0x92f   :  { %4476 = vperm.xlu1 %6234, %v3877_v7   ;;  %v3854_v7 = vmul.f32 %v9355_v28, %v9295_v60 }
 0x931   :  { %v9812_v53 = vpop.permute.xlu1 %4353 }
 0x932   :  { %12614 = vst [vmem:[#allocation185_spill] sm:$0xff] %v9812_v53 }
 0x935   :  { %4398 = vperm.xlu2 %6232, %v3851_v45   ;;  %v9830_v53 = vpop.permute.xlu0 %4590 }
 0x936   :  { %12617 = vst [vmem:[#allocation180_spill] sm:$0xff] %v9830_v53  ;;  %v3889_v53 = vmul.f32 %v9485_v5, %v9276_v52 }
 0x937   :  { %4485 = vperm.xlu1 %6234, %v3880_v26   ;;  %v3857_v26 = vmul.f32 %v9393_v1, %v9276_v52  ;;  %v3863_v1 = vmul.f32 %v9257_v4, %v9276_v52 }
 0x939   :  { %v9822_v63 = vpop.permute.xlu1 %4359 }
 0x93a   :  { %12616 = vst [vmem:[#allocation179_spill] sm:$0xff] %v9822_v63 }
 0x93d   :  { %4407 = vperm.xlu2 %6232, %v3854_v7  }
 0x93e   :  { %v9828_v44 = vpop.permute.xlu2 %3665 }
 0x93f   :  { %4494 = vperm.xlu1 %6234, %v3883_v30   ;;  %v3860_v30 = vmul.f32 %v9399_v19, %v9295_v60 }
 0x941   :  { %v9832_v45 = vpop.permute.xlu1 %4368 }
 0x942   :  { %12618 = vst [vmem:[#allocation19_spill] sm:$0xff] %v9832_v45  ;;  %v9846_v45 = vpop.permute.xlu0 %4599 }
 0x943   :  { %12621 = vst [vmem:[#allocation23_spill] sm:$0xff] %v9846_v45 }
 0x945   :  { %4416 = vperm.xlu2 %6232, %v3857_v26  }
 0x946   :  { %v9838_v63 = vpop.permute.xlu2 %3678 }
 0x947   :  { %12619 = vst [vmem:[#allocation162_spill] sm:$0xff] %v9838_v63  ;;  %v3957_v28 = vmul.f32 %v9838_v63, %v9276_v52  ;;  %4503 = vperm.xlu1 %6234, %v3886_v22   ;;  %v3892_v22 = vmul.f32 %v9512_v37, %v9295_v60 }
 0x949   :  { %v9842_v7 = vpop.permute.xlu1 %4377  ;;  %4716 = vperm.xlu0 %6233, %v3957_v28  }
 0x94a   :  { %12620 = vst [vmem:[#allocation173_spill] sm:$0xff] %v9842_v7  ;;  %v9856_v63 = vpop.permute.xlu0 %4608 }
 0x94b   :  { %12623 = vst [vmem:[#allocation170_spill] sm:$0xff] %v9856_v63 }
 0x94d   :  { %4425 = vperm.xlu2 %6232, %v3860_v30   ;;  %v9867_v30 = vmax.f32 %v9271_v35, 0.0  ;;  %v9882_v35 = vmax.f32 %v9244_v15, 0.0  ;;  %v3901_v15 = vmul.f32 %v9536_v12, %v9276_v52 }
 0x94f   :  { %4512 = vperm.xlu1 %6234, %v3889_v53   ;;  %v3866_v53 = vmul.f32 %v9411_v48, %v9295_v60 }
 0x951   :  { %v9850_v26 = vpop.permute.xlu1 %4386 }
 0x952   :  { %12622 = vst [vmem:[#allocation168_spill] sm:$0xff] %v9850_v26  ;;  %v3895_v26 = vmul.f32 %v9520_v32, %v9276_v52  ;;  %v9873_v63 = vpop.permute.xlu0 %4617 }
 0x953   :  { %12626 = vst [vmem:[#allocation36_spill] sm:$0xff] %v9873_v63 }
 0x955   :  { %4434 = vperm.xlu2 %6232, %v3863_v1   ;;  %v3963_v1 = vmul.f32 %v9278_v56, %v9867_v30  ;;  %v3966_v56 = vmul.f32 %v9287_v58, %v9882_v35 }
 0x956   :  { %v9858_v28 = vpop.permute.xlu2 %3698 }
 0x957   :  { %12624 = vst [vmem:[#allocation31_spill] sm:$0xff] %v9858_v28  ;;  %v3960_v7 = vmul.f32 %v9858_v28, %v9295_v60  ;;  %4521 = vperm.xlu1 %6234, %v3892_v22  }
 0x959   :  { %v9862_v45 = vpop.permute.xlu1 %4395  ;;  %4725 = vperm.xlu0 %6233, %v3960_v7   ;;  %v3869_v7 = vmul.f32 %v9418_v27, %v9276_v52 }
 0x95a   :  { %12625 = vst [vmem:[#allocation37_spill] sm:$0xff] %v9862_v45  ;;  %v9888_v45 = vpop.permute.xlu0 %4626 }
 0x95b   :  { %12629 = vst [vmem:[#allocation44_spill] sm:$0xff] %v9888_v45 }
 0x95d   :  { %4443 = vperm.xlu2 %6232, %v3866_v53   ;;  %v3898_v53 = vmul.f32 %v9508_v2, %v9295_v60 }
 0x95f   :  { %v9875_v28 = vpop.permute.xlu2 %4347  ;;  %4530 = vperm.xlu1 %6234, %v3895_v26  }
 0x960   :  { %12627 = vst [vmem:[#allocation186_spill] sm:$0xff] %v9875_v28 }
 0x961   :  { %v9877_v22 = vpop.permute.xlu1 %4404  ;;  %4734 = vperm.xlu0 %6233, %v3963_v1   ;;  %v3872_v1 = vmul.f32 %v9443_v51, %v9295_v60 }
 0x962   :  { %12628 = vst [vmem:[#allocation27_spill] sm:$0xff] %v9877_v22  ;;  %v9900_v22 = vpop.permute.xlu0 %4635 }
 0x963   :  { %12632 = vst [vmem:[#allocation32_spill] sm:$0xff] %v9900_v22 }
 0x965   :  { %4452 = vperm.xlu2 %6232, %v3869_v7   ;;  %v3969_v7 = vmul.f32 %v9290_v20, %v9867_v30 }
 0x967   :  { %v9890_v28 = vpop.permute.xlu2 %4356  ;;  %4539 = vperm.xlu1 %6234, %v3898_v53   ;;  %v12635_v53 = vld [vmem:[#allocation4_spill] sm:$0xff] }
 0x968   :  { %12630 = vst [vmem:[#allocation176_spill] sm:$0xff] %v9890_v28 }
 0x969   :  { %v9892_v26 = vpop.permute.xlu1 %4413  ;;  %4743 = vperm.xlu0 %6233, %v3966_v56   ;;  %v3875_v56 = vmul.f32 %v12635_v53, %v9276_v52 }
 0x96a   :  { %12631 = vst [vmem:[#allocation181_spill] sm:$0xff] %v9892_v26  ;;  %v12636_v26 = vld [vmem:[#allocation16_spill] sm:$0xff]  ;;  %v9914_v20 = vpop.permute.xlu0 %4644 }
 0x96b   :  { %v3904_v45 = vmul.f32 %v12636_v26, %v9295_v60  ;;  %12638 = vst [vmem:[#allocation17_spill] sm:$0xff] %v9914_v20  ;;  %v12645_v20 = vld [vmem:[#allocation138_spill] sm:$0xff] }
 0x96d   :  { %4461 = vperm.xlu2 %6232, %v3872_v1   ;;  %v3972_v1 = vmul.f32 %v9304_v46, %v9882_v35 }
 0x96f   :  { %v9902_v58 = vpop.permute.xlu2 %4362  ;;  %4548 = vperm.xlu1 %6234, %v3901_v15   ;;  %v12640_v15 = vld [vmem:[#allocation133_spill] sm:$0xff] }
 0x970   :  { %12633 = vst [vmem:[#allocation182_spill] sm:$0xff] %v9902_v58 }
 0x971   :  { %v9904_v28 = vpop.permute.xlu1 %4422  ;;  %4752 = vperm.xlu0 %6233, %v3969_v7   ;;  %v3878_v7 = vmul.f32 %v12640_v15, %v9295_v60 }
 0x972   :  { %12634 = vst [vmem:[#allocation24_spill] sm:$0xff] %v9904_v28  ;;  %v3907_v28 = vmul.f32 %v9578_v34, %v9276_v52 }
 0x975   :  { %4470 = vperm.xlu2 %6232, %v3875_v56   ;;  %v3975_v56 = vmul.f32 %v9337_v55, %v9867_v30 }
 0x977   :  { %v9912_v63 = vpop.permute.xlu2 %4371  ;;  %4557 = vperm.xlu1 %6234, %v3904_v45   ;;  %v12643_v45 = vld [vmem:[#allocation5_spill] sm:$0xff] }
 0x978   :  { %12637 = vst [vmem:[#allocation26_spill] sm:$0xff] %v9912_v63  ;;  %v3910_v63 = vmul.f32 %v12645_v20, %v9295_v60 }
 0x979   :  { %v9916_v22 = vpop.permute.xlu1 %4431  ;;  %4761 = vperm.xlu0 %6233, %v3972_v1   ;;  %v9930_v1 = vpop.permute.xlu0 %4653 }
 0x97a   :  { %12639 = vst [vmem:[#allocation38_spill] sm:$0xff] %v9916_v22  ;;  %v3881_v22 = vmul.f32 %v12643_v45, %v9276_v52 }
 0x97b   :  { %12644 = vst [vmem:[#allocation22_spill] sm:$0xff] %v9930_v1 }
 0x97d   :  { %4479 = vperm.xlu2 %6232, %v3878_v7   ;;  %v3978_v7 = vmul.f32 %v9342_v21, %v9882_v35 }
 0x97f   :  { %v9924_v58 = vpop.permute.xlu2 %4380  ;;  %4566 = vperm.xlu1 %6234, %v3907_v28   ;;  %v12648_v28 = vld [vmem:[#allocation130_spill] sm:$0xff] }
 0x980   :  { %12641 = vst [vmem:[#allocation30_spill] sm:$0xff] %v9924_v58 }
 0x981   :  { %v9926_v46 = vpop.permute.xlu1 %4440  ;;  %4770 = vperm.xlu0 %6233, %v3975_v56   ;;  %v3884_v56 = vmul.f32 %v12648_v28, %v9295_v60  ;;  %v9944_v1 = vpop.permute.xlu0 %4662 }
 0x982   :  { %12642 = vst [vmem:[#allocation42_spill] sm:$0xff] %v9926_v46  ;;  %v12649_v46 = vld [vmem:[#allocation78_spill] sm:$0xff] }
 0x983   :  { %v3913_v58 = vmul.f32 %v12649_v46, %v9276_v52  ;;  %12650 = vst [vmem:[#allocation6_spill] sm:$0xff] %v9944_v1 }
 0x985   :  { %4488 = vperm.xlu2 %6232, %v3881_v22   ;;  %v3981_v22 = vmul.f32 %v9253_v24, %v9867_v30 }
 0x987   :  { %v9936_v15 = vpop.permute.xlu2 %4389  ;;  %4575 = vperm.xlu1 %6234, %v3910_v63   ;;  %v12653_v63 = vld [vmem:[#allocation131_spill] sm:$0xff] }
 0x988   :  { %12646 = vst [vmem:[#allocation29_spill] sm:$0xff] %v9936_v15  ;;  %v12654_v15 = vld [vmem:[#allocation8_spill] sm:$0xff] }
 0x989   :  { %v9938_v55 = vpop.permute.xlu1 %4449  ;;  %4779 = vperm.xlu0 %6233, %v3978_v7   ;;  %v3887_v7 = vmul.f32 %v12653_v63, %v9276_v52  ;;  %v9956_v28 = vpop.permute.xlu0 %4671 }
 0x98a   :  { %12647 = vst [vmem:[#allocation184_spill] sm:$0xff] %v9938_v55  ;;  %v3916_v55 = vmul.f32 %v12654_v15, %v9295_v60 }
 0x98b   :  { %12655 = vst [vmem:[#allocation41_spill] sm:$0xff] %v9956_v28 }
 0x98d   :  { %4497 = vperm.xlu2 %6232, %v3884_v56   ;;  %v3984_v56 = vmul.f32 %v9362_v38, %v9882_v35 }
 0x98f   :  { %v9948_v45 = vpop.permute.xlu2 %4398  ;;  %4584 = vperm.xlu1 %6234, %v3913_v58   ;;  %v12658_v58 = vld [vmem:[#allocation68_spill] sm:$0xff] }
 0x990   :  { %12651 = vst [vmem:[#allocation11_spill] sm:$0xff] %v9948_v45  ;;  %v12659_v45 = vld [vmem:[#allocation46_spill] sm:$0xff] }
 0x991   :  { %v9950_v21 = vpop.permute.xlu1 %4458  ;;  %4788 = vperm.xlu0 %6233, %v3981_v22   ;;  %v3890_v22 = vmul.f32 %v12658_v58, %v9295_v60  ;;  %v9968_v63 = vpop.permute.xlu0 %4680 }
 0x992   :  { %12652 = vst [vmem:[#allocation21_spill] sm:$0xff] %v9950_v21  ;;  %v3919_v21 = vmul.f32 %v12659_v45, %v9276_v52 }
 0x993   :  { %12660 = vst [vmem:[#allocation39_spill] sm:$0xff] %v9968_v63  ;;  %v3990_v63 = vmul.f32 %v9403_v10, %v9882_v35 }
 0x995   :  { %4506 = vperm.xlu2 %6232, %v3887_v7   ;;  %v3987_v7 = vmul.f32 %v9371_v36, %v9867_v30 }
 0x997   :  { %v9960_v1 = vpop.permute.xlu2 %4407  ;;  %4593 = vperm.xlu1 %6234, %v3916_v55   ;;  %v12663_v55 = vld [vmem:[#allocation43_spill] sm:$0xff] }
 0x998   :  { %12656 = vst [vmem:[#allocation160_spill] sm:$0xff] %v9960_v1  ;;  %v3922_v1 = vmul.f32 %v9650_v16, %v9295_v60 }
 0x999   :  { %v9962_v24 = vpop.permute.xlu1 %4467  ;;  %4797 = vperm.xlu0 %6233, %v3984_v56   ;;  %v3893_v56 = vmul.f32 %v12663_v55, %v9276_v52 }
 0x99a   :  { %12657 = vst [vmem:[#allocation34_spill] sm:$0xff] %v9962_v24 }
 0x99d   :  { %4515 = vperm.xlu2 %6232, %v3890_v22   ;;  %v9982_v22 = vpop.permute.xlu0 %4689 }
 0x99f   :  { %v9972_v28 = vpop.permute.xlu2 %4416  ;;  %4602 = vperm.xlu1 %6234, %v3919_v21   ;;  %v12666_v21 = vld [vmem:[#allocation51_spill] sm:$0xff] }
 0x9a0   :  { %12661 = vst [vmem:[#allocation149_spill] sm:$0xff] %v9972_v28  ;;  %v3925_v28 = vmul.f32 %v9660_v54, %v9276_v52 }
 0x9a1   :  { %v9974_v38 = vpop.permute.xlu1 %4476  ;;  %4806 = vperm.xlu0 %6233, %v3987_v7   ;;  %v3896_v7 = vmul.f32 %v12666_v21, %v9295_v60 }
 0x9a2   :  { %12662 = vst [vmem:[#allocation15_spill] sm:$0xff] %v9974_v38 }
 0x9a5   :  { %4524 = vperm.xlu2 %6232, %v3893_v56   ;;  %v3993_v56 = vmul.f32 %v9409_v29, %v9867_v30  ;;  %v9996_v10 = vpop.permute.xlu0 %4698 }
 0x9a7   :  { %v9984_v24 = vpop.permute.xlu2 %4425  ;;  %4611 = vperm.xlu1 %6234, %v3922_v1   ;;  %v12669_v1 = vld [vmem:[#allocation79_spill] sm:$0xff] }
 0x9a8   :  { %12664 = vst [vmem:[#allocation76_spill] sm:$0xff] %v9984_v24 }
 0x9a9   :  { %v9986_v36 = vpop.permute.xlu1 %4485  ;;  %4815 = vperm.xlu0 %6233, %v3990_v63   ;;  %v3899_v63 = vmul.f32 %v12669_v1, %v9276_v52 }
 0x9aa   :  { %12665 = vst [vmem:[#allocation89_spill] sm:$0xff] %v9986_v36  ;;  %v12670_v36 = vld [vmem:[#allocation81_spill] sm:$0xff] }
 0x9ab   :  { %v3928_v21 = vmul.f32 %v12670_v36, %v9295_v60 }
 0x9ad   :  { %4533 = vperm.xlu2 %6232, %v3896_v7   ;;  %v3996_v7 = vmul.f32 %v9467_v13, %v9882_v35 }
 0x9af   :  { %v9994_v38 = vpop.permute.xlu2 %4434  ;;  %4620 = vperm.xlu1 %6234, %v3925_v28   ;;  %v12673_v28 = vld [vmem:[#allocation152_spill] sm:$0xff] }
 0x9b0   :  { %12667 = vst [vmem:[#allocation63_spill] sm:$0xff] %v9994_v38  ;;  %v3902_v38 = vmul.f32 %v12673_v28, %v9295_v60 }
 0x9b1   :  { %v9998_v24 = vpop.permute.xlu1 %4494  ;;  %4824 = vperm.xlu0 %6233, %v3993_v56   ;;  %v10012_v56 = vpop.permute.xlu0 %4707 }
 0x9b2   :  { %12668 = vst [vmem:[#allocation20_spill] sm:$0xff] %v9998_v24  ;;  %v3931_v24 = vmul.f32 %v9675_v62, %v9276_v52 }
 0x9b5   :  { %4542 = vperm.xlu2 %6232, %v3899_v63   ;;  %v3999_v63 = vmul.f32 %v9421_v0, %v9867_v30 }
 0x9b7   :  { %v10006_v55 = vpop.permute.xlu2 %4443  ;;  %4629 = vperm.xlu1 %6234, %v3928_v21   ;;  %v12676_v21 = vld [vmem:[#allocation155_spill] sm:$0xff] }
 0x9b8   :  { %12671 = vst [vmem:[#allocation64_spill] sm:$0xff] %v10006_v55  ;;  %v3934_v55 = vmul.f32 %v9683_v18, %v9295_v60 }
 0x9b9   :  { %v10008_v29 = vpop.permute.xlu1 %4503  ;;  %4833 = vperm.xlu0 %6233, %v3996_v7   ;;  %v3905_v7 = vmul.f32 %v12676_v21, %v9276_v52  ;;  %v3937_v21 = vmul.f32 %v9730_v14, %v9276_v52 }
 0x9ba   :  { %12672 = vst [vmem:[#allocation70_spill] sm:$0xff] %v10008_v29 }
 0x9bb   :  { %v10024_v29 = vpop.permute.xlu0 %4716 }
 0x9bd   :  { %4551 = vperm.xlu2 %6232, %v3902_v38   ;;  %v4002_v38 = vmul.f32 %v9429_v47, %v9882_v35 }
 0x9bf   :  { %v10018_v1 = vpop.permute.xlu2 %4452  ;;  %4638 = vperm.xlu1 %6234, %v3931_v24   ;;  %v12679_v24 = vld [vmem:[#allocation121_spill] sm:$0xff] }
 0x9c0   :  { %12674 = vst [vmem:[#allocation33_spill] sm:$0xff] %v10018_v1 }
 0x9c1   :  { %v10020_v13 = vpop.permute.xlu1 %4512  ;;  %4842 = vperm.xlu0 %6233, %v3999_v63   ;;  %v3908_v63 = vmul.f32 %v12679_v24, %v9295_v60  ;;  %v3940_v24 = vmul.f32 %v9739_v39, %v9295_v60 }
 0x9c2   :  { %12675 = vst [vmem:[#allocation77_spill] sm:$0xff] %v10020_v13 }
 0x9c5   :  { %4560 = vperm.xlu2 %6232, %v3905_v7   ;;  %v4005_v7 = vmul.f32 %v9453_v31, %v9867_v30 }
 0x9c7   :  { %v10030_v28 = vpop.permute.xlu2 %4461  ;;  %4647 = vperm.xlu1 %6234, %v3934_v55   ;;  %v12682_v55 = vld [vmem:[#allocation52_spill] sm:$0xff] }
 0x9c8   :  { %12677 = vst [vmem:[#allocation83_spill] sm:$0xff] %v10030_v28 }
 0x9c9   :  { %v10032_v0 = vpop.permute.xlu1 %4521  ;;  %4851 = vperm.xlu0 %6233, %v4002_v38   ;;  %v3911_v38 = vmul.f32 %v12682_v55, %v9276_v52  ;;  %v12687_v55 = vld [vmem:[#allocation105_spill] sm:$0xff] }
 0x9ca   :  { %12678 = vst [vmem:[#allocation87_spill] sm:$0xff] %v10032_v0 }
 0x9cb   :  { %v10036_v13 = vpop.permute.xlu0 %4725 }
 0x9cd   :  { %4569 = vperm.xlu2 %6232, %v3908_v63   ;;  %v4008_v63 = vmul.f32 %v9458_v59, %v9882_v35 }
 0x9cf   :  { %v10042_v1 = vpop.permute.xlu2 %4470  ;;  %4656 = vperm.xlu1 %6234, %v3937_v21   ;;  %v12686_v21 = vld [vmem:[#allocation161_spill] sm:$0xff] }
 0x9d0   :  { %12680 = vst [vmem:[#allocation85_spill] sm:$0xff] %v10042_v1  ;;  %v3943_v1 = vmul.f32 %v12687_v55, %v9276_v52 }
 0x9d1   :  { %v10044_v47 = vpop.permute.xlu1 %4530  ;;  %4860 = vperm.xlu0 %6233, %v4005_v7   ;;  %v3914_v7 = vmul.f32 %v12686_v21, %v9295_v60  ;;  %v3946_v21 = vmul.f32 %v9734_v41, %v9295_v60 }
 0x9d2   :  { %12681 = vst [vmem:[#allocation9_spill] sm:$0xff] %v10044_v47 }
 0x9d3   :  { %v10048_v0 = vpop.permute.xlu0 %4734 }
 0x9d4   :  { %12683 = vst [vmem:[#allocation94_spill] sm:$0xff] %v10048_v0 }
 0x9d5   :  { %4578 = vperm.xlu2 %6232, %v3911_v38   ;;  %v4011_v38 = vmul.f32 %v9273_v8, %v9867_v30 }
 0x9d7   :  { %v10054_v28 = vpop.permute.xlu2 %4479  ;;  %4665 = vperm.xlu1 %6234, %v3940_v24   ;;  %v12690_v24 = vld [vmem:[#allocation169_spill] sm:$0xff] }
 0x9d8   :  { %12684 = vst [vmem:[#allocation71_spill] sm:$0xff] %v10054_v28 }
 0x9d9   :  { %v10056_v31 = vpop.permute.xlu1 %4539  ;;  %4869 = vperm.xlu0 %6233, %v4008_v63   ;;  %v3917_v63 = vmul.f32 %v12690_v24, %v9276_v52  ;;  %v3949_v24 = vmul.f32 %v9743_v25, %v9276_v52 }
 0x9da   :  { %12685 = vst [vmem:[#allocation80_spill] sm:$0xff] %v10056_v31 }
 0x9db   :  { %v10060_v47 = vpop.permute.xlu0 %4743 }
 0x9dd   :  { %4587 = vperm.xlu2 %6232, %v3914_v7   ;;  %v4014_v7 = vmul.f32 %v9476_v17, %v9882_v35 }
 0x9df   :  { %v10066_v0 = vpop.permute.xlu2 %4488  ;;  %4674 = vperm.xlu1 %6234, %v3943_v1   ;;  %v12693_v1 = vld [vmem:[#allocation140_spill] sm:$0xff] }
 0x9e0   :  { %12688 = vst [vmem:[#allocation49_spill] sm:$0xff] %v10066_v0 }
 0x9e1   :  { %v10068_v59 = vpop.permute.xlu1 %4548  ;;  %4878 = vperm.xlu0 %6233, %v4011_v38   ;;  %v3920_v38 = vmul.f32 %v12693_v1, %v9295_v60 }
 0x9e2   :  { %12689 = vst [vmem:[#allocation61_spill] sm:$0xff] %v10068_v59 }
 0x9e3   :  { %v10072_v31 = vpop.permute.xlu0 %4752 }
 0x9e5   :  { %4596 = vperm.xlu2 %6232, %v3917_v63   ;;  %v4017_v63 = vmul.f32 %v9485_v5, %v9867_v30 }
 0x9e7   :  { %v10078_v28 = vpop.permute.xlu2 %4497  ;;  %4683 = vperm.xlu1 %6234, %v3946_v21   ;;  %v12696_v21 = vld [vmem:[#allocation98_spill] sm:$0xff] }
 0x9e8   :  { %12691 = vst [vmem:[#allocation45_spill] sm:$0xff] %v10078_v28  ;;  %v3952_v28 = vmul.f32 %v9818_v42, %v9295_v60 }
 0x9e9   :  { %v10080_v8 = vpop.permute.xlu1 %4557  ;;  %4887 = vperm.xlu0 %6233, %v4014_v7   ;;  %v3923_v7 = vmul.f32 %v12696_v21, %v9276_v52 }
 0x9ea   :  { %12692 = vst [vmem:[#allocation56_spill] sm:$0xff] %v10080_v8 }
 0x9eb   :  { %v10084_v59 = vpop.permute.xlu0 %4761 }
 0x9ed   :  { %4605 = vperm.xlu2 %6232, %v3920_v38   ;;  %v4020_v38 = vmul.f32 %v9512_v37, %v9882_v35 }
 0x9ef   :  { %v10090_v0 = vpop.permute.xlu2 %4506  ;;  %4692 = vperm.xlu1 %6234, %v3949_v24   ;;  %v12700_v24 = vld [vmem:[#allocation146_spill] sm:$0xff] }
 0x9f0   :  { %12694 = vst [vmem:[#allocation47_spill] sm:$0xff] %v10090_v0  ;;  %v3955_v0 = vmul.f32 %v9828_v44, %v9276_v52 }
 0x9f1   :  { %v10092_v17 = vpop.permute.xlu1 %4566  ;;  %4896 = vperm.xlu0 %6233, %v4017_v63   ;;  %v3926_v63 = vmul.f32 %v12700_v24, %v9295_v60 }
 0x9f2   :  { %12695 = vst [vmem:[#allocation93_spill] sm:$0xff] %v10092_v17 }
 0x9f3   :  { %v10096_v8 = vpop.permute.xlu0 %4770 }
 0x9f4   :  { %12697 = vst [vmem:[#allocation95_spill] sm:$0xff] %v10096_v8 }
 0x9f5   :  { %4614 = vperm.xlu2 %6232, %v3923_v7   ;;  %v4023_v7 = vmul.f32 %v9520_v32, %v9867_v30 }
 0x9f7   :  { %v10102_v1 = vpop.permute.xlu2 %4515  ;;  %4701 = vperm.xlu1 %6234, %v3952_v28   ;;  %v12703_v28 = vld [vmem:[#allocation10_spill] sm:$0xff] }
 0x9f8   :  { %12698 = vst [vmem:[#allocation48_spill] sm:$0xff] %v10102_v1  ;;  %v12704_v1 = vld [vmem:[#allocation150_spill] sm:$0xff] }
 0x9f9   :  { %v10104_v5 = vpop.permute.xlu1 %4575  ;;  %4905 = vperm.xlu0 %6233, %v4020_v38   ;;  %v3929_v38 = vmul.f32 %v12703_v28, %v9276_v52  ;;  %v3958_v24 = vmul.f32 %v12704_v1, %v9295_v60 }
 0x9fa   :  { %12699 = vst [vmem:[#allocation86_spill] sm:$0xff] %v10104_v5 }
 0x9fb   :  { %v10108_v17 = vpop.permute.xlu0 %4779 }
 0x9fd   :  { %4623 = vperm.xlu2 %6232, %v3926_v63   ;;  %v4026_v63 = vmul.f32 %v9508_v2, %v9882_v35 }
 0x9ff   :  { %v10114_v21 = vpop.permute.xlu2 %4524  ;;  %4710 = vperm.xlu1 %6234, %v3955_v0   ;;  %v3932_v0 = vmul.f32 %v9707_v3, %v9295_v60 }
 0xa00   :  { %12701 = vst [vmem:[#allocation55_spill] sm:$0xff] %v10114_v21 }
 0xa01   :  { %v10116_v37 = vpop.permute.xlu1 %4584  ;;  %4914 = vperm.xlu0 %6233, %v4023_v7  }
 0xa02   :  { %12702 = vst [vmem:[#allocation18_spill] sm:$0xff] %v10116_v37  ;;  %v3961_v37 = vmul.f32 %v9802_v33, %v9276_v52 }
 0xa03   :  { %v10120_v5 = vpop.permute.xlu0 %4788 }
 0xa05   :  { %4632 = vperm.xlu2 %6232, %v3929_v38   ;;  %v4029_v38 = vmul.f32 %v9536_v12, %v9867_v30 }
 0xa07   :  { %v10126_v8 = vpop.permute.xlu2 %4533  ;;  %4719 = vperm.xlu1 %6234, %v3958_v24   ;;  %v3935_v24 = vmul.f32 %v9718_v11, %v9276_v52  ;;  %v3967_v11 = vmul.f32 %v9282_v6, %v9867_v30  ;;  %v4038_v6 = vmul.f32 %v12645_v20, %v9882_v35 }
 0xa08   :  { %12705 = vst [vmem:[#allocation65_spill] sm:$0xff] %v10126_v8  ;;  %v12707_v8 = vld [vmem:[#allocation107_spill] sm:$0xff] }
 0xa09   :  { %v10128_v32 = vpop.permute.xlu1 %4593  ;;  %4923 = vperm.xlu0 %6233, %v4026_v63   ;;  %v3964_v3 = vmul.f32 %v12707_v8, %v9882_v35  ;;  %v4035_v8 = vmul.f32 %v9578_v34, %v9867_v30 }
 0xa0b   :  { %v10132_v7 = vpop.permute.xlu0 %4797 }
 0xa0d   :  { %4641 = vperm.xlu2 %6232, %v3932_v0   ;;  %v4032_v0 = vmul.f32 %v12636_v26, %v9882_v35 }
 0xa0f   :  { %v10138_v21 = vpop.permute.xlu2 %4542  ;;  %4728 = vperm.xlu1 %6234, %v3961_v37   ;;  %v12709_v37 = vld [vmem:[#allocation145_spill] sm:$0xff] }
 0xa10   :  { %12706 = vst [vmem:[#allocation50_spill] sm:$0xff] %v10138_v21 }
 0xa11   :  { %v10140_v2 = vpop.permute.xlu1 %4602  ;;  %4932 = vperm.xlu0 %6233, %v4029_v38   ;;  %v3938_v38 = vmul.f32 %v12709_v37, %v9295_v60 }
 0xa13   :  { %v10144_v63 = vpop.permute.xlu0 %4806 }
 0xa15   :  { %4650 = vperm.xlu2 %6232, %v3935_v24  }
 0xa17   :  { %v10150_v28 = vpop.permute.xlu2 %4551  ;;  %4737 = vperm.xlu1 %6234, %v3964_v3   ;;  %v3941_v3 = vmul.f32 %v9716_v57, %v9276_v52 }
 0xa18   :  { %12708 = vst [vmem:[#allocation82_spill] sm:$0xff] %v10150_v28  ;;  %v3970_v28 = vmul.f32 %v9319_v49, %v9882_v35  ;;  %v4041_v49 = vmul.f32 %v12649_v46, %v9867_v30 }
 0xa19   :  { %v10152_v12 = vpop.permute.xlu1 %4611  ;;  %4941 = vperm.xlu0 %6233, %v4032_v0  }
 0xa1b   :  { %v10156_v21 = vpop.permute.xlu0 %4815 }
 0xa1d   :  { %4659 = vperm.xlu2 %6232, %v3938_v38  }
 0xa1f   :  { %v10162_v24 = vpop.permute.xlu2 %4560  ;;  %4746 = vperm.xlu1 %6234, %v3967_v11   ;;  %v3944_v11 = vmul.f32 %v9726_v50, %v9295_v60 }
 0xa20   :  { %12710 = vst [vmem:[#allocation54_spill] sm:$0xff] %v10162_v24  ;;  %v3973_v24 = vmul.f32 %v9333_v23, %v9867_v30  ;;  %v4044_v23 = vmul.f32 %v12654_v15, %v9882_v35 }
 0xa21   :  { %v10164_v26 = vpop.permute.xlu1 %4620  ;;  %4950 = vperm.xlu0 %6233, %v4035_v8  }
 0xa23   :  { %v10168_v0 = vpop.permute.xlu0 %4824 }
 0xa25   :  { %4668 = vperm.xlu2 %6232, %v3941_v3  }
 0xa27   :  { %v10174_v38 = vpop.permute.xlu2 %4569  ;;  %4755 = vperm.xlu1 %6234, %v3970_v28   ;;  %v3947_v28 = vmul.f32 %v9794_v9, %v9276_v52 }
 0xa28   :  { %12711 = vst [vmem:[#allocation58_spill] sm:$0xff] %v10174_v38  ;;  %v3976_v38 = vmul.f32 %v9360_v40, %v9882_v35  ;;  %v4047_v40 = vmul.f32 %v12659_v45, %v9867_v30 }
 0xa29   :  { %v10176_v34 = vpop.permute.xlu1 %4629  ;;  %4959 = vperm.xlu0 %6233, %v4038_v6  }
 0xa2b   :  { %v10180_v8 = vpop.permute.xlu0 %4833 }
 0xa2d   :  { %4677 = vperm.xlu2 %6232, %v3944_v11  }
 0xa2f   :  { %v10186_v3 = vpop.permute.xlu2 %4578  ;;  %4764 = vperm.xlu1 %6234, %v3973_v24   ;;  %v3950_v24 = vmul.f32 %v9806_v61, %v9295_v60 }
 0xa30   :  { %12712 = vst [vmem:[#allocation91_spill] sm:$0xff] %v10186_v3  ;;  %v3979_v3 = vmul.f32 %v9346_v43, %v9867_v30  ;;  %v4050_v43 = vmul.f32 %v9650_v16, %v9882_v35 }
 0xa31   :  { %v10188_v20 = vpop.permute.xlu1 %4638  ;;  %4968 = vperm.xlu0 %6233, %v4041_v49  }
 0xa32   :  { %12713 = vst [vmem:[#allocation59_spill] sm:$0xff] %v10188_v20  ;;  %v12717_v20 = vld [vmem:[#allocation108_spill] sm:$0xff] }
 0xa33   :  { %v10192_v6 = vpop.permute.xlu0 %4842  ;;  %v3982_v61 = vmul.f32 %v12717_v20, %v9882_v35  ;;  %v4053_v20 = vmul.f32 %v9660_v54, %v9867_v30 }
 0xa35   :  { %4686 = vperm.xlu2 %6232, %v3947_v28  }
 0xa37   :  { %v10198_v11 = vpop.permute.xlu2 %4587  ;;  %4773 = vperm.xlu1 %6234, %v3976_v38   ;;  %v12716_v38 = vld [vmem:[#allocation7_spill] sm:$0xff] }
 0xa39   :  { %v10200_v46 = vpop.permute.xlu1 %4647  ;;  %4977 = vperm.xlu0 %6233, %v4044_v23   ;;  %v3953_v23 = vmul.f32 %v12716_v38, %v9276_v52  ;;  %v12720_v38 = vld [vmem:[#allocation129_spill] sm:$0xff] }
 0xa3a   :  { %12714 = vst [vmem:[#allocation67_spill] sm:$0xff] %v10200_v46  ;;  %v3985_v9 = vmul.f32 %v12720_v38, %v9867_v30  ;;  %v4056_v38 = vmul.f32 %v12670_v36, %v9882_v35 }
 0xa3b   :  { %v10204_v49 = vpop.permute.xlu0 %4851 }
 0xa3d   :  { %4695 = vperm.xlu2 %6232, %v3950_v24  }
 0xa3f   :  { %v10210_v28 = vpop.permute.xlu2 %4596  ;;  %4782 = vperm.xlu1 %6234, %v3979_v3   ;;  %v12719_v3 = vld [vmem:[#allocation92_spill] sm:$0xff] }
 0xa41   :  { %v10212_v15 = vpop.permute.xlu1 %4656  ;;  %4986 = vperm.xlu0 %6233, %v4047_v40   ;;  %v3956_v40 = vmul.f32 %v12719_v3, %v9295_v60  ;;  %v3988_v60 = vmul.f32 %v9399_v19, %v9882_v35  ;;  %v4059_v19 = vmul.f32 %v9675_v62, %v9867_v30 }
 0xa42   :  { %12715 = vst [vmem:[#allocation72_spill] sm:$0xff] %v10212_v15 }
 0xa43   :  { %v10216_v46 = vpop.permute.xlu0 %4860 }
 0xa45   :  { %4704 = vperm.xlu2 %6232, %v3953_v23  }
 0xa47   :  { %v10222_v24 = vpop.permute.xlu2 %4605  ;;  %4791 = vperm.xlu1 %6234, %v3982_v61   ;;  %v12722_v61 = vld [vmem:[#allocation2_spill] sm:$0xff] }
 0xa49   :  { %v10224_v45 = vpop.permute.xlu1 %4665  ;;  %4995 = vperm.xlu0 %6233, %v4050_v43   ;;  %v3959_v43 = vmul.f32 %v12722_v61, %v9276_v52  ;;  %v3991_v52 = vmul.f32 %v9257_v4, %v9867_v30  ;;  %v4062_v4 = vmul.f32 %v9683_v18, %v9882_v35 }
 0xa4a   :  { %12718 = vst [vmem:[#allocation60_spill] sm:$0xff] %v10224_v45 }
 0xa4b   :  { %v10228_v15 = vpop.permute.xlu0 %4869 }
 0xa4d   :  { %4713 = vperm.xlu2 %6232, %v3956_v40  }
 0xa4f   :  { %v10234_v23 = vpop.permute.xlu2 %4614  ;;  %4800 = vperm.xlu1 %6234, %v3985_v9   ;;  %v12723_v9 = vld [vmem:[#allocation100_spill] sm:$0xff] }
 0xa51   :  { %v10236_v16 = vpop.permute.xlu1 %4674  ;;  %5004 = vperm.xlu0 %6233, %v4053_v20   ;;  %v3962_v20 = vmul.f32 %v12723_v9, %v9882_v35  ;;  %v3994_v9 = vmul.f32 %v9411_v48, %v9882_v35  ;;  %v4065_v48 = vmul.f32 %v9730_v14, %v9867_v30 }
 0xa52   :  { %12721 = vst [vmem:[#allocation53_spill] sm:$0xff] %v10236_v16 }
 0xa53   :  { %v10240_v45 = vpop.permute.xlu0 %4878 }
 0xa55   :  { %4722 = vperm.xlu2 %6232, %v3959_v43  }
 0xa57   :  { %v10246_v40 = vpop.permute.xlu2 %4623  ;;  %4809 = vperm.xlu1 %6234, %v3988_v60   ;;  %v12725_v60 = vld [vmem:[#allocation102_spill] sm:$0xff] }
 0xa59   :  { %v10248_v54 = vpop.permute.xlu1 %4683  ;;  %5013 = vperm.xlu0 %6233, %v4056_v38   ;;  %v3965_v38 = vmul.f32 %v12725_v60, %v9867_v30  ;;  %v3997_v60 = vmul.f32 %v9418_v27, %v9867_v30  ;;  %v4068_v27 = vmul.f32 %v9739_v39, %v9882_v35 }
 0xa5b   :  { %v10252_v16 = vpop.permute.xlu0 %4887 }
 0xa5c   :  { %12724 = vst [vmem:[#allocation3_spill] sm:$0xff] %v10252_v16 }
 0xa5d   :  { %4731 = vperm.xlu2 %6232, %v3962_v20  }
 0xa5f   :  { %v10258_v43 = vpop.permute.xlu2 %4632  ;;  %4818 = vperm.xlu1 %6234, %v3991_v52   ;;  %v12728_v52 = vld [vmem:[#allocation111_spill] sm:$0xff] }
 0xa61   :  { %v10260_v36 = vpop.permute.xlu1 %4692  ;;  %5022 = vperm.xlu0 %6233, %v4059_v19   ;;  %v3968_v19 = vmul.f32 %v12728_v52, %v9882_v35  ;;  %v4000_v52 = vmul.f32 %v9443_v51, %v9882_v35  ;;  %v4071_v51 = vmul.f32 %v12687_v55, %v9867_v30  ;;  %v12740_v55 = vld [vmem:[#allocation133_spill] sm:$0xff] }
 0xa63   :  { %v10264_v61 = vpop.permute.xlu0 %4896 }
 0xa64   :  { %12726 = vst [vmem:[#allocation13_spill] sm:$0xff] %v10264_v61 }
 0xa65   :  { %4740 = vperm.xlu2 %6232, %v3965_v38  }
 0xa67   :  { %v10270_v20 = vpop.permute.xlu2 %4641  ;;  %4827 = vperm.xlu1 %6234, %v3994_v9   ;;  %v12731_v9 = vld [vmem:[#allocation57_spill] sm:$0xff] }
 0xa68   :  { %12727 = vst [vmem:[#allocation28_spill] sm:$0xff] %v10270_v20 }
 0xa69   :  { %v10272_v62 = vpop.permute.xlu1 %4701  ;;  %5031 = vperm.xlu0 %6233, %v4062_v4   ;;  %v3971_v4 = vmul.f32 %v12731_v9, %v9867_v30  ;;  %v4003_v9 = vmul.f32 %v12635_v53, %v9867_v30 }
 0xa6b   :  { %v10276_v3 = vpop.permute.xlu0 %4905 }
 0xa6c   :  { %12729 = vst [vmem:[#allocation99_spill] sm:$0xff] %v10276_v3 }
 0xa6d   :  { %4749 = vperm.xlu2 %6232, %v3968_v19  }
 0xa6f   :  { %v10282_v38 = vpop.permute.xlu2 %4650  ;;  %4836 = vperm.xlu1 %6234, %v3997_v60   ;;  %v12734_v60 = vld [vmem:[#allocation97_spill] sm:$0xff] }
 0xa70   :  { %12730 = vst [vmem:[#allocation4_spill] sm:$0xff] %v10282_v38 }
 0xa71   :  { %v10284_v18 = vpop.permute.xlu1 %4710  ;;  %5040 = vperm.xlu0 %6233, %v4065_v48   ;;  %v3974_v48 = vmul.f32 %v12734_v60, %v9882_v35  ;;  %v12738_v60 = vld [vmem:[#allocation101_spill] sm:$0xff] }
 0xa72   :  { %v3977_v3 = vmul.f32 %v12738_v60, %v9867_v30 }
 0xa73   :  { %v10288_v20 = vpop.permute.xlu0 %4914 }
 0xa74   :  { %12732 = vst [vmem:[#allocation16_spill] sm:$0xff] %v10288_v20 }
 0xa75   :  { %4758 = vperm.xlu2 %6232, %v3971_v4  }
 0xa77   :  { %v10294_v19 = vpop.permute.xlu2 %4659  ;;  %4845 = vperm.xlu1 %6234, %v4000_v52   ;;  %v12736_v52 = vld [vmem:[#allocation73_spill] sm:$0xff] }
 0xa78   :  { %12733 = vst [vmem:[#allocation138_spill] sm:$0xff] %v10294_v19  ;;  %v12737_v19 = vld [vmem:[#allocation40_spill] sm:$0xff] }
 0xa79   :  { %v10296_v14 = vpop.permute.xlu1 %4719  ;;  %5049 = vperm.xlu0 %6233, %v4068_v27   ;;  %v5303_v27 = vperm.slane %v10036_v13, %v12736_v52 }
 0xa7b   :  { %v10300_v38 = vpop.permute.xlu0 %4923 }
 0xa7d   :  { %4767 = vperm.xlu2 %6232, %v3974_v48   ;;  %v4006_v48 = vmul.f32 %v12740_v55, %v9882_v35 }
 0xa7f   :  { %v10306_v4 = vpop.permute.xlu2 %4668  ;;  %4854 = vperm.xlu1 %6234, %v4003_v9   ;;  %v4074_v9 = vmul.f32 %v9734_v41, %v9882_v35 }
 0xa80   :  { %12735 = vst [vmem:[#allocation78_spill] sm:$0xff] %v10306_v4 }
 0xa81   :  { %v4729_v39 = vpop.permute.xlu1 %4728  ;;  %5058 = vperm.xlu0 %6233, %v4071_v51  }
 0xa82   :  { %v5304_v20 = vperm.slane %v4729_v39, %v12737_v19  ;;  %v12742_v39 = vld [vmem:[#allocation106_spill] sm:$0xff] }
 0xa83   :  { %v10313_v61 = vpop.permute.xlu0 %4932  ;;  %v3980_v60 = vmul.f32 %v12742_v39, %v9882_v35  ;;  %v12747_v39 = vld [vmem:[#allocation130_spill] sm:$0xff] }
 0xa84   :  { %12739 = vst [vmem:[#allocation8_spill] sm:$0xff] %v10313_v61  ;;  %v10316_v53 = vsel %vm2311_vm0, %v5304_v20, %v5303_v27  ;;  %v12744_v20 = vld [vmem:[#allocation5_spill] sm:$0xff] }
 0xa85   :  { %4776 = vperm.xlu2 %6232, %v3977_v3   ;;  %v4009_v27 = vmul.f32 %v12744_v20, %v9867_v30  ;;  %v4077_v3 = vmul.f32 %v9743_v25, %v9867_v30 }
 0xa87   :  { %v10322_v51 = vpop.permute.xlu2 %4677  ;;  %4863 = vperm.xlu1 %6234, %v4006_v48   ;;  %v12745_v48 = vld [vmem:[#allocation110_spill] sm:$0xff] }
 0xa88   :  { %12741 = vst [vmem:[#allocation68_spill] sm:$0xff] %v10322_v51 }
 0xa89   :  { %v10324_v13 = vpop.permute.xlu1 %4737  ;;  %5067 = vperm.xlu0 %6233, %v4074_v9   ;;  %v3983_v9 = vmul.f32 %v12745_v48, %v9867_v30  ;;  %v12750_v48 = vld [vmem:[#allocation131_spill] sm:$0xff] }
 0xa8b   :  { %v10328_v4 = vpop.permute.xlu0 %4941 }
 0xa8c   :  { %12743 = vst [vmem:[#allocation46_spill] sm:$0xff] %v10328_v4  ;;  %v4012_v4 = vmul.f32 %v12747_v39, %v9882_v35 }
 0xa8d   :  { %4785 = vperm.xlu2 %6232, %v3980_v60   ;;  %v4080_v60 = vmul.f32 %v9818_v42, %v9882_v35 }
 0xa8f   :  { %v4687_v55 = vpop.permute.xlu2 %4686  ;;  %4872 = vperm.xlu1 %6234, %v4009_v27   ;;  %v12748_v27 = vld [vmem:[#allocation112_spill] sm:$0xff] }
 0xa91   :  { %v10334_v41 = vpop.permute.xlu1 %4746  ;;  %5076 = vperm.xlu0 %6233, %v4077_v3   ;;  %v3986_v3 = vmul.f32 %v12748_v27, %v9882_v35  ;;  %v4018_v27 = vmul.f32 %v12658_v58, %v9882_v35  ;;  %v5289_v58 = vperm.slane %v9996_v10, %v12737_v19 }
 0xa93   :  { %v10338_v51 = vpop.permute.xlu0 %4950 }
 0xa94   :  { %12746 = vst [vmem:[#allocation81_spill] sm:$0xff] %v10338_v51  ;;  %v4015_v51 = vmul.f32 %v12750_v48, %v9867_v30 }
 0xa95   :  { %4794 = vperm.xlu2 %6232, %v3983_v9   ;;  %v4083_v9 = vmul.f32 %v9828_v44, %v9867_v30  ;;  %v4086_v44 = vmul.f32 %v12704_v1, %v9882_v35 }
 0xa97   :  { %v4696_v20 = vpop.permute.xlu2 %4695  ;;  %4881 = vperm.xlu1 %6234, %v4012_v4   ;;  %v12751_v4 = vld [vmem:[#allocation114_spill] sm:$0xff] }
 0xa98   :  { %v5288_v48 = vperm.slane %v4696_v20, %v12736_v52  ;;  %v5291_v20 = vperm.slane %v10272_v62, %v12736_v52 }
 0xa99   :  { %v10344_v25 = vpop.permute.xlu1 %4755  ;;  %5085 = vperm.xlu0 %6233, %v4080_v60   ;;  %v3989_v60 = vmul.f32 %v12751_v4, %v9867_v30 }
 0xa9b   :  { %v10348_v61 = vpop.permute.xlu0 %4959 }
 0xa9c   :  { %12749 = vst [vmem:[#allocation105_spill] sm:$0xff] %v10348_v61  ;;  %v5283_v61 = vperm.slane %v4687_v55, %v12737_v19  ;;  %v5285_v55 = vperm.slane %v9982_v22, %v12736_v52  ;;  %v5295_v22 = vperm.slane %v10284_v18, %v12737_v19 }
 0xa9d   :  { %4803 = vperm.xlu2 %6232, %v3986_v3  }
 0xa9f   :  { %v4705_v39 = vpop.permute.xlu2 %4704  ;;  %4890 = vperm.xlu1 %6234, %v4015_v51   ;;  %v5282_v51 = vperm.slane %v10248_v54, %v12736_v52  ;;  %v5290_v54 = vsel %vm2311_vm0, %v5289_v58, %v5288_v48  ;;  %v5298_v48 = vperm.slane %v10024_v29, %v12737_v19  ;;  %v5300_v29 = vperm.slane %v10296_v14, %v12736_v52 }
 0xaa0   :  { %v5292_v4 = vperm.slane %v4705_v39, %v12737_v19 }
 0xaa1   :  { %v10354_v42 = vpop.permute.xlu1 %4764  ;;  %5094 = vperm.xlu0 %6233, %v4083_v9   ;;  %v5286_v9 = vperm.slane %v10260_v36, %v12737_v19  ;;  %v5284_v1 = vsel %vm2311_vm0, %v5283_v61, %v5282_v51  ;;  %v12753_v36 = vld [vmem:[#allocation126_spill] sm:$0xff]  ;;  %v12754_v61 = vld [vmem:[#allocation43_spill] sm:$0xff] }
 0xaa2   :  { %v3992_v39 = vmul.f32 %v12753_v36, %v9882_v35  ;;  %v5293_v10 = vsel %vm2311_vm0, %v5292_v4, %v5291_v20  ;;  %v4021_v51 = vmul.f32 %v12754_v61, %v9867_v30 }
 0xaa3   :  { %v10362_v3 = vpop.permute.xlu0 %4968 }
 0xaa4   :  { %12752 = vst [vmem:[#allocation150_spill] sm:$0xff] %v10362_v3 }
 0xaa5   :  { %4812 = vperm.xlu2 %6232, %v3989_v60  }
 0xaa7   :  { %v4714_v16 = vpop.permute.xlu2 %4713  ;;  %4899 = vperm.xlu1 %6234, %v4018_v27   ;;  %v5287_v27 = vsel %vm2311_vm0, %v5286_v9, %v5285_v55  ;;  %v5294_v9 = vperm.slane %v10012_v56, %v12736_v52 }
 0xaa8   :  { %v5297_v3 = vperm.slane %v4714_v16, %v12736_v52  ;;  %v5547_v62 = vsel %vm2802_vm7, %v5287_v27, %v5284_v1  ;;  %v4089_v16 = vmul.f32 %v9802_v33, %v9867_v30  ;;  %v5330_v33 = vperm.slane %v10108_v17, %v12736_v52  ;;  %v12755_v27 = vld [vmem:[#allocation116_spill] sm:$0xff]  ;;  %v12757_v17 = vld [vmem:[#allocation51_spill] sm:$0xff] }
 0xaa9   :  { %v10378_v60 = vpop.permute.xlu1 %4773  ;;  %5103 = vperm.xlu0 %6233, %v4086_v44   ;;  %v5548_v44 = vsel %vm2804_vm8, %v5290_v54, %v5547_v62  ;;  %v5296_v55 = vsel %vm2311_vm0, %v5295_v22, %v5294_v9  ;;  %v3995_v14 = vmul.f32 %v12755_v27, %v9867_v30  ;;  %v4024_v61 = vmul.f32 %v12757_v17, %v9882_v35  ;;  %v12759_v9 = vld [vmem:[#allocation119_spill] sm:$0xff] }
 0xaaa   :  { %v5549_v4 = vsel %vm2806_vm9, %v5293_v10, %v5548_v44  ;;  %v5299_v18 = vsel %vm2311_vm0, %v5298_v48, %v5297_v3 }
 0xaab   :  { %v10403_v20 = vpop.permute.xlu0 %4977  ;;  %v5550_v56 = vsel %vm2808_vm10, %v5296_v55, %v5549_v4  ;;  %v3998_v4 = vmul.f32 %v12759_v9, %v9882_v35 }
 0xaad   :  { %4821 = vperm.xlu2 %6232, %v3992_v39   ;;  %v5551_v39 = vsel %vm2810_vm11, %v5299_v18, %v5550_v56 }
 0xaaf   :  { %v4723_v58 = vpop.permute.xlu2 %4722  ;;  %4908 = vperm.xlu1 %6234, %v4021_v51  }
 0xab0   :  { %v5301_v1 = vperm.slane %v4723_v58, %v12737_v19  ;;  %v5313_v58 = vperm.slane %v10334_v41, %v12737_v19 }
 0xab1   :  { %v4783_v54 = vpop.permute.xlu1 %4782  ;;  %5112 = vperm.xlu0 %6233, %v4089_v16   ;;  %v12760_v16 = vld [vmem:[#allocation79_spill] sm:$0xff] }
 0xab2   :  { %v5302_v3 = vsel %vm2311_vm0, %v5301_v1, %v5300_v29  ;;  %v5331_v36 = vperm.slane %v4783_v54, %v12737_v19  ;;  %v4027_v18 = vmul.f32 %v12760_v16, %v9867_v30  ;;  %v12761_v29 = vld [vmem:[#allocation94_spill] sm:$0xff]  ;;  %v5309_v54 = vperm.slane %v10324_v13, %v12736_v52  ;;  %v12763_v13 = vld [vmem:[#allocation33_spill] sm:$0xff] }
 0xab3   :  { %v5552_v10 = vsel %vm2812_vm12, %v5302_v3, %v5551_v39  ;;  %v10426_v44 = vpop.permute.xlu0 %4986  ;;  %v5307_v1 = vperm.slane %v12761_v29, %v12737_v19  ;;  %v5166_v17 = vperm.slane %v12763_v13, %v12737_v19  ;;  %v12771_v13 = vld [vmem:[#allocation121_spill] sm:$0xff] }
 0xab4   :  { %v10416_v22 = vsel %vm2311_vm0, %v5331_v36, %v5330_v33  ;;  %v10420_v62 = vsel %vm2814_vm13, %v10316_v53, %v5552_v10  ;;  %12758 = vst [vmem:[#allocation145_spill] sm:$0xff] %v10426_v44  ;;  %v5312_v33 = vperm.slane %v10060_v47, %v12736_v52  ;;  %v5339_v36 = vperm.slane %v10132_v7, %v12736_v52  ;;  %v12779_v44 = vld [vmem:[#allocation151_spill] sm:$0xff] }
 0xab5   :  { %12756 = vst [vmem:[#allocation107_spill] sm:$0xff] %v10420_v62  ;;  %4830 = vperm.xlu2 %6232, %v3995_v14   ;;  %v12762_v14 = vld [vmem:[#allocation103_spill] sm:$0xff]  ;;  %v12778_v62 = vld [vmem:[#allocation178_spill] sm:$0xff] }
 0xab6   :  { %v4001_v10 = vmul.f32 %v12762_v14, %v9867_v30  ;;  %v5316_v14 = vperm.slane %v10072_v31, %v12737_v19  ;;  %v12775_v31 = vld [vmem:[#allocation34_spill] sm:$0xff] }
 0xab7   :  { %v4732_v51 = vpop.permute.xlu2 %4731  ;;  %4917 = vperm.xlu1 %6234, %v4024_v61   ;;  %v5314_v61 = vsel %vm2311_vm0, %v5313_v58, %v5312_v33  ;;  %v12767_v58 = vld [vmem:[#allocation172_spill] sm:$0xff] }
 0xab8   :  { %v5306_v53 = vperm.slane %v4732_v51, %v12736_v52 }
 0xab9   :  { %v10424_v48 = vpop.permute.xlu1 %4791 }
 0xaba   :  { %v5308_v39 = vsel %vm2311_vm0, %v5307_v1, %v5306_v53  ;;  %v5163_v1 = vperm.slane %v12767_v58, %v12737_v19 }
 0xabb   :  { %v10453_v51 = vpop.permute.xlu0 %4995 }
 0xabd   :  { %4839 = vperm.xlu2 %6232, %v3998_v4   ;;  %v12764_v4 = vld [vmem:[#allocation152_spill] sm:$0xff] }
 0xabe   :  { %v4030_v16 = vmul.f32 %v12764_v4, %v9882_v35  ;;  %v12773_v4 = vld [vmem:[#allocation139_spill] sm:$0xff] }
 0xabf   :  { %v4741_v55 = vpop.permute.xlu2 %4740  ;;  %4926 = vperm.xlu1 %6234, %v4027_v18   ;;  %v12765_v18 = vld [vmem:[#allocation184_spill] sm:$0xff] }
 0xac0   :  { %v5310_v56 = vperm.slane %v4741_v55, %v12737_v19  ;;  %v5165_v53 = vperm.slane %v12765_v18, %v12736_v52  ;;  %v12766_v55 = vld [vmem:[#allocation64_spill] sm:$0xff] }
 0xac1   :  { %v4801_v3 = vpop.permute.xlu1 %4800  ;;  %v5162_v29 = vperm.slane %v12766_v55, %v12736_v52  ;;  %v12774_v55 = vld [vmem:[#allocation175_spill] sm:$0xff] }
 0xac2   :  { %v5311_v41 = vsel %vm2311_vm0, %v5310_v56, %v5309_v54  ;;  %v5340_v27 = vperm.slane %v4801_v3, %v12737_v19  ;;  %v5167_v54 = vsel %vm2311_vm0, %v5166_v17, %v5165_v53  ;;  %v12768_v56 = vld [vmem:[#allocation83_spill] sm:$0xff]  ;;  %v12772_v17 = vld [vmem:[#allocation120_spill] sm:$0xff]  ;;  %v5168_v58 = vperm.slane %v12774_v55, %v12736_v52 }
 0xac3   :  { %v5554_v47 = vsel %vm2802_vm7, %v5311_v41, %v5308_v39  ;;  %v5171_v33 = vperm.slane %v12768_v56, %v12736_v52  ;;  %v12770_v41 = vld [vmem:[#allocation85_spill] sm:$0xff]  ;;  %v5164_v18 = vsel %vm2311_vm0, %v5163_v1, %v5162_v29  ;;  %v5174_v56 = vperm.slane %v12775_v31, %v12736_v52 }
 0xac4   :  { %v10456_v7 = vsel %vm2311_vm0, %v5340_v27, %v5339_v36  ;;  %v5555_v9 = vsel %vm2804_vm8, %v5314_v61, %v5554_v47  ;;  %v12769_v36 = vld [vmem:[#allocation21_spill] sm:$0xff]  ;;  %v5175_v27 = vperm.slane %v12770_v41, %v12737_v19  ;;  %v10479_v61 = vmul.f32 %v12771_v13, %v9882_v35 }
 0xac5   :  { %4848 = vperm.xlu2 %6232, %v4001_v10   ;;  %v5169_v39 = vperm.slane %v12769_v36, %v12737_v19  ;;  %v4004_v47 = vmul.f32 %v12772_v17, %v9882_v35  ;;  %v12776_v41 = vld [vmem:[#allocation125_spill] sm:$0xff]  ;;  %v12777_v17 = vld [vmem:[#allocation15_spill] sm:$0xff]  ;;  %v5177_v55 = vperm.slane %v12778_v62, %v12736_v52  ;;  %v5181_v31 = vperm.slane %v12779_v44, %v12737_v19  ;;  %v12783_v62 = vld [vmem:[#allocation180_spill] sm:$0xff] }
 0xac6   :  { %v4007_v13 = vmul.f32 %v12776_v41, %v9867_v30  ;;  %v12784_v44 = vld [vmem:[#allocation170_spill] sm:$0xff] }
 0xac7   :  { %v4750_v3 = vpop.permute.xlu2 %4749  ;;  %4935 = vperm.xlu1 %6234, %v4030_v16   ;;  %v5172_v16 = vperm.slane %v12773_v4, %v12737_v19  ;;  %v5178_v4 = vperm.slane %v12777_v17, %v12737_v19  ;;  %v12781_v17 = vld [vmem:[#allocation71_spill] sm:$0xff] }
 0xac8   :  { %v5315_v10 = vperm.slane %v4750_v3, %v12736_v52  ;;  %v5512_v3 = vsel %vm2802_vm7, %v5167_v54, %v5164_v18  ;;  %v5170_v54 = vsel %vm2311_vm0, %v5169_v39, %v5168_v58  ;;  %v5244_v39 = vperm.slane %v12784_v44, %v12737_v19 }
 0xac9   :  { %v10486_v53 = vpop.permute.xlu1 %4809  ;;  %v5173_v29 = vsel %vm2311_vm0, %v5172_v16, %v5171_v33  ;;  %v5513_v41 = vsel %vm2804_vm8, %v5170_v54, %v5512_v3  ;;  %v5180_v33 = vperm.slane %v12781_v17, %v12736_v52  ;;  %v5238_v58 = vperm.slane %v10210_v28, %v12737_v19  ;;  %v12785_v54 = vld [vmem:[#allocation89_spill] sm:$0xff] }
 0xaca   :  { %v5317_v36 = vsel %vm2311_vm0, %v5316_v14, %v5315_v10  ;;  %v5176_v14 = vsel %vm2311_vm0, %v5175_v27, %v5174_v56  ;;  %v12780_v10 = vld [vmem:[#allocation155_spill] sm:$0xff]  ;;  %v5514_v27 = vsel %vm2806_vm9, %v5173_v29, %v5513_v41  ;;  %v10520_v56 = vpop.permute.xlu0 %5004  ;;  %v5179_v3 = vsel %vm2311_vm0, %v5178_v4, %v5177_v55 }
 0xacb   :  { %v5556_v1 = vsel %vm2806_vm9, %v5317_v36, %v5555_v9  ;;  %v4033_v18 = vmul.f32 %v12780_v10, %v9867_v30  ;;  %v12782_v9 = vld [vmem:[#allocation49_spill] sm:$0xff]  ;;  %v5235_v36 = vperm.slane %v12783_v62, %v12737_v19  ;;  %v5183_v10 = vperm.slane %v12785_v54, %v12736_v52  ;;  %v12786_v54 = vld [vmem:[#allocation23_spill] sm:$0xff] }
 0xacc   :  { %v5184_v16 = vperm.slane %v12782_v9, %v12737_v19  ;;  %v5322_v17 = vperm.slane %v10354_v42, %v12737_v19  ;;  %v5237_v29 = vperm.slane %v10128_v32, %v12736_v52  ;;  %v5234_v28 = vperm.slane %v10198_v11, %v12736_v52 }
 0xacd   :  { %4857 = vperm.xlu2 %6232, %v4004_v47   ;;  %v5515_v47 = vsel %vm2808_vm10, %v5176_v14, %v5514_v27  ;;  %v5318_v41 = vperm.slane %v10344_v25, %v12736_v52  ;;  %v5182_v55 = vsel %vm2311_vm0, %v5181_v31, %v5180_v33  ;;  %v5321_v14 = vperm.slane %v10084_v59, %v12736_v52 }
 0xace   :  { %v5348_v42 = vperm.slane %v10156_v21, %v12736_v52  ;;  %v5185_v62 = vsel %vm2311_vm0, %v5184_v16, %v5183_v10  ;;  %v5239_v32 = vsel %vm2311_vm0, %v5238_v58, %v5237_v29  ;;  %v5243_v11 = vperm.slane %v10222_v24, %v12736_v52 }
 0xacf   :  { %v4759_v9 = vpop.permute.xlu2 %4758  ;;  %4944 = vperm.xlu1 %6234, %v4033_v18   ;;  %v5241_v31 = vperm.slane %v10140_v2, %v12737_v19  ;;  %v5247_v59 = vperm.slane %v10234_v23, %v12737_v19  ;;  %v5323_v21 = vsel %vm2311_vm0, %v5322_v17, %v5321_v14  ;;  %v5236_v16 = vsel %vm2311_vm0, %v5235_v36, %v5234_v28  ;;  %v12788_v14 = vld [vmem:[#allocation36_spill] sm:$0xff] }
 0xad0   :  { %v5319_v4 = vperm.slane %v4759_v9, %v12737_v19  ;;  %v5516_v24 = vsel %vm2810_vm11, %v5179_v3, %v5515_v47  ;;  %v5240_v10 = vperm.slane %v12786_v54, %v12736_v52  ;;  %v5246_v2 = vperm.slane %v10152_v12, %v12736_v52  ;;  %v12787_v9 = vld [vmem:[#allocation95_spill] sm:$0xff] }
 0xad1   :  { %v4819_v18 = vpop.permute.xlu1 %4818  ;;  %v5533_v23 = vsel %vm2802_vm7, %v5239_v32, %v5236_v16  ;;  %v5245_v36 = vsel %vm2311_vm0, %v5244_v39, %v5243_v11  ;;  %v5325_v3 = vperm.slane %v12787_v9, %v12737_v19  ;;  %v5252_v28 = vperm.slane %v10246_v40, %v12736_v52  ;;  %v12789_v40 = vld [vmem:[#allocation44_spill] sm:$0xff] }
 0xad2   :  { %v5320_v25 = vsel %vm2311_vm0, %v5319_v4, %v5318_v41  ;;  %v5349_v44 = vperm.slane %v4819_v18, %v12737_v19  ;;  %v5242_v47 = vsel %vm2311_vm0, %v5241_v31, %v5240_v10  ;;  %v5248_v29 = vsel %vm2311_vm0, %v5247_v59, %v5246_v2  ;;  %v10578_v4 = vpop.permute.xlu0 %5013 }
 0xad3   :  { %v5557_v33 = vsel %vm2808_vm10, %v5320_v25, %v5556_v1  ;;  %v5517_v1 = vsel %vm2812_vm12, %v5182_v55, %v5516_v24  ;;  %v5534_v39 = vsel %vm2804_vm8, %v5242_v47, %v5533_v23  ;;  %v5256_v41 = vperm.slane %v10258_v43, %v12737_v19  ;;  %v12790_v25 = vld [vmem:[#allocation14_spill] sm:$0xff] }
 0xad4   :  { %v10554_v27 = vsel %vm2311_vm0, %v5349_v44, %v5348_v42  ;;  %v5558_v58 = vsel %vm2810_vm11, %v5323_v21, %v5557_v33  ;;  %v5518_v17 = vsel %vm2814_vm13, %v5185_v62, %v5517_v1  ;;  %v5249_v42 = vperm.slane %v12788_v14, %v12736_v52  ;;  %v12792_v47 = vld [vmem:[#allocation62_spill] sm:$0xff] }
 0xad5   :  { %4866 = vperm.xlu2 %6232, %v4007_v13   ;;  %v5250_v13 = vperm.slane %v10164_v26, %v12737_v19  ;;  %v5253_v18 = vperm.slane %v12789_v40, %v12737_v19  ;;  %v5255_v26 = vperm.slane %v10176_v34, %v12736_v52  ;;  %v5633_v11 = vsel %vm5626_vm15, %v5518_v17, 0.0  ;;  %v12791_v34 = vld [vmem:[#allocation52_spill] sm:$0xff] }
 0xad6   :  { %v4010_v44 = vmul.f32 %v12790_v25, %v9882_v35  ;;  %v4039_v16 = vmul.f32 %v12791_v34, %v9867_v30  ;;  %v5336_v25 = vperm.slane %v10424_v48, %v12736_v52 }
 0xad7   :  { %v4768_v12 = vpop.permute.xlu2 %4767  ;;  %4953 = vperm.xlu1 %6234, %v10479_v61   ;;  %v5535_v61 = vsel %vm2806_vm9, %v5245_v36, %v5534_v39  ;;  %v5254_v31 = vsel %vm2311_vm0, %v5253_v18, %v5252_v28  ;;  %v5251_v21 = vsel %vm2311_vm0, %v5250_v13, %v5249_v42  ;;  %v5257_v33 = vsel %vm2311_vm0, %v5256_v41, %v5255_v26  ;;  %v12794_v18 = vld [vmem:[#allocation25_spill] sm:$0xff] }
 0xad8   :  { %v5324_v55 = vperm.slane %v4768_v12, %v12736_v52  ;;  %v5536_v43 = vsel %vm2808_vm10, %v5248_v29, %v5535_v61  ;;  %v5327_v36 = vperm.slane %v10378_v60, %v12736_v52  ;;  %v4013_v29 = vmul.f32 %v12792_v47, %v9867_v30  ;;  %v12799_v47 = vld [vmem:[#allocation98_spill] sm:$0xff] }
 0xad9   :  { %v10586_v62 = vpop.permute.xlu1 %4827  ;;  %v5537_v24 = vsel %vm2810_vm11, %v5251_v21, %v5536_v43  ;;  %v5334_v41 = vperm.slane %v10120_v5, %v12737_v19  ;;  %v4016_v61 = vmul.f32 %v12794_v18, %v9882_v35 }
 0xada   :  { %v5326_v32 = vsel %vm2311_vm0, %v5325_v3, %v5324_v55  ;;  %v5538_v54 = vsel %vm2812_vm12, %v5254_v31, %v5537_v24  ;;  %v10609_v17 = vpop.permute.xlu0 %5022 }
 0xadb   :  { %5634 = vadd.xlane.f32.xlu0 %v5633_v11  ;;  %v5559_v59 = vsel %vm2812_vm12, %v5326_v32, %v5558_v58  ;;  %v5539_v2 = vsel %vm2814_vm13, %v5257_v33, %v5538_v54  ;;  %v5357_v58 = vperm.slane %v10180_v8, %v12736_v52  ;;  %v12793_v8 = vld [vmem:[#allocation161_spill] sm:$0xff]  ;;  %v12797_v54 = vld [vmem:[#allocation140_spill] sm:$0xff] }
 0xadc   :  { %v5642_v3 = vsel %vm5626_vm15, %v5539_v2, 0.0  ;;  %v4042_v13 = vmul.f32 %v12793_v8, %v9882_v35  ;;  %v12795_v32 = vld [vmem:[#allocation169_spill] sm:$0xff] }
 0xadd   :  { %4875 = vperm.xlu2 %6232, %v4010_v44   ;;  %v4045_v5 = vmul.f32 %v12795_v32, %v9867_v30  ;;  %v12796_v33 = vld [vmem:[#allocation113_spill] sm:$0xff] }
 0xade   :  { %v4019_v34 = vmul.f32 %v12796_v33, %v9867_v30 }
 0xadf   :  { %v4777_v10 = vpop.permute.xlu2 %4776  ;;  %4962 = vperm.xlu1 %6234, %v4039_v16  }
 0xae0   :  { %v5328_v23 = vperm.slane %v4777_v10, %v12737_v19  ;;  %v4048_v10 = vmul.f32 %v12797_v54, %v9882_v35 }
 0xae1   :  { %v4837_v1 = vpop.permute.xlu1 %4836 }
 0xae2   :  { %v5358_v9 = vperm.slane %v4837_v1, %v12737_v19  ;;  %v5329_v12 = vsel %vm2311_vm0, %v5328_v23, %v5327_v36  ;;  %v10633_v43 = vpop.permute.xlu0 %5031  ;;  %v5343_v23 = vperm.slane %v10144_v63, %v12737_v19  ;;  %v5345_v63 = vperm.slane %v10486_v53, %v12736_v52 }
 0xae3   :  { %5643 = vadd.xlane.f32.xlu0 %v5642_v3  ;;  %v5560_v39 = vsel %vm2814_vm13, %v5329_v12, %v5559_v59  ;;  %v5366_v59 = vperm.slane %v10204_v49, %v12736_v52 }
 0xae4   :  { %v10616_v28 = vsel %vm2311_vm0, %v5358_v9, %v5357_v58  ;;  %v5651_v40 = vsel %vm5626_vm15, %v5560_v39, 0.0  ;;  %v12798_v9 = vld [vmem:[#allocation127_spill] sm:$0xff]  ;;  %v5375_v39 = vperm.slane %v10228_v15, %v12736_v52 }
 0xae5   :  { %4884 = vperm.xlu2 %6232, %v4013_v29   ;;  %v4051_v29 = vmul.f32 %v12799_v47, %v9867_v30 }
 0xae7   :  { %v4786_v60 = vpop.permute.xlu2 %4785  ;;  %4971 = vperm.xlu1 %6234, %v4042_v13  }
 0xae8   :  { %v5333_v55 = vperm.slane %v4786_v60, %v12736_v52 }
 0xae9   :  { %v10625_v14 = vpop.permute.xlu1 %4845 }
 0xaea   :  { %v5335_v42 = vsel %vm2311_vm0, %v5334_v41, %v5333_v55  ;;  %v10654_v49 = vpop.permute.xlu0 %5040 }
 0xaeb   :  { %v5561_v26 = vsel %vm2802_vm7, %v5335_v42, %v10416_v22  ;;  %5652 = vadd.xlane.f32.xlu0 %v5651_v40  ;;  %v12800_v42 = vld [vmem:[#allocation69_spill] sm:$0xff] }
 0xaec   :  { %v4025_v40 = vmul.f32 %v12800_v42, %v9867_v30 }
 0xaed   :  { %4893 = vperm.xlu2 %6232, %v4016_v61  }
 0xaef   :  { %v4795_v11 = vpop.permute.xlu2 %4794  ;;  %4980 = vperm.xlu1 %6234, %v4045_v5   ;;  %v5352_v5 = vperm.slane %v10168_v0, %v12737_v19  ;;  %v5354_v0 = vperm.slane %v10586_v62, %v12736_v52  ;;  %v5361_v62 = vperm.slane %v10192_v6, %v12737_v19  ;;  %v5363_v6 = vperm.slane %v10625_v14, %v12736_v52 }
 0xaf0   :  { %v5337_v44 = vperm.slane %v4795_v11, %v12737_v19  ;;  %v5370_v14 = vperm.slane %v10216_v46, %v12737_v19 }
 0xaf1   :  { %v4855_v31 = vpop.permute.xlu1 %4854 }
 0xaf2   :  { %v5338_v22 = vsel %vm2311_vm0, %v5337_v44, %v5336_v25  ;;  %v5367_v21 = vperm.slane %v4855_v31, %v12737_v19  ;;  %v10669_v8 = vpop.permute.xlu0 %5049  ;;  %v12802_v31 = vld [vmem:[#allocation109_spill] sm:$0xff] }
 0xaf3   :  { %v5562_v16 = vsel %vm2804_vm8, %v5338_v22, %v5561_v26  ;;  %v12801_v26 = vld [vmem:[#allocation146_spill] sm:$0xff] }
 0xaf4   :  { %v10648_v24 = vsel %vm2311_vm0, %v5367_v21, %v5366_v59  ;;  %v5563_v48 = vsel %vm2806_vm9, %v10456_v7, %v5562_v16  ;;  %v4022_v7 = vmul.f32 %v12798_v9, %v9882_v35  ;;  %v4054_v32 = vmul.f32 %v12801_v26, %v9882_v35  ;;  %v12803_v21 = vld [vmem:[#allocation10_spill] sm:$0xff] }
 0xaf5   :  { %4902 = vperm.xlu2 %6232, %v4019_v34   ;;  %v4028_v59 = vmul.f32 %v12802_v31, %v9882_v35  ;;  %v4057_v33 = vmul.f32 %v12803_v21, %v9867_v30  ;;  %v12809_v21 = vld [vmem:[#allocation135_spill] sm:$0xff] }
 0xaf7   :  { %v4804_v2 = vpop.permute.xlu2 %4803  ;;  %4989 = vperm.xlu1 %6234, %v4048_v10   ;;  %v12804_v10 = vld [vmem:[#allocation123_spill] sm:$0xff] }
 0xaf8   :  { %v5342_v1 = vperm.slane %v4804_v2, %v12736_v52  ;;  %v4031_v2 = vmul.f32 %v12804_v10, %v9867_v30 }
 0xaf9   :  { %v10659_v58 = vpop.permute.xlu1 %4863 }
 0xafa   :  { %v5344_v36 = vsel %vm2311_vm0, %v5343_v23, %v5342_v1  ;;  %v10691_v44 = vpop.permute.xlu0 %5058  ;;  %v5372_v46 = vperm.slane %v10659_v58, %v12736_v52 }
 0xafb   :  { %v5564_v3 = vsel %vm2808_vm10, %v5344_v36, %v5563_v48  ;;  %v12805_v36 = vld [vmem:[#allocation137_spill] sm:$0xff] }
 0xafc   :  { %v4060_v9 = vmul.f32 %v12805_v36, %v9882_v35 }
 0xafd   :  { %4911 = vperm.xlu2 %6232, %v4022_v7  }
 0xaff   :  { %v4813_v12 = vpop.permute.xlu2 %4812  ;;  %4998 = vperm.xlu1 %6234, %v4051_v29  }
 0xb00   :  { %v5346_v13 = vperm.slane %v4813_v12, %v12737_v19  ;;  %v12806_v12 = vld [vmem:[#allocation148_spill] sm:$0xff] }
 0xb01   :  { %v4873_v60 = vpop.permute.xlu1 %4872 }
 0xb02   :  { %v5347_v41 = vsel %vm2311_vm0, %v5346_v13, %v5345_v63  ;;  %v5376_v55 = vperm.slane %v4873_v60, %v12737_v19  ;;  %v10711_v1 = vpop.permute.xlu0 %5067  ;;  %v12807_v13 = vld [vmem:[#allocation165_spill] sm:$0xff] }
 0xb03   :  { %v5565_v18 = vsel %vm2810_vm11, %v5347_v41, %v5564_v3  ;;  %v4063_v60 = vmul.f32 %v12807_v13, %v9867_v30 }
 0xb04   :  { %v5566_v53 = vsel %vm2812_vm12, %v10554_v27, %v5565_v18  ;;  %v10682_v61 = vsel %vm2311_vm0, %v5376_v55, %v5375_v39  ;;  %v12808_v18 = vld [vmem:[#allocation124_spill] sm:$0xff] }
 0xb05   :  { %4920 = vperm.xlu2 %6232, %v4025_v40  }
 0xb07   :  { %v4822_v15 = vpop.permute.xlu2 %4821  ;;  %5007 = vperm.xlu1 %6234, %v4054_v32  }
 0xb08   :  { %v5351_v11 = vperm.slane %v4822_v15, %v12736_v52  ;;  %v4066_v15 = vmul.f32 %v12709_v37, %v9882_v35  ;;  %v4069_v37 = vmul.f32 %v9716_v57, %v9867_v30  ;;  %v12810_v57 = vld [vmem:[#allocation164_spill] sm:$0xff] }
 0xb09   :  { %v10689_v25 = vpop.permute.xlu1 %4881  ;;  %v4043_v36 = vmul.f32 %v12810_v57, %v9867_v30 }
 0xb0a   :  { %v5353_v27 = vsel %vm2311_vm0, %v5352_v5, %v5351_v11  ;;  %v10726_v39 = vpop.permute.xlu0 %5076 }
 0xb0b   :  { %v10697_v22 = vsel %vm2814_vm13, %v5353_v27, %v5566_v53  ;;  %v4037_v53 = vmul.f32 %v12808_v18, %v9867_v30 }
 0xb0d   :  { %4929 = vperm.xlu2 %6232, %v4028_v59  }
 0xb0f   :  { %v4831_v34 = vpop.permute.xlu2 %4830  ;;  %5016 = vperm.xlu1 %6234, %v4057_v33  }
 0xb10   :  { %v5355_v16 = vperm.slane %v4831_v34, %v12737_v19 }
 0xb11   :  { %v10704_v48 = vpop.permute.xlu1 %4890 }
 0xb12   :  { %v5356_v54 = vsel %vm2311_vm0, %v5355_v16, %v5354_v0  ;;  %v10743_v11 = vpop.permute.xlu0 %5085 }
 0xb13   :  { %v5568_v23 = vsel %vm2802_vm7, %v10616_v28, %v5356_v54  ;;  %v4034_v28 = vmul.f32 %v12806_v12, %v9882_v35  ;;  %v5402_v54 = vperm.slane %v10300_v38, %v12736_v52  ;;  %v4072_v38 = vmul.f32 %v9726_v50, %v9882_v35 }
 0xb15   :  { %4938 = vperm.xlu2 %6232, %v4031_v2  }
 0xb17   :  { %v4840_v7 = vpop.permute.xlu2 %4839  ;;  %5025 = vperm.xlu1 %6234, %v4060_v9  }
 0xb18   :  { %v5360_v3 = vperm.slane %v4840_v7, %v12736_v52 }
 0xb19   :  { %v10718_v47 = vpop.permute.xlu1 %4899 }
 0xb1a   :  { %v5362_v29 = vsel %vm2311_vm0, %v5361_v62, %v5360_v3  ;;  %v10759_v10 = vpop.permute.xlu0 %5094 }
 0xb1b   :  { %v5569_v63 = vsel %vm2804_vm8, %v5362_v29, %v5568_v23  ;;  %v12811_v29 = vld [vmem:[#allocation134_spill] sm:$0xff] }
 0xb1c   :  { %v4046_v12 = vmul.f32 %v12811_v29, %v9882_v35 }
 0xb1d   :  { %4947 = vperm.xlu2 %6232, %v4034_v28  }
 0xb1f   :  { %v4849_v41 = vpop.permute.xlu2 %4848  ;;  %5034 = vperm.xlu1 %6234, %v4063_v60   ;;  %v5385_v60 = vperm.slane %v10704_v48, %v12737_v19  ;;  %v12814_v48 = vld [vmem:[#allocation117_spill] sm:$0xff] }
 0xb20   :  { %v5364_v55 = vperm.slane %v4849_v41, %v12737_v19  ;;  %v5379_v41 = vperm.slane %v10240_v45, %v12737_v19 }
 0xb21   :  { %v10731_v42 = vpop.permute.xlu1 %4908 }
 0xb22   :  { %v5365_v40 = vsel %vm2311_vm0, %v5364_v55, %v5363_v6  ;;  %v10779_v28 = vpop.permute.xlu0 %5103  ;;  %v5381_v6 = vperm.slane %v10689_v25, %v12736_v52 }
 0xb23   :  { %v5570_v26 = vsel %vm2806_vm9, %v5365_v40, %v5569_v63  ;;  %v12812_v63 = vld [vmem:[#allocation159_spill] sm:$0xff] }
 0xb24   :  { %v5571_v32 = vsel %vm2808_vm10, %v10648_v24, %v5570_v26  ;;  %v4040_v24 = vmul.f32 %v12809_v21, %v9882_v35  ;;  %v4075_v13 = vmul.f32 %v12812_v63, %v9867_v30  ;;  %v12813_v40 = vld [vmem:[#allocation3_spill] sm:$0xff] }
 0xb25   :  { %4956 = vperm.xlu2 %6232, %v4037_v53   ;;  %v5384_v18 = vperm.slane %v12813_v40, %v12736_v52 }
 0xb27   :  { %v4858_v5 = vpop.permute.xlu2 %4857  ;;  %5043 = vperm.xlu1 %6234, %v4066_v15   ;;  %v4049_v15 = vmul.f32 %v12814_v48, %v9867_v30 }
 0xb28   :  { %v5369_v27 = vperm.slane %v4858_v5, %v12736_v52  ;;  %v5386_v5 = vsel %vm2311_vm0, %v5385_v60, %v5384_v18  ;;  %v12820_v60 = vld [vmem:[#allocation143_spill] sm:$0xff] }
 0xb29   :  { %v10746_v31 = vpop.permute.xlu1 %4917 }
 0xb2a   :  { %v5371_v59 = vsel %vm2311_vm0, %v5370_v14, %v5369_v27  ;;  %v12815_v14 = vld [vmem:[#allocation177_spill] sm:$0xff] }
 0xb2b   :  { %v5572_v33 = vsel %vm2810_vm11, %v5371_v59, %v5571_v32  ;;  %v4078_v27 = vmul.f32 %v12815_v14, %v9882_v35  ;;  %v10804_v59 = vpop.permute.xlu0 %5112  ;;  %v12823_v14 = vld [vmem:[#allocation74_spill] sm:$0xff] }
 0xb2d   :  { %4965 = vperm.xlu2 %6232, %v4040_v24   ;;  %v12816_v24 = vld [vmem:[#allocation13_spill] sm:$0xff] }
 0xb2f   :  { %v4867_v34 = vpop.permute.xlu2 %4866  ;;  %5052 = vperm.xlu1 %6234, %v4069_v37  }
 0xb30   :  { %v5373_v0 = vperm.slane %v4867_v34, %v12737_v19 }
 0xb31   :  { %v4927_v16 = vpop.permute.xlu1 %4926 }
 0xb32   :  { %v5374_v2 = vsel %vm2311_vm0, %v5373_v0, %v5372_v46  ;;  %v5403_v23 = vperm.slane %v4927_v16, %v12737_v19  ;;  %v12817_v0 = vld [vmem:[#allocation35_spill] sm:$0xff] }
 0xb33   :  { %v5573_v9 = vsel %vm2812_vm12, %v5374_v2, %v5572_v33  ;;  %v5388_v33 = vperm.slane %v12816_v24, %v12737_v19  ;;  %v4052_v16 = vmul.f32 %v12817_v0, %v9882_v35  ;;  %v12818_v2 = vld [vmem:[#allocation7_spill] sm:$0xff] }
 0xb34   :  { %v10767_v7 = vsel %vm2311_vm0, %v5403_v23, %v5402_v54  ;;  %v10771_v58 = vsel %vm2814_vm13, %v10682_v61, %v5573_v9  ;;  %v4081_v23 = vmul.f32 %v12818_v2, %v9867_v30 }
 0xb35   :  { %4974 = vperm.xlu2 %6232, %v4043_v36   ;;  %v5394_v36 = vperm.slane %v10731_v42, %v12737_v19 }
 0xb37   :  { %v4876_v62 = vpop.permute.xlu2 %4875  ;;  %5061 = vperm.xlu1 %6234, %v4072_v38  }
 0xb38   :  { %v5378_v61 = vperm.slane %v4876_v62, %v12736_v52  ;;  %v5390_v62 = vperm.slane %v10718_v47, %v12736_v52  ;;  %v12821_v47 = vld [vmem:[#allocation92_spill] sm:$0xff] }
 0xb39   :  { %v10775_v3 = vpop.permute.xlu1 %4935 }
 0xb3a   :  { %v5380_v26 = vsel %vm2311_vm0, %v5379_v41, %v5378_v61 }
 0xb3d   :  { %4983 = vperm.xlu2 %6232, %v4046_v12   ;;  %v12819_v12 = vld [vmem:[#allocation99_spill] sm:$0xff] }
 0xb3e   :  { %v5393_v63 = vperm.slane %v12819_v12, %v12736_v52  ;;  %v5429_v12 = vperm.slane %v10403_v20, %v12736_v52 }
 0xb3f   :  { %v4885_v50 = vpop.permute.xlu2 %4884  ;;  %5070 = vperm.xlu1 %6234, %v4075_v13  }
 0xb40   :  { %v5382_v55 = vperm.slane %v4885_v50, %v12737_v19  ;;  %v4055_v50 = vmul.f32 %v12820_v60, %v9867_v30  ;;  %v5395_v42 = vsel %vm2311_vm0, %v5394_v36, %v5393_v63  ;;  %v5399_v36 = vperm.slane %v10746_v31, %v12736_v52 }
 0xb41   :  { %v10793_v53 = vpop.permute.xlu1 %4944 }
 0xb42   :  { %v5383_v32 = vsel %vm2311_vm0, %v5382_v55, %v5381_v6  ;;  %v4084_v55 = vmul.f32 %v12821_v47, %v9882_v35 }
 0xb43   :  { %v5575_v45 = vsel %vm2802_vm7, %v5383_v32, %v5380_v26 }
 0xb44   :  { %v5576_v25 = vsel %vm2804_vm8, %v5386_v5, %v5575_v45  ;;  %v12822_v5 = vld [vmem:[#allocation16_spill] sm:$0xff] }
 0xb45   :  { %4992 = vperm.xlu2 %6232, %v4049_v15   ;;  %v5397_v45 = vperm.slane %v12822_v5, %v12737_v19 }
 0xb47   :  { %v4894_v21 = vpop.permute.xlu2 %4893  ;;  %5079 = vperm.xlu1 %6234, %v4078_v27   ;;  %v4058_v27 = vmul.f32 %v12823_v14, %v9882_v35 }
 0xb48   :  { %v5387_v37 = vperm.slane %v4894_v21, %v12736_v52 }
 0xb49   :  { %v10809_v34 = vpop.permute.xlu1 %4953 }
 0xb4a   :  { %v5389_v46 = vsel %vm2311_vm0, %v5388_v33, %v5387_v37  ;;  %v12824_v33 = vld [vmem:[#allocation2_spill] sm:$0xff] }
 0xb4b   :  { %v5577_v54 = vsel %vm2806_vm9, %v5389_v46, %v5576_v25  ;;  %v4087_v37 = vmul.f32 %v12824_v33, %v9867_v30  ;;  %v12832_v33 = vld [vmem:[#allocation154_spill] sm:$0xff] }
 0xb4d   :  { %5001 = vperm.xlu2 %6232, %v4052_v16  }
 0xb4e   :  { %v5635_v57 = vpop.xlane.xlu0 %5634 }
 0xb4f   :  { %v6049_v9 = vmul.f32 -1.442695, %v5635_v57  ;;  %v4903_v38 = vpop.permute.xlu2 %4902  ;;  %5088 = vperm.xlu1 %6234, %v4081_v23  }
 0xb50   :  { %v5391_v29 = vperm.slane %v4903_v38, %v12737_v19 }
 0xb51   :  { %6235 = vpow2.f32 %v6049_v9  ;;  %v10824_v13 = vpop.permute.xlu1 %4962 }
 0xb52   :  { %v5392_v61 = vsel %vm2311_vm0, %v5391_v29, %v5390_v62  ;;  %v12825_v62 = vld [vmem:[#allocation104_spill] sm:$0xff] }
 0xb53   :  { %v5578_v41 = vsel %vm2808_vm10, %v5392_v61, %v5577_v54  ;;  %v4061_v29 = vmul.f32 %v12825_v62, %v9867_v30  ;;  %v12834_v62 = vld [vmem:[#allocation176_spill] sm:$0xff] }
 0xb54   :  { %v5579_v6 = vsel %vm2810_vm11, %v5395_v42, %v5578_v41 }
 0xb55   :  { %5010 = vperm.xlu2 %6232, %v4055_v50   ;;  %v12826_v50 = vld [vmem:[#allocation128_spill] sm:$0xff] }
 0xb56   :  { %v5644_v40 = vpop.xlane.xlu0 %5643  ;;  %v10859_v42 = vmul.f32 %v12826_v50, %v9882_v35  ;;  %v12836_v50 = vld [vmem:[#allocation8_spill] sm:$0xff] }
 0xb57   :  { %v6236_v18 = vpop.eup %6235  ;;  %v6052_v26 = vmul.f32 -1.442695, %v5644_v40  ;;  %v4912_v32 = vpop.permute.xlu2 %4911  ;;  %5097 = vperm.xlu1 %6234, %v4084_v55   ;;  %v12827_v40 = vld [vmem:[#allocation153_spill] sm:$0xff] }
 0xb58   :  { %v5725_v48 = vadd.f32 1.0, %v6236_v18  ;;  %v5396_v15 = vperm.slane %v4912_v32, %v12736_v52  ;;  %v5115_v18 = vperm.slane %v12827_v40, %v12737_v19  ;;  %v12844_v40 = vld [vmem:[#allocation115_spill] sm:$0xff] }
 0xb59   :  { %6237 = vpow2.f32 %v6052_v26  ;;  %v10837_v25 = vpop.permute.xlu1 %4971  ;;  %v12828_v26 = vld [vmem:[#allocation12_spill] sm:$0xff] }
 0xb5a   :  { %6239 = vrcp.f32 %v5725_v48  ;;  %v5398_v21 = vsel %vm2311_vm0, %v5397_v45, %v5396_v15  ;;  %v5778_v31 = vand.u32 2147483647, %v5725_v48  ;;  %v5780_v41 = vand.u32 2147483648, %v5725_v48  ;;  %v12829_v15 = vld [vmem:[#allocation132_spill] sm:$0xff]  ;;  %v12830_v45 = vld [vmem:[#allocation158_spill] sm:$0xff] }
 0xb5b   :  { %v5580_v24 = vsel %vm2812_vm12, %v5398_v21, %v5579_v6  ;;  %v5123_v32 = vperm.slane %v12828_v26, %v12736_v52  ;;  %v5127_v5 = vperm.slane %v12829_v15, %v12737_v19  ;;  %v5132_v14 = vperm.slane %v12830_v45, %v12736_v52  ;;  %v12831_v21 = vld [vmem:[#allocation88_spill] sm:$0xff]  ;;  %v12846_v26 = vld [vmem:[#allocation29_spill] sm:$0xff] }
 0xb5c   :  { %vm5774_vm2 = vweird.f32 %v5725_v48  ;;  %vm5779_vm4 = vcmp.eq.f32.partialorder %v5778_v31, 8.507059e+37  ;;  %v12848_v15 = vld [vmem:[#allocation168_spill] sm:$0xff] }
 0xb5d   :  { %5019 = vperm.xlu2 %6232, %v4058_v27  }
 0xb5e   :  { %v5653_v46 = vpop.xlane.xlu0 %5652 }
 0xb5f   :  { %v6238_v0 = vpop.eup %6237  ;;  %v6055_v16 = vmul.f32 -1.442695, %v5653_v46  ;;  %v4921_v54 = vpop.permute.xlu2 %4920  ;;  %5106 = vperm.xlu1 %6234, %v4087_v37   ;;  %v10878_v37 = vmul.f32 %v12832_v33, %v9867_v30 }
 0xb60   :  { %v6240_v2 = vpop.eup %6239  ;;  %v10845_v23 = vadd.f32 1.0, %v6238_v0  ;;  %v5400_v57 = vperm.slane %v4921_v54, %v12737_v19  ;;  %v12833_v54 = vld [vmem:[#allocation185_spill] sm:$0xff] }
 0xb61   :  { %v5770_v9 = vmul.f32 %v6240_v2, %v5725_v48  ;;  %6241 = vpow2.f32 %v6055_v16  ;;  %v4981_v38 = vpop.permute.xlu1 %4980  ;;  %vm5775_vm1 = vweird.f32 %v6240_v2 }
 0xb62   :  { %6243 = vrcp.f32 %v10845_v23  ;;  %v5430_v61 = vperm.slane %v4981_v38, %v12737_v19  ;;  %v5401_v60 = vsel %vm2311_vm0, %v5400_v57, %v5399_v36  ;;  %v5117_v57 = vperm.slane %v12833_v54, %v12736_v52  ;;  %vm5776_vm3 = vmor %vm5774_vm2, %vm5775_vm1  ;;  %v12839_v54 = vld [vmem:[#allocation173_spill] sm:$0xff] }
 0xb63   :  { %v5771_v63 = vsub.f32 1.0, %v5770_v9  ;;  %v5581_v6 = vsel %vm2814_vm13, %v5401_v60, %v5580_v24  ;;  %v4064_v24 = vmul.f32 %v12831_v21, %v9882_v35  ;;  %v5781_v36 = vor.u32 1.1754944e-38, %v5780_v41 }
 0xb64   :  { %v10863_v55 = vsel %vm2311_vm0, %v5430_v61, %v5429_v12  ;;  %v5660_v20 = vsel %vm5626_vm15, %v5581_v6, 0.0  ;;  %v12835_v61 = vld [vmem:[#allocation182_spill] sm:$0xff]  ;;  %v5406_v6 = vperm.slane %v12836_v50, %v12737_v19  ;;  %v5823_v50 = vand.u32 2147483647, %v10845_v23 }
 0xb65   :  { %v5772_v47 = vmul.f32 %v6240_v2, %v5771_v63  ;;  %5028 = vperm.xlu2 %6232, %v4061_v29   ;;  %5661 = vadd.xlane.f32.xlu0 %v5660_v20  ;;  %v5118_v29 = vperm.slane %v12834_v62, %v12737_v19  ;;  %v5121_v60 = vperm.slane %v12835_v61, %v12737_v19  ;;  %v5825_v62 = vand.u32 2147483648, %v10845_v23 }
 0xb66   :  { %vm5819_vm6 = vweird.f32 %v10845_v23  ;;  %vm5824_vm1 = vcmp.eq.f32.partialorder %v5823_v50, 8.507059e+37 }
 0xb67   :  { %v6242_v27 = vpop.eup %6241  ;;  %v5773_v46 = vadd.f32 %v6240_v2, %v5772_v47  ;;  %v4930_v0 = vpop.permute.xlu2 %4929  ;;  %v12837_v47 = vld [vmem:[#allocation179_spill] sm:$0xff] }
 0xb68   :  { %v6244_v16 = vpop.eup %6243  ;;  %v10883_v9 = vadd.f32 1.0, %v6242_v27  ;;  %v5405_v38 = vperm.slane %v4930_v0, %v12736_v52  ;;  %v5120_v20 = vperm.slane %v12837_v47, %v12736_v52  ;;  %v6305_v27 = vld [vmem:[%s11533_s0 + $0x28] sm:$0xff] }
 0xb69   :  { %v5777_v12 = vsel %vm5776_vm3, %v6240_v2, %v5773_v46  ;;  %v5815_v63 = vmul.f32 %v6244_v16, %v10845_v23  ;;  %v10889_v48 = vpop.permute.xlu1 %4989  ;;  %v6304_v2 = vld [vmem:[%s11533_s0 + $0x20] sm:$0xff]  ;;  %v12838_v46 = vld [vmem:[#allocation19_spill] sm:$0xff]  ;;  %vm5820_vm5 = vweird.f32 %v6244_v16 }
 0xb6a   :  { %v5782_v41 = vsel %vm5779_vm4, %v5781_v36, %v5777_v12  ;;  %6245 = vrcp.f32 %v10883_v9  ;;  %v5124_v0 = vperm.slane %v12838_v46, %v12737_v19  ;;  %v5129_v36 = vperm.slane %v12839_v54, %v12736_v52  ;;  %vm5821_vm14 = vmor %vm5819_vm6, %vm5820_vm5 }
 0xb6b   :  { %v5983_v31 = vmul.f32 %v6304_v2, %v5782_v41  ;;  %v5984_v21 = vmul.f32 %v6305_v27, %v5782_v41  ;;  %v5816_v33 = vsub.f32 1.0, %v5815_v63  ;;  %v5407_v12 = vsel %vm2311_vm0, %v5406_v6, %v5405_v38  ;;  %v12840_v41 = vld [vmem:[#allocation186_spill] sm:$0xff] }
 0xb6c   :  { %v5582_v63 = vsel %vm2802_vm7, %v5407_v12, %v10767_v7  ;;  %v5114_v47 = vperm.slane %v12840_v41, %v12736_v52  ;;  %v5119_v2 = vsel %vm2311_vm0, %v5118_v29, %v5117_v57  ;;  %v5122_v27 = vsel %vm2311_vm0, %v5121_v60, %v5120_v20  ;;  %v12841_v6 = vld [vmem:[#allocation26_spill] sm:$0xff] }
 0xb6d   :  { %6015 = vst [vmem:[%s11536_s3 + $0x20] sm:$0xff] %v5983_v31  ;;  %v5817_v61 = vmul.f32 %v6244_v16, %v5816_v33  ;;  %5037 = vperm.xlu2 %6232, %v4064_v24   ;;  %v5412_v38 = vperm.slane %v10793_v53, %v12737_v19  ;;  %v5126_v31 = vperm.slane %v12841_v6, %v12736_v52  ;;  %v12842_v7 = vld [vmem:[#allocation30_spill] sm:$0xff]  ;;  %v5826_v20 = vor.u32 1.1754944e-38, %v5825_v62  ;;  %v6306_v62 = vld [vmem:[%s11533_s0 + $0x50] sm:$0xff] }
 0xb6e   :  { %6016 = vst [vmem:[%s11536_s3 + $0x28] sm:$0xff] %v5984_v21  ;;  %v5130_v24 = vperm.slane %v12842_v7, %v12737_v19  ;;  %v12843_v29 = vld [vmem:[#allocation46_spill] sm:$0xff]  ;;  %v5408_v53 = vperm.slane %v10775_v3, %v12736_v52  ;;  %v5438_v54 = vperm.slane %v10453_v51, %v12736_v52  ;;  %v6307_v51 = vld [vmem:[%s11533_s0 + $0x58] sm:$0xff]  ;;  %vm5864_vm3 = vweird.f32 %v10883_v9 }
 0xb6f   :  { %v5818_v33 = vadd.f32 %v6244_v16, %v5817_v61  ;;  %v4939_v46 = vpop.permute.xlu2 %4938  ;;  %v5411_v60 = vperm.slane %v12843_v29, %v12736_v52  ;;  %v5870_v29 = vand.u32 2147483648, %v10883_v9 }
 0xb70   :  { %v6246_v57 = vpop.eup %6245  ;;  %v5409_v21 = vperm.slane %v4939_v46, %v12737_v19 }
 0xb71   :  { %v5822_v12 = vsel %vm5821_vm14, %v6244_v16, %v5818_v33  ;;  %v5860_v23 = vmul.f32 %v6246_v57, %v10883_v9  ;;  %v4999_v61 = vpop.permute.xlu1 %4998  ;;  %v5413_v41 = vsel %vm2311_vm0, %v5412_v38, %v5411_v60  ;;  %v5116_v38 = vsel %vm2311_vm0, %v5115_v18, %v5114_v47  ;;  %v12845_v47 = vld [vmem:[#allocation163_spill] sm:$0xff] }
 0xb72   :  { %v5827_v6 = vsel %vm5824_vm1, %v5826_v20, %v5822_v12  ;;  %v5410_v7 = vsel %vm2311_vm0, %v5409_v21, %v5408_v53  ;;  %v5439_v3 = vperm.slane %v4999_v61, %v12737_v19  ;;  %v5498_v20 = vsel %vm2802_vm7, %v5119_v2, %v5116_v38 }
 0xb73   :  { %v5989_v46 = vmul.f32 %v6306_v62, %v5827_v6  ;;  %v5990_v16 = vmul.f32 %v6307_v51, %v5827_v6  ;;  %v5861_v50 = vsub.f32 1.0, %v5860_v23  ;;  %v5583_v33 = vsel %vm2804_vm8, %v5410_v7, %v5582_v63 }
 0xb74   :  { %v10955_v60 = vsel %vm2311_vm0, %v5439_v3, %v5438_v54  ;;  %v5584_v53 = vsel %vm2806_vm9, %v5413_v41, %v5583_v33  ;;  %vm5865_vm2 = vweird.f32 %v6246_v57  ;;  %v5868_v63 = vand.u32 2147483647, %v10883_v9 }
 0xb75   :  { %6021 = vst [vmem:[%s11536_s3 + $0x50] sm:$0xff] %v5989_v46  ;;  %v5862_v21 = vmul.f32 %v6246_v57, %v5861_v50  ;;  %5046 = vperm.xlu2 %6232, %v10878_v37   ;;  %v5136_v18 = vperm.slane %v12844_v40, %v12737_v19  ;;  %v5186_v54 = vperm.slane %v12845_v47, %v12736_v52  ;;  %vm5866_vm4 = vmor %vm5864_vm3, %vm5865_vm2  ;;  %v5871_v6 = vor.u32 1.1754944e-38, %v5870_v29  ;;  %v12852_v47 = vld [vmem:[#allocation45_spill] sm:$0xff] }
 0xb76   :  { %v5125_v2 = vsel %vm2311_vm0, %v5124_v0, %v5123_v32  ;;  %v5499_v12 = vsel %vm2804_vm8, %v5122_v27, %v5498_v20  ;;  %6022 = vst [vmem:[%s11536_s3 + $0x58] sm:$0xff] %v5990_v16  ;;  %v5128_v37 = vsel %vm2311_vm0, %v5127_v5, %v5126_v31  ;;  %v5131_v23 = vsel %vm2311_vm0, %v5130_v24, %v5129_v36  ;;  %v12847_v0 = vld [vmem:[#allocation81_spill] sm:$0xff]  ;;  %v12849_v24 = vld [vmem:[#allocation75_spill] sm:$0xff]  ;;  %v6308_v16 = vld [vmem:[%s11533_s0 + $0x80] sm:$0xff] }
 0xb77   :  { %v5863_v61 = vadd.f32 %v6246_v57, %v5862_v21  ;;  %v4948_v41 = vpop.permute.xlu2 %4947  ;;  %v5135_v32 = vperm.slane %v12846_v26, %v12736_v52  ;;  %v5415_v27 = vperm.slane %v12847_v0, %v12737_v19  ;;  %v5133_v5 = vperm.slane %v12848_v15, %v12737_v19  ;;  %v12850_v20 = vld [vmem:[#allocation141_spill] sm:$0xff]  ;;  %v12855_v26 = vld [vmem:[#allocation171_spill] sm:$0xff]  ;;  %v12859_v15 = vld [vmem:[#allocation70_spill] sm:$0xff] }
 0xb78   :  { %v5414_v7 = vperm.slane %v4948_v41, %v12736_v52  ;;  %v5500_v36 = vsel %vm2806_vm9, %v5125_v2, %v5499_v12  ;;  %vm5869_vm5 = vcmp.eq.f32.partialorder %v5868_v63, 8.507059e+37  ;;  %v4070_v3 = vmul.f32 %v12849_v24, %v9882_v35  ;;  %v12851_v63 = vld [vmem:[#allocation20_spill] sm:$0xff] }
 0xb79   :  { %v5867_v31 = vsel %vm5866_vm4, %v6246_v57, %v5863_v61  ;;  %v10991_v9 = vpop.permute.xlu1 %5007  ;;  %v5501_v62 = vsel %vm2808_vm10, %v5128_v37, %v5500_v36  ;;  %v6309_v57 = vld [vmem:[%s11533_s0 + $0x88] sm:$0xff]  ;;  %v5190_v21 = vperm.slane %v12850_v20, %v12737_v19  ;;  %v5187_v40 = vperm.slane %v12851_v63, %v12737_v19 }
 0xb7a   :  { %v5872_v46 = vsel %vm5869_vm5, %v5871_v6, %v5867_v31  ;;  %v5416_v51 = vsel %vm2311_vm0, %v5415_v27, %v5414_v7  ;;  %v5502_v29 = vsel %vm2810_vm11, %v5131_v23, %v5501_v62  ;;  %v5189_v2 = vperm.slane %v12852_v47, %v12736_v52  ;;  %v12853_v37 = vld [vmem:[#allocation147_spill] sm:$0xff]  ;;  %v12857_v27 = vld [vmem:[#allocation157_spill] sm:$0xff] }
 0xb7b   :  { %v5995_v50 = vmul.f32 %v6308_v16, %v5872_v46  ;;  %v5996_v33 = vmul.f32 %v6309_v57, %v5872_v46  ;;  %v5585_v38 = vsel %vm2808_vm10, %v5416_v51, %v5584_v53  ;;  %v5137_v12 = vsel %vm2311_vm0, %v5136_v18, %v5135_v32  ;;  %v12854_v23 = vld [vmem:[#allocation47_spill] sm:$0xff]  ;;  %v12856_v18 = vld [vmem:[#allocation156_spill] sm:$0xff]  ;;  %v12860_v16 = vld [vmem:[#allocation77_spill] sm:$0xff] }
 0xb7c   :  { %v5195_v61 = vperm.slane %v12853_v37, %v12736_v52  ;;  %v5134_v53 = vsel %vm2311_vm0, %v5133_v5, %v5132_v14  ;;  %v5193_v41 = vperm.slane %v12854_v23, %v12737_v19  ;;  %v5199_v0 = vperm.slane %v12855_v26, %v12737_v19  ;;  %v12858_v14 = vld [vmem:[#allocation144_spill] sm:$0xff] }
 0xb7d   :  { %6027 = vst [vmem:[%s11536_s3 + $0x80] sm:$0xff] %v5995_v50  ;;  %5055 = vperm.xlu2 %6232, %v4070_v3   ;;  %v5204_v32 = vperm.slane %v12856_v18, %v12736_v52  ;;  %v5208_v6 = vperm.slane %v12857_v27, %v12737_v19  ;;  %v5503_v45 = vsel %vm2812_vm12, %v5134_v53, %v5502_v29  ;;  %v12862_v29 = vld [vmem:[#allocation105_spill] sm:$0xff]  ;;  %v12865_v26 = vld [vmem:[#allocation28_spill] sm:$0xff] }
 0xb7e   :  { %6028 = vst [vmem:[%s11536_s3 + $0x88] sm:$0xff] %v5996_v33  ;;  %v4073_v7 = vmul.f32 %v12858_v14, %v9867_v30  ;;  %v5192_v5 = vperm.slane %v12859_v15, %v12736_v52  ;;  %v5421_v36 = vperm.slane %v10824_v13, %v12737_v19  ;;  %v5504_v24 = vsel %vm2814_vm13, %v5137_v12, %v5503_v45  ;;  %v12861_v33 = vld [vmem:[#allocation48_spill] sm:$0xff] }
 0xb7f   :  { %v4957_v31 = vpop.permute.xlu2 %4956  ;;  %v5188_v3 = vsel %vm2311_vm0, %v5187_v40, %v5186_v54  ;;  %v5191_v62 = vsel %vm2311_vm0, %v5190_v21, %v5189_v2  ;;  %v5417_v46 = vperm.slane %v10809_v34, %v12736_v52  ;;  %v5196_v50 = vperm.slane %v12860_v16, %v12737_v19  ;;  %v12863_v54 = vld [vmem:[#allocation55_spill] sm:$0xff]  ;;  %v12866_v45 = vld [vmem:[#allocation32_spill] sm:$0xff] }
 0xb80   :  { %v5418_v51 = vperm.slane %v4957_v31, %v12737_v19  ;;  %v5194_v57 = vsel %vm2311_vm0, %v5193_v41, %v5192_v5  ;;  %v5198_v13 = vperm.slane %v12861_v33, %v12736_v52  ;;  %v5420_v20 = vperm.slane %v12862_v29, %v12736_v52  ;;  %v12864_v2 = vld [vmem:[#allocation87_spill] sm:$0xff]  ;;  %v12867_v5 = vld [vmem:[#allocation65_spill] sm:$0xff] }
 0xb81   :  { %v5017_v63 = vpop.permute.xlu1 %5016  ;;  %v5202_v21 = vperm.slane %v12863_v54, %v12737_v19  ;;  %v5447_v34 = vperm.slane %v10578_v4, %v12736_v52  ;;  %v5201_v12 = vperm.slane %v12864_v2, %v12736_v52  ;;  %v5519_v37 = vsel %vm2802_vm7, %v5191_v62, %v5188_v3  ;;  %v12869_v3 = vld [vmem:[#allocation17_spill] sm:$0xff]  ;;  %v12870_v16 = vld [vmem:[#allocation59_spill] sm:$0xff] }
 0xb82   :  { %v5419_v40 = vsel %vm2311_vm0, %v5418_v51, %v5417_v46  ;;  %v5448_v47 = vperm.slane %v5017_v63, %v12737_v19  ;;  %v5422_v53 = vsel %vm2311_vm0, %v5421_v36, %v5420_v20  ;;  %v5520_v41 = vsel %vm2804_vm8, %v5194_v57, %v5519_v37  ;;  %v12871_v33 = vld [vmem:[#allocation9_spill] sm:$0xff]  ;;  %v12872_v29 = vld [vmem:[#allocation67_spill] sm:$0xff] }
 0xb83   :  { %v5586_v23 = vsel %vm2810_vm11, %v5419_v40, %v5585_v38  ;;  %v5261_v18 = vperm.slane %v12865_v26, %v12736_v52  ;;  %v5258_v14 = vperm.slane %v12866_v45, %v12736_v52  ;;  %v5200_v15 = vsel %vm2311_vm0, %v5199_v0, %v5198_v13  ;;  %v12868_v38 = vld [vmem:[#allocation4_spill] sm:$0xff]  ;;  %v12877_v45 = vld [vmem:[#allocation6_spill] sm:$0xff] }
 0xb84   :  { %v5587_v4 = vsel %vm2812_vm12, %v5422_v53, %v5586_v23  ;;  %v11068_v27 = vsel %vm2311_vm0, %v5448_v47, %v5447_v34  ;;  %v5207_v36 = vperm.slane %v12867_v5, %v12736_v52  ;;  %v5265_v31 = vperm.slane %v12868_v38, %v12737_v19  ;;  %v12874_v47 = vld [vmem:[#allocation138_spill] sm:$0xff]  ;;  %v12875_v53 = vld [vmem:[#allocation72_spill] sm:$0xff] }
 0xb85   :  { %5064 = vperm.xlu2 %6232, %v4073_v7   ;;  %v5262_v62 = vperm.slane %v12869_v3, %v12737_v19  ;;  %v5197_v46 = vsel %vm2311_vm0, %v5196_v50, %v5195_v61  ;;  %v5203_v51 = vsel %vm2311_vm0, %v5202_v21, %v5201_v12  ;;  %v5259_v57 = vperm.slane %v12870_v16, %v12737_v19  ;;  %v12873_v50 = vld [vmem:[#allocation150_spill] sm:$0xff] }
 0xb86   :  { %v5205_v0 = vperm.slane %v12871_v33, %v12737_v19  ;;  %v5521_v13 = vsel %vm2806_vm9, %v5197_v46, %v5520_v41  ;;  %v5264_v20 = vperm.slane %v12872_v29, %v12736_v52  ;;  %v5627_v7 = vsel %vm5626_vm15, %v5504_v24, 0.0  ;;  %v12876_v41 = vld [vmem:[#allocation78_spill] sm:$0xff]  ;;  %v12882_v29 = vld [vmem:[#allocation53_spill] sm:$0xff] }
 0xb87   :  { %v4966_v63 = vpop.permute.xlu2 %4965  ;;  %v5522_v54 = vsel %vm2808_vm10, %v5200_v15, %v5521_v13  ;;  %v5263_v61 = vsel %vm2311_vm0, %v5262_v62, %v5261_v18  ;;  %v5424_v21 = vperm.slane %v12873_v50, %v12737_v19  ;;  %v5270_v2 = vperm.slane %v12874_v47, %v12736_v52 }
 0xb88   :  { %v5423_v34 = vperm.slane %v4966_v63, %v12736_v52  ;;  %v5266_v40 = vsel %vm2311_vm0, %v5265_v31, %v5264_v20  ;;  %v5209_v12 = vsel %vm2311_vm0, %v5208_v6, %v5207_v36  ;;  %v5523_v37 = vsel %vm2810_vm11, %v5203_v51, %v5522_v54  ;;  %v12878_v36 = vld [vmem:[#allocation22_spill] sm:$0xff]  ;;  %v12879_v31 = vld [vmem:[#allocation60_spill] sm:$0xff] }
 0xb89   :  { %5628 = vadd.xlane.f32.xlu1 %v5627_v7  ;;  %v5260_v24 = vsel %vm2311_vm0, %v5259_v57, %v5258_v14  ;;  %v5268_v23 = vperm.slane %v12875_v53, %v12737_v19  ;;  %v5274_v26 = vperm.slane %v12876_v41, %v12737_v19  ;;  %v5271_v15 = vperm.slane %v12877_v45, %v12737_v19  ;;  %v12880_v57 = vld [vmem:[#allocation68_spill] sm:$0xff] }
 0xb8a   :  { %v5425_v18 = vsel %vm2311_vm0, %v5424_v21, %v5423_v34  ;;  %v5206_v5 = vsel %vm2311_vm0, %v5205_v0, %v5204_v32  ;;  %v5540_v38 = vsel %vm2802_vm7, %v5263_v61, %v5260_v24  ;;  %v5267_v14 = vperm.slane %v12878_v36, %v12736_v52  ;;  %v12881_v0 = vld [vmem:[#allocation39_spill] sm:$0xff]  ;;  %v12883_v21 = vld [vmem:[#allocation41_spill] sm:$0xff]  ;;  %v12886_v36 = vld [vmem:[#allocation90_spill] sm:$0xff] }
 0xb8b   :  { %v5588_v6 = vsel %vm2814_vm13, %v5425_v18, %v5587_v4  ;;  %v5273_v3 = vperm.slane %v12879_v31, %v12736_v52  ;;  %v5541_v62 = vsel %vm2804_vm8, %v5266_v40, %v5540_v38  ;;  %v5524_v46 = vsel %vm2812_vm12, %v5206_v5, %v5523_v37  ;;  %v5026_v5 = vpop.permute.xlu1 %5025 }
 0xb8c   :  { %v5272_v51 = vsel %vm2311_vm0, %v5271_v15, %v5270_v2  ;;  %v5525_v32 = vsel %vm2814_vm13, %v5209_v12, %v5524_v46  ;;  %v5269_v16 = vsel %vm2311_vm0, %v5268_v23, %v5267_v14  ;;  %v5279_v33 = vperm.slane %v12880_v57, %v12736_v52  ;;  %v12884_v12 = vld [vmem:[#allocation96_spill] sm:$0xff] }
 0xb8d   :  { %5073 = vperm.xlu2 %6232, %v10859_v42   ;;  %v5275_v4 = vsel %vm2311_vm0, %v5274_v26, %v5273_v3  ;;  %v5280_v13 = vperm.slane %v12881_v0, %v12737_v19  ;;  %v5277_v20 = vperm.slane %v12882_v29, %v12737_v19  ;;  %v5542_v63 = vsel %vm2806_vm9, %v5269_v16, %v5541_v62  ;;  %v12885_v26 = vld [vmem:[#allocation145_spill] sm:$0xff] }
 0xb8e   :  { %v5543_v42 = vsel %vm2808_vm10, %v5272_v51, %v5542_v63  ;;  %v5426_v54 = vperm.slane %v10837_v25, %v12736_v52  ;;  %v5636_v50 = vsel %vm5626_vm15, %v5525_v32, 0.0  ;;  %v5276_v34 = vperm.slane %v12883_v21, %v12736_v52  ;;  %v12887_v32 = vld [vmem:[#allocation162_spill] sm:$0xff] }
 0xb8f   :  { %v4975_v7 = vpop.permute.xlu2 %4974  ;;  %v5544_v40 = vsel %vm2810_vm11, %v5275_v4, %v5543_v42  ;;  %v5281_v2 = vsel %vm2311_vm0, %v5280_v13, %v5279_v33  ;;  %v4079_v37 = vmul.f32 %v12884_v12, %v9867_v30  ;;  %v5433_v18 = vperm.slane %v12885_v26, %v12737_v19 }
 0xb90   :  { %v5427_v61 = vperm.slane %v4975_v7, %v12737_v19  ;;  %v5278_v24 = vsel %vm2311_vm0, %v5277_v20, %v5276_v34  ;;  %v5435_v3 = vperm.slane %v10889_v48, %v12736_v52  ;;  %v5654_v46 = vsel %vm5626_vm15, %v10697_v22, 0.0 }
 0xb91   :  { %5637 = vadd.xlane.f32.xlu1 %v5636_v50  ;;  %v5545_v53 = vsel %vm2812_vm12, %v5278_v24, %v5544_v40  ;;  %v4085_v16 = vmul.f32 %v12887_v32, %v9867_v30  ;;  %v5442_v48 = vperm.slane %v10520_v56, %v12737_v19  ;;  %v5663_v22 = vsel %vm5626_vm15, %v5588_v6, 0.0  ;;  %v12888_v30 = vld [vmem:[#allocation31_spill] sm:$0xff]  ;;  %v12897_v32 = vld [vmem:[#allocation24_spill] sm:$0xff] }
 0xb92   :  { %v5428_v47 = vsel %vm2311_vm0, %v5427_v61, %v5426_v54  ;;  %v5546_v23 = vsel %vm2814_vm13, %v5281_v2, %v5545_v53  ;;  %v4088_v20 = vmul.f32 %v12888_v30, %v9882_v35  ;;  %v5444_v42 = vperm.slane %v10991_v9, %v12736_v52  ;;  %v12889_v9 = vld [vmem:[#allocation11_spill] sm:$0xff] }
 0xb93   :  { %v5589_v25 = vsel %vm2802_vm7, %v10863_v55, %v5428_v47  ;;  %v5645_v15 = vsel %vm5626_vm15, %v5546_v23, 0.0  ;;  %v4082_v55 = vmul.f32 %v12886_v36, %v9882_v35  ;;  %v5035_v57 = vpop.permute.xlu1 %5034  ;;  %v5139_v47 = vperm.slane %v12889_v9, %v12737_v19  ;;  %v12900_v30 = vld [vmem:[#allocation63_spill] sm:$0xff]  ;;  %v12903_v9 = vld [vmem:[#allocation50_spill] sm:$0xff] }
 0xb94   :  { %v5457_v34 = vperm.slane %v5035_v57, %v12737_v19  ;;  %v5451_v2 = vperm.slane %v10609_v17, %v12737_v19  ;;  %v5453_v12 = vperm.slane %v5026_v5, %v12736_v52  ;;  %v5456_v23 = vperm.slane %v10633_v43, %v12736_v52  ;;  %v12895_v43 = vld [vmem:[#allocation118_spill] sm:$0xff] }
 0xb95   :  { %5082 = vperm.xlu2 %6232, %v4079_v37  }
 0xb97   :  { %v4984_v41 = vpop.permute.xlu2 %4983 }
 0xb98   :  { %v5432_v45 = vperm.slane %v4984_v41, %v12736_v52  ;;  %v12892_v41 = vld [vmem:[#allocation27_spill] sm:$0xff] }
 0xb99   :  { %5646 = vadd.xlane.f32.xlu1 %v5645_v15  ;;  %v5142_v26 = vperm.slane %v12892_v41, %v12737_v19  ;;  %v12907_v41 = vld [vmem:[#allocation54_spill] sm:$0xff] }
 0xb9a   :  { %v5434_v38 = vsel %vm2311_vm0, %v5433_v18, %v5432_v45  ;;  %v12893_v18 = vld [vmem:[#allocation149_spill] sm:$0xff] }
 0xb9b   :  { %v5590_v14 = vsel %vm2804_vm8, %v5434_v38, %v5589_v25  ;;  %v11172_v7 = vpop.permute.xlu1 %5043  ;;  %v12891_v25 = vld [vmem:[#allocation160_spill] sm:$0xff]  ;;  %v5148_v45 = vperm.slane %v12893_v18, %v12737_v19  ;;  %v12894_v38 = vld [vmem:[#allocation142_spill] sm:$0xff] }
 0xb9c   :  { %v5144_v53 = vperm.slane %v12891_v25, %v12736_v52  ;;  %v5145_v36 = vperm.slane %v12894_v38, %v12737_v19 }
 0xb9d   :  { %5091 = vperm.xlu2 %6232, %v4082_v55   ;;  %v5458_v55 = vsel %vm2311_vm0, %v5457_v34, %v5456_v23 }
 0xb9f   :  { %v4993_v31 = vpop.permute.xlu2 %4992 }
 0xba0   :  { %v5436_v62 = vperm.slane %v4993_v31, %v12737_v19  ;;  %v5141_v31 = vperm.slane %v12895_v43, %v12736_v52 }
 0xba1   :  { %5655 = vadd.xlane.f32.xlu1 %v5654_v46 }
 0xba2   :  { %v5437_v51 = vsel %vm2311_vm0, %v5436_v62, %v5435_v3  ;;  %v12896_v3 = vld [vmem:[#allocation181_spill] sm:$0xff]  ;;  %v5143_v57 = vsel %vm2311_vm0, %v5142_v26, %v5141_v31  ;;  %v5220_v26 = vperm.slane %v12907_v41, %v12737_v19  ;;  %v12911_v31 = vld [vmem:[#allocation42_spill] sm:$0xff] }
 0xba3   :  { %v5591_v4 = vsel %vm2806_vm9, %v5437_v51, %v5590_v14  ;;  %v11183_v50 = vpop.permute.xlu1 %5052  ;;  %v5147_v62 = vperm.slane %v12896_v3, %v12736_v52  ;;  %v5160_v3 = vperm.slane %v12911_v31, %v12737_v19 }
 0xba4   :  { %v5592_v33 = vsel %vm2808_vm10, %v10955_v60, %v5591_v4  ;;  %v5146_v4 = vsel %vm2311_vm0, %v5145_v36, %v5144_v53  ;;  %v12906_v53 = vld [vmem:[#allocation80_spill] sm:$0xff]  ;;  %v12910_v36 = vld [vmem:[#allocation166_spill] sm:$0xff] }
 0xba5   :  { %5100 = vperm.xlu2 %6232, %v4085_v16   ;;  %v5151_v16 = vperm.slane %v12897_v32, %v12737_v19  ;;  %v5210_v23 = vperm.slane %v12906_v53, %v12736_v52  ;;  %v12919_v53 = vld [vmem:[#allocation18_spill] sm:$0xff] }
 0xba7   :  { %v5002_v0 = vpop.permute.xlu2 %5001 }
 0xba8   :  { %v5441_v13 = vperm.slane %v5002_v0, %v12736_v52  ;;  %v12898_v0 = vld [vmem:[#allocation76_spill] sm:$0xff] }
 0xba9   :  { %5664 = vadd.xlane.f32.xlu1 %v5663_v22 }
 0xbaa   :  { %v5443_v29 = vsel %vm2311_vm0, %v5442_v48, %v5441_v13  ;;  %v5153_v48 = vperm.slane %v12898_v0, %v12736_v52  ;;  %v12899_v13 = vld [vmem:[#allocation122_spill] sm:$0xff] }
 0xbab   :  { %v5593_v63 = vsel %vm2810_vm11, %v5443_v29, %v5592_v33  ;;  %v11203_v17 = vpop.permute.xlu1 %5061  ;;  %v5149_v33 = vsel %vm2311_vm0, %v5148_v45, %v5147_v62  ;;  %v5150_v22 = vperm.slane %v12899_v13, %v12736_v52  ;;  %v12908_v45 = vld [vmem:[#allocation136_spill] sm:$0xff] }
 0xbac   :  { %v12912_v62 = vld [vmem:[#allocation56_spill] sm:$0xff] }
 0xbad   :  { %5109 = vperm.xlu2 %6232, %v4088_v20   ;;  %v5157_v20 = vperm.slane %v12900_v30, %v12737_v19 }
 0xbaf   :  { %v5011_v60 = vpop.permute.xlu2 %5010 }
 0xbb0   :  { %v5445_v56 = vperm.slane %v5011_v60, %v12737_v19  ;;  %v12901_v60 = vld [vmem:[#allocation66_spill] sm:$0xff] }
 0xbb2   :  { %v5446_v54 = vsel %vm2311_vm0, %v5445_v56, %v5444_v42  ;;  %v5154_v42 = vperm.slane %v12901_v60, %v12737_v19 }
 0xbb3   :  { %v5594_v6 = vsel %vm2812_vm12, %v5446_v54, %v5593_v63  ;;  %v5460_v54 = vperm.slane %v10654_v49, %v12737_v19 }
 0xbb4   :  { %v11181_v61 = vsel %vm2814_vm13, %v11068_v27, %v5594_v6  ;;  %v12890_v27 = vld [vmem:[#allocation37_spill] sm:$0xff] }
 0xbb5   :  { %v5138_v24 = vperm.slane %v12890_v27, %v12736_v52  ;;  %v12905_v27 = vld [vmem:[#allocation82_spill] sm:$0xff] }
 0xbb6   :  { %v5216_v49 = vperm.slane %v12905_v27, %v12736_v52 }
 0xbb7   :  { %v5020_v35 = vpop.permute.xlu2 %5019  ;;  %v5140_v46 = vsel %vm2311_vm0, %v5139_v47, %v5138_v24  ;;  %v5211_v47 = vperm.slane %v12903_v9, %v12737_v19  ;;  %v12918_v9 = vld [vmem:[#allocation86_spill] sm:$0xff] }
 0xbb8   :  { %v5450_v21 = vperm.slane %v5020_v35, %v12736_v52  ;;  %v5505_v29 = vsel %vm2802_vm7, %v5143_v57, %v5140_v46  ;;  %v5152_v35 = vsel %vm2311_vm0, %v5151_v16, %v5150_v22  ;;  %v5219_v46 = vperm.slane %v12912_v62, %v12736_v52  ;;  %v12913_v16 = vld [vmem:[#allocation174_spill] sm:$0xff] }
 0xbb9   :  { %v5506_v56 = vsel %vm2804_vm8, %v5146_v4, %v5505_v29  ;;  %v5222_v4 = vperm.slane %v12913_v16, %v12736_v52  ;;  %v12915_v29 = vld [vmem:[#allocation58_spill] sm:$0xff] }
 0xbba   :  { %v5452_v15 = vsel %vm2311_vm0, %v5451_v2, %v5450_v21  ;;  %v12902_v21 = vld [vmem:[#allocation38_spill] sm:$0xff]  ;;  %v5155_v2 = vsel %vm2311_vm0, %v5154_v42, %v5153_v48  ;;  %v12914_v48 = vld [vmem:[#allocation93_spill] sm:$0xff]  ;;  %v5221_v22 = vsel %vm2311_vm0, %v5220_v26, %v5219_v46  ;;  %v5225_v30 = vperm.slane %v12915_v29, %v12736_v52  ;;  %v12916_v42 = vld [vmem:[#allocation91_spill] sm:$0xff] }
 0xbbb   :  { %v5156_v34 = vperm.slane %v12902_v21, %v12736_v52  ;;  %v5223_v13 = vperm.slane %v12914_v48, %v12737_v19 }
 0xbbd   :  { %v5158_v25 = vsel %vm2311_vm0, %v5157_v20, %v5156_v34  ;;  %v5466_v20 = vperm.slane %v11183_v50, %v12737_v19 }
 0xbbf   :  { %v5029_v40 = vpop.permute.xlu2 %5028 }
 0xbc0   :  { %v5454_v37 = vperm.slane %v5029_v40, %v12737_v19  ;;  %v5507_v40 = vsel %vm2806_vm9, %v5149_v33, %v5506_v56  ;;  %v5229_v56 = vperm.slane %v12916_v42, %v12737_v19  ;;  %v5478_v42 = vperm.slane %v10726_v39, %v12737_v19 }
 0xbc1   :  { %v5508_v43 = vsel %vm2808_vm10, %v5152_v35, %v5507_v40  ;;  %v12917_v35 = vld [vmem:[#allocation167_spill] sm:$0xff]  ;;  %v5465_v40 = vperm.slane %v10669_v8, %v12736_v52 }
 0xbc2   :  { %v5455_v5 = vsel %vm2311_vm0, %v5454_v37, %v5453_v12  ;;  %v12904_v12 = vld [vmem:[#allocation61_spill] sm:$0xff]  ;;  %v5509_v32 = vsel %vm2810_vm11, %v5155_v2, %v5508_v43  ;;  %v5226_v21 = vperm.slane %v12917_v35, %v12737_v19 }
 0xbc3   :  { %v5596_v14 = vsel %vm2802_vm7, %v5455_v5, %v5452_v15  ;;  %v5214_v37 = vperm.slane %v12904_v12, %v12737_v19  ;;  %v5159_v15 = vperm.slane %v12908_v45, %v12736_v52  ;;  %v12909_v5 = vld [vmem:[#allocation84_spill] sm:$0xff]  ;;  %v5510_v0 = vsel %vm2812_vm12, %v5158_v25, %v5509_v32 }
 0xbc4   :  { %v5597_v51 = vsel %vm2804_vm8, %v5458_v55, %v5596_v14  ;;  %v5213_v38 = vperm.slane %v12909_v5, %v12736_v52  ;;  %v5217_v55 = vperm.slane %v12910_v36, %v12737_v19  ;;  %v11259_v14 = vpop.permute.xlu1 %5070  ;;  %v5467_v27 = vsel %vm2311_vm0, %v5466_v20, %v5465_v40  ;;  %v12920_v5 = vld [vmem:[#allocation183_spill] sm:$0xff] }
 0xbc5   :  { %v5161_v50 = vsel %vm2311_vm0, %v5160_v3, %v5159_v15 }
 0xbc6   :  { %v5215_v57 = vsel %vm2311_vm0, %v5214_v37, %v5213_v38  ;;  %v5218_v33 = vsel %vm2311_vm0, %v5217_v55, %v5216_v49  ;;  %v5227_v37 = vsel %vm2311_vm0, %v5226_v21, %v5225_v30  ;;  %v5469_v55 = vperm.slane %v10691_v44, %v12737_v19  ;;  %v12921_v30 = vld [vmem:[#allocation107_spill] sm:$0xff] }
 0xbc7   :  { %v5038_v63 = vpop.permute.xlu2 %5037  ;;  %v5471_v44 = vperm.slane %v11203_v17, %v12736_v52  ;;  %v5648_v20 = vsel %vm5626_vm15, %v12921_v30, 0.0 }
 0xbc8   :  { %v5459_v6 = vperm.slane %v5038_v63, %v12736_v52 }
 0xbca   :  { %v5461_v24 = vsel %vm2311_vm0, %v5460_v54, %v5459_v6  ;;  %v5462_v54 = vperm.slane %v11172_v7, %v12736_v52  ;;  %v5511_v7 = vsel %vm2814_vm13, %v5161_v50, %v5510_v0 }
 0xbcb   :  { %v5598_v18 = vsel %vm2806_vm9, %v5461_v24, %v5597_v51  ;;  %v5212_v51 = vsel %vm2311_vm0, %v5211_v47, %v5210_v23  ;;  %v5228_v47 = vperm.slane %v12918_v9, %v12736_v52  ;;  %v5224_v24 = vsel %vm2311_vm0, %v5223_v13, %v5222_v4 }
 0xbcc   :  { %v5526_v60 = vsel %vm2802_vm7, %v5215_v57, %v5212_v51  ;;  %v5232_v23 = vperm.slane %v12919_v53, %v12737_v19  ;;  %v5630_v41 = vsel %vm5626_vm15, %v5511_v7, 0.0  ;;  %v5080_v45 = vpop.permute.xlu1 %5079 }
 0xbcd   :  { %v5527_v34 = vsel %vm2804_vm8, %v5218_v33, %v5526_v60  ;;  %v5230_v8 = vsel %vm2311_vm0, %v5229_v56, %v5228_v47  ;;  %v5474_v60 = vperm.slane %v10711_v1, %v12736_v52  ;;  %v5480_v1 = vperm.slane %v5080_v45, %v12736_v52 }
 0xbce   :  { %v5528_v2 = vsel %vm2806_vm9, %v5221_v22, %v5527_v34 }
 0xbcf   :  { %v5047_v63 = vpop.permute.xlu2 %5046  ;;  %v5529_v26 = vsel %vm2808_vm10, %v5224_v24, %v5528_v2 }
 0xbd0   :  { %v5463_v6 = vperm.slane %v5047_v63, %v12737_v19  ;;  %v5530_v15 = vsel %vm2810_vm11, %v5227_v37, %v5529_v26  ;;  %v5475_v63 = vperm.slane %v11259_v14, %v12737_v19  ;;  %v5657_v14 = vsel %vm5626_vm15, %v10771_v58, 0.0 }
 0xbd1   :  { %v5531_v36 = vsel %vm2812_vm12, %v5230_v8, %v5530_v15  ;;  %v5483_v37 = vperm.slane %v10743_v11, %v12736_v52  ;;  %v5666_v26 = vsel %vm5626_vm15, %v11181_v61, 0.0  ;;  %v6310_v11 = vld [vmem:[%s11533_s0 + $0xb0] sm:$0xff]  ;;  %v6311_v15 = vld [vmem:[%s11533_s0 + $0xb8] sm:$0xff] }
 0xbd2   :  { %v5464_v12 = vsel %vm2311_vm0, %v5463_v6, %v5462_v54  ;;  %v5476_v54 = vsel %vm2311_vm0, %v5475_v63, %v5474_v60 }
 0xbd3   :  { %v5599_v49 = vsel %vm2808_vm10, %v5464_v12, %v5598_v18  ;;  %v5231_v18 = vperm.slane %v12920_v5, %v12736_v52 }
 0xbd4   :  { %v5600_v25 = vsel %vm2810_vm11, %v5467_v27, %v5599_v49  ;;  %v5089_v57 = vpop.permute.xlu1 %5088 }
 0xbd5   :  { %v5233_v3 = vsel %vm2311_vm0, %v5232_v23, %v5231_v18  ;;  %v5484_v39 = vperm.slane %v5089_v57, %v12737_v19 }
 0xbd6   :  { %5631 = vadd.xlane.f32.xlu2 %v5630_v41  ;;  %v5532_v51 = vsel %vm2814_vm13, %v5233_v3, %v5531_v36 }
 0xbd7   :  { %v5056_v38 = vpop.permute.xlu2 %5055  ;;  %v5639_v16 = vsel %vm5626_vm15, %v5532_v51, 0.0  ;;  %v5485_v49 = vsel %vm2311_vm0, %v5484_v39, %v5483_v37  ;;  %v5492_v51 = vperm.slane %v10779_v28, %v12736_v52 }
 0xbd8   :  { %v5468_v43 = vperm.slane %v5056_v38, %v12736_v52  ;;  %v5662_v31 = vpop.xlane.xlu0 %5661  ;;  %v5487_v38 = vperm.slane %v10759_v10, %v12737_v19 }
 0xbd9   :  { %v6058_v46 = vmul.f32 -1.442695, %v5662_v31 }
 0xbda   :  { %v5470_v62 = vsel %vm2311_vm0, %v5469_v55, %v5468_v43 }
 0xbdb   :  { %v5601_v32 = vsel %vm2812_vm12, %v5470_v62, %v5600_v25  ;;  %6247 = vpow2.f32 %v6058_v46 }
 0xbdc   :  { %v5098_v6 = vpop.permute.xlu1 %5097 }
 0xbdd   :  { %v5489_v62 = vperm.slane %v5098_v6, %v12736_v52 }
 0xbde   :  { %5640 = vadd.xlane.f32.xlu2 %v5639_v16 }
 0xbdf   :  { %v5065_v4 = vpop.permute.xlu2 %5064 }
 0xbe0   :  { %v5472_v33 = vperm.slane %v5065_v4, %v12737_v19 }
 0xbe1   :  { %v6248_v0 = vpop.eup %6247 }
 0xbe2   :  { %v5473_v48 = vsel %vm2311_vm0, %v5472_v33, %v5471_v44  ;;  %v5734_v13 = vadd.f32 1.0, %v6248_v0 }
 0xbe3   :  { %v5602_v22 = vsel %vm2814_vm13, %v5473_v48, %v5601_v32 }
 0xbe4   :  { %v5669_v29 = vsel %vm5626_vm15, %v5602_v22, 0.0  ;;  %6249 = vrcp.f32 %v5734_v13  ;;  %v5915_v9 = vand.u32 2147483648, %v5734_v13  ;;  %v5913_v12 = vand.u32 2147483647, %v5734_v13  ;;  %v5107_v25 = vpop.permute.xlu1 %5106 }
 0xbe5   :  { %5670 = vadd.xlane.f32.xlu0 %v5669_v29  ;;  %v5493_v3 = vperm.slane %v5107_v25, %v12737_v19  ;;  %v5496_v22 = vperm.slane %v10804_v59, %v12737_v19 }
 0xbe6   :  { %5649 = vadd.xlane.f32.xlu2 %v5648_v20  ;;  %v5916_v24 = vor.u32 1.1754944e-38, %v5915_v9  ;;  %vm5914_vm1 = vcmp.eq.f32.partialorder %v5913_v12, 8.507059e+37 }
 0xbe7   :  { %v5074_v17 = vpop.permute.xlu2 %5073  ;;  %v5494_v16 = vsel %vm2311_vm0, %v5493_v3, %v5492_v51 }
 0xbe8   :  { %v5477_v56 = vperm.slane %v5074_v17, %v12736_v52 }
 0xbea   :  { %v5479_v35 = vsel %vm2311_vm0, %v5478_v42, %v5477_v56  ;;  %v6250_v21 = vpop.eup %6249 }
 0xbeb   :  { %v5603_v34 = vsel %vm2802_vm7, %v5479_v35, %v5476_v54  ;;  %v5905_v40 = vmul.f32 %v6250_v21, %v5734_v13  ;;  %vm5910_vm6 = vweird.f32 %v6250_v21  ;;  %vm5909_vm7 = vweird.f32 %v5734_v13 }
 0xbec   :  { %vm5911_vm14 = vmor %vm5909_vm7, %vm5910_vm6 }
 0xbed   :  { %v5906_v50 = vsub.f32 1.0, %v5905_v40 }
 0xbee   :  { %5658 = vadd.xlane.f32.xlu2 %v5657_v14 }
 0xbef   :  { %v5083_v47 = vpop.permute.xlu2 %5082  ;;  %v5907_v2 = vmul.f32 %v6250_v21, %v5906_v50 }
 0xbf0   :  { %v5481_v7 = vperm.slane %v5083_v47, %v12737_v19 }
 0xbf1   :  { %v5908_v27 = vadd.f32 %v6250_v21, %v5907_v2  ;;  %v6312_v2 = vld [vmem:[%s11533_s0] sm:$0xff] }
 0xbf2   :  { %v5482_v58 = vsel %vm2311_vm0, %v5481_v7, %v5480_v1  ;;  %v6313_v7 = vld [vmem:[%s11533_s0 + $0x8] sm:$0xff] }
 0xbf3   :  { %v5604_v8 = vsel %vm2804_vm8, %v5482_v58, %v5603_v34  ;;  %v5912_v53 = vsel %vm5911_vm14, %v6250_v21, %v5908_v27 }
 0xbf4   :  { %v5605_v23 = vsel %vm2806_vm9, %v5485_v49, %v5604_v8  ;;  %v5917_v41 = vsel %vm5914_vm1, %v5916_v24, %v5912_v53 }
 0xbf5   :  { %v6001_v45 = vmul.f32 %v6310_v11, %v5917_v41  ;;  %v6002_v5 = vmul.f32 %v6311_v15, %v5917_v41 }
 0xbf6   :  { %5667 = vadd.xlane.f32.xlu2 %v5666_v26 }
 0xbf7   :  { %v5092_v18 = vpop.permute.xlu2 %5091  ;;  %6033 = vst [vmem:[%s11536_s3 + $0xb0] sm:$0xff] %v6001_v45 }
 0xbf8   :  { %v5486_v61 = vperm.slane %v5092_v18, %v12736_v52  ;;  %6034 = vst [vmem:[%s11536_s3 + $0xb8] sm:$0xff] %v6002_v5  ;;  %v6314_v18 = vld [vmem:[%s11533_s0 + $0x30] sm:$0xff] }
 0xbfa   :  { %v5488_v36 = vsel %vm2311_vm0, %v5487_v38, %v5486_v61  ;;  %v6315_v61 = vld [vmem:[%s11533_s0 + $0x38] sm:$0xff] }
 0xbfb   :  { %v5606_v55 = vsel %vm2808_vm10, %v5488_v36, %v5605_v23 }
 0xbfc   :  { %v5629_v43 = vpop.xlane.xlu1 %5628 }
 0xbfd   :  { %v6047_v31 = vmul.f32 -1.442695, %v5629_v43 }
 0xbff   :  { %6251 = vpow2.f32 %v6047_v31  ;;  %v5101_v10 = vpop.permute.xlu2 %5100 }
 0xc00   :  { %v5490_v46 = vperm.slane %v5101_v10, %v12737_v19 }
 0xc02   :  { %v5491_v32 = vsel %vm2311_vm0, %v5490_v46, %v5489_v62 }
 0xc03   :  { %v5607_v4 = vsel %vm2810_vm11, %v5491_v32, %v5606_v55 }
 0xc04   :  { %v5638_v44 = vpop.xlane.xlu1 %5637  ;;  %v5608_v57 = vsel %vm2812_vm12, %v5494_v16, %v5607_v4 }
 0xc05   :  { %v6252_v33 = vpop.eup %6251  ;;  %v6050_v0 = vmul.f32 -1.442695, %v5638_v44 }
 0xc06   :  { %v5723_v48 = vadd.f32 1.0, %v6252_v33 }
 0xc07   :  { %6253 = vpow2.f32 %v6050_v0  ;;  %v5110_v13 = vpop.permute.xlu2 %5109  ;;  %v6317_v0 = vld [vmem:[%s11533_s0 + $0x68] sm:$0xff] }
 0xc08   :  { %6255 = vrcp.f32 %v5723_v48  ;;  %v5495_v28 = vperm.slane %v5110_v13, %v12736_v52  ;;  %v5750_v35 = vand.u32 2147483648, %v5723_v48  ;;  %v5748_v52 = vand.u32 2147483647, %v5723_v48 }
 0xc0a   :  { %v5497_v29 = vsel %vm2311_vm0, %v5496_v22, %v5495_v28  ;;  %vm5744_vm0 = vweird.f32 %v5723_v48  ;;  %v5751_v50 = vor.u32 1.1754944e-38, %v5750_v35  ;;  %vm5749_vm10 = vcmp.eq.f32.partialorder %v5748_v52, 8.507059e+37 }
 0xc0b   :  { %v5609_v20 = vsel %vm2814_vm13, %v5497_v29, %v5608_v57  ;;  %v6316_v57 = vld [vmem:[%s11533_s0 + $0x60] sm:$0xff] }
 0xc0c   :  { %v5647_v30 = vpop.xlane.xlu1 %5646  ;;  %v5672_v60 = vsel %vm5626_vm15, %v5609_v20, 0.0 }
 0xc0d   :  { %v6254_v63 = vpop.eup %6253  ;;  %v6053_v17 = vmul.f32 -1.442695, %v5647_v30  ;;  %5673 = vadd.xlane.f32.xlu1 %v5672_v60 }
 0xc0e   :  { %v6256_v42 = vpop.eup %6255  ;;  %v5726_v56 = vadd.f32 1.0, %v6254_v63 }
 0xc0f   :  { %v5740_v54 = vmul.f32 %v6256_v42, %v5723_v48  ;;  %6257 = vpow2.f32 %v6053_v17  ;;  %vm5745_vm8 = vweird.f32 %v6256_v42 }
 0xc10   :  { %6259 = vrcp.f32 %v5726_v56  ;;  %vm5746_vm9 = vmor %vm5744_vm0, %vm5745_vm8  ;;  %v5795_v58 = vand.u32 2147483648, %v5726_v56  ;;  %v5793_v24 = vand.u32 2147483647, %v5726_v56  ;;  %vm5789_vm12 = vweird.f32 %v5726_v56 }
 0xc11   :  { %v5741_v6 = vsub.f32 1.0, %v5740_v54 }
 0xc12   :  { %v5796_v26 = vor.u32 1.1754944e-38, %v5795_v58  ;;  %vm5794_vm15 = vcmp.eq.f32.partialorder %v5793_v24, 8.507059e+37 }
 0xc13   :  { %v5742_v19 = vmul.f32 %v6256_v42, %v5741_v6  ;;  %v6319_v6 = vld [vmem:[%s11533_s0 + $0x98] sm:$0xff] }
 0xc14   :  { %v5656_v59 = vpop.xlane.xlu1 %5655 }
 0xc15   :  { %v6258_v21 = vpop.eup %6257  ;;  %v5743_v34 = vadd.f32 %v6256_v42, %v5742_v19  ;;  %v6056_v40 = vmul.f32 -1.442695, %v5656_v59 }
 0xc16   :  { %v6260_v14 = vpop.eup %6259  ;;  %v5729_v1 = vadd.f32 1.0, %v6258_v21 }
 0xc17   :  { %v5747_v39 = vsel %vm5746_vm9, %v6256_v42, %v5743_v34  ;;  %v5785_v9 = vmul.f32 %v6260_v14, %v5726_v56  ;;  %6261 = vpow2.f32 %v6056_v40  ;;  %vm5790_vm11 = vweird.f32 %v6260_v14  ;;  %v6318_v56 = vld [vmem:[%s11533_s0 + $0x90] sm:$0xff] }
 0xc18   :  { %v5752_v47 = vsel %vm5749_vm10, %v5751_v50, %v5747_v39  ;;  %6263 = vrcp.f32 %v5729_v1  ;;  %vm5791_vm13 = vmor %vm5789_vm12, %vm5790_vm11  ;;  %v5840_v43 = vand.u32 2147483648, %v5729_v1  ;;  %v5838_v3 = vand.u32 2147483647, %v5729_v1 }
 0xc19   :  { %v5979_v12 = vmul.f32 %v6312_v2, %v5752_v47  ;;  %v5980_v37 = vmul.f32 %v6313_v7, %v5752_v47  ;;  %v5786_v27 = vsub.f32 1.0, %v5785_v9  ;;  %vm5834_vm3 = vweird.f32 %v5729_v1  ;;  %v6321_v9 = vld [vmem:[%s11533_s0 + $0xc8] sm:$0xff] }
 0xc1a   :  { %v5841_v51 = vor.u32 1.1754944e-38, %v5840_v43  ;;  %vm5839_vm5 = vcmp.eq.f32.partialorder %v5838_v3, 8.507059e+37 }
 0xc1b   :  { %6011 = vst [vmem:[%s11536_s3] sm:$0xff] %v5979_v12  ;;  %v5787_v49 = vmul.f32 %v6260_v14, %v5786_v27 }
 0xc1c   :  { %6012 = vst [vmem:[%s11536_s3 + $0x8] sm:$0xff] %v5980_v37  ;;  %v5665_v8 = vpop.xlane.xlu1 %5664 }
 0xc1d   :  { %v6262_v25 = vpop.eup %6261  ;;  %v5788_v53 = vadd.f32 %v6260_v14, %v5787_v49  ;;  %v6059_v23 = vmul.f32 -1.442695, %v5665_v8 }
 0xc1e   :  { %v6264_v41 = vpop.eup %6263  ;;  %v5732_v11 = vadd.f32 1.0, %v6262_v25 }
 0xc1f   :  { %v5792_v45 = vsel %vm5791_vm13, %v6260_v14, %v5788_v53  ;;  %v5830_v15 = vmul.f32 %v6264_v41, %v5729_v1  ;;  %6265 = vpow2.f32 %v6059_v23  ;;  %vm5835_vm2 = vweird.f32 %v6264_v41  ;;  %v6320_v1 = vld [vmem:[%s11533_s0 + $0xc0] sm:$0xff] }
 0xc20   :  { %v5797_v5 = vsel %vm5794_vm15, %v5796_v26, %v5792_v45  ;;  %6267 = vrcp.f32 %v5732_v11  ;;  %vm5836_vm4 = vmor %vm5834_vm3, %vm5835_vm2  ;;  %v5885_v22 = vand.u32 2147483648, %v5732_v11  ;;  %v5883_v29 = vand.u32 2147483647, %v5732_v11 }
 0xc21   :  { %v5985_v38 = vmul.f32 %v6314_v18, %v5797_v5  ;;  %v5986_v36 = vmul.f32 %v6315_v61, %v5797_v5  ;;  %v5831_v55 = vsub.f32 1.0, %v5830_v15  ;;  %vm5879_vm7 = vweird.f32 %v5732_v11 }
 0xc22   :  { %v5886_v63 = vor.u32 1.1754944e-38, %v5885_v22  ;;  %vm5884_vm1 = vcmp.eq.f32.partialorder %v5883_v29, 8.507059e+37 }
 0xc23   :  { %6017 = vst [vmem:[%s11536_s3 + $0x30] sm:$0xff] %v5985_v38  ;;  %v5832_v31 = vmul.f32 %v6264_v41, %v5831_v55 }
 0xc24   :  { %6018 = vst [vmem:[%s11536_s3 + $0x38] sm:$0xff] %v5986_v36 }
 0xc25   :  { %v6266_v10 = vpop.eup %6265  ;;  %v5833_v62 = vadd.f32 %v6264_v41, %v5832_v31 }
 0xc26   :  { %v6268_v46 = vpop.eup %6267  ;;  %v5735_v32 = vadd.f32 1.0, %v6266_v10 }
 0xc27   :  { %v5837_v16 = vsel %vm5836_vm4, %v6264_v41, %v5833_v62  ;;  %v5875_v4 = vmul.f32 %v6268_v46, %v5732_v11  ;;  %vm5880_vm6 = vweird.f32 %v6268_v46 }
 0xc28   :  { %v5842_v44 = vsel %vm5839_vm5, %v5841_v51, %v5837_v16  ;;  %6269 = vrcp.f32 %v5735_v32  ;;  %vm5881_vm14 = vmor %vm5879_vm7, %vm5880_vm6  ;;  %v5930_v52 = vand.u32 2147483648, %v5735_v32  ;;  %v5928_v21 = vand.u32 2147483647, %v5735_v32 }
 0xc29   :  { %v5991_v33 = vmul.f32 %v6316_v57, %v5842_v44  ;;  %v5992_v48 = vmul.f32 %v6317_v0, %v5842_v44  ;;  %v5876_v13 = vsub.f32 1.0, %v5875_v4  ;;  %vm5924_vm0 = vweird.f32 %v5735_v32  ;;  %v6323_v4 = vld [vmem:[%s11533_s0 + $0x18] sm:$0xff] }
 0xc2a   :  { %v5931_v40 = vor.u32 1.1754944e-38, %v5930_v52  ;;  %vm5929_vm10 = vcmp.eq.f32.partialorder %v5928_v21, 8.507059e+37 }
 0xc2b   :  { %6023 = vst [vmem:[%s11536_s3 + $0x60] sm:$0xff] %v5991_v33  ;;  %v5877_v28 = vmul.f32 %v6268_v46, %v5876_v13 }
 0xc2c   :  { %6024 = vst [vmem:[%s11536_s3 + $0x68] sm:$0xff] %v5992_v48 }
 0xc2d   :  { %v5878_v30 = vadd.f32 %v6268_v46, %v5877_v28 }
 0xc2e   :  { %v6270_v20 = vpop.eup %6269 }
 0xc2f   :  { %v5882_v17 = vsel %vm5881_vm14, %v6268_v46, %v5878_v30  ;;  %v5920_v60 = vmul.f32 %v6270_v20, %v5735_v32  ;;  %vm5925_vm8 = vweird.f32 %v6270_v20  ;;  %v6322_v32 = vld [vmem:[%s11533_s0 + $0x10] sm:$0xff] }
 0xc30   :  { %v5887_v42 = vsel %vm5884_vm1, %v5886_v63, %v5882_v17  ;;  %vm5926_vm9 = vmor %vm5924_vm0, %vm5925_vm8 }
 0xc31   :  { %v5997_v54 = vmul.f32 %v6318_v56, %v5887_v42  ;;  %v5998_v35 = vmul.f32 %v6319_v6, %v5887_v42  ;;  %v5921_v19 = vsub.f32 1.0, %v5920_v60  ;;  %v6324_v6 = vld [vmem:[%s11533_s0 + $0x40] sm:$0xff] }
 0xc33   :  { %6029 = vst [vmem:[%s11536_s3 + $0x90] sm:$0xff] %v5997_v54  ;;  %v5922_v59 = vmul.f32 %v6270_v20, %v5921_v19  ;;  %v6325_v19 = vld [vmem:[%s11533_s0 + $0x48] sm:$0xff] }
 0xc34   :  { %6030 = vst [vmem:[%s11536_s3 + $0x98] sm:$0xff] %v5998_v35 }
 0xc35   :  { %v5923_v34 = vadd.f32 %v6270_v20, %v5922_v59 }
 0xc37   :  { %v5927_v14 = vsel %vm5926_vm9, %v6270_v20, %v5923_v34 }
 0xc38   :  { %v5932_v50 = vsel %vm5929_vm10, %v5931_v40, %v5927_v14 }
 0xc39   :  { %v6003_v39 = vmul.f32 %v6320_v1, %v5932_v50  ;;  %v6004_v47 = vmul.f32 %v6321_v9, %v5932_v50 }
 0xc3b   :  { %6035 = vst [vmem:[%s11536_s3 + $0xc0] sm:$0xff] %v6003_v39 }
 0xc3c   :  { %6036 = vst [vmem:[%s11536_s3 + $0xc8] sm:$0xff] %v6004_v47 }
 0xc49   :  { %v5632_v2 = vpop.xlane.xlu2 %5631 }
 0xc4a   :  { %v6048_v12 = vmul.f32 -1.442695, %v5632_v2 }
 0xc4c   :  { %6271 = vpow2.f32 %v6048_v12 }
 0xc51   :  { %v5641_v7 = vpop.xlane.xlu2 %5640 }
 0xc52   :  { %v6272_v37 = vpop.eup %6271  ;;  %v6051_v27 = vmul.f32 -1.442695, %v5641_v7 }
 0xc53   :  { %v5724_v58 = vadd.f32 1.0, %v6272_v37 }
 0xc54   :  { %6273 = vpow2.f32 %v6051_v27 }
 0xc55   :  { %6275 = vrcp.f32 %v5724_v58  ;;  %v5763_v45 = vand.u32 2147483647, %v5724_v58  ;;  %v5765_v15 = vand.u32 2147483648, %v5724_v58  ;;  %vm5759_vm12 = vweird.f32 %v5724_v58 }
 0xc57   :  { %vm5764_vm15 = vcmp.eq.f32.partialorder %v5763_v45, 8.507059e+37  ;;  %v5766_v31 = vor.u32 1.1754944e-38, %v5765_v15  ;;  %v6329_v45 = vld [vmem:[%s11533_s0 + $0x78] sm:$0xff] }
 0xc58   :  { %v5671_v49 = vpop.xlane.xlu0 %5670 }
 0xc59   :  { %v6061_v24 = vmul.f32 -1.442695, %v5671_v49  ;;  %v5650_v8 = vpop.xlane.xlu2 %5649  ;;  %v6326_v49 = vld [vmem:[%s11533_s0 + $0xe0] sm:$0xff] }
 0xc5a   :  { %v6274_v25 = vpop.eup %6273  ;;  %v6054_v53 = vmul.f32 -1.442695, %v5650_v8  ;;  %v6327_v8 = vld [vmem:[%s11533_s0 + $0xe8] sm:$0xff] }
 0xc5b   :  { %v6276_v23 = vpop.eup %6275  ;;  %v5727_v41 = vadd.f32 1.0, %v6274_v25  ;;  %6277 = vpow2.f32 %v6061_v24 }
 0xc5c   :  { %v5755_v26 = vmul.f32 %v6276_v23, %v5724_v58  ;;  %6279 = vpow2.f32 %v6054_v53  ;;  %vm5760_vm11 = vweird.f32 %v6276_v23 }
 0xc5d   :  { %6281 = vrcp.f32 %v5727_v41  ;;  %vm5761_vm13 = vmor %vm5759_vm12, %vm5760_vm11  ;;  %v5810_v33 = vand.u32 2147483648, %v5727_v41  ;;  %v5808_v48 = vand.u32 2147483647, %v5727_v41  ;;  %vm5804_vm3 = vweird.f32 %v5727_v41 }
 0xc5e   :  { %v5756_v11 = vsub.f32 1.0, %v5755_v26  ;;  %v6328_v26 = vld [vmem:[%s11533_s0 + $0x70] sm:$0xff] }
 0xc5f   :  { %v5811_v30 = vor.u32 1.1754944e-38, %v5810_v33  ;;  %vm5809_vm5 = vcmp.eq.f32.partialorder %v5808_v48, 8.507059e+37  ;;  %v6331_v33 = vld [vmem:[%s11533_s0 + $0xa8] sm:$0xff] }
 0xc60   :  { %v5757_v5 = vmul.f32 %v6276_v23, %v5756_v11 }
 0xc61   :  { %v6278_v18 = vpop.eup %6277  ;;  %v5659_v38 = vpop.xlane.xlu2 %5658 }
 0xc62   :  { %v6280_v61 = vpop.eup %6279  ;;  %v5758_v36 = vadd.f32 %v6276_v23, %v5757_v5  ;;  %v5737_v55 = vadd.f32 1.0, %v6278_v18  ;;  %v6057_v46 = vmul.f32 -1.442695, %v5659_v38 }
 0xc63   :  { %v6282_v43 = vpop.eup %6281  ;;  %v11442_v3 = vadd.f32 1.0, %v6280_v61 }
 0xc64   :  { %v5762_v10 = vsel %vm5761_vm13, %v6276_v23, %v5758_v36  ;;  %v5800_v62 = vmul.f32 %v6282_v43, %v5727_v41  ;;  %6283 = vrcp.f32 %v5737_v55  ;;  %vm5805_vm2 = vweird.f32 %v6282_v43 }
 0xc65   :  { %v5767_v51 = vsel %vm5764_vm15, %v5766_v31, %v5762_v10  ;;  %6285 = vrcp.f32 %v11442_v3  ;;  %vm5806_vm4 = vmor %vm5804_vm3, %vm5805_vm2  ;;  %v5958_v59 = vand.u32 2147483647, %v5737_v55  ;;  %v5960_v21 = vand.u32 2147483648, %v5737_v55 }
 0xc66   :  { %v5981_v16 = vmul.f32 %v6322_v32, %v5767_v51  ;;  %v5982_v44 = vmul.f32 %v6323_v4, %v5767_v51  ;;  %v5801_v57 = vsub.f32 1.0, %v5800_v62  ;;  %6287 = vpow2.f32 %v6057_v46 }
 0xc67   :  { %vm5954_vm7 = vweird.f32 %v5737_v55  ;;  %v5853_v50 = vand.u32 2147483647, %v11442_v3  ;;  %v5855_v1 = vand.u32 2147483648, %v11442_v3  ;;  %vm5959_vm8 = vcmp.eq.f32.partialorder %v5958_v59, 8.507059e+37 }
 0xc68   :  { %6013 = vst [vmem:[%s11536_s3 + $0x10] sm:$0xff] %v5981_v16  ;;  %v5802_v0 = vmul.f32 %v6282_v43, %v5801_v57  ;;  %v5961_v2 = vor.u32 1.1754944e-38, %v5960_v21  ;;  %vm5849_vm0 = vweird.f32 %v11442_v3 }
 0xc69   :  { %6014 = vst [vmem:[%s11536_s3 + $0x18] sm:$0xff] %v5982_v44  ;;  %v5668_v13 = vpop.xlane.xlu2 %5667  ;;  %vm5854_vm10 = vcmp.eq.f32.partialorder %v5853_v50, 8.507059e+37  ;;  %v5856_v58 = vor.u32 1.1754944e-38, %v5855_v1  ;;  %v6330_v44 = vld [vmem:[%s11533_s0 + $0xa0] sm:$0xff]  ;;  %v6335_v1 = vld [vmem:[%s11533_s0 + $0xf8] sm:$0xff] }
 0xc6a   :  { %v6284_v22 = vpop.eup %6283  ;;  %v5803_v28 = vadd.f32 %v6282_v43, %v5802_v0  ;;  %v6060_v29 = vmul.f32 -1.442695, %v5668_v13 }
 0xc6b   :  { %v5950_v20 = vmul.f32 %v6284_v22, %v5737_v55  ;;  %v6286_v63 = vpop.eup %6285  ;;  %vm5955_vm6 = vweird.f32 %v6284_v22 }
 0xc6c   :  { %v5807_v17 = vsel %vm5806_vm4, %v6282_v43, %v5803_v28  ;;  %6289 = vpow2.f32 %v6060_v29  ;;  %v5845_v56 = vmul.f32 %v6286_v63, %v11442_v3  ;;  %v6288_v54 = vpop.eup %6287  ;;  %vm5850_vm14 = vweird.f32 %v6286_v63  ;;  %vm5956_vm1 = vmor %vm5954_vm7, %vm5955_vm6 }
 0xc6d   :  { %v5812_v60 = vsel %vm5809_vm5, %v5811_v30, %v5807_v17  ;;  %v5951_v42 = vsub.f32 1.0, %v5950_v20  ;;  %v5733_v14 = vadd.f32 1.0, %v6288_v54  ;;  %vm5851_vm9 = vmor %vm5849_vm0, %vm5850_vm14  ;;  %v6332_v30 = vld [vmem:[%s11533_s0 + $0xd0] sm:$0xff] }
 0xc6e   :  { %v5987_v35 = vmul.f32 %v6324_v6, %v5812_v60  ;;  %v5988_v52 = vmul.f32 %v6325_v19, %v5812_v60  ;;  %v5846_v40 = vsub.f32 1.0, %v5845_v56 }
 0xc6f   :  { %v5952_v34 = vmul.f32 %v6284_v22, %v5951_v42  ;;  %6291 = vrcp.f32 %v5733_v14  ;;  %v5898_v61 = vand.u32 2147483647, %v5733_v14  ;;  %v5900_v36 = vand.u32 2147483648, %v5733_v14 }
 0xc70   :  { %6019 = vst [vmem:[%s11536_s3 + $0x40] sm:$0xff] %v5987_v35  ;;  %v5847_v9 = vmul.f32 %v6286_v63, %v5846_v40  ;;  %vm5894_vm12 = vweird.f32 %v5733_v14 }
 0xc71   :  { %6020 = vst [vmem:[%s11536_s3 + $0x48] sm:$0xff] %v5988_v52  ;;  %v5953_v39 = vadd.f32 %v6284_v22, %v5952_v34  ;;  %vm5899_vm15 = vcmp.eq.f32.partialorder %v5898_v61, 8.507059e+37  ;;  %v5901_v10 = vor.u32 1.1754944e-38, %v5900_v36 }
 0xc72   :  { %v6290_v47 = vpop.eup %6289  ;;  %v5848_v7 = vadd.f32 %v6286_v63, %v5847_v9 }
 0xc73   :  { %v5957_v12 = vsel %vm5956_vm1, %v6284_v22, %v5953_v39  ;;  %v5736_v37 = vadd.f32 1.0, %v6290_v47 }
 0xc74   :  { %v5962_v27 = vsel %vm5959_vm8, %v5961_v2, %v5957_v12  ;;  %v5852_v53 = vsel %vm5851_vm9, %v6286_v63, %v5848_v7  ;;  %v6333_v63 = vld [vmem:[%s11533_s0 + $0xd8] sm:$0xff] }
 0xc75   :  { %v6007_v24 = vmul.f32 %v6326_v49, %v5962_v27  ;;  %v6008_v25 = vmul.f32 %v6327_v8, %v5962_v27  ;;  %6293 = vrcp.f32 %v5736_v37  ;;  %v5857_v23 = vsel %vm5854_vm10, %v5856_v58, %v5852_v53  ;;  %v6292_v41 = vpop.eup %6291 }
 0xc76   :  { %v5993_v11 = vmul.f32 %v6328_v26, %v5857_v23  ;;  %v5994_v15 = vmul.f32 %v6329_v45, %v5857_v23  ;;  %v5890_v5 = vmul.f32 %v6292_v41, %v5733_v14  ;;  %vm5895_vm11 = vweird.f32 %v6292_v41  ;;  %v6334_v14 = vld [vmem:[%s11533_s0 + $0xf0] sm:$0xff] }
 0xc77   :  { %6039 = vst [vmem:[%s11536_s3 + $0xe0] sm:$0xff] %v6007_v24  ;;  %vm5896_vm13 = vmor %vm5894_vm12, %vm5895_vm11  ;;  %v5945_v62 = vand.u32 2147483648, %v5736_v37  ;;  %v5943_v32 = vand.u32 2147483647, %v5736_v37  ;;  %vm5939_vm3 = vweird.f32 %v5736_v37 }
 0xc78   :  { %6040 = vst [vmem:[%s11536_s3 + $0xe8] sm:$0xff] %v6008_v25  ;;  %v5891_v18 = vsub.f32 1.0, %v5890_v5 }
 0xc79   :  { %6025 = vst [vmem:[%s11536_s3 + $0x70] sm:$0xff] %v5993_v11  ;;  %v5946_v22 = vor.u32 1.1754944e-38, %v5945_v62  ;;  %vm5944_vm5 = vcmp.eq.f32.partialorder %v5943_v32, 8.507059e+37 }
 0xc7a   :  { %6026 = vst [vmem:[%s11536_s3 + $0x78] sm:$0xff] %v5994_v15  ;;  %v5892_v55 = vmul.f32 %v6292_v41, %v5891_v18 }
 0xc7b   :  { %v6294_v38 = vpop.eup %6293 }
 0xc7c   :  { %v5935_v43 = vmul.f32 %v6294_v38, %v5736_v37  ;;  %v5893_v31 = vadd.f32 %v6292_v41, %v5892_v55  ;;  %vm5940_vm2 = vweird.f32 %v6294_v38 }
 0xc7d   :  { %vm5941_vm4 = vmor %vm5939_vm3, %vm5940_vm2 }
 0xc7e   :  { %v5936_v3 = vsub.f32 1.0, %v5935_v43  ;;  %v5897_v46 = vsel %vm5896_vm13, %v6292_v41, %v5893_v31 }
 0xc7f   :  { %v5902_v16 = vsel %vm5899_vm15, %v5901_v10, %v5897_v46 }
 0xc80   :  { %v5937_v51 = vmul.f32 %v6294_v38, %v5936_v3  ;;  %v5674_v4 = vpop.xlane.xlu1 %5673  ;;  %v5999_v57 = vmul.f32 %v6330_v44, %v5902_v16  ;;  %v6000_v0 = vmul.f32 %v6331_v33, %v5902_v16 }
 0xc81   :  { %v6062_v13 = vmul.f32 -1.442695, %v5674_v4 }
 0xc82   :  { %v5938_v48 = vadd.f32 %v6294_v38, %v5937_v51  ;;  %6031 = vst [vmem:[%s11536_s3 + $0xa0] sm:$0xff] %v5999_v57 }
 0xc83   :  { %6295 = vpow2.f32 %v6062_v13  ;;  %6032 = vst [vmem:[%s11536_s3 + $0xa8] sm:$0xff] %v6000_v0 }
 0xc84   :  { %v5942_v28 = vsel %vm5941_vm4, %v6294_v38, %v5938_v48 }
 0xc85   :  { %v5947_v29 = vsel %vm5944_vm5, %v5946_v22, %v5942_v28 }
 0xc86   :  { %v6005_v20 = vmul.f32 %v6332_v30, %v5947_v29  ;;  %v6006_v17 = vmul.f32 %v6333_v63, %v5947_v29 }
 0xc88   :  { %6037 = vst [vmem:[%s11536_s3 + $0xd0] sm:$0xff] %v6005_v20 }
 0xc89   :  { %6038 = vst [vmem:[%s11536_s3 + $0xd8] sm:$0xff] %v6006_v17  ;;  %v6296_v60 = vpop.eup %6295 }
 0xc8a   :  { %v5738_v42 = vadd.f32 1.0, %v6296_v60 }
 0xc8c   :  { %6297 = vrcp.f32 %v5738_v42  ;;  %v5975_v35 = vand.u32 2147483648, %v5738_v42  ;;  %v5973_v52 = vand.u32 2147483647, %v5738_v42  ;;  %vm5969_vm7 = vweird.f32 %v5738_v42 }
 0xc8e   :  { %v5976_v21 = vor.u32 1.1754944e-38, %v5975_v35  ;;  %vm5974_vm1 = vcmp.eq.f32.partialorder %v5973_v52, 8.507059e+37 }
 0xc92   :  { %v6298_v56 = vpop.eup %6297 }
 0xc93   :  { %v5965_v54 = vmul.f32 %v6298_v56, %v5738_v42  ;;  %vm5970_vm6 = vweird.f32 %v6298_v56 }
 0xc94   :  { %vm5971_vm14 = vmor %vm5969_vm7, %vm5970_vm6 }
 0xc95   :  { %v5966_v6 = vsub.f32 1.0, %v5965_v54 }
 0xc97   :  { %v5967_v19 = vmul.f32 %v6298_v56, %v5966_v6 }
 0xc99   :  { %v5968_v59 = vadd.f32 %v6298_v56, %v5967_v19 }
 0xc9b   :  { %v5972_v34 = vsel %vm5971_vm14, %v6298_v56, %v5968_v59 }
 0xc9c   :  { %v5977_v40 = vsel %vm5974_vm1, %v5976_v21, %v5972_v34 }
 0xc9d   :  { %v6009_v50 = vmul.f32 %v6334_v14, %v5977_v40  ;;  %v6010_v39 = vmul.f32 %v6335_v1, %v5977_v40 }
 0xc9f   :  { %6041 = vst [vmem:[%s11536_s3 + $0xf0] sm:$0xff] %v6009_v50 }
 0xca0   :  { %6042 = vst [vmem:[%s11536_s3 + $0xf8] sm:$0xff] %v6010_v39 }

</bundles_post_ra>
